<compile_context>
chip_gen: v7x
topology: tpu7x:2x2x1
jax: 0.10.0
libtpu: 0.0.40
codegen_flags: <defaults>
</compile_context>

<pallas_src>
from functools import partial

import jax
import jax.numpy as jnp
from jax import lax
from jax.experimental import pallas as pl
from jax.experimental.pallas import tpu as pltpu

# ----------------------------------------------------------------------------
# Static configuration (scaled-down, valid OrthCaps_S)
# ----------------------------------------------------------------------------
CIN = 3                      # input image channels
CSTEM = 16                   # conv stem output channels (reference: 64)
P = 8                        # number of capsules (n)
CCAPS = 16                   # capsule dim (d) == depthwise channels
KCAPS = 9                    # capsule conv kernel size
IMG = 32                     # input spatial size
FH = FW = IMG // 2           # stem output spatial (stride 2, pad 1)      -> 16
COH = COW = FH - KCAPS + 1   # capsule conv output spatial                -> 8
PC = P * CCAPS               # lane-packed (capsule, channel) axis        -> 128
HW = COH * COW               # flattened capsule spatial                  -> 64
D = CCAPS * HW               # flattened capsule vector length            -> 1024
THETA = 0.7


# ----------------------------------------------------------------------------
# Kernel 1: conv stem (MXU matmul) + BN + ReLU + depthwise 9x9 capsule conv
#           + modified squash, fused; stores (B, n, d, H*W) lane-dense.
# ----------------------------------------------------------------------------
def _stem_caps_kernel(p_ref, wrep_ref, scale_ref, shift_ref, wtap_ref, bias_ref, o_ref):
    # p_ref     : (1, FH*FW, 9*CIN)   stem im2col patches
    # wrep_ref  : (9*CIN, PC)         stem weights, channels lane-replicated for P capsules
    # scale_ref : (1, PC)             fused BN scale  (gamma / sqrt(var + eps))
    # shift_ref : (1, PC)             fused BN shift  (incl. conv bias)
    # wtap_ref  : (KCAPS*KCAPS, PC)   depthwise capsule weights, one row per 9x9 tap
    # bias_ref  : (1, PC)             capsule conv bias
    # o_ref     : (1, P, CCAPS, HW)

    # --- conv stem as a single MXU matmul (N = 128 lanes), BN + ReLU -----------
    feat = jnp.dot(p_ref[0], wrep_ref[...], preferred_element_type=jnp.float32)  # (256, 128)
    feat = jnp.maximum(feat * scale_ref[...] + shift_ref[...], 0.0)
    feat = feat.reshape(FH, FW, PC)                                              # (16, 16, 128)

    # --- 9x9 depthwise capsule conv: 81-tap accumulate, lane-dense accumulator -
    acc = jnp.broadcast_to(bias_ref[...].reshape(1, 1, PC), (COH, COW, PC))      # (8, 8, 128)
    for kh in range(KCAPS):
        rows = feat[kh:kh + COH]                       # (8, 16, 128)  page-dim slice
        for kw in range(KCAPS):
            tap = rows[:, kw:kw + COW, :]              # (8, 8, 128)   sublane slice
            acc = acc + tap * wtap_ref[kh * KCAPS + kw]

    # --- modified squash over the W axis (== PyTorch dim=-1 of (B, n, d, H, W)) -
    sq = jnp.sum(acc * acc, axis=1, keepdims=True)     # (8, 1, 128)
    norm = jnp.sqrt(sq)
    coef = 1.0 - 1.0 / (jnp.exp(jnp.minimum(norm, 80.0)) + 1e-20)  # clamp avoids f32 inf
    u = (coef / (norm + 1e-20)) * acc                  # (8, 8, 128)  [oh, ow, p*16+c]

    # --- single relayout: (oh, ow, p*16+c) -> (p, c, oh*8+ow) -------------------
    u2 = jnp.transpose(u.reshape(COH * COW, PC))       # (128, 64)
    o_ref[0] = u2.reshape(P, CCAPS, HW)                # (8, 16, 64)


def stem_primary_caps(patches, wrep, scale, shift, wtap, bias):
    B = patches.shape[0]
    return pl.pallas_call(
        _stem_caps_kernel,
        out_shape=jax.ShapeDtypeStruct((B, P, CCAPS, HW), jnp.float32),
        grid=(B,),
        in_specs=[
            pl.BlockSpec((1, FH * FW, 9 * CIN), lambda b: (b, 0, 0)),
            pl.BlockSpec((9 * CIN, PC), lambda b: (0, 0)),
            pl.BlockSpec((1, PC), lambda b: (0, 0)),
            pl.BlockSpec((1, PC), lambda b: (0, 0)),
            pl.BlockSpec((KCAPS * KCAPS, PC), lambda b: (0, 0)),
            pl.BlockSpec((1, PC), lambda b: (0, 0)),
        ],
        out_specs=pl.BlockSpec((1, P, CCAPS, HW), lambda b: (b, 0, 0, 0)),
        compiler_params=pltpu.CompilerParams(dimension_semantics=("parallel",)),
    )(patches, wrep, scale, shift, wtap, bias)


# ----------------------------------------------------------------------------
# Kernel 2: PrunedCaps — Gram/cosine matmul, ascending-norm ranking, prune mask,
#           and sorted+compacted gather as a selection-matrix matmul (0-padded).
# ----------------------------------------------------------------------------
def _prune_compact_kernel(u_ref, out_ref, keep_ref, *, theta):
    u = u_ref[0]                                         # (n, D)
    n = u.shape[0]
    g = lax.dot_general(u, u, (((1,), (1,)), ((), ())),
                        preferred_element_type=jnp.float32)          # (n, n) Gram
    i_idx = lax.broadcasted_iota(jnp.int32, (n, n), 0)
    j_idx = lax.broadcasted_iota(jnp.int32, (n, n), 1)
    eye = jnp.where(i_idx == j_idx, 1.0, 0.0)
    sq_col = jnp.sum(g * eye, axis=1, keepdims=True)     # (n, 1) ||u_i||^2 (row capsule)
    sq_row = jnp.sum(g * eye, axis=0, keepdims=True)     # (1, n) ||u_j||^2 (col capsule)
    csim = g / ((jnp.sqrt(sq_col) + 1e-8) * (jnp.sqrt(sq_row) + 1e-8))
    hot = csim > theta

    sq_i = jnp.broadcast_to(sq_col, (n, n))
    sq_j = jnp.broadcast_to(sq_row, (n, n))
    # strict total order of the ascending-norm sort (stable tie-break by index)
    j_after_i = (sq_j > sq_i) | ((sq_j == sq_i) & (j_idx > i_idx))
    i_after_j = (sq_i > sq_j) | ((sq_i == sq_j) & (i_idx > j_idx))
    i_before_j = (sq_i < sq_j) | ((sq_i == sq_j) & (i_idx < j_idx))

    # a capsule is pruned iff some LATER (higher-norm) capsule is too similar
    pruned_col = jnp.max(jnp.where(j_after_i & hot, 1.0, 0.0), axis=1, keepdims=True)
    keep_col = 1.0 - pruned_col                          # (n, 1) keep flag of row capsule
    pruned_row = jnp.max(jnp.where(i_after_j & hot, 1.0, 0.0), axis=0, keepdims=True)
    keep_row = 1.0 - pruned_row                          # (1, n) keep flag of col capsule

    # destination slot of col capsule j = # kept capsules strictly before it in sort order
    dest = jnp.sum(jnp.where(i_before_j, 1.0, 0.0) * keep_col, axis=0, keepdims=True)  # (1, n)
    sel = jnp.where(jnp.broadcast_to(dest, (n, n)) == i_idx.astype(jnp.float32), 1.0, 0.0) \
        * jnp.broadcast_to(keep_row, (n, n))             # (n, n) compaction matrix

    out_ref[0] = jnp.dot(sel, u, preferred_element_type=jnp.float32)  # compacted, zero-padded
    keep_ref[0] = keep_row


def prune_compact(u_flat, theta=THETA):
    B, n, d_ = u_flat.shape
    kernel = partial(_prune_compact_kernel, theta=theta)
    out, keep = pl.pallas_call(
        kernel,
        out_shape=(jax.ShapeDtypeStruct((B, n, d_), jnp.float32),
                   jax.ShapeDtypeStruct((B, 1, n), jnp.float32)),
        grid=(B,),
        in_specs=[pl.BlockSpec((1, n, d_), lambda b: (b, 0, 0))],
        out_specs=(pl.BlockSpec((1, n, d_), lambda b: (b, 0, 0)),
                   pl.BlockSpec((1, 1, n), lambda b: (b, 0, 0))),
        compiler_params=pltpu.CompilerParams(dimension_semantics=("parallel",)),
    )(u_flat)
    return out, keep


# ----------------------------------------------------------------------------
# Host-side glue (all on-device XLA except the one scalar n_prime sync)
# ----------------------------------------------------------------------------
def _stem_im2col(x_nchw):
    B = x_nchw.shape[0]
    x = jnp.transpose(x_nchw, (0, 2, 3, 1))                               # NHWC
    xp = jnp.pad(x, ((0, 0), (1, 1), (1, 1), (0, 0)))
    cols = []
    for kh in range(3):
        for kw in range(3):
            cols.append(xp[:, kh:kh + 2 * FH:2, kw:kw + 2 * FW:2, :])
    return jnp.stack(cols, axis=3).reshape(B, FH * FW, 9 * CIN)           # (B, 256, 27)


@partial(jax.jit, static_argnames=("theta",))
def orthcaps_device(x, params, theta=THETA):
    eps = 1e-5
    # fold conv bias + eval BatchNorm into scale/shift, lane-replicate for the P capsules
    inv = params["bn_gamma"] / jnp.sqrt(params["bn_var"] + eps)
    scale = jnp.tile(inv.reshape(1, CSTEM), (1, P))                                   # (1, 128)
    shift = jnp.tile((params["bn_beta"] +
                      (params["conv_b"] - params["bn_mean"]) * inv).reshape(1, CSTEM),
                     (1, P))                                                          # (1, 128)
    wm = jnp.transpose(params["conv_w"], (2, 3, 1, 0)).reshape(9 * CIN, CSTEM)        # (27, 16)
    wrep = jnp.tile(wm, (1, P))                                                       # (27, 128)
    # depthwise capsule weights: one (p*16+c) row per 9x9 tap
    w_pckk = params["caps_w"][:, :, 0, :, :]                                          # (P, C, 9, 9)
    wtap = jnp.transpose(w_pckk, (2, 3, 0, 1)).reshape(KCAPS * KCAPS, PC)             # (81, 128)
    bias = params["caps_b"].reshape(1, PC)

    patches = _stem_im2col(x)
    u_caps = stem_primary_caps(patches, wrep, scale, shift, wtap, bias)               # (B, 8, 16, 64)
    u_flat = u_caps.reshape(x.shape[0], P, D)                                         # free reshape
    u_compact, keep = prune_compact(u_flat, theta)
    return u_compact, keep


def orthcaps_s_forward(x, params, theta=THETA):
    u_compact, keep = orthcaps_device(x, params, theta=theta)
    # dynamic n_prime (max kept capsules across batch) -> one tiny scalar host sync.
    n_prime = int(jnp.max(jnp.sum(keep, axis=(-2, -1))))
    B = u_compact.shape[0]
    # reference: .view(B, n_prime, d, W, H) of the flat (d*H*W) vectors
    return u_compact[:, :n_prime].reshape(B, n_prime, CCAPS, COW, COH)


if __name__ == "__main__":
    key = jax.random.PRNGKey(0)
    ks = jax.random.split(key, 4)

    B = 2
    x = jax.random.normal(ks[0], (B, CIN, IMG, IMG), jnp.float32)   # NCHW input

    params = {
        # conv stem: Conv2d(3 -> 16, k=3, s=2, p=1)
        "conv_w": jax.random.normal(ks[1], (CSTEM, CIN, 3, 3), jnp.float32)
                  * jnp.sqrt(2.0 / (CIN * 9)),
        "conv_b": jnp.zeros((CSTEM,), jnp.float32),
        # BatchNorm2d(16), eval mode, PyTorch default init
        "bn_gamma": jnp.ones((CSTEM,), jnp.float32),
        "bn_beta": jnp.zeros((CSTEM,), jnp.float32),
        "bn_mean": jnp.zeros((CSTEM,), jnp.float32),
        "bn_var": jnp.ones((CSTEM,), jnp.float32),
        # 8 depthwise capsule convs: each weight (16, 1, 9, 9), bias (16,)
        "caps_w": jax.random.normal(ks[2], (P, CCAPS, 1, KCAPS, KCAPS), jnp.float32) * 0.05,
        "caps_b": jax.random.normal(ks[3], (P, CCAPS), jnp.float32) * 0.01,
    }

    u_pruned = orthcaps_s_forward(x, params)
    u_pruned = jax.block_until_ready(u_pruned)
    assert u_pruned.ndim == 5 and u_pruned.shape[0] == B and u_pruned.shape[2] == CCAPS
    assert 1 <= u_pruned.shape[1] <= P
    assert bool(jnp.all(jnp.isfinite(u_pruned)))
    print("KERNEL_OK")
</pallas_src>

<mosaic_0001>
module attributes {stable_mosaic.version = 11 : i64} {
  func.func @_stem_caps_kernel(%arg0: i32, %arg1: memref<1x256x27xf32, #tpu.memory_space<vmem>>, %arg2: memref<27x128xf32, #tpu.memory_space<vmem>>, %arg3: memref<1x128xf32, #tpu.memory_space<vmem>>, %arg4: memref<1x128xf32, #tpu.memory_space<vmem>>, %arg5: memref<81x128xf32, #tpu.memory_space<vmem>>, %arg6: memref<1x128xf32, #tpu.memory_space<vmem>>, %arg7: memref<1x8x16x64xf32, #tpu.memory_space<vmem>>) attributes {dimension_semantics = [#tpu.dimension_semantics<parallel>], iteration_bounds = array<i64: 2>, scalar_prefetch = 0 : i64, scratch_operands = 0 : i64, tpu.core_type = #tpu.core_type<tc>, window_params = [{transform_indices = @transform_0, window_bounds = array<i64: 1, 256, 27>}, {pipeline_mode = #tpu.pipeline_mode<synchronous>, transform_indices = @transform_1, window_bounds = array<i64: 27, 128>}, {pipeline_mode = #tpu.pipeline_mode<synchronous>, transform_indices = @transform_2, window_bounds = array<i64: 1, 128>}, {pipeline_mode = #tpu.pipeline_mode<synchronous>, transform_indices = @transform_3, window_bounds = array<i64: 1, 128>}, {pipeline_mode = #tpu.pipeline_mode<synchronous>, transform_indices = @transform_4, window_bounds = array<i64: 81, 128>}, {pipeline_mode = #tpu.pipeline_mode<synchronous>, transform_indices = @transform_5, window_bounds = array<i64: 1, 128>}, {transform_indices = @transform_6, window_bounds = array<i64: 1, 8, 16, 64>}]} {
    %c0 = arith.constant 0 : index
    %c0_0 = arith.constant 0 : index
    %c0_1 = arith.constant 0 : index
    %0 = vector.load %arg1[%c0, %c0_0, %c0_1] : memref<1x256x27xf32, #tpu.memory_space<vmem>>, vector<1x256x27xf32>
    %1 = vector.shape_cast %0 : vector<1x256x27xf32> to vector<256x27xf32>
    %c0_2 = arith.constant 0 : index
    %c0_3 = arith.constant 0 : index
    %2 = vector.load %arg2[%c0_2, %c0_3] : memref<27x128xf32, #tpu.memory_space<vmem>>, vector<27x128xf32>
    %cst = arith.constant dense<0.000000e+00> : vector<256x128xf32>
    %3 = tpu.matmul %1, %2, %cst {dimension_numbers = #tpu.dot_dimension_numbers<[1], [0], [0], [1], [0, 0, 1, 1], [], []>} : vector<256x27xf32>, vector<27x128xf32>, vector<256x128xf32> -> vector<256x128xf32>
    %c0_4 = arith.constant 0 : index
    %c0_5 = arith.constant 0 : index
    %4 = vector.load %arg3[%c0_4, %c0_5] : memref<1x128xf32, #tpu.memory_space<vmem>>, vector<1x128xf32>
    %5 = vector.broadcast %4 : vector<1x128xf32> to vector<256x128xf32>
    %6 = arith.mulf %3, %5 : vector<256x128xf32>
    %c0_6 = arith.constant 0 : index
    %c0_7 = arith.constant 0 : index
    %7 = vector.load %arg4[%c0_6, %c0_7] : memref<1x128xf32, #tpu.memory_space<vmem>>, vector<1x128xf32>
    %8 = vector.broadcast %7 : vector<1x128xf32> to vector<256x128xf32>
    %9 = arith.addf %6, %8 : vector<256x128xf32>
    %cst_8 = arith.constant 0.000000e+00 : f32
    %10 = vector.broadcast %cst_8 : f32 to vector<256x128xf32>
    %11 = arith.maximumf %9, %10 : vector<256x128xf32>
    %12 = vector.shape_cast %11 : vector<256x128xf32> to vector<16x16x128xf32>
    %c0_9 = arith.constant 0 : index
    %c0_10 = arith.constant 0 : index
    %13 = vector.load %arg6[%c0_9, %c0_10] : memref<1x128xf32, #tpu.memory_space<vmem>>, vector<1x128xf32>
    %14 = vector.shape_cast %13 : vector<1x128xf32> to vector<1x1x128xf32>
    %15 = vector.shape_cast %14 : vector<1x1x128xf32> to vector<1x1x128xf32>
    %16 = vector.broadcast %15 : vector<1x1x128xf32> to vector<8x8x128xf32>
    %17 = vector.extract_strided_slice %12 {offsets = [0, 0, 0], sizes = [8, 16, 128], strides = [1, 1, 1]} : vector<16x16x128xf32> to vector<8x16x128xf32>
    %18 = vector.extract_strided_slice %17 {offsets = [0, 0, 0], sizes = [8, 8, 128], strides = [1, 1, 1]} : vector<8x16x128xf32> to vector<8x8x128xf32>
    %c0_11 = arith.constant 0 : index
    %c0_12 = arith.constant 0 : index
    %19 = vector.load %arg5[%c0_11, %c0_12] : memref<81x128xf32, #tpu.memory_space<vmem>>, vector<1x128xf32>
    %20 = vector.shape_cast %19 : vector<1x128xf32> to vector<128xf32>
    %21 = vector.shape_cast %20 : vector<128xf32> to vector<1x1x128xf32>
    %22 = vector.broadcast %21 : vector<1x1x128xf32> to vector<8x8x128xf32>
    %23 = arith.mulf %18, %22 : vector<8x8x128xf32>
    %24 = arith.addf %16, %23 : vector<8x8x128xf32>
    %25 = vector.extract_strided_slice %17 {offsets = [0, 1, 0], sizes = [8, 8, 128], strides = [1, 1, 1]} : vector<8x16x128xf32> to vector<8x8x128xf32>
    %c1 = arith.constant 1 : index
    %c0_13 = arith.constant 0 : index
    %26 = vector.load %arg5[%c1, %c0_13] : memref<81x128xf32, #tpu.memory_space<vmem>>, vector<1x128xf32>
    %27 = vector.shape_cast %26 : vector<1x128xf32> to vector<128xf32>
    %28 = vector.shape_cast %27 : vector<128xf32> to vector<1x1x128xf32>
    %29 = vector.broadcast %28 : vector<1x1x128xf32> to vector<8x8x128xf32>
    %30 = arith.mulf %25, %29 : vector<8x8x128xf32>
    %31 = arith.addf %24, %30 : vector<8x8x128xf32>
    %32 = vector.extract_strided_slice %17 {offsets = [0, 2, 0], sizes = [8, 8, 128], strides = [1, 1, 1]} : vector<8x16x128xf32> to vector<8x8x128xf32>
    %c2 = arith.constant 2 : index
    %c0_14 = arith.constant 0 : index
    %33 = vector.load %arg5[%c2, %c0_14] : memref<81x128xf32, #tpu.memory_space<vmem>>, vector<1x128xf32>
    %34 = vector.shape_cast %33 : vector<1x128xf32> to vector<128xf32>
    %35 = vector.shape_cast %34 : vector<128xf32> to vector<1x1x128xf32>
    %36 = vector.broadcast %35 : vector<1x1x128xf32> to vector<8x8x128xf32>
    %37 = arith.mulf %32, %36 : vector<8x8x128xf32>
    %38 = arith.addf %31, %37 : vector<8x8x128xf32>
    %39 = vector.extract_strided_slice %17 {offsets = [0, 3, 0], sizes = [8, 8, 128], strides = [1, 1, 1]} : vector<8x16x128xf32> to vector<8x8x128xf32>
    %c3 = arith.constant 3 : index
    %c0_15 = arith.constant 0 : index
    %40 = vector.load %arg5[%c3, %c0_15] : memref<81x128xf32, #tpu.memory_space<vmem>>, vector<1x128xf32>
    %41 = vector.shape_cast %40 : vector<1x128xf32> to vector<128xf32>
    %42 = vector.shape_cast %41 : vector<128xf32> to vector<1x1x128xf32>
    %43 = vector.broadcast %42 : vector<1x1x128xf32> to vector<8x8x128xf32>
    %44 = arith.mulf %39, %43 : vector<8x8x128xf32>
    %45 = arith.addf %38, %44 : vector<8x8x128xf32>
    %46 = vector.extract_strided_slice %17 {offsets = [0, 4, 0], sizes = [8, 8, 128], strides = [1, 1, 1]} : vector<8x16x128xf32> to vector<8x8x128xf32>
    %c4 = arith.constant 4 : index
    %c0_16 = arith.constant 0 : index
    %47 = vector.load %arg5[%c4, %c0_16] : memref<81x128xf32, #tpu.memory_space<vmem>>, vector<1x128xf32>
    %48 = vector.shape_cast %47 : vector<1x128xf32> to vector<128xf32>
    %49 = vector.shape_cast %48 : vector<128xf32> to vector<1x1x128xf32>
    %50 = vector.broadcast %49 : vector<1x1x128xf32> to vector<8x8x128xf32>
    %51 = arith.mulf %46, %50 : vector<8x8x128xf32>
    %52 = arith.addf %45, %51 : vector<8x8x128xf32>
    %53 = vector.extract_strided_slice %17 {offsets = [0, 5, 0], sizes = [8, 8, 128], strides = [1, 1, 1]} : vector<8x16x128xf32> to vector<8x8x128xf32>
    %c5 = arith.constant 5 : index
    %c0_17 = arith.constant 0 : index
    %54 = vector.load %arg5[%c5, %c0_17] : memref<81x128xf32, #tpu.memory_space<vmem>>, vector<1x128xf32>
    %55 = vector.shape_cast %54 : vector<1x128xf32> to vector<128xf32>
    %56 = vector.shape_cast %55 : vector<128xf32> to vector<1x1x128xf32>
    %57 = vector.broadcast %56 : vector<1x1x128xf32> to vector<8x8x128xf32>
    %58 = arith.mulf %53, %57 : vector<8x8x128xf32>
    %59 = arith.addf %52, %58 : vector<8x8x128xf32>
    %60 = vector.extract_strided_slice %17 {offsets = [0, 6, 0], sizes = [8, 8, 128], strides = [1, 1, 1]} : vector<8x16x128xf32> to vector<8x8x128xf32>
    %c6 = arith.constant 6 : index
    %c0_18 = arith.constant 0 : index
    %61 = vector.load %arg5[%c6, %c0_18] : memref<81x128xf32, #tpu.memory_space<vmem>>, vector<1x128xf32>
    %62 = vector.shape_cast %61 : vector<1x128xf32> to vector<128xf32>
    %63 = vector.shape_cast %62 : vector<128xf32> to vector<1x1x128xf32>
    %64 = vector.broadcast %63 : vector<1x1x128xf32> to vector<8x8x128xf32>
    %65 = arith.mulf %60, %64 : vector<8x8x128xf32>
    %66 = arith.addf %59, %65 : vector<8x8x128xf32>
    %67 = vector.extract_strided_slice %17 {offsets = [0, 7, 0], sizes = [8, 8, 128], strides = [1, 1, 1]} : vector<8x16x128xf32> to vector<8x8x128xf32>
    %c7 = arith.constant 7 : index
    %c0_19 = arith.constant 0 : index
    %68 = vector.load %arg5[%c7, %c0_19] : memref<81x128xf32, #tpu.memory_space<vmem>>, vector<1x128xf32>
    %69 = vector.shape_cast %68 : vector<1x128xf32> to vector<128xf32>
    %70 = vector.shape_cast %69 : vector<128xf32> to vector<1x1x128xf32>
    %71 = vector.broadcast %70 : vector<1x1x128xf32> to vector<8x8x128xf32>
    %72 = arith.mulf %67, %71 : vector<8x8x128xf32>
    %73 = arith.addf %66, %72 : vector<8x8x128xf32>
    %74 = vector.extract_strided_slice %17 {offsets = [0, 8, 0], sizes = [8, 8, 128], strides = [1, 1, 1]} : vector<8x16x128xf32> to vector<8x8x128xf32>
    %c8 = arith.constant 8 : index
    %c0_20 = arith.constant 0 : index
    %75 = vector.load %arg5[%c8, %c0_20] : memref<81x128xf32, #tpu.memory_space<vmem>>, vector<1x128xf32>
    %76 = vector.shape_cast %75 : vector<1x128xf32> to vector<128xf32>
    %77 = vector.shape_cast %76 : vector<128xf32> to vector<1x1x128xf32>
    %78 = vector.broadcast %77 : vector<1x1x128xf32> to vector<8x8x128xf32>
    %79 = arith.mulf %74, %78 : vector<8x8x128xf32>
    %80 = arith.addf %73, %79 : vector<8x8x128xf32>
    %81 = vector.extract_strided_slice %12 {offsets = [1, 0, 0], sizes = [8, 16, 128], strides = [1, 1, 1]} : vector<16x16x128xf32> to vector<8x16x128xf32>
    %82 = vector.extract_strided_slice %81 {offsets = [0, 0, 0], sizes = [8, 8, 128], strides = [1, 1, 1]} : vector<8x16x128xf32> to vector<8x8x128xf32>
    %c9 = arith.constant 9 : index
    %c0_21 = arith.constant 0 : index
    %83 = vector.load %arg5[%c9, %c0_21] : memref<81x128xf32, #tpu.memory_space<vmem>>, vector<1x128xf32>
    %84 = vector.shape_cast %83 : vector<1x128xf32> to vector<128xf32>
    %85 = vector.shape_cast %84 : vector<128xf32> to vector<1x1x128xf32>
    %86 = vector.broadcast %85 : vector<1x1x128xf32> to vector<8x8x128xf32>
    %87 = arith.mulf %82, %86 : vector<8x8x128xf32>
    %88 = arith.addf %80, %87 : vector<8x8x128xf32>
    %89 = vector.extract_strided_slice %81 {offsets = [0, 1, 0], sizes = [8, 8, 128], strides = [1, 1, 1]} : vector<8x16x128xf32> to vector<8x8x128xf32>
    %c10 = arith.constant 10 : index
    %c0_22 = arith.constant 0 : index
    %90 = vector.load %arg5[%c10, %c0_22] : memref<81x128xf32, #tpu.memory_space<vmem>>, vector<1x128xf32>
    %91 = vector.shape_cast %90 : vector<1x128xf32> to vector<128xf32>
    %92 = vector.shape_cast %91 : vector<128xf32> to vector<1x1x128xf32>
    %93 = vector.broadcast %92 : vector<1x1x128xf32> to vector<8x8x128xf32>
    %94 = arith.mulf %89, %93 : vector<8x8x128xf32>
    %95 = arith.addf %88, %94 : vector<8x8x128xf32>
    %96 = vector.extract_strided_slice %81 {offsets = [0, 2, 0], sizes = [8, 8, 128], strides = [1, 1, 1]} : vector<8x16x128xf32> to vector<8x8x128xf32>
    %c11 = arith.constant 11 : index
    %c0_23 = arith.constant 0 : index
    %97 = vector.load %arg5[%c11, %c0_23] : memref<81x128xf32, #tpu.memory_space<vmem>>, vector<1x128xf32>
    %98 = vector.shape_cast %97 : vector<1x128xf32> to vector<128xf32>
    %99 = vector.shape_cast %98 : vector<128xf32> to vector<1x1x128xf32>
    %100 = vector.broadcast %99 : vector<1x1x128xf32> to vector<8x8x128xf32>
    %101 = arith.mulf %96, %100 : vector<8x8x128xf32>
    %102 = arith.addf %95, %101 : vector<8x8x128xf32>
    %103 = vector.extract_strided_slice %81 {offsets = [0, 3, 0], sizes = [8, 8, 128], strides = [1, 1, 1]} : vector<8x16x128xf32> to vector<8x8x128xf32>
    %c12 = arith.constant 12 : index
    %c0_24 = arith.constant 0 : index
    %104 = vector.load %arg5[%c12, %c0_24] : memref<81x128xf32, #tpu.memory_space<vmem>>, vector<1x128xf32>
    %105 = vector.shape_cast %104 : vector<1x128xf32> to vector<128xf32>
    %106 = vector.shape_cast %105 : vector<128xf32> to vector<1x1x128xf32>
    %107 = vector.broadcast %106 : vector<1x1x128xf32> to vector<8x8x128xf32>
    %108 = arith.mulf %103, %107 : vector<8x8x128xf32>
    %109 = arith.addf %102, %108 : vector<8x8x128xf32>
    %110 = vector.extract_strided_slice %81 {offsets = [0, 4, 0], sizes = [8, 8, 128], strides = [1, 1, 1]} : vector<8x16x128xf32> to vector<8x8x128xf32>
    %c13 = arith.constant 13 : index
    %c0_25 = arith.constant 0 : index
    %111 = vector.load %arg5[%c13, %c0_25] : memref<81x128xf32, #tpu.memory_space<vmem>>, vector<1x128xf32>
    %112 = vector.shape_cast %111 : vector<1x128xf32> to vector<128xf32>
    %113 = vector.shape_cast %112 : vector<128xf32> to vector<1x1x128xf32>
    %114 = vector.broadcast %113 : vector<1x1x128xf32> to vector<8x8x128xf32>
    %115 = arith.mulf %110, %114 : vector<8x8x128xf32>
    %116 = arith.addf %109, %115 : vector<8x8x128xf32>
    %117 = vector.extract_strided_slice %81 {offsets = [0, 5, 0], sizes = [8, 8, 128], strides = [1, 1, 1]} : vector<8x16x128xf32> to vector<8x8x128xf32>
    %c14 = arith.constant 14 : index
    %c0_26 = arith.constant 0 : index
    %118 = vector.load %arg5[%c14, %c0_26] : memref<81x128xf32, #tpu.memory_space<vmem>>, vector<1x128xf32>
    %119 = vector.shape_cast %118 : vector<1x128xf32> to vector<128xf32>
    %120 = vector.shape_cast %119 : vector<128xf32> to vector<1x1x128xf32>
    %121 = vector.broadcast %120 : vector<1x1x128xf32> to vector<8x8x128xf32>
    %122 = arith.mulf %117, %121 : vector<8x8x128xf32>
    %123 = arith.addf %116, %122 : vector<8x8x128xf32>
    %124 = vector.extract_strided_slice %81 {offsets = [0, 6, 0], sizes = [8, 8, 128], strides = [1, 1, 1]} : vector<8x16x128xf32> to vector<8x8x128xf32>
    %c15 = arith.constant 15 : index
    %c0_27 = arith.constant 0 : index
    %125 = vector.load %arg5[%c15, %c0_27] : memref<81x128xf32, #tpu.memory_space<vmem>>, vector<1x128xf32>
    %126 = vector.shape_cast %125 : vector<1x128xf32> to vector<128xf32>
    %127 = vector.shape_cast %126 : vector<128xf32> to vector<1x1x128xf32>
    %128 = vector.broadcast %127 : vector<1x1x128xf32> to vector<8x8x128xf32>
    %129 = arith.mulf %124, %128 : vector<8x8x128xf32>
    %130 = arith.addf %123, %129 : vector<8x8x128xf32>
    %131 = vector.extract_strided_slice %81 {offsets = [0, 7, 0], sizes = [8, 8, 128], strides = [1, 1, 1]} : vector<8x16x128xf32> to vector<8x8x128xf32>
    %c16 = arith.constant 16 : index
    %c0_28 = arith.constant 0 : index
    %132 = vector.load %arg5[%c16, %c0_28] : memref<81x128xf32, #tpu.memory_space<vmem>>, vector<1x128xf32>
    %133 = vector.shape_cast %132 : vector<1x128xf32> to vector<128xf32>
    %134 = vector.shape_cast %133 : vector<128xf32> to vector<1x1x128xf32>
    %135 = vector.broadcast %134 : vector<1x1x128xf32> to vector<8x8x128xf32>
    %136 = arith.mulf %131, %135 : vector<8x8x128xf32>
    %137 = arith.addf %130, %136 : vector<8x8x128xf32>
    %138 = vector.extract_strided_slice %81 {offsets = [0, 8, 0], sizes = [8, 8, 128], strides = [1, 1, 1]} : vector<8x16x128xf32> to vector<8x8x128xf32>
    %c17 = arith.constant 17 : index
    %c0_29 = arith.constant 0 : index
    %139 = vector.load %arg5[%c17, %c0_29] : memref<81x128xf32, #tpu.memory_space<vmem>>, vector<1x128xf32>
    %140 = vector.shape_cast %139 : vector<1x128xf32> to vector<128xf32>
    %141 = vector.shape_cast %140 : vector<128xf32> to vector<1x1x128xf32>
    %142 = vector.broadcast %141 : vector<1x1x128xf32> to vector<8x8x128xf32>
    %143 = arith.mulf %138, %142 : vector<8x8x128xf32>
    %144 = arith.addf %137, %143 : vector<8x8x128xf32>
    %145 = vector.extract_strided_slice %12 {offsets = [2, 0, 0], sizes = [8, 16, 128], strides = [1, 1, 1]} : vector<16x16x128xf32> to vector<8x16x128xf32>
    %146 = vector.extract_strided_slice %145 {offsets = [0, 0, 0], sizes = [8, 8, 128], strides = [1, 1, 1]} : vector<8x16x128xf32> to vector<8x8x128xf32>
    %c18 = arith.constant 18 : index
    %c0_30 = arith.constant 0 : index
    %147 = vector.load %arg5[%c18, %c0_30] : memref<81x128xf32, #tpu.memory_space<vmem>>, vector<1x128xf32>
    %148 = vector.shape_cast %147 : vector<1x128xf32> to vector<128xf32>
    %149 = vector.shape_cast %148 : vector<128xf32> to vector<1x1x128xf32>
    %150 = vector.broadcast %149 : vector<1x1x128xf32> to vector<8x8x128xf32>
    %151 = arith.mulf %146, %150 : vector<8x8x128xf32>
    %152 = arith.addf %144, %151 : vector<8x8x128xf32>
    %153 = vector.extract_strided_slice %145 {offsets = [0, 1, 0], sizes = [8, 8, 128], strides = [1, 1, 1]} : vector<8x16x128xf32> to vector<8x8x128xf32>
    %c19 = arith.constant 19 : index
    %c0_31 = arith.constant 0 : index
    %154 = vector.load %arg5[%c19, %c0_31] : memref<81x128xf32, #tpu.memory_space<vmem>>, vector<1x128xf32>
    %155 = vector.shape_cast %154 : vector<1x128xf32> to vector<128xf32>
    %156 = vector.shape_cast %155 : vector<128xf32> to vector<1x1x128xf32>
    %157 = vector.broadcast %156 : vector<1x1x128xf32> to vector<8x8x128xf32>
    %158 = arith.mulf %153, %157 : vector<8x8x128xf32>
    %159 = arith.addf %152, %158 : vector<8x8x128xf32>
    %160 = vector.extract_strided_slice %145 {offsets = [0, 2, 0], sizes = [8, 8, 128], strides = [1, 1, 1]} : vector<8x16x128xf32> to vector<8x8x128xf32>
    %c20 = arith.constant 20 : index
    %c0_32 = arith.constant 0 : index
    %161 = vector.load %arg5[%c20, %c0_32] : memref<81x128xf32, #tpu.memory_space<vmem>>, vector<1x128xf32>
    %162 = vector.shape_cast %161 : vector<1x128xf32> to vector<128xf32>
    %163 = vector.shape_cast %162 : vector<128xf32> to vector<1x1x128xf32>
    %164 = vector.broadcast %163 : vector<1x1x128xf32> to vector<8x8x128xf32>
    %165 = arith.mulf %160, %164 : vector<8x8x128xf32>
    %166 = arith.addf %159, %165 : vector<8x8x128xf32>
    %167 = vector.extract_strided_slice %145 {offsets = [0, 3, 0], sizes = [8, 8, 128], strides = [1, 1, 1]} : vector<8x16x128xf32> to vector<8x8x128xf32>
    %c21 = arith.constant 21 : index
    %c0_33 = arith.constant 0 : index
    %168 = vector.load %arg5[%c21, %c0_33] : memref<81x128xf32, #tpu.memory_space<vmem>>, vector<1x128xf32>
    %169 = vector.shape_cast %168 : vector<1x128xf32> to vector<128xf32>
    %170 = vector.shape_cast %169 : vector<128xf32> to vector<1x1x128xf32>
    %171 = vector.broadcast %170 : vector<1x1x128xf32> to vector<8x8x128xf32>
    %172 = arith.mulf %167, %171 : vector<8x8x128xf32>
    %173 = arith.addf %166, %172 : vector<8x8x128xf32>
    %174 = vector.extract_strided_slice %145 {offsets = [0, 4, 0], sizes = [8, 8, 128], strides = [1, 1, 1]} : vector<8x16x128xf32> to vector<8x8x128xf32>
    %c22 = arith.constant 22 : index
    %c0_34 = arith.constant 0 : index
    %175 = vector.load %arg5[%c22, %c0_34] : memref<81x128xf32, #tpu.memory_space<vmem>>, vector<1x128xf32>
    %176 = vector.shape_cast %175 : vector<1x128xf32> to vector<128xf32>
    %177 = vector.shape_cast %176 : vector<128xf32> to vector<1x1x128xf32>
    %178 = vector.broadcast %177 : vector<1x1x128xf32> to vector<8x8x128xf32>
    %179 = arith.mulf %174, %178 : vector<8x8x128xf32>
    %180 = arith.addf %173, %179 : vector<8x8x128xf32>
    %181 = vector.extract_strided_slice %145 {offsets = [0, 5, 0], sizes = [8, 8, 128], strides = [1, 1, 1]} : vector<8x16x128xf32> to vector<8x8x128xf32>
    %c23 = arith.constant 23 : index
    %c0_35 = arith.constant 0 : index
    %182 = vector.load %arg5[%c23, %c0_35] : memref<81x128xf32, #tpu.memory_space<vmem>>, vector<1x128xf32>
    %183 = vector.shape_cast %182 : vector<1x128xf32> to vector<128xf32>
    %184 = vector.shape_cast %183 : vector<128xf32> to vector<1x1x128xf32>
    %185 = vector.broadcast %184 : vector<1x1x128xf32> to vector<8x8x128xf32>
    %186 = arith.mulf %181, %185 : vector<8x8x128xf32>
    %187 = arith.addf %180, %186 : vector<8x8x128xf32>
    %188 = vector.extract_strided_slice %145 {offsets = [0, 6, 0], sizes = [8, 8, 128], strides = [1, 1, 1]} : vector<8x16x128xf32> to vector<8x8x128xf32>
    %c24 = arith.constant 24 : index
    %c0_36 = arith.constant 0 : index
    %189 = vector.load %arg5[%c24, %c0_36] : memref<81x128xf32, #tpu.memory_space<vmem>>, vector<1x128xf32>
    %190 = vector.shape_cast %189 : vector<1x128xf32> to vector<128xf32>
    %191 = vector.shape_cast %190 : vector<128xf32> to vector<1x1x128xf32>
    %192 = vector.broadcast %191 : vector<1x1x128xf32> to vector<8x8x128xf32>
    %193 = arith.mulf %188, %192 : vector<8x8x128xf32>
    %194 = arith.addf %187, %193 : vector<8x8x128xf32>
    %195 = vector.extract_strided_slice %145 {offsets = [0, 7, 0], sizes = [8, 8, 128], strides = [1, 1, 1]} : vector<8x16x128xf32> to vector<8x8x128xf32>
    %c25 = arith.constant 25 : index
    %c0_37 = arith.constant 0 : index
    %196 = vector.load %arg5[%c25, %c0_37] : memref<81x128xf32, #tpu.memory_space<vmem>>, vector<1x128xf32>
    %197 = vector.shape_cast %196 : vector<1x128xf32> to vector<128xf32>
    %198 = vector.shape_cast %197 : vector<128xf32> to vector<1x1x128xf32>
    %199 = vector.broadcast %198 : vector<1x1x128xf32> to vector<8x8x128xf32>
    %200 = arith.mulf %195, %199 : vector<8x8x128xf32>
    %201 = arith.addf %194, %200 : vector<8x8x128xf32>
    %202 = vector.extract_strided_slice %145 {offsets = [0, 8, 0], sizes = [8, 8, 128], strides = [1, 1, 1]} : vector<8x16x128xf32> to vector<8x8x128xf32>
    %c26 = arith.constant 26 : index
    %c0_38 = arith.constant 0 : index
    %203 = vector.load %arg5[%c26, %c0_38] : memref<81x128xf32, #tpu.memory_space<vmem>>, vector<1x128xf32>
    %204 = vector.shape_cast %203 : vector<1x128xf32> to vector<128xf32>
    %205 = vector.shape_cast %204 : vector<128xf32> to vector<1x1x128xf32>
    %206 = vector.broadcast %205 : vector<1x1x128xf32> to vector<8x8x128xf32>
    %207 = arith.mulf %202, %206 : vector<8x8x128xf32>
    %208 = arith.addf %201, %207 : vector<8x8x128xf32>
    %209 = vector.extract_strided_slice %12 {offsets = [3, 0, 0], sizes = [8, 16, 128], strides = [1, 1, 1]} : vector<16x16x128xf32> to vector<8x16x128xf32>
    %210 = vector.extract_strided_slice %209 {offsets = [0, 0, 0], sizes = [8, 8, 128], strides = [1, 1, 1]} : vector<8x16x128xf32> to vector<8x8x128xf32>
    %c27 = arith.constant 27 : index
    %c0_39 = arith.constant 0 : index
    %211 = vector.load %arg5[%c27, %c0_39] : memref<81x128xf32, #tpu.memory_space<vmem>>, vector<1x128xf32>
    %212 = vector.shape_cast %211 : vector<1x128xf32> to vector<128xf32>
    %213 = vector.shape_cast %212 : vector<128xf32> to vector<1x1x128xf32>
    %214 = vector.broadcast %213 : vector<1x1x128xf32> to vector<8x8x128xf32>
    %215 = arith.mulf %210, %214 : vector<8x8x128xf32>
    %216 = arith.addf %208, %215 : vector<8x8x128xf32>
    %217 = vector.extract_strided_slice %209 {offsets = [0, 1, 0], sizes = [8, 8, 128], strides = [1, 1, 1]} : vector<8x16x128xf32> to vector<8x8x128xf32>
    %c28 = arith.constant 28 : index
    %c0_40 = arith.constant 0 : index
    %218 = vector.load %arg5[%c28, %c0_40] : memref<81x128xf32, #tpu.memory_space<vmem>>, vector<1x128xf32>
    %219 = vector.shape_cast %218 : vector<1x128xf32> to vector<128xf32>
    %220 = vector.shape_cast %219 : vector<128xf32> to vector<1x1x128xf32>
    %221 = vector.broadcast %220 : vector<1x1x128xf32> to vector<8x8x128xf32>
    %222 = arith.mulf %217, %221 : vector<8x8x128xf32>
    %223 = arith.addf %216, %222 : vector<8x8x128xf32>
    %224 = vector.extract_strided_slice %209 {offsets = [0, 2, 0], sizes = [8, 8, 128], strides = [1, 1, 1]} : vector<8x16x128xf32> to vector<8x8x128xf32>
    %c29 = arith.constant 29 : index
    %c0_41 = arith.constant 0 : index
    %225 = vector.load %arg5[%c29, %c0_41] : memref<81x128xf32, #tpu.memory_space<vmem>>, vector<1x128xf32>
    %226 = vector.shape_cast %225 : vector<1x128xf32> to vector<128xf32>
    %227 = vector.shape_cast %226 : vector<128xf32> to vector<1x1x128xf32>
    %228 = vector.broadcast %227 : vector<1x1x128xf32> to vector<8x8x128xf32>
    %229 = arith.mulf %224, %228 : vector<8x8x128xf32>
    %230 = arith.addf %223, %229 : vector<8x8x128xf32>
    %231 = vector.extract_strided_slice %209 {offsets = [0, 3, 0], sizes = [8, 8, 128], strides = [1, 1, 1]} : vector<8x16x128xf32> to vector<8x8x128xf32>
    %c30 = arith.constant 30 : index
    %c0_42 = arith.constant 0 : index
    %232 = vector.load %arg5[%c30, %c0_42] : memref<81x128xf32, #tpu.memory_space<vmem>>, vector<1x128xf32>
    %233 = vector.shape_cast %232 : vector<1x128xf32> to vector<128xf32>
    %234 = vector.shape_cast %233 : vector<128xf32> to vector<1x1x128xf32>
    %235 = vector.broadcast %234 : vector<1x1x128xf32> to vector<8x8x128xf32>
    %236 = arith.mulf %231, %235 : vector<8x8x128xf32>
    %237 = arith.addf %230, %236 : vector<8x8x128xf32>
    %238 = vector.extract_strided_slice %209 {offsets = [0, 4, 0], sizes = [8, 8, 128], strides = [1, 1, 1]} : vector<8x16x128xf32> to vector<8x8x128xf32>
    %c31 = arith.constant 31 : index
    %c0_43 = arith.constant 0 : index
    %239 = vector.load %arg5[%c31, %c0_43] : memref<81x128xf32, #tpu.memory_space<vmem>>, vector<1x128xf32>
    %240 = vector.shape_cast %239 : vector<1x128xf32> to vector<128xf32>
    %241 = vector.shape_cast %240 : vector<128xf32> to vector<1x1x128xf32>
    %242 = vector.broadcast %241 : vector<1x1x128xf32> to vector<8x8x128xf32>
    %243 = arith.mulf %238, %242 : vector<8x8x128xf32>
    %244 = arith.addf %237, %243 : vector<8x8x128xf32>
    %245 = vector.extract_strided_slice %209 {offsets = [0, 5, 0], sizes = [8, 8, 128], strides = [1, 1, 1]} : vector<8x16x128xf32> to vector<8x8x128xf32>
    %c32 = arith.constant 32 : index
    %c0_44 = arith.constant 0 : index
    %246 = vector.load %arg5[%c32, %c0_44] : memref<81x128xf32, #tpu.memory_space<vmem>>, vector<1x128xf32>
    %247 = vector.shape_cast %246 : vector<1x128xf32> to vector<128xf32>
    %248 = vector.shape_cast %247 : vector<128xf32> to vector<1x1x128xf32>
    %249 = vector.broadcast %248 : vector<1x1x128xf32> to vector<8x8x128xf32>
    %250 = arith.mulf %245, %249 : vector<8x8x128xf32>
    %251 = arith.addf %244, %250 : vector<8x8x128xf32>
    %252 = vector.extract_strided_slice %209 {offsets = [0, 6, 0], sizes = [8, 8, 128], strides = [1, 1, 1]} : vector<8x16x128xf32> to vector<8x8x128xf32>
    %c33 = arith.constant 33 : index
    %c0_45 = arith.constant 0 : index
    %253 = vector.load %arg5[%c33, %c0_45] : memref<81x128xf32, #tpu.memory_space<vmem>>, vector<1x128xf32>
    %254 = vector.shape_cast %253 : vector<1x128xf32> to vector<128xf32>
    %255 = vector.shape_cast %254 : vector<128xf32> to vector<1x1x128xf32>
    %256 = vector.broadcast %255 : vector<1x1x128xf32> to vector<8x8x128xf32>
    %257 = arith.mulf %252, %256 : vector<8x8x128xf32>
    %258 = arith.addf %251, %257 : vector<8x8x128xf32>
    %259 = vector.extract_strided_slice %209 {offsets = [0, 7, 0], sizes = [8, 8, 128], strides = [1, 1, 1]} : vector<8x16x128xf32> to vector<8x8x128xf32>
    %c34 = arith.constant 34 : index
    %c0_46 = arith.constant 0 : index
    %260 = vector.load %arg5[%c34, %c0_46] : memref<81x128xf32, #tpu.memory_space<vmem>>, vector<1x128xf32>
    %261 = vector.shape_cast %260 : vector<1x128xf32> to vector<128xf32>
    %262 = vector.shape_cast %261 : vector<128xf32> to vector<1x1x128xf32>
    %263 = vector.broadcast %262 : vector<1x1x128xf32> to vector<8x8x128xf32>
    %264 = arith.mulf %259, %263 : vector<8x8x128xf32>
    %265 = arith.addf %258, %264 : vector<8x8x128xf32>
    %266 = vector.extract_strided_slice %209 {offsets = [0, 8, 0], sizes = [8, 8, 128], strides = [1, 1, 1]} : vector<8x16x128xf32> to vector<8x8x128xf32>
    %c35 = arith.constant 35 : index
    %c0_47 = arith.constant 0 : index
    %267 = vector.load %arg5[%c35, %c0_47] : memref<81x128xf32, #tpu.memory_space<vmem>>, vector<1x128xf32>
    %268 = vector.shape_cast %267 : vector<1x128xf32> to vector<128xf32>
    %269 = vector.shape_cast %268 : vector<128xf32> to vector<1x1x128xf32>
    %270 = vector.broadcast %269 : vector<1x1x128xf32> to vector<8x8x128xf32>
    %271 = arith.mulf %266, %270 : vector<8x8x128xf32>
    %272 = arith.addf %265, %271 : vector<8x8x128xf32>
    %273 = vector.extract_strided_slice %12 {offsets = [4, 0, 0], sizes = [8, 16, 128], strides = [1, 1, 1]} : vector<16x16x128xf32> to vector<8x16x128xf32>
    %274 = vector.extract_strided_slice %273 {offsets = [0, 0, 0], sizes = [8, 8, 128], strides = [1, 1, 1]} : vector<8x16x128xf32> to vector<8x8x128xf32>
    %c36 = arith.constant 36 : index
    %c0_48 = arith.constant 0 : index
    %275 = vector.load %arg5[%c36, %c0_48] : memref<81x128xf32, #tpu.memory_space<vmem>>, vector<1x128xf32>
    %276 = vector.shape_cast %275 : vector<1x128xf32> to vector<128xf32>
    %277 = vector.shape_cast %276 : vector<128xf32> to vector<1x1x128xf32>
    %278 = vector.broadcast %277 : vector<1x1x128xf32> to vector<8x8x128xf32>
    %279 = arith.mulf %274, %278 : vector<8x8x128xf32>
    %280 = arith.addf %272, %279 : vector<8x8x128xf32>
    %281 = vector.extract_strided_slice %273 {offsets = [0, 1, 0], sizes = [8, 8, 128], strides = [1, 1, 1]} : vector<8x16x128xf32> to vector<8x8x128xf32>
    %c37 = arith.constant 37 : index
    %c0_49 = arith.constant 0 : index
    %282 = vector.load %arg5[%c37, %c0_49] : memref<81x128xf32, #tpu.memory_space<vmem>>, vector<1x128xf32>
    %283 = vector.shape_cast %282 : vector<1x128xf32> to vector<128xf32>
    %284 = vector.shape_cast %283 : vector<128xf32> to vector<1x1x128xf32>
    %285 = vector.broadcast %284 : vector<1x1x128xf32> to vector<8x8x128xf32>
    %286 = arith.mulf %281, %285 : vector<8x8x128xf32>
    %287 = arith.addf %280, %286 : vector<8x8x128xf32>
    %288 = vector.extract_strided_slice %273 {offsets = [0, 2, 0], sizes = [8, 8, 128], strides = [1, 1, 1]} : vector<8x16x128xf32> to vector<8x8x128xf32>
    %c38 = arith.constant 38 : index
    %c0_50 = arith.constant 0 : index
    %289 = vector.load %arg5[%c38, %c0_50] : memref<81x128xf32, #tpu.memory_space<vmem>>, vector<1x128xf32>
    %290 = vector.shape_cast %289 : vector<1x128xf32> to vector<128xf32>
    %291 = vector.shape_cast %290 : vector<128xf32> to vector<1x1x128xf32>
    %292 = vector.broadcast %291 : vector<1x1x128xf32> to vector<8x8x128xf32>
    %293 = arith.mulf %288, %292 : vector<8x8x128xf32>
    %294 = arith.addf %287, %293 : vector<8x8x128xf32>
    %295 = vector.extract_strided_slice %273 {offsets = [0, 3, 0], sizes = [8, 8, 128], strides = [1, 1, 1]} : vector<8x16x128xf32> to vector<8x8x128xf32>
    %c39 = arith.constant 39 : index
    %c0_51 = arith.constant 0 : index
    %296 = vector.load %arg5[%c39, %c0_51] : memref<81x128xf32, #tpu.memory_space<vmem>>, vector<1x128xf32>
    %297 = vector.shape_cast %296 : vector<1x128xf32> to vector<128xf32>
    %298 = vector.shape_cast %297 : vector<128xf32> to vector<1x1x128xf32>
    %299 = vector.broadcast %298 : vector<1x1x128xf32> to vector<8x8x128xf32>
    %300 = arith.mulf %295, %299 : vector<8x8x128xf32>
    %301 = arith.addf %294, %300 : vector<8x8x128xf32>
    %302 = vector.extract_strided_slice %273 {offsets = [0, 4, 0], sizes = [8, 8, 128], strides = [1, 1, 1]} : vector<8x16x128xf32> to vector<8x8x128xf32>
    %c40 = arith.constant 40 : index
    %c0_52 = arith.constant 0 : index
    %303 = vector.load %arg5[%c40, %c0_52] : memref<81x128xf32, #tpu.memory_space<vmem>>, vector<1x128xf32>
    %304 = vector.shape_cast %303 : vector<1x128xf32> to vector<128xf32>
    %305 = vector.shape_cast %304 : vector<128xf32> to vector<1x1x128xf32>
    %306 = vector.broadcast %305 : vector<1x1x128xf32> to vector<8x8x128xf32>
    %307 = arith.mulf %302, %306 : vector<8x8x128xf32>
    %308 = arith.addf %301, %307 : vector<8x8x128xf32>
    %309 = vector.extract_strided_slice %273 {offsets = [0, 5, 0], sizes = [8, 8, 128], strides = [1, 1, 1]} : vector<8x16x128xf32> to vector<8x8x128xf32>
    %c41 = arith.constant 41 : index
    %c0_53 = arith.constant 0 : index
    %310 = vector.load %arg5[%c41, %c0_53] : memref<81x128xf32, #tpu.memory_space<vmem>>, vector<1x128xf32>
    %311 = vector.shape_cast %310 : vector<1x128xf32> to vector<128xf32>
    %312 = vector.shape_cast %311 : vector<128xf32> to vector<1x1x128xf32>
    %313 = vector.broadcast %312 : vector<1x1x128xf32> to vector<8x8x128xf32>
    %314 = arith.mulf %309, %313 : vector<8x8x128xf32>
    %315 = arith.addf %308, %314 : vector<8x8x128xf32>
    %316 = vector.extract_strided_slice %273 {offsets = [0, 6, 0], sizes = [8, 8, 128], strides = [1, 1, 1]} : vector<8x16x128xf32> to vector<8x8x128xf32>
    %c42 = arith.constant 42 : index
    %c0_54 = arith.constant 0 : index
    %317 = vector.load %arg5[%c42, %c0_54] : memref<81x128xf32, #tpu.memory_space<vmem>>, vector<1x128xf32>
    %318 = vector.shape_cast %317 : vector<1x128xf32> to vector<128xf32>
    %319 = vector.shape_cast %318 : vector<128xf32> to vector<1x1x128xf32>
    %320 = vector.broadcast %319 : vector<1x1x128xf32> to vector<8x8x128xf32>
    %321 = arith.mulf %316, %320 : vector<8x8x128xf32>
    %322 = arith.addf %315, %321 : vector<8x8x128xf32>
    %323 = vector.extract_strided_slice %273 {offsets = [0, 7, 0], sizes = [8, 8, 128], strides = [1, 1, 1]} : vector<8x16x128xf32> to vector<8x8x128xf32>
    %c43 = arith.constant 43 : index
    %c0_55 = arith.constant 0 : index
    %324 = vector.load %arg5[%c43, %c0_55] : memref<81x128xf32, #tpu.memory_space<vmem>>, vector<1x128xf32>
    %325 = vector.shape_cast %324 : vector<1x128xf32> to vector<128xf32>
    %326 = vector.shape_cast %325 : vector<128xf32> to vector<1x1x128xf32>
    %327 = vector.broadcast %326 : vector<1x1x128xf32> to vector<8x8x128xf32>
    %328 = arith.mulf %323, %327 : vector<8x8x128xf32>
    %329 = arith.addf %322, %328 : vector<8x8x128xf32>
    %330 = vector.extract_strided_slice %273 {offsets = [0, 8, 0], sizes = [8, 8, 128], strides = [1, 1, 1]} : vector<8x16x128xf32> to vector<8x8x128xf32>
    %c44 = arith.constant 44 : index
    %c0_56 = arith.constant 0 : index
    %331 = vector.load %arg5[%c44, %c0_56] : memref<81x128xf32, #tpu.memory_space<vmem>>, vector<1x128xf32>
    %332 = vector.shape_cast %331 : vector<1x128xf32> to vector<128xf32>
    %333 = vector.shape_cast %332 : vector<128xf32> to vector<1x1x128xf32>
    %334 = vector.broadcast %333 : vector<1x1x128xf32> to vector<8x8x128xf32>
    %335 = arith.mulf %330, %334 : vector<8x8x128xf32>
    %336 = arith.addf %329, %335 : vector<8x8x128xf32>
    %337 = vector.extract_strided_slice %12 {offsets = [5, 0, 0], sizes = [8, 16, 128], strides = [1, 1, 1]} : vector<16x16x128xf32> to vector<8x16x128xf32>
    %338 = vector.extract_strided_slice %337 {offsets = [0, 0, 0], sizes = [8, 8, 128], strides = [1, 1, 1]} : vector<8x16x128xf32> to vector<8x8x128xf32>
    %c45 = arith.constant 45 : index
    %c0_57 = arith.constant 0 : index
    %339 = vector.load %arg5[%c45, %c0_57] : memref<81x128xf32, #tpu.memory_space<vmem>>, vector<1x128xf32>
    %340 = vector.shape_cast %339 : vector<1x128xf32> to vector<128xf32>
    %341 = vector.shape_cast %340 : vector<128xf32> to vector<1x1x128xf32>
    %342 = vector.broadcast %341 : vector<1x1x128xf32> to vector<8x8x128xf32>
    %343 = arith.mulf %338, %342 : vector<8x8x128xf32>
    %344 = arith.addf %336, %343 : vector<8x8x128xf32>
    %345 = vector.extract_strided_slice %337 {offsets = [0, 1, 0], sizes = [8, 8, 128], strides = [1, 1, 1]} : vector<8x16x128xf32> to vector<8x8x128xf32>
    %c46 = arith.constant 46 : index
    %c0_58 = arith.constant 0 : index
    %346 = vector.load %arg5[%c46, %c0_58] : memref<81x128xf32, #tpu.memory_space<vmem>>, vector<1x128xf32>
    %347 = vector.shape_cast %346 : vector<1x128xf32> to vector<128xf32>
    %348 = vector.shape_cast %347 : vector<128xf32> to vector<1x1x128xf32>
    %349 = vector.broadcast %348 : vector<1x1x128xf32> to vector<8x8x128xf32>
    %350 = arith.mulf %345, %349 : vector<8x8x128xf32>
    %351 = arith.addf %344, %350 : vector<8x8x128xf32>
    %352 = vector.extract_strided_slice %337 {offsets = [0, 2, 0], sizes = [8, 8, 128], strides = [1, 1, 1]} : vector<8x16x128xf32> to vector<8x8x128xf32>
    %c47 = arith.constant 47 : index
    %c0_59 = arith.constant 0 : index
    %353 = vector.load %arg5[%c47, %c0_59] : memref<81x128xf32, #tpu.memory_space<vmem>>, vector<1x128xf32>
    %354 = vector.shape_cast %353 : vector<1x128xf32> to vector<128xf32>
    %355 = vector.shape_cast %354 : vector<128xf32> to vector<1x1x128xf32>
    %356 = vector.broadcast %355 : vector<1x1x128xf32> to vector<8x8x128xf32>
    %357 = arith.mulf %352, %356 : vector<8x8x128xf32>
    %358 = arith.addf %351, %357 : vector<8x8x128xf32>
    %359 = vector.extract_strided_slice %337 {offsets = [0, 3, 0], sizes = [8, 8, 128], strides = [1, 1, 1]} : vector<8x16x128xf32> to vector<8x8x128xf32>
    %c48 = arith.constant 48 : index
    %c0_60 = arith.constant 0 : index
    %360 = vector.load %arg5[%c48, %c0_60] : memref<81x128xf32, #tpu.memory_space<vmem>>, vector<1x128xf32>
    %361 = vector.shape_cast %360 : vector<1x128xf32> to vector<128xf32>
    %362 = vector.shape_cast %361 : vector<128xf32> to vector<1x1x128xf32>
    %363 = vector.broadcast %362 : vector<1x1x128xf32> to vector<8x8x128xf32>
    %364 = arith.mulf %359, %363 : vector<8x8x128xf32>
    %365 = arith.addf %358, %364 : vector<8x8x128xf32>
    %366 = vector.extract_strided_slice %337 {offsets = [0, 4, 0], sizes = [8, 8, 128], strides = [1, 1, 1]} : vector<8x16x128xf32> to vector<8x8x128xf32>
    %c49 = arith.constant 49 : index
    %c0_61 = arith.constant 0 : index
    %367 = vector.load %arg5[%c49, %c0_61] : memref<81x128xf32, #tpu.memory_space<vmem>>, vector<1x128xf32>
    %368 = vector.shape_cast %367 : vector<1x128xf32> to vector<128xf32>
    %369 = vector.shape_cast %368 : vector<128xf32> to vector<1x1x128xf32>
    %370 = vector.broadcast %369 : vector<1x1x128xf32> to vector<8x8x128xf32>
    %371 = arith.mulf %366, %370 : vector<8x8x128xf32>
    %372 = arith.addf %365, %371 : vector<8x8x128xf32>
    %373 = vector.extract_strided_slice %337 {offsets = [0, 5, 0], sizes = [8, 8, 128], strides = [1, 1, 1]} : vector<8x16x128xf32> to vector<8x8x128xf32>
    %c50 = arith.constant 50 : index
    %c0_62 = arith.constant 0 : index
    %374 = vector.load %arg5[%c50, %c0_62] : memref<81x128xf32, #tpu.memory_space<vmem>>, vector<1x128xf32>
    %375 = vector.shape_cast %374 : vector<1x128xf32> to vector<128xf32>
    %376 = vector.shape_cast %375 : vector<128xf32> to vector<1x1x128xf32>
    %377 = vector.broadcast %376 : vector<1x1x128xf32> to vector<8x8x128xf32>
    %378 = arith.mulf %373, %377 : vector<8x8x128xf32>
    %379 = arith.addf %372, %378 : vector<8x8x128xf32>
    %380 = vector.extract_strided_slice %337 {offsets = [0, 6, 0], sizes = [8, 8, 128], strides = [1, 1, 1]} : vector<8x16x128xf32> to vector<8x8x128xf32>
    %c51 = arith.constant 51 : index
    %c0_63 = arith.constant 0 : index
    %381 = vector.load %arg5[%c51, %c0_63] : memref<81x128xf32, #tpu.memory_space<vmem>>, vector<1x128xf32>
    %382 = vector.shape_cast %381 : vector<1x128xf32> to vector<128xf32>
    %383 = vector.shape_cast %382 : vector<128xf32> to vector<1x1x128xf32>
    %384 = vector.broadcast %383 : vector<1x1x128xf32> to vector<8x8x128xf32>
    %385 = arith.mulf %380, %384 : vector<8x8x128xf32>
    %386 = arith.addf %379, %385 : vector<8x8x128xf32>
    %387 = vector.extract_strided_slice %337 {offsets = [0, 7, 0], sizes = [8, 8, 128], strides = [1, 1, 1]} : vector<8x16x128xf32> to vector<8x8x128xf32>
    %c52 = arith.constant 52 : index
    %c0_64 = arith.constant 0 : index
    %388 = vector.load %arg5[%c52, %c0_64] : memref<81x128xf32, #tpu.memory_space<vmem>>, vector<1x128xf32>
    %389 = vector.shape_cast %388 : vector<1x128xf32> to vector<128xf32>
    %390 = vector.shape_cast %389 : vector<128xf32> to vector<1x1x128xf32>
    %391 = vector.broadcast %390 : vector<1x1x128xf32> to vector<8x8x128xf32>
    %392 = arith.mulf %387, %391 : vector<8x8x128xf32>
    %393 = arith.addf %386, %392 : vector<8x8x128xf32>
    %394 = vector.extract_strided_slice %337 {offsets = [0, 8, 0], sizes = [8, 8, 128], strides = [1, 1, 1]} : vector<8x16x128xf32> to vector<8x8x128xf32>
    %c53 = arith.constant 53 : index
    %c0_65 = arith.constant 0 : index
    %395 = vector.load %arg5[%c53, %c0_65] : memref<81x128xf32, #tpu.memory_space<vmem>>, vector<1x128xf32>
    %396 = vector.shape_cast %395 : vector<1x128xf32> to vector<128xf32>
    %397 = vector.shape_cast %396 : vector<128xf32> to vector<1x1x128xf32>
    %398 = vector.broadcast %397 : vector<1x1x128xf32> to vector<8x8x128xf32>
    %399 = arith.mulf %394, %398 : vector<8x8x128xf32>
    %400 = arith.addf %393, %399 : vector<8x8x128xf32>
    %401 = vector.extract_strided_slice %12 {offsets = [6, 0, 0], sizes = [8, 16, 128], strides = [1, 1, 1]} : vector<16x16x128xf32> to vector<8x16x128xf32>
    %402 = vector.extract_strided_slice %401 {offsets = [0, 0, 0], sizes = [8, 8, 128], strides = [1, 1, 1]} : vector<8x16x128xf32> to vector<8x8x128xf32>
    %c54 = arith.constant 54 : index
    %c0_66 = arith.constant 0 : index
    %403 = vector.load %arg5[%c54, %c0_66] : memref<81x128xf32, #tpu.memory_space<vmem>>, vector<1x128xf32>
    %404 = vector.shape_cast %403 : vector<1x128xf32> to vector<128xf32>
    %405 = vector.shape_cast %404 : vector<128xf32> to vector<1x1x128xf32>
    %406 = vector.broadcast %405 : vector<1x1x128xf32> to vector<8x8x128xf32>
    %407 = arith.mulf %402, %406 : vector<8x8x128xf32>
    %408 = arith.addf %400, %407 : vector<8x8x128xf32>
    %409 = vector.extract_strided_slice %401 {offsets = [0, 1, 0], sizes = [8, 8, 128], strides = [1, 1, 1]} : vector<8x16x128xf32> to vector<8x8x128xf32>
    %c55 = arith.constant 55 : index
    %c0_67 = arith.constant 0 : index
    %410 = vector.load %arg5[%c55, %c0_67] : memref<81x128xf32, #tpu.memory_space<vmem>>, vector<1x128xf32>
    %411 = vector.shape_cast %410 : vector<1x128xf32> to vector<128xf32>
    %412 = vector.shape_cast %411 : vector<128xf32> to vector<1x1x128xf32>
    %413 = vector.broadcast %412 : vector<1x1x128xf32> to vector<8x8x128xf32>
    %414 = arith.mulf %409, %413 : vector<8x8x128xf32>
    %415 = arith.addf %408, %414 : vector<8x8x128xf32>
    %416 = vector.extract_strided_slice %401 {offsets = [0, 2, 0], sizes = [8, 8, 128], strides = [1, 1, 1]} : vector<8x16x128xf32> to vector<8x8x128xf32>
    %c56 = arith.constant 56 : index
    %c0_68 = arith.constant 0 : index
    %417 = vector.load %arg5[%c56, %c0_68] : memref<81x128xf32, #tpu.memory_space<vmem>>, vector<1x128xf32>
    %418 = vector.shape_cast %417 : vector<1x128xf32> to vector<128xf32>
    %419 = vector.shape_cast %418 : vector<128xf32> to vector<1x1x128xf32>
    %420 = vector.broadcast %419 : vector<1x1x128xf32> to vector<8x8x128xf32>
    %421 = arith.mulf %416, %420 : vector<8x8x128xf32>
    %422 = arith.addf %415, %421 : vector<8x8x128xf32>
    %423 = vector.extract_strided_slice %401 {offsets = [0, 3, 0], sizes = [8, 8, 128], strides = [1, 1, 1]} : vector<8x16x128xf32> to vector<8x8x128xf32>
    %c57 = arith.constant 57 : index
    %c0_69 = arith.constant 0 : index
    %424 = vector.load %arg5[%c57, %c0_69] : memref<81x128xf32, #tpu.memory_space<vmem>>, vector<1x128xf32>
    %425 = vector.shape_cast %424 : vector<1x128xf32> to vector<128xf32>
    %426 = vector.shape_cast %425 : vector<128xf32> to vector<1x1x128xf32>
    %427 = vector.broadcast %426 : vector<1x1x128xf32> to vector<8x8x128xf32>
    %428 = arith.mulf %423, %427 : vector<8x8x128xf32>
    %429 = arith.addf %422, %428 : vector<8x8x128xf32>
    %430 = vector.extract_strided_slice %401 {offsets = [0, 4, 0], sizes = [8, 8, 128], strides = [1, 1, 1]} : vector<8x16x128xf32> to vector<8x8x128xf32>
    %c58 = arith.constant 58 : index
    %c0_70 = arith.constant 0 : index
    %431 = vector.load %arg5[%c58, %c0_70] : memref<81x128xf32, #tpu.memory_space<vmem>>, vector<1x128xf32>
    %432 = vector.shape_cast %431 : vector<1x128xf32> to vector<128xf32>
    %433 = vector.shape_cast %432 : vector<128xf32> to vector<1x1x128xf32>
    %434 = vector.broadcast %433 : vector<1x1x128xf32> to vector<8x8x128xf32>
    %435 = arith.mulf %430, %434 : vector<8x8x128xf32>
    %436 = arith.addf %429, %435 : vector<8x8x128xf32>
    %437 = vector.extract_strided_slice %401 {offsets = [0, 5, 0], sizes = [8, 8, 128], strides = [1, 1, 1]} : vector<8x16x128xf32> to vector<8x8x128xf32>
    %c59 = arith.constant 59 : index
    %c0_71 = arith.constant 0 : index
    %438 = vector.load %arg5[%c59, %c0_71] : memref<81x128xf32, #tpu.memory_space<vmem>>, vector<1x128xf32>
    %439 = vector.shape_cast %438 : vector<1x128xf32> to vector<128xf32>
    %440 = vector.shape_cast %439 : vector<128xf32> to vector<1x1x128xf32>
    %441 = vector.broadcast %440 : vector<1x1x128xf32> to vector<8x8x128xf32>
    %442 = arith.mulf %437, %441 : vector<8x8x128xf32>
    %443 = arith.addf %436, %442 : vector<8x8x128xf32>
    %444 = vector.extract_strided_slice %401 {offsets = [0, 6, 0], sizes = [8, 8, 128], strides = [1, 1, 1]} : vector<8x16x128xf32> to vector<8x8x128xf32>
    %c60 = arith.constant 60 : index
    %c0_72 = arith.constant 0 : index
    %445 = vector.load %arg5[%c60, %c0_72] : memref<81x128xf32, #tpu.memory_space<vmem>>, vector<1x128xf32>
    %446 = vector.shape_cast %445 : vector<1x128xf32> to vector<128xf32>
    %447 = vector.shape_cast %446 : vector<128xf32> to vector<1x1x128xf32>
    %448 = vector.broadcast %447 : vector<1x1x128xf32> to vector<8x8x128xf32>
    %449 = arith.mulf %444, %448 : vector<8x8x128xf32>
    %450 = arith.addf %443, %449 : vector<8x8x128xf32>
    %451 = vector.extract_strided_slice %401 {offsets = [0, 7, 0], sizes = [8, 8, 128], strides = [1, 1, 1]} : vector<8x16x128xf32> to vector<8x8x128xf32>
    %c61 = arith.constant 61 : index
    %c0_73 = arith.constant 0 : index
    %452 = vector.load %arg5[%c61, %c0_73] : memref<81x128xf32, #tpu.memory_space<vmem>>, vector<1x128xf32>
    %453 = vector.shape_cast %452 : vector<1x128xf32> to vector<128xf32>
    %454 = vector.shape_cast %453 : vector<128xf32> to vector<1x1x128xf32>
    %455 = vector.broadcast %454 : vector<1x1x128xf32> to vector<8x8x128xf32>
    %456 = arith.mulf %451, %455 : vector<8x8x128xf32>
    %457 = arith.addf %450, %456 : vector<8x8x128xf32>
    %458 = vector.extract_strided_slice %401 {offsets = [0, 8, 0], sizes = [8, 8, 128], strides = [1, 1, 1]} : vector<8x16x128xf32> to vector<8x8x128xf32>
    %c62 = arith.constant 62 : index
    %c0_74 = arith.constant 0 : index
    %459 = vector.load %arg5[%c62, %c0_74] : memref<81x128xf32, #tpu.memory_space<vmem>>, vector<1x128xf32>
    %460 = vector.shape_cast %459 : vector<1x128xf32> to vector<128xf32>
    %461 = vector.shape_cast %460 : vector<128xf32> to vector<1x1x128xf32>
    %462 = vector.broadcast %461 : vector<1x1x128xf32> to vector<8x8x128xf32>
    %463 = arith.mulf %458, %462 : vector<8x8x128xf32>
    %464 = arith.addf %457, %463 : vector<8x8x128xf32>
    %465 = vector.extract_strided_slice %12 {offsets = [7, 0, 0], sizes = [8, 16, 128], strides = [1, 1, 1]} : vector<16x16x128xf32> to vector<8x16x128xf32>
    %466 = vector.extract_strided_slice %465 {offsets = [0, 0, 0], sizes = [8, 8, 128], strides = [1, 1, 1]} : vector<8x16x128xf32> to vector<8x8x128xf32>
    %c63 = arith.constant 63 : index
    %c0_75 = arith.constant 0 : index
    %467 = vector.load %arg5[%c63, %c0_75] : memref<81x128xf32, #tpu.memory_space<vmem>>, vector<1x128xf32>
    %468 = vector.shape_cast %467 : vector<1x128xf32> to vector<128xf32>
    %469 = vector.shape_cast %468 : vector<128xf32> to vector<1x1x128xf32>
    %470 = vector.broadcast %469 : vector<1x1x128xf32> to vector<8x8x128xf32>
    %471 = arith.mulf %466, %470 : vector<8x8x128xf32>
    %472 = arith.addf %464, %471 : vector<8x8x128xf32>
    %473 = vector.extract_strided_slice %465 {offsets = [0, 1, 0], sizes = [8, 8, 128], strides = [1, 1, 1]} : vector<8x16x128xf32> to vector<8x8x128xf32>
    %c64 = arith.constant 64 : index
    %c0_76 = arith.constant 0 : index
    %474 = vector.load %arg5[%c64, %c0_76] : memref<81x128xf32, #tpu.memory_space<vmem>>, vector<1x128xf32>
    %475 = vector.shape_cast %474 : vector<1x128xf32> to vector<128xf32>
    %476 = vector.shape_cast %475 : vector<128xf32> to vector<1x1x128xf32>
    %477 = vector.broadcast %476 : vector<1x1x128xf32> to vector<8x8x128xf32>
    %478 = arith.mulf %473, %477 : vector<8x8x128xf32>
    %479 = arith.addf %472, %478 : vector<8x8x128xf32>
    %480 = vector.extract_strided_slice %465 {offsets = [0, 2, 0], sizes = [8, 8, 128], strides = [1, 1, 1]} : vector<8x16x128xf32> to vector<8x8x128xf32>
    %c65 = arith.constant 65 : index
    %c0_77 = arith.constant 0 : index
    %481 = vector.load %arg5[%c65, %c0_77] : memref<81x128xf32, #tpu.memory_space<vmem>>, vector<1x128xf32>
    %482 = vector.shape_cast %481 : vector<1x128xf32> to vector<128xf32>
    %483 = vector.shape_cast %482 : vector<128xf32> to vector<1x1x128xf32>
    %484 = vector.broadcast %483 : vector<1x1x128xf32> to vector<8x8x128xf32>
    %485 = arith.mulf %480, %484 : vector<8x8x128xf32>
    %486 = arith.addf %479, %485 : vector<8x8x128xf32>
    %487 = vector.extract_strided_slice %465 {offsets = [0, 3, 0], sizes = [8, 8, 128], strides = [1, 1, 1]} : vector<8x16x128xf32> to vector<8x8x128xf32>
    %c66 = arith.constant 66 : index
    %c0_78 = arith.constant 0 : index
    %488 = vector.load %arg5[%c66, %c0_78] : memref<81x128xf32, #tpu.memory_space<vmem>>, vector<1x128xf32>
    %489 = vector.shape_cast %488 : vector<1x128xf32> to vector<128xf32>
    %490 = vector.shape_cast %489 : vector<128xf32> to vector<1x1x128xf32>
    %491 = vector.broadcast %490 : vector<1x1x128xf32> to vector<8x8x128xf32>
    %492 = arith.mulf %487, %491 : vector<8x8x128xf32>
    %493 = arith.addf %486, %492 : vector<8x8x128xf32>
    %494 = vector.extract_strided_slice %465 {offsets = [0, 4, 0], sizes = [8, 8, 128], strides = [1, 1, 1]} : vector<8x16x128xf32> to vector<8x8x128xf32>
    %c67 = arith.constant 67 : index
    %c0_79 = arith.constant 0 : index
    %495 = vector.load %arg5[%c67, %c0_79] : memref<81x128xf32, #tpu.memory_space<vmem>>, vector<1x128xf32>
    %496 = vector.shape_cast %495 : vector<1x128xf32> to vector<128xf32>
    %497 = vector.shape_cast %496 : vector<128xf32> to vector<1x1x128xf32>
    %498 = vector.broadcast %497 : vector<1x1x128xf32> to vector<8x8x128xf32>
    %499 = arith.mulf %494, %498 : vector<8x8x128xf32>
    %500 = arith.addf %493, %499 : vector<8x8x128xf32>
    %501 = vector.extract_strided_slice %465 {offsets = [0, 5, 0], sizes = [8, 8, 128], strides = [1, 1, 1]} : vector<8x16x128xf32> to vector<8x8x128xf32>
    %c68 = arith.constant 68 : index
    %c0_80 = arith.constant 0 : index
    %502 = vector.load %arg5[%c68, %c0_80] : memref<81x128xf32, #tpu.memory_space<vmem>>, vector<1x128xf32>
    %503 = vector.shape_cast %502 : vector<1x128xf32> to vector<128xf32>
    %504 = vector.shape_cast %503 : vector<128xf32> to vector<1x1x128xf32>
    %505 = vector.broadcast %504 : vector<1x1x128xf32> to vector<8x8x128xf32>
    %506 = arith.mulf %501, %505 : vector<8x8x128xf32>
    %507 = arith.addf %500, %506 : vector<8x8x128xf32>
    %508 = vector.extract_strided_slice %465 {offsets = [0, 6, 0], sizes = [8, 8, 128], strides = [1, 1, 1]} : vector<8x16x128xf32> to vector<8x8x128xf32>
    %c69 = arith.constant 69 : index
    %c0_81 = arith.constant 0 : index
    %509 = vector.load %arg5[%c69, %c0_81] : memref<81x128xf32, #tpu.memory_space<vmem>>, vector<1x128xf32>
    %510 = vector.shape_cast %509 : vector<1x128xf32> to vector<128xf32>
    %511 = vector.shape_cast %510 : vector<128xf32> to vector<1x1x128xf32>
    %512 = vector.broadcast %511 : vector<1x1x128xf32> to vector<8x8x128xf32>
    %513 = arith.mulf %508, %512 : vector<8x8x128xf32>
    %514 = arith.addf %507, %513 : vector<8x8x128xf32>
    %515 = vector.extract_strided_slice %465 {offsets = [0, 7, 0], sizes = [8, 8, 128], strides = [1, 1, 1]} : vector<8x16x128xf32> to vector<8x8x128xf32>
    %c70 = arith.constant 70 : index
    %c0_82 = arith.constant 0 : index
    %516 = vector.load %arg5[%c70, %c0_82] : memref<81x128xf32, #tpu.memory_space<vmem>>, vector<1x128xf32>
    %517 = vector.shape_cast %516 : vector<1x128xf32> to vector<128xf32>
    %518 = vector.shape_cast %517 : vector<128xf32> to vector<1x1x128xf32>
    %519 = vector.broadcast %518 : vector<1x1x128xf32> to vector<8x8x128xf32>
    %520 = arith.mulf %515, %519 : vector<8x8x128xf32>
    %521 = arith.addf %514, %520 : vector<8x8x128xf32>
    %522 = vector.extract_strided_slice %465 {offsets = [0, 8, 0], sizes = [8, 8, 128], strides = [1, 1, 1]} : vector<8x16x128xf32> to vector<8x8x128xf32>
    %c71 = arith.constant 71 : index
    %c0_83 = arith.constant 0 : index
    %523 = vector.load %arg5[%c71, %c0_83] : memref<81x128xf32, #tpu.memory_space<vmem>>, vector<1x128xf32>
    %524 = vector.shape_cast %523 : vector<1x128xf32> to vector<128xf32>
    %525 = vector.shape_cast %524 : vector<128xf32> to vector<1x1x128xf32>
    %526 = vector.broadcast %525 : vector<1x1x128xf32> to vector<8x8x128xf32>
    %527 = arith.mulf %522, %526 : vector<8x8x128xf32>
    %528 = arith.addf %521, %527 : vector<8x8x128xf32>
    %529 = vector.extract_strided_slice %12 {offsets = [8, 0, 0], sizes = [8, 16, 128], strides = [1, 1, 1]} : vector<16x16x128xf32> to vector<8x16x128xf32>
    %530 = vector.extract_strided_slice %529 {offsets = [0, 0, 0], sizes = [8, 8, 128], strides = [1, 1, 1]} : vector<8x16x128xf32> to vector<8x8x128xf32>
    %c72 = arith.constant 72 : index
    %c0_84 = arith.constant 0 : index
    %531 = vector.load %arg5[%c72, %c0_84] : memref<81x128xf32, #tpu.memory_space<vmem>>, vector<1x128xf32>
    %532 = vector.shape_cast %531 : vector<1x128xf32> to vector<128xf32>
    %533 = vector.shape_cast %532 : vector<128xf32> to vector<1x1x128xf32>
    %534 = vector.broadcast %533 : vector<1x1x128xf32> to vector<8x8x128xf32>
    %535 = arith.mulf %530, %534 : vector<8x8x128xf32>
    %536 = arith.addf %528, %535 : vector<8x8x128xf32>
    %537 = vector.extract_strided_slice %529 {offsets = [0, 1, 0], sizes = [8, 8, 128], strides = [1, 1, 1]} : vector<8x16x128xf32> to vector<8x8x128xf32>
    %c73 = arith.constant 73 : index
    %c0_85 = arith.constant 0 : index
    %538 = vector.load %arg5[%c73, %c0_85] : memref<81x128xf32, #tpu.memory_space<vmem>>, vector<1x128xf32>
    %539 = vector.shape_cast %538 : vector<1x128xf32> to vector<128xf32>
    %540 = vector.shape_cast %539 : vector<128xf32> to vector<1x1x128xf32>
    %541 = vector.broadcast %540 : vector<1x1x128xf32> to vector<8x8x128xf32>
    %542 = arith.mulf %537, %541 : vector<8x8x128xf32>
    %543 = arith.addf %536, %542 : vector<8x8x128xf32>
    %544 = vector.extract_strided_slice %529 {offsets = [0, 2, 0], sizes = [8, 8, 128], strides = [1, 1, 1]} : vector<8x16x128xf32> to vector<8x8x128xf32>
    %c74 = arith.constant 74 : index
    %c0_86 = arith.constant 0 : index
    %545 = vector.load %arg5[%c74, %c0_86] : memref<81x128xf32, #tpu.memory_space<vmem>>, vector<1x128xf32>
    %546 = vector.shape_cast %545 : vector<1x128xf32> to vector<128xf32>
    %547 = vector.shape_cast %546 : vector<128xf32> to vector<1x1x128xf32>
    %548 = vector.broadcast %547 : vector<1x1x128xf32> to vector<8x8x128xf32>
    %549 = arith.mulf %544, %548 : vector<8x8x128xf32>
    %550 = arith.addf %543, %549 : vector<8x8x128xf32>
    %551 = vector.extract_strided_slice %529 {offsets = [0, 3, 0], sizes = [8, 8, 128], strides = [1, 1, 1]} : vector<8x16x128xf32> to vector<8x8x128xf32>
    %c75 = arith.constant 75 : index
    %c0_87 = arith.constant 0 : index
    %552 = vector.load %arg5[%c75, %c0_87] : memref<81x128xf32, #tpu.memory_space<vmem>>, vector<1x128xf32>
    %553 = vector.shape_cast %552 : vector<1x128xf32> to vector<128xf32>
    %554 = vector.shape_cast %553 : vector<128xf32> to vector<1x1x128xf32>
    %555 = vector.broadcast %554 : vector<1x1x128xf32> to vector<8x8x128xf32>
    %556 = arith.mulf %551, %555 : vector<8x8x128xf32>
    %557 = arith.addf %550, %556 : vector<8x8x128xf32>
    %558 = vector.extract_strided_slice %529 {offsets = [0, 4, 0], sizes = [8, 8, 128], strides = [1, 1, 1]} : vector<8x16x128xf32> to vector<8x8x128xf32>
    %c76 = arith.constant 76 : index
    %c0_88 = arith.constant 0 : index
    %559 = vector.load %arg5[%c76, %c0_88] : memref<81x128xf32, #tpu.memory_space<vmem>>, vector<1x128xf32>
    %560 = vector.shape_cast %559 : vector<1x128xf32> to vector<128xf32>
    %561 = vector.shape_cast %560 : vector<128xf32> to vector<1x1x128xf32>
    %562 = vector.broadcast %561 : vector<1x1x128xf32> to vector<8x8x128xf32>
    %563 = arith.mulf %558, %562 : vector<8x8x128xf32>
    %564 = arith.addf %557, %563 : vector<8x8x128xf32>
    %565 = vector.extract_strided_slice %529 {offsets = [0, 5, 0], sizes = [8, 8, 128], strides = [1, 1, 1]} : vector<8x16x128xf32> to vector<8x8x128xf32>
    %c77 = arith.constant 77 : index
    %c0_89 = arith.constant 0 : index
    %566 = vector.load %arg5[%c77, %c0_89] : memref<81x128xf32, #tpu.memory_space<vmem>>, vector<1x128xf32>
    %567 = vector.shape_cast %566 : vector<1x128xf32> to vector<128xf32>
    %568 = vector.shape_cast %567 : vector<128xf32> to vector<1x1x128xf32>
    %569 = vector.broadcast %568 : vector<1x1x128xf32> to vector<8x8x128xf32>
    %570 = arith.mulf %565, %569 : vector<8x8x128xf32>
    %571 = arith.addf %564, %570 : vector<8x8x128xf32>
    %572 = vector.extract_strided_slice %529 {offsets = [0, 6, 0], sizes = [8, 8, 128], strides = [1, 1, 1]} : vector<8x16x128xf32> to vector<8x8x128xf32>
    %c78 = arith.constant 78 : index
    %c0_90 = arith.constant 0 : index
    %573 = vector.load %arg5[%c78, %c0_90] : memref<81x128xf32, #tpu.memory_space<vmem>>, vector<1x128xf32>
    %574 = vector.shape_cast %573 : vector<1x128xf32> to vector<128xf32>
    %575 = vector.shape_cast %574 : vector<128xf32> to vector<1x1x128xf32>
    %576 = vector.broadcast %575 : vector<1x1x128xf32> to vector<8x8x128xf32>
    %577 = arith.mulf %572, %576 : vector<8x8x128xf32>
    %578 = arith.addf %571, %577 : vector<8x8x128xf32>
    %579 = vector.extract_strided_slice %529 {offsets = [0, 7, 0], sizes = [8, 8, 128], strides = [1, 1, 1]} : vector<8x16x128xf32> to vector<8x8x128xf32>
    %c79 = arith.constant 79 : index
    %c0_91 = arith.constant 0 : index
    %580 = vector.load %arg5[%c79, %c0_91] : memref<81x128xf32, #tpu.memory_space<vmem>>, vector<1x128xf32>
    %581 = vector.shape_cast %580 : vector<1x128xf32> to vector<128xf32>
    %582 = vector.shape_cast %581 : vector<128xf32> to vector<1x1x128xf32>
    %583 = vector.broadcast %582 : vector<1x1x128xf32> to vector<8x8x128xf32>
    %584 = arith.mulf %579, %583 : vector<8x8x128xf32>
    %585 = arith.addf %578, %584 : vector<8x8x128xf32>
    %586 = vector.extract_strided_slice %529 {offsets = [0, 8, 0], sizes = [8, 8, 128], strides = [1, 1, 1]} : vector<8x16x128xf32> to vector<8x8x128xf32>
    %c80 = arith.constant 80 : index
    %c0_92 = arith.constant 0 : index
    %587 = vector.load %arg5[%c80, %c0_92] : memref<81x128xf32, #tpu.memory_space<vmem>>, vector<1x128xf32>
    %588 = vector.shape_cast %587 : vector<1x128xf32> to vector<128xf32>
    %589 = vector.shape_cast %588 : vector<128xf32> to vector<1x1x128xf32>
    %590 = vector.broadcast %589 : vector<1x1x128xf32> to vector<8x8x128xf32>
    %591 = arith.mulf %586, %590 : vector<8x8x128xf32>
    %592 = arith.addf %585, %591 : vector<8x8x128xf32>
    %593 = arith.mulf %592, %592 : vector<8x8x128xf32>
    %cst_93 = arith.constant dense<0.000000e+00> : vector<8x128xf32>
    %594 = vector.multi_reduction <add>, %593, %cst_93 [1] : vector<8x8x128xf32> to vector<8x128xf32>
    %595 = vector.shape_cast %594 : vector<8x128xf32> to vector<8x1x128xf32>
    %596 = math.sqrt %595 : vector<8x1x128xf32>
    %cst_94 = arith.constant 8.000000e+01 : f32
    %597 = vector.broadcast %cst_94 : f32 to vector<8x1x128xf32>
    %598 = arith.minimumf %596, %597 : vector<8x1x128xf32>
    %599 = math.exp %598 : vector<8x1x128xf32>
    %cst_95 = arith.constant 9.99999968E-21 : f32
    %600 = vector.broadcast %cst_95 : f32 to vector<8x1x128xf32>
    %601 = arith.addf %599, %600 : vector<8x1x128xf32>
    %cst_96 = arith.constant 1.000000e+00 : f32
    %602 = vector.broadcast %cst_96 : f32 to vector<8x1x128xf32>
    %603 = arith.divf %602, %601 : vector<8x1x128xf32>
    %cst_97 = arith.constant 1.000000e+00 : f32
    %604 = vector.broadcast %cst_97 : f32 to vector<8x1x128xf32>
    %605 = arith.subf %604, %603 : vector<8x1x128xf32>
    %cst_98 = arith.constant 9.99999968E-21 : f32
    %606 = vector.broadcast %cst_98 : f32 to vector<8x1x128xf32>
    %607 = arith.addf %596, %606 : vector<8x1x128xf32>
    %608 = arith.divf %605, %607 : vector<8x1x128xf32>
    %609 = vector.broadcast %608 : vector<8x1x128xf32> to vector<8x8x128xf32>
    %610 = arith.mulf %609, %592 : vector<8x8x128xf32>
    %611 = vector.shape_cast %610 : vector<8x8x128xf32> to vector<64x128xf32>
    %612 = tpu.transpose %611, [1, 0] : vector<64x128xf32> -> vector<128x64xf32>
    %613 = vector.shape_cast %612 : vector<128x64xf32> to vector<8x16x64xf32>
    %c0_99 = arith.constant 0 : index
    %c0_100 = arith.constant 0 : index
    %c0_101 = arith.constant 0 : index
    %c0_102 = arith.constant 0 : index
    %614 = vector.load %arg7[%c0_99, %c0_100, %c0_101, %c0_102] : memref<1x8x16x64xf32, #tpu.memory_space<vmem>>, vector<1x8x16x64xf32>
    %615 = vector.shape_cast %614 : vector<1x8x16x64xf32> to vector<8x16x64xf32>
    %616 = vector.shape_cast %613 : vector<8x16x64xf32> to vector<1x8x16x64xf32>
    tpu.vector_store %arg7[%c0_99, %c0_100, %c0_101, %c0_102], %616 {strides = array<i32>} : memref<1x8x16x64xf32, #tpu.memory_space<vmem>>, vector<1x8x16x64xf32>,
    return
  }
  func.func @transform_0(%arg0: i32) -> (i32, i32, i32) {
    %c0_i32 = arith.constant 0 : i32
    %c0_i32_0 = arith.constant 0 : i32
    %c0_i32_1 = arith.constant 0 : i32
    return %arg0, %c0_i32, %c0_i32_0 : i32, i32, i32
  }
  func.func @transform_1(%arg0: i32) -> (i32, i32) {
    %c0_i32 = arith.constant 0 : i32
    %c0_i32_0 = arith.constant 0 : i32
    %c0_i32_1 = arith.constant 0 : i32
    return %c0_i32, %c0_i32_0 : i32, i32
  }
  func.func @transform_2(%arg0: i32) -> (i32, i32) {
    %c0_i32 = arith.constant 0 : i32
    %c0_i32_0 = arith.constant 0 : i32
    %c0_i32_1 = arith.constant 0 : i32
    return %c0_i32, %c0_i32_0 : i32, i32
  }
  func.func @transform_3(%arg0: i32) -> (i32, i32) {
    %c0_i32 = arith.constant 0 : i32
    %c0_i32_0 = arith.constant 0 : i32
    %c0_i32_1 = arith.constant 0 : i32
    return %c0_i32, %c0_i32_0 : i32, i32
  }
  func.func @transform_4(%arg0: i32) -> (i32, i32) {
    %c0_i32 = arith.constant 0 : i32
    %c0_i32_0 = arith.constant 0 : i32
    %c0_i32_1 = arith.constant 0 : i32
    return %c0_i32, %c0_i32_0 : i32, i32
  }
  func.func @transform_5(%arg0: i32) -> (i32, i32) {
    %c0_i32 = arith.constant 0 : i32
    %c0_i32_0 = arith.constant 0 : i32
    %c0_i32_1 = arith.constant 0 : i32
    return %c0_i32, %c0_i32_0 : i32, i32
  }
  func.func @transform_6(%arg0: i32) -> (i32, i32, i32, i32) {
    %c0_i32 = arith.constant 0 : i32
    %c0_i32_0 = arith.constant 0 : i32
    %c0_i32_1 = arith.constant 0 : i32
    %c0_i32_2 = arith.constant 0 : i32
    return %arg0, %c0_i32, %c0_i32_0, %c0_i32_1 : i32, i32, i32, i32
  }
}

module attributes {stable_mosaic.version = 11 : i64} {
  func.func @_prune_compact_kernel(%arg0: i32, %arg1: memref<1x8x1024xf32, #tpu.memory_space<vmem>>, %arg2: memref<1x8x1024xf32, #tpu.memory_space<vmem>>, %arg3: memref<1x1x8xf32, #tpu.memory_space<vmem>>) attributes {dimension_semantics = [#tpu.dimension_semantics<parallel>], iteration_bounds = array<i64: 2>, scalar_prefetch = 0 : i64, scratch_operands = 0 : i64, tpu.core_type = #tpu.core_type<tc>, window_params = [{transform_indices = @transform_0, window_bounds = array<i64: 1, 8, 1024>}, {transform_indices = @transform_1, window_bounds = array<i64: 1, 8, 1024>}, {transform_indices = @transform_2, window_bounds = array<i64: 1, 1, 8>}]} {
    %c0 = arith.constant 0 : index
    %c0_0 = arith.constant 0 : index
    %c0_1 = arith.constant 0 : index
    %0 = vector.load %arg1[%c0, %c0_0, %c0_1] : memref<1x8x1024xf32, #tpu.memory_space<vmem>>, vector<1x8x1024xf32>
    %1 = vector.shape_cast %0 : vector<1x8x1024xf32> to vector<8x1024xf32>
    %cst = arith.constant dense<0.000000e+00> : vector<8x8xf32>
    %2 = tpu.matmul %1, %1, %cst {dimension_numbers = #tpu.dot_dimension_numbers<[1], [1], [0], [0], [0, 0, 1, 0], [], []>} : vector<8x1024xf32>, vector<8x1024xf32>, vector<8x8xf32> -> vector<8x8xf32>
    %3 = tpu.iota {dimensions = array<i32: 0>} : vector<8x8xi32>
    %4 = tpu.iota {dimensions = array<i32: 1>} : vector<8x8xi32>
    %5 = arith.cmpi eq, %3, %4 : vector<8x8xi32>
    %cst_2 = arith.constant 1.000000e+00 : f32
    %cst_3 = arith.constant 0.000000e+00 : f32
    %6 = vector.broadcast %cst_2 : f32 to vector<8x8xf32>
    %7 = vector.broadcast %cst_3 : f32 to vector<8x8xf32>
    %8 = arith.select %5, %6, %7 : vector<8x8xi1>, vector<8x8xf32>
    %9 = arith.mulf %2, %8 : vector<8x8xf32>
    %cst_4 = arith.constant dense<0.000000e+00> : vector<8xf32>
    %10 = vector.multi_reduction <add>, %9, %cst_4 [1] : vector<8x8xf32> to vector<8xf32>
    %11 = vector.shape_cast %10 : vector<8xf32> to vector<8x1xf32>
    %12 = arith.mulf %2, %8 : vector<8x8xf32>
    %cst_5 = arith.constant dense<0.000000e+00> : vector<8xf32>
    %13 = vector.multi_reduction <add>, %12, %cst_5 [0] : vector<8x8xf32> to vector<8xf32>
    %14 = vector.shape_cast %13 : vector<8xf32> to vector<1x8xf32>
    %15 = math.sqrt %11 : vector<8x1xf32>
    %cst_6 = arith.constant 9.99999993E-9 : f32
    %16 = vector.broadcast %cst_6 : f32 to vector<8x1xf32>
    %17 = arith.addf %15, %16 : vector<8x1xf32>
    %18 = math.sqrt %14 : vector<1x8xf32>
    %cst_7 = arith.constant 9.99999993E-9 : f32
    %19 = vector.broadcast %cst_7 : f32 to vector<1x8xf32>
    %20 = arith.addf %18, %19 : vector<1x8xf32>
    %21 = vector.broadcast %17 : vector<8x1xf32> to vector<8x8xf32>
    %22 = vector.broadcast %20 : vector<1x8xf32> to vector<8x8xf32>
    %23 = arith.mulf %21, %22 : vector<8x8xf32>
    %24 = arith.divf %2, %23 : vector<8x8xf32>
    %cst_8 = arith.constant 0.699999988 : f32
    %25 = vector.broadcast %cst_8 : f32 to vector<8x8xf32>
    %26 = arith.cmpf ogt, %24, %25 : vector<8x8xf32>
    %27 = vector.shape_cast %11 : vector<8x1xf32> to vector<8x1xf32>
    %28 = vector.broadcast %27 : vector<8x1xf32> to vector<8x8xf32>
    %29 = vector.shape_cast %14 : vector<1x8xf32> to vector<1x8xf32>
    %30 = vector.broadcast %29 : vector<1x8xf32> to vector<8x8xf32>
    %31 = arith.cmpf ogt, %30, %28 : vector<8x8xf32>
    %32 = arith.cmpf oeq, %30, %28 : vector<8x8xf32>
    %33 = arith.cmpi sgt, %4, %3 : vector<8x8xi32>
    %34 = arith.andi %32, %33 : vector<8x8xi1>
    %35 = arith.ori %31, %34 : vector<8x8xi1>
    %36 = arith.cmpf ogt, %28, %30 : vector<8x8xf32>
    %37 = arith.cmpf oeq, %28, %30 : vector<8x8xf32>
    %38 = arith.cmpi sgt, %3, %4 : vector<8x8xi32>
    %39 = arith.andi %37, %38 : vector<8x8xi1>
    %40 = arith.ori %36, %39 : vector<8x8xi1>
    %41 = arith.cmpf olt, %28, %30 : vector<8x8xf32>
    %42 = arith.cmpf oeq, %28, %30 : vector<8x8xf32>
    %43 = arith.cmpi slt, %3, %4 : vector<8x8xi32>
    %44 = arith.andi %42, %43 : vector<8x8xi1>
    %45 = arith.ori %41, %44 : vector<8x8xi1>
    %46 = arith.andi %35, %26 : vector<8x8xi1>
    %cst_9 = arith.constant 1.000000e+00 : f32
    %cst_10 = arith.constant 0.000000e+00 : f32
    %47 = vector.broadcast %cst_9 : f32 to vector<8x8xf32>
    %48 = vector.broadcast %cst_10 : f32 to vector<8x8xf32>
    %49 = arith.select %46, %47, %48 : vector<8x8xi1>, vector<8x8xf32>
    %cst_11 = arith.constant dense<0xFF800000> : vector<8xf32>
    %50 = vector.multi_reduction <maximumf>, %49, %cst_11 [1] : vector<8x8xf32> to vector<8xf32>
    %51 = vector.shape_cast %50 : vector<8xf32> to vector<8x1xf32>
    %cst_12 = arith.constant 1.000000e+00 : f32
    %52 = vector.broadcast %cst_12 : f32 to vector<8x1xf32>
    %53 = arith.subf %52, %51 : vector<8x1xf32>
    %54 = arith.andi %40, %26 : vector<8x8xi1>
    %cst_13 = arith.constant 1.000000e+00 : f32
    %cst_14 = arith.constant 0.000000e+00 : f32
    %55 = vector.broadcast %cst_13 : f32 to vector<8x8xf32>
    %56 = vector.broadcast %cst_14 : f32 to vector<8x8xf32>
    %57 = arith.select %54, %55, %56 : vector<8x8xi1>, vector<8x8xf32>
    %cst_15 = arith.constant dense<0xFF800000> : vector<8xf32>
    %58 = vector.multi_reduction <maximumf>, %57, %cst_15 [0] : vector<8x8xf32> to vector<8xf32>
    %59 = vector.shape_cast %58 : vector<8xf32> to vector<1x8xf32>
    %cst_16 = arith.constant 1.000000e+00 : f32
    %60 = vector.broadcast %cst_16 : f32 to vector<1x8xf32>
    %61 = arith.subf %60, %59 : vector<1x8xf32>
    %cst_17 = arith.constant 1.000000e+00 : f32
    %cst_18 = arith.constant 0.000000e+00 : f32
    %62 = vector.broadcast %cst_17 : f32 to vector<8x8xf32>
    %63 = vector.broadcast %cst_18 : f32 to vector<8x8xf32>
    %64 = arith.select %45, %62, %63 : vector<8x8xi1>, vector<8x8xf32>
    %65 = vector.broadcast %53 : vector<8x1xf32> to vector<8x8xf32>
    %66 = arith.mulf %64, %65 : vector<8x8xf32>
    %cst_19 = arith.constant dense<0.000000e+00> : vector<8xf32>
    %67 = vector.multi_reduction <add>, %66, %cst_19 [0] : vector<8x8xf32> to vector<8xf32>
    %68 = vector.shape_cast %67 : vector<8xf32> to vector<1x8xf32>
    %69 = vector.shape_cast %68 : vector<1x8xf32> to vector<1x8xf32>
    %70 = vector.broadcast %69 : vector<1x8xf32> to vector<8x8xf32>
    %71 = arith.sitofp %3 : vector<8x8xi32> to vector<8x8xf32>
    %72 = arith.cmpf oeq, %70, %71 : vector<8x8xf32>
    %cst_20 = arith.constant 1.000000e+00 : f32
    %cst_21 = arith.constant 0.000000e+00 : f32
    %73 = vector.broadcast %cst_20 : f32 to vector<8x8xf32>
    %74 = vector.broadcast %cst_21 : f32 to vector<8x8xf32>
    %75 = arith.select %72, %73, %74 : vector<8x8xi1>, vector<8x8xf32>
    %76 = vector.shape_cast %61 : vector<1x8xf32> to vector<1x8xf32>
    %77 = vector.broadcast %76 : vector<1x8xf32> to vector<8x8xf32>
    %78 = arith.mulf %75, %77 : vector<8x8xf32>
    %cst_22 = arith.constant dense<0.000000e+00> : vector<8x1024xf32>
    %79 = tpu.matmul %78, %1, %cst_22 {dimension_numbers = #tpu.dot_dimension_numbers<[1], [0], [0], [1], [0, 0, 1, 1], [], []>} : vector<8x8xf32>, vector<8x1024xf32>, vector<8x1024xf32> -> vector<8x1024xf32>
    %c0_23 = arith.constant 0 : index
    %c0_24 = arith.constant 0 : index
    %c0_25 = arith.constant 0 : index
    %80 = vector.load %arg2[%c0_23, %c0_24, %c0_25] : memref<1x8x1024xf32, #tpu.memory_space<vmem>>, vector<1x8x1024xf32>
    %81 = vector.shape_cast %80 : vector<1x8x1024xf32> to vector<8x1024xf32>
    %82 = vector.shape_cast %79 : vector<8x1024xf32> to vector<1x8x1024xf32>
    tpu.vector_store %arg2[%c0_23, %c0_24, %c0_25], %82 {strides = array<i32>} : memref<1x8x1024xf32, #tpu.memory_space<vmem>>, vector<1x8x1024xf32>,
    %c0_26 = arith.constant 0 : index
    %c0_27 = arith.constant 0 : index
    %c0_28 = arith.constant 0 : index
    %83 = vector.load %arg3[%c0_26, %c0_27, %c0_28] : memref<1x1x8xf32, #tpu.memory_space<vmem>>, vector<1x1x8xf32>
    %84 = vector.shape_cast %83 : vector<1x1x8xf32> to vector<1x8xf32>
    %85 = vector.shape_cast %61 : vector<1x8xf32> to vector<1x1x8xf32>
    tpu.vector_store %arg3[%c0_26, %c0_27, %c0_28], %85 {strides = array<i32>} : memref<1x1x8xf32, #tpu.memory_space<vmem>>, vector<1x1x8xf32>,
    return
  }
  func.func @transform_0(%arg0: i32) -> (i32, i32, i32) {
    %c0_i32 = arith.constant 0 : i32
    %c0_i32_0 = arith.constant 0 : i32
    %c0_i32_1 = arith.constant 0 : i32
    return %arg0, %c0_i32, %c0_i32_0 : i32, i32, i32
  }
  func.func @transform_1(%arg0: i32) -> (i32, i32, i32) {
    %c0_i32 = arith.constant 0 : i32
    %c0_i32_0 = arith.constant 0 : i32
    %c0_i32_1 = arith.constant 0 : i32
    return %arg0, %c0_i32, %c0_i32_0 : i32, i32, i32
  }
  func.func @transform_2(%arg0: i32) -> (i32, i32, i32) {
    %c0_i32 = arith.constant 0 : i32
    %c0_i32_0 = arith.constant 0 : i32
    %c0_i32_1 = arith.constant 0 : i32
    return %arg0, %c0_i32, %c0_i32_0 : i32, i32, i32
  }
}

</mosaic_0001>

<bundles_post_ra>
// kernel: tile.23
= control target key start
LH: loop header
LB: loop body
LE: loop exit
PB: predicated region body
PF: predicated region fallthrough
CT: control target
= control target key end

     0   :  { %vm4_vm0 = vcmask 1047556   ;;  %s389_s14 = smov 112   ;;  %s390_s4 = smov 96   ;;  %vm6_vm1 = vcmask 130048   ;;  %vm39_vm2 = vcmask 1048448   ;;  %vm78_vm3 = vcmask 917248   ;;  %s698_s0 = inlined_call_operand.vmem [shape: f32[27,8,16], index: 0, kind: input, shape index: {}]   ;;  %s699_s1 = inlined_call_operand.vmem [shape: f32[27,128], index: 1, kind: output, shape index: {}]  }
   0x1   :  { %v317_v0 = vld [vmem:[%s698_s0 + $0x87] ss:$8 sm:$0xf]   ;;  %v324_v10 = vld [vmem:[%s698_s0 + $0x46] ss:$8 sm:$0xf]  }
   0x2   :  { %v318_v1 = vld [vmem:[%s698_s0 + $0x87] ss:$8 sm:$0xf0]   ;;  %v325_v11 = vld [vmem:[%s698_s0 + $0x46] ss:$8 sm:$0xf0]  }
   0x3   :  { %v57_v2 = vsel %vm4_vm0, %v318_v1, %v317_v0  ;;  %v312_v3 = vld [vmem:[%s698_s0 + $0x7] ss:$8 sm:$0xf]   ;;  %v322_v12 = vld [vmem:[%s698_s0 + $0x6] ss:$8 sm:$0xf]   ;;  %v85_v14 = vsel %vm4_vm0, %v325_v11, %v324_v10 }
   0x4   :  { %v313_v4 = vld [vmem:[%s698_s0 + $0x7] ss:$8 sm:$0xf0]   ;;  %58 = vrot.lane.b32.xlu1 %v57_v2, %s389_s14  ;;  %v323_v13 = vld [vmem:[%s698_s0 + $0x6] ss:$8 sm:$0xf0]  }
   0x5   :  { %v36_v5 = vsel %vm4_vm0, %v313_v4, %v312_v3  ;;  %v314_v6 = vld [vmem:[%s698_s0 + $0x47] ss:$8 sm:$0xf]   ;;  %v75_v15 = vsel %vm4_vm0, %v323_v13, %v322_v12  ;;  %v327_v16 = vld [vmem:[%s698_s0 + $0x86] ss:$8 sm:$0xf]  }
   0x6   :  { %37 = vrot.lane.b32.xlu0 %v36_v5, %s389_s14  ;;  %v320_v7 = vld [vmem:[%s698_s0 + $0xc7] ss:$8 sm:$0x7]   ;;  %v328_v17 = vld [vmem:[%s698_s0 + $0x86] ss:$8 sm:$0xf0]  }
   0x7   :  { %v315_v8 = vld [vmem:[%s698_s0 + $0x47] ss:$8 sm:$0xf0]   ;;  %v330_v18 = vld [vmem:[%s698_s0 + $0xc6] ss:$8 sm:$0x7]   ;;  %v96_v19 = vsel %vm4_vm0, %v328_v17, %v327_v16 }
   0x8   :  { %v46_v9 = vsel %vm4_vm0, %v315_v8, %v314_v6  ;;  %65 = vrot.lane.b32.xlu1 %v320_v7, %s389_s14  ;;  %v334_v20 = vld [vmem:[%s698_s0 + $0x45] ss:$8 sm:$0xf]   ;;  %s391_s19 = smov 80   ;;  %s392_s7 = smov 64   ;;  %vm117_vm4 = vcmask 786048  }
   0x9   :  { %v335_v21 = vld [vmem:[%s698_s0 + $0x45] ss:$8 sm:$0xf0]   ;;  %v344_v30 = vld [vmem:[%s698_s0 + $0x44] ss:$8 sm:$0xf]  }
   0xa   :  { %47 = vrot.lane.b32.xlu0 %v46_v9, %s389_s14  ;;  %v332_v22 = vld [vmem:[%s698_s0 + $0x5] ss:$8 sm:$0xf]   ;;  %v124_v24 = vsel %vm4_vm0, %v335_v21, %v334_v20  ;;  %v345_v31 = vld [vmem:[%s698_s0 + $0x44] ss:$8 sm:$0xf0]  }
   0xb   :  { %v333_v23 = vld [vmem:[%s698_s0 + $0x5] ss:$8 sm:$0xf0]   ;;  %v342_v32 = vld [vmem:[%s698_s0 + $0x4] ss:$8 sm:$0xf]   ;;  %v163_v34 = vsel %vm4_vm0, %v345_v31, %v344_v30 }
   0xc   :  { %86 = vrot.lane.b32.xlu1 %v85_v14, %s390_s4  ;;  %v114_v25 = vsel %vm4_vm0, %v333_v23, %v332_v22  ;;  %v337_v26 = vld [vmem:[%s698_s0 + $0x85] ss:$8 sm:$0xf]   ;;  %v343_v33 = vld [vmem:[%s698_s0 + $0x4] ss:$8 sm:$0xf0]  }
   0xd   :  { %v338_v27 = vld [vmem:[%s698_s0 + $0x85] ss:$8 sm:$0xf0]   ;;  %v153_v35 = vsel %vm4_vm0, %v343_v33, %v342_v32  ;;  %v350_v36 = vld [vmem:[%s698_s0 + $0xc4] ss:$8 sm:$0x7]  }
   0xe   :  { %76 = vrot.lane.b32.xlu0 %v75_v15, %s390_s4  ;;  %v340_v28 = vld [vmem:[%s698_s0 + $0xc5] ss:$8 sm:$0x7]   ;;  %v135_v29 = vsel %vm4_vm0, %v338_v27, %v337_v26  ;;  %v347_v37 = vld [vmem:[%s698_s0 + $0x84] ss:$8 sm:$0xf]  }
   0xf   :  { %v348_v38 = vld [vmem:[%s698_s0 + $0x84] ss:$8 sm:$0xf0]   ;;  %v354_v39 = vld [vmem:[%s698_s0 + $0x43] ss:$8 sm:$0xf]  }
  0x10   :  { %104 = vrot.lane.b32.xlu1 %v330_v18, %s390_s4  ;;  %v355_v40 = vld [vmem:[%s698_s0 + $0x43] ss:$8 sm:$0xf0]   ;;  %v307_v41 = vld [vmem:[%s698_s0 + $0x80] ss:$8 sm:$0xf]   ;;  %v174_v47 = vsel %vm4_vm0, %v348_v38, %v347_v37 }
  0x11   :  { %v308_v42 = vld [vmem:[%s698_s0 + $0x80] ss:$8 sm:$0xf0]   ;;  %v352_v43 = vld [vmem:[%s698_s0 + $0x3] ss:$8 sm:$0xf]   ;;  %v202_v54 = vsel %vm4_vm0, %v355_v40, %v354_v39 }
  0x12   :  { %97 = vrot.lane.b32.xlu0 %v96_v19, %s390_s4  ;;  %v22_v44 = vsel %vm4_vm0, %v308_v42, %v307_v41  ;;  %v2_v45 = vld [vmem:[%s698_s0] ss:$8 sm:$0xf]   ;;  %v353_v51 = vld [vmem:[%s698_s0 + $0x3] ss:$8 sm:$0xf0]  }
  0x13   :  { %v3_v46 = vld [vmem:[%s698_s0] ss:$8 sm:$0xf0]   ;;  %309 = vst.msk [vmem:[%s699_s1 + $0x10] sm:$0xff] %vm6_vm1, %v22_v44   ;;  %v192_v55 = vsel %vm4_vm0, %v353_v51, %v352_v43  ;;  %s393_s13 = smov 48   ;;  %s394_s28 = smov 32  }
  0x14   :  { %125 = vrot.lane.b32.xlu1 %v124_v24, %s391_s19  ;;  %v5_v48 = vsel %vm4_vm0, %v3_v46, %v2_v45  ;;  %v310_v49 = vld [vmem:[%s698_s0 + $0xc0] ss:$8 sm:$0x7]   ;;  %v357_v56 = vld [vmem:[%s698_s0 + $0x83] ss:$8 sm:$0xf]  }
  0x15   :  { %v304_v50 = vld [vmem:[%s698_s0 + $0x40] ss:$8 sm:$0xf]   ;;  %7 = vst.msk [vmem:[%s699_s1] sm:$0xff] %vm6_vm1, %v5_v48   ;;  %311 = vst.msk [vmem:[%s699_s1 + $0x18] sm:$0x7] %vm6_vm1, %v310_v49  }
  0x16   :  { %115 = vrot.lane.b32.xlu0 %v114_v25, %s391_s19  ;;  %v305_v52 = vld [vmem:[%s698_s0 + $0x40] ss:$8 sm:$0xf0]   ;;  %v358_v57 = vld [vmem:[%s698_s0 + $0x83] ss:$8 sm:$0xf0]  }
  0x17   :  { %v13_v53 = vsel %vm4_vm0, %v305_v52, %v304_v50  ;;  %v360_v58 = vld [vmem:[%s698_s0 + $0xc3] ss:$8 sm:$0x7]   ;;  %v213_v59 = vsel %vm4_vm0, %v358_v57, %v357_v56  ;;  %v364_v60 = vld [vmem:[%s698_s0 + $0x42] ss:$8 sm:$0xf]  }
  0x18   :  { %143 = vrot.lane.b32.xlu1 %v340_v28, %s391_s19  ;;  %306 = vst.msk [vmem:[%s699_s1 + $0x8] sm:$0xff] %vm6_vm1, %v13_v53   ;;  %v365_v61 = vld [vmem:[%s698_s0 + $0x42] ss:$8 sm:$0xf0]   ;;  %s395_s14 = smov 16   ;;  %vm156_vm5 = vcmask 654848  }
  0x19   :  { %v362_v62 = vld [vmem:[%s698_s0 + $0x2] ss:$8 sm:$0xf]   ;;  %v241_v0 = vsel %vm4_vm0, %v365_v61, %v364_v60  ;;  %v374_v6 = vld [vmem:[%s698_s0 + $0x41] ss:$8 sm:$0xf]  }
  0x1a   :  { %136 = vrot.lane.b32.xlu0 %v135_v29, %s391_s19  ;;  %v363_v63 = vld [vmem:[%s698_s0 + $0x2] ss:$8 sm:$0xf0]   ;;  %v375_v7 = vld [vmem:[%s698_s0 + $0x41] ss:$8 sm:$0xf0]  }
  0x1b   :  { %v231_v1 = vsel %vm4_vm0, %v363_v63, %v362_v62  ;;  %v367_v2 = vld [vmem:[%s698_s0 + $0x82] ss:$8 sm:$0xf]   ;;  %v372_v8 = vld [vmem:[%s698_s0 + $0x1] ss:$8 sm:$0xf]   ;;  %v280_v10 = vsel %vm4_vm0, %v375_v7, %v374_v6 }
  0x1c   :  { %164 = vrot.lane.b32.xlu1 %v163_v34, %s392_s7  ;;  %v368_v3 = vld [vmem:[%s698_s0 + $0x82] ss:$8 sm:$0xf0]   ;;  %v373_v9 = vld [vmem:[%s698_s0 + $0x1] ss:$8 sm:$0xf0]  }
  0x1d   :  { %v370_v4 = vld [vmem:[%s698_s0 + $0xc2] ss:$8 sm:$0x7]   ;;  %v252_v5 = vsel %vm4_vm0, %v368_v3, %v367_v2  ;;  %v270_v11 = vsel %vm4_vm0, %v373_v9, %v372_v8  ;;  %v377_v12 = vld [vmem:[%s698_s0 + $0x81] ss:$8 sm:$0xf]  }
  0x1e   :  { %154 = vrot.lane.b32.xlu0 %v153_v35, %s392_s7  ;;  %v378_v13 = vld [vmem:[%s698_s0 + $0x81] ss:$8 sm:$0xf0]   ;;  %vm195_vm6 = vcmask 523648   ;;  %vm234_vm7 = vcmask 392448   ;;  %vm273_vm8 = vcmask 261248  }
  0x1f   :  { %v380_v14 = vld [vmem:[%s698_s0 + $0xc1] ss:$8 sm:$0x7]   ;;  %v291_v15 = vsel %vm4_vm0, %v378_v13, %v377_v12 }
  0x20   :  { %182 = vrot.lane.b32.xlu1 %v350_v36, %s392_s7 }
  0x22   :  { %175 = vrot.lane.b32.xlu0 %v174_v47, %s392_s7 }
  0x24   :  { %203 = vrot.lane.b32.xlu1 %v202_v54, %s393_s13 }
  0x26   :  { %193 = vrot.lane.b32.xlu0 %v192_v55, %s393_s13 }
  0x28   :  { %221 = vrot.lane.b32.xlu1 %v360_v58, %s393_s13 }
  0x2a   :  { %214 = vrot.lane.b32.xlu0 %v213_v59, %s393_s13 }
  0x2c   :  { %242 = vrot.lane.b32.xlu1 %v241_v0, %s394_s28 }
  0x2e   :  { %232 = vrot.lane.b32.xlu0 %v231_v1, %s394_s28 }
  0x30   :  { %260 = vrot.lane.b32.xlu1 %v370_v4, %s394_s28 }
  0x32   :  { %253 = vrot.lane.b32.xlu0 %v252_v5, %s394_s28 }
  0x34   :  { %281 = vrot.lane.b32.xlu1 %v280_v10, %s395_s14 }
  0x36   :  { %271 = vrot.lane.b32.xlu0 %v270_v11, %s395_s14 }
  0x38   :  { %299 = vrot.lane.b32.xlu1 %v380_v14, %s395_s14 }
  0x3a   :  { %292 = vrot.lane.b32.xlu0 %v291_v15, %s395_s14 }
  0x76   :  { %v59_v16 = vpop.permute.xlu1 %58  }
  0x77   :  { %319 = vst.msk [vmem:[%s699_s1 + $0x10] sm:$0xff] %vm39_vm2, %v59_v16  }
  0x78   :  { %v38_v17 = vpop.permute.xlu0 %37  }
  0x79   :  { %40 = vst.msk [vmem:[%s699_s1] sm:$0xff] %vm39_vm2, %v38_v17  }
  0x7a   :  { %v66_v18 = vpop.permute.xlu1 %65  }
  0x7b   :  { %321 = vst.msk [vmem:[%s699_s1 + $0x18] sm:$0x7] %vm39_vm2, %v66_v18  }
  0x7c   :  { %v48_v19 = vpop.permute.xlu0 %47  }
  0x7d   :  { %316 = vst.msk [vmem:[%s699_s1 + $0x8] sm:$0xff] %vm39_vm2, %v48_v19  }
  0x7e   :  { %v87_v20 = vpop.permute.xlu1 %86  }
  0x7f   :  { %326 = vst.msk [vmem:[%s699_s1 + $0x8] sm:$0xff] %vm78_vm3, %v87_v20  }
  0x80   :  { %v77_v21 = vpop.permute.xlu0 %76  }
  0x81   :  { %79 = vst.msk [vmem:[%s699_s1] sm:$0xff] %vm78_vm3, %v77_v21  }
  0x82   :  { %v105_v22 = vpop.permute.xlu1 %104  }
  0x83   :  { %331 = vst.msk [vmem:[%s699_s1 + $0x18] sm:$0x7] %vm78_vm3, %v105_v22  }
  0x84   :  { %v98_v23 = vpop.permute.xlu0 %97  }
  0x85   :  { %329 = vst.msk [vmem:[%s699_s1 + $0x10] sm:$0xff] %vm78_vm3, %v98_v23  }
  0x86   :  { %v126_v24 = vpop.permute.xlu1 %125  }
  0x87   :  { %336 = vst.msk [vmem:[%s699_s1 + $0x8] sm:$0xff] %vm117_vm4, %v126_v24  }
  0x88   :  { %v116_v25 = vpop.permute.xlu0 %115  }
  0x89   :  { %118 = vst.msk [vmem:[%s699_s1] sm:$0xff] %vm117_vm4, %v116_v25  }
  0x8a   :  { %v144_v26 = vpop.permute.xlu1 %143  }
  0x8b   :  { %341 = vst.msk [vmem:[%s699_s1 + $0x18] sm:$0x7] %vm117_vm4, %v144_v26  }
  0x8c   :  { %v137_v27 = vpop.permute.xlu0 %136  }
  0x8d   :  { %339 = vst.msk [vmem:[%s699_s1 + $0x10] sm:$0xff] %vm117_vm4, %v137_v27  }
  0x8e   :  { %v165_v28 = vpop.permute.xlu1 %164  }
  0x8f   :  { %346 = vst.msk [vmem:[%s699_s1 + $0x8] sm:$0xff] %vm156_vm5, %v165_v28  }
  0x90   :  { %v155_v29 = vpop.permute.xlu0 %154  }
  0x91   :  { %157 = vst.msk [vmem:[%s699_s1] sm:$0xff] %vm156_vm5, %v155_v29  }
  0x92   :  { %v183_v30 = vpop.permute.xlu1 %182  }
  0x93   :  { %351 = vst.msk [vmem:[%s699_s1 + $0x18] sm:$0x7] %vm156_vm5, %v183_v30  }
  0x94   :  { %v176_v31 = vpop.permute.xlu0 %175  }
  0x95   :  { %349 = vst.msk [vmem:[%s699_s1 + $0x10] sm:$0xff] %vm156_vm5, %v176_v31  }
  0x96   :  { %v204_v32 = vpop.permute.xlu1 %203  }
  0x97   :  { %356 = vst.msk [vmem:[%s699_s1 + $0x8] sm:$0xff] %vm195_vm6, %v204_v32  }
  0x98   :  { %v194_v33 = vpop.permute.xlu0 %193  }
  0x99   :  { %196 = vst.msk [vmem:[%s699_s1] sm:$0xff] %vm195_vm6, %v194_v33  }
  0x9a   :  { %v222_v34 = vpop.permute.xlu1 %221  }
  0x9b   :  { %361 = vst.msk [vmem:[%s699_s1 + $0x18] sm:$0x7] %vm195_vm6, %v222_v34  }
  0x9c   :  { %v215_v35 = vpop.permute.xlu0 %214  }
  0x9d   :  { %359 = vst.msk [vmem:[%s699_s1 + $0x10] sm:$0xff] %vm195_vm6, %v215_v35  }
  0x9e   :  { %v243_v36 = vpop.permute.xlu1 %242  }
  0x9f   :  { %366 = vst.msk [vmem:[%s699_s1 + $0x8] sm:$0xff] %vm234_vm7, %v243_v36  }
  0xa0   :  { %v233_v37 = vpop.permute.xlu0 %232  }
  0xa1   :  { %235 = vst.msk [vmem:[%s699_s1] sm:$0xff] %vm234_vm7, %v233_v37  }
  0xa2   :  { %v261_v38 = vpop.permute.xlu1 %260  }
  0xa3   :  { %371 = vst.msk [vmem:[%s699_s1 + $0x18] sm:$0x7] %vm234_vm7, %v261_v38  }
  0xa4   :  { %v254_v39 = vpop.permute.xlu0 %253  }
  0xa5   :  { %369 = vst.msk [vmem:[%s699_s1 + $0x10] sm:$0xff] %vm234_vm7, %v254_v39  }
  0xa6   :  { %v282_v40 = vpop.permute.xlu1 %281  }
  0xa7   :  { %376 = vst.msk [vmem:[%s699_s1 + $0x8] sm:$0xff] %vm273_vm8, %v282_v40  }
  0xa8   :  { %v272_v41 = vpop.permute.xlu0 %271  }
  0xa9   :  { %274 = vst.msk [vmem:[%s699_s1] sm:$0xff] %vm273_vm8, %v272_v41  }
  0xaa   :  { %v300_v42 = vpop.permute.xlu1 %299  }
  0xab   :  { %381 = vst.msk [vmem:[%s699_s1 + $0x18] sm:$0x7] %vm273_vm8, %v300_v42  }
  0xac   :  { %v293_v43 = vpop.permute.xlu0 %292  }
  0xad   :  { %379 = vst.msk [vmem:[%s699_s1 + $0x10] sm:$0xff] %vm273_vm8, %v293_v43  }

// kernel: orthcaps_device.3
= control target key start
LH: loop header
LB: loop body
LE: loop exit
PB: predicated region body
PF: predicated region fallthrough
CT: control target
= control target key end

     0   :  { %8 = vsyncpa [#allocation3], 0  ;;  %s1316_s0 = inlined_call_operand.vmem [shape: f32[2,8,1024], index: 0, kind: input, shape index: {}]   ;;  %s1317_s1 = inlined_call_operand.hbm [shape: f32[2,8,1024], index: 1, kind: output, shape index: {0}]   ;;  %s1318_s2 = inlined_call_operand.hbm [shape: f32[2,1,8], index: 2, kind: output, shape index: {1}]  }
   0x1   :  { %10 = vsyncpa [#allocation3 + $0x1], 0 }
   0x2   :  { %11 = vsyncpa [#allocation5], 0 }
   0x3   :  { %13 = vsyncpa [#allocation5 + $0x1], 0  ;;  %s1126_s9 = smov 0   ;;  %s1128_s10 = smov 0  }
   0x4   :  { %s1130_s11 = smov 0   ;;  %s1132_s12 = smov 0  }
   0x5 LB: > { %s1147_s13 = sadd.s32 4294967295, %s1106_s12   ;;  %s936_s14 = sadd.s32 4294967294, %s1106_s12   ;;  %s1106_s12 = sphi %s1132_s12, %s1324_s12   ;;  %s1102_s11 = sphi %s1130_s11, %s1323_s11   ;;  %s1098_s10 = sphi %s1128_s10, %s1322_s10   ;;  %s1094_s9 = sphi %s1126_s9, %s1321_s9  }
   0x6   : > { %s1151_s15 = sadd.s32 1, %s1106_s12   ;;  %s52_s16 = sadd.s32 1, %s1102_s11 }
   0x7   : > { %s49_s17 = ssub.s32 %s1106_s12, %s1151_s15  ;;  %p62_p0 = scmp.ne.s32.totalorder %s1102_s11, %s1098_s10 }
   0x8   : > { %p50_p1 = scmp.eq.s32.totalorder %s49_s17, 0  ;;  %p63_p2 = scmp.eq.s32.totalorder %s1147_s13, 1 }
   0x9   : > { %p68_p3 = scmp.ne.s32.totalorder %s1098_s10, %s1094_s9  ;;  %p69_p4 = scmp.eq.s32.totalorder %s936_s14, 1 }
   0xa   : > { %s1162_s18 = scalar_select %p50_p1, %s1102_s11, %s52_s16  }
   0xb   : > { %p1164_p5 = por %p63_p2, %p62_p0  ;;  %p1168_p6 = por %p69_p4, %p68_p3 }
   0xc   : > { %p939_p7 = scmp.ge.s32.totalorder %s1106_s12, 1  ;;  %p121_p8 = scmp.lt.s32.totalorder %s1106_s12, 3 }
   0xe   : > { %p122_p9 = pnand %p939_p7, %p121_p8 }
   0xf   : > { %p147_p10 = scmp.lt.s32.totalorder (!%p122_p9), %s1147_s13, 1  ;;  %v1108_v8 = vmov (!%p122_p9), 0.0   ;;  %v440_v9 = vlaneseq (!%p122_p9)  ;;  %vm447_vm1 = vcmask (!%p122_p9), 64512   ;;  %s1218_s26 = sand.u32 (!%p122_p9), 1, %s1098_s10  }
  0x10   : > { %125 = sbr.rel (%p122_p9) target bundleno = 851 (0x353), region = 24  ;;  %587 = vmatprep.mubr.f32.mxu1 (!%p122_p9), %v1108_v8  ;;  %s146_s27 = scalar_lea.vmem (!%p122_p9), [#allocation4], %s1218_s26 }
  0x11   : > { %v1200_v10 = vshrl.u32 (!%p122_p9), %v440_v9, 7  ;;  %v1202_v11 = vand.u32 (!%p122_p9), 127, %v440_v9  ;;  %s950_s28 = sshll.u32 (!%p122_p9), %s1147_s13, 4  ;;  %s849_s4 = sshll.u32 (!%p122_p9), %s146_s27, 4  ;;  %s850_s4 = int_to_ptr.vmem [resolvable:$true] %s849_s4 }
  0x12   : > { %s1246_s3 = scalar_lea.hbm (!%p122_p9), %s1318_s2, %s950_s28  ;;  %s823_s5 = scalar_lea.sflag (!%p122_p9), [#allocation5], %s1218_s26 }
  0x13   : > { %vm444_vm0 = vcmp.eq.s32.totalorder (!%p122_p9), %v1200_v10, %v1202_v11  ;;  %vm479_vm7 = vcmp.gt.s32.totalorder (!%p122_p9), %v1202_v11, %v1200_v10  ;;  %vm484_vm9 = vcmp.gt.s32.totalorder (!%p122_p9), %v1200_v10, %v1202_v11  ;;  %v516_v60 = vcvt.s32.f32 (!%p122_p9), %v1200_v10  ;;  %s1012_s6 = scalar_lea.vmem (!%p122_p9), %s850_s4, 16  ;;  %s1109_s7 = smov (!%p122_p9), [#allocation4]  }
  0x14   : > { %v445_v12 = vsel (!%p122_p9), %vm444_vm0, 1.0, %v1108_v8  ;;  %p1013_p11 = scmp.ne.s32.totalorder (!%p122_p9), %s850_s4, %s1012_s6  ;;  %s1016_s8 = sshll.u32 (!%p122_p9), %s1109_s7, 4  ;;  %s1017_s8 = int_to_ptr.vmem [resolvable:$false] %s1016_s8 }
  0x15   : > { %s1018_s14 = scalar_lea.vmem (!%p122_p9), %s1017_s8, 32  ;;  %p1019_p0 = scmp.lt.s32.totalorder (!%p122_p9), %s850_s4, %s1017_s8 }
  0x16   : > { %p1014_p12 = pnand (!%p122_p9), %p1013_p11, %p1164_p5  ;;  %p1020_p1 = scmp.lt.s32.totalorder (!%p122_p9), %s1018_s14, %s1012_s6 }
  0x17   : > { %s148_s21 = scalar_select %p147_p10, %s1147_s13, 1 }
  0x18   : > { %p1015_p13 = pneg %p1014_p12  ;;  %p1021_p2 = por %p1020_p1, %p1019_p0 }
  0x19   : > { %s953_s22 = sshll.u32 %s148_s21, 6 }
  0x1a   : > { %s151_s25 = scalar_lea.vmem %s1316_s0, %s953_s22  ;;  %p1022_p3 = pnand %p1021_p2, %p1015_p13 }
  0x1b   : > { %v153_v0 = vld [vmem:[%s151_s25 + $0x8] sm:$0xff]  ;;  %v152_v1 = vld [vmem:[%s151_s25] sm:$0xff]  ;;  %v155_v2 = vld [vmem:[%s151_s25 + $0x18] sm:$0xff] }
  0x1c   : > { %160 = vmatprep.subr.mxu0 %v153_v0  ;;  %224 = vmatprep.mubr.f32.mxu0 %v153_v0  ;;  %v1179_v3 = vld [vmem:[%s151_s25 + $0x10] sm:$0xff]  ;;  %v1181_v4 = vld [vmem:[%s151_s25 + $0x28] sm:$0xff]  ;;  %v1185_v5 = vld [vmem:[%s151_s25 + $0x20] sm:$0xff] }
  0x1d   : > { %161 = vmatpush1.xpose.msra.mxu0 %v152_v1  ;;  %523 = vmatprep.subr.mxu1 %v153_v0  ;;  %v1187_v6 = vld [vmem:[%s151_s25 + $0x38] sm:$0xff]  ;;  %v1193_v7 = vld [vmem:[%s151_s25 + $0x30] sm:$0xff] }
  0x1e   : > { %230 = vmatprep.subr.mxu0 %v155_v2  ;;  %524 = vmatpush1.msra.mxu1 %v152_v1 }
  0x1f   : > { %594 = vmatprep.subr.mxu1 %v155_v2 }
  0x20   : > { %225 = vmatmul.mubr.f32.vlgmr.msra.gmra.mrb[0].mxu0 %v152_v1 }
  0x21   : > { %231 = vmatpush1.xpose.msra.mxu0 %v1179_v3  ;;  %294 = vmatprep.mubr.f32.mxu0 %v155_v2 }
  0x22   : > { %300 = vmatprep.subr.mxu0 %v1181_v4 }
  0x28   : > { %295 = vmatmul.mubr.f32.vlgmr.msra.gmra.mrb[0].mxu0 %v1179_v3 }
  0x29   : > { %301 = vmatpush1.xpose.msra.mxu0 %v1185_v5  ;;  %364 = vmatprep.mubr.f32.mxu0 %v1181_v4 }
  0x2a   : > { %370 = vmatprep.subr.mxu0 %v1187_v6 }
  0x30   : > { %365 = vmatmul.mubr.f32.vlgmr.msra.gmra.mrb[0].mxu0 %v1185_v5 }
  0x31   : > { %371 = vmatpush1.xpose.msra.mxu0 %v1193_v7  ;;  %434 = vmatprep.mubr.f32.mxu0 %v1187_v6 }
  0x38   : > { %435 = vmatmul.mubr.f32.vlgmr.msra.gmra.mrb[0].mxu0 %v1193_v7 }
 0x10b   : > { %v436_v13 = vpop.f32.mrb[0].mxu0 }
 0x10c   : > { %v446_v14 = vmul.f32 %v445_v12, %v436_v13  ;;  %v438_v15 = vpop.f32.mrb[1].mxu0 }
 0x10e   : > { %v448_v16 = vsel %vm447_vm1, %v446_v14, 0.0 }
 0x10f   : > { %449 = vadd.xlane.f32.xlu0 %v448_v16  ;;  %v451_v17 = vrot.slane %v448_v16, 4 }
 0x111   : > { %v452_v18 = vadd.f32 %v451_v17, %v448_v16 }
 0x113   : > { %v453_v19 = vrot.slane %v452_v18, 2 }
 0x115   : > { %v454_v20 = vadd.f32 %v453_v19, %v452_v18 }
 0x117   : > { %v455_v21 = vrot.slane %v454_v20, 1 }
 0x119   : > { %v456_v22 = vadd.f32 %v455_v21, %v454_v20 }
 0x11b   : > { %1006 = vrsqrt.f32 %v456_v22  ;;  %vm467_vm2 = vcmp.eq.f32.partialorder %v456_v22, inf  ;;  %v470_v28 = vand.u32 2147483648, %v456_v22  ;;  %vm469_vm3 = vcmp.eq.f32.partialorder %v456_v22, 0.0 }
 0x125   : > { %v1007_v24 = vpop.eup %1006 }
 0x126   : > { %v466_v25 = vmul.f32 %v1007_v24, %v456_v22 }
 0x128   : > { %v468_v26 = vsel %vm467_vm2, %v456_v22, %v466_v25 }
 0x129   : > { %v471_v31 = vsel %vm469_vm3, %v470_v28, %v468_v26 }
 0x12a   : > { %v472_v35 = vadd.f32 1e-08, %v471_v31 }
 0x19c   : > { %v450_v23 = vpop.xlane.xlu0 %449 }
 0x19d   : > { %1008 = vrsqrt.f32 %v450_v23  ;;  %vm459_vm4 = vcmp.eq.f32.partialorder %v450_v23, inf  ;;  %v462_v30 = vand.u32 2147483648, %v450_v23  ;;  %vm461_vm5 = vcmp.eq.f32.partialorder %v450_v23, 0.0 }
 0x19e   : > { %vm478_vm6 = vcmp.eq.f32.partialorder %v456_v22, %v450_v23  ;;  %vm483_vm8 = vcmp.eq.f32.partialorder %v450_v23, %v456_v22  ;;  %vm477_vm10 = vcmp.gt.f32.partialorder %v456_v22, %v450_v23  ;;  %vm482_vm12 = vcmp.gt.f32.partialorder %v450_v23, %v456_v22 }
 0x19f   : > { %vm480_vm11 = vmand %vm478_vm6, %vm479_vm7  ;;  %vm487_vm6 = vcmp.lt.f32.partialorder %v450_v23, %v456_v22 }
 0x1a0   : > { %vm485_vm13 = vmand %vm483_vm8, %vm484_vm9 }
 0x1a1   : > { %vm481_vm14 = vmor %vm477_vm10, %vm480_vm11 }
 0x1a2   : > { %vm486_vm0 = vmor %vm482_vm12, %vm485_vm13 }
 0x1a7   : > { %v1009_v27 = vpop.eup %1008 }
 0x1a8   : > { %v458_v29 = vmul.f32 %v1009_v27, %v450_v23 }
 0x1aa   : > { %v460_v32 = vsel %vm459_vm4, %v450_v23, %v458_v29  ;;  %vm815_vm4 = vcmask 57344  }
 0x1ab   : > { %v463_v33 = vsel %vm461_vm5, %v462_v30, %v460_v32  ;;  %vm488_vm5 = vcmp.lt.s32.totalorder %v1200_v10, %v1202_v11 }
 0x1ac   : > { %v464_v34 = vadd.f32 1e-08, %v463_v33  ;;  %vm489_vm7 = vmand %vm483_vm8, %vm488_vm5 }
 0x1ad   : > { %vm490_vm9 = vmor %vm487_vm6, %vm489_vm7 }
 0x1ae   : > { %v473_v36 = vmul.f32 %v472_v35, %v464_v34  ;;  %v507_v52 = vsel %vm490_vm9, 1.0, %v1108_v8 }
 0x1b0   : > { %1010 = vrcp.f32 %v473_v36 }
 0x1ba   : > { %v1011_v37 = vpop.eup %1010 }
 0x1bb   : > { %v475_v38 = vmul.f32 %v1011_v37, %v436_v13 }
 0x1bd   : > { %vm476_vm15 = vcmp.gt.f32.partialorder %v475_v38, 0.7 }
 0x1be   : > { %vm491_vm2 = vmand %vm481_vm14, %vm476_vm15 }
 0x1bf   : > { %v492_v39 = vsel %vm491_vm2, 1.0, %v1108_v8  ;;  %vm497_vm3 = vmand %vm486_vm0, %vm476_vm15 }
 0x1c0   : > { %v493_v40 = vsel %vm447_vm1, %v492_v39, -inf  ;;  %v498_v41 = vsel %vm497_vm3, 1.0, %v1108_v8 }
 0x1c1   : > { %v499_v42 = vsel %vm447_vm1, %v498_v41, -inf  ;;  %494 = vmax.xlane.f32.xlu0 %v493_v40 }
 0x1c2   : > { %v500_v43 = vrot.slane %v499_v42, 4 }
 0x1c4   : > { %v501_v44 = vmax.f32 %v499_v42, %v500_v43 }
 0x1c6   : > { %v502_v45 = vrot.slane %v501_v44, 2 }
 0x1c8   : > { %v503_v46 = vmax.f32 %v501_v44, %v502_v45 }
 0x1ca   : > { %v504_v47 = vrot.slane %v503_v46, 1 }
 0x1cc   : > { %v505_v48 = vmax.f32 %v503_v46, %v504_v47 }
 0x1ce   : > { %v506_v49 = vsub.f32 1.0, %v505_v48 }
 0x1d0   : > { %816 = vst.msk [vmem:[%s146_s27] sm:$0x1] %vm815_vm4, %v506_v49 }
 0x24e   : > { %v495_v50 = vpop.xlane.xlu0 %494 }
 0x24f   : > { %v496_v51 = vsub.f32 1.0, %v495_v50 }
 0x251   : > { %v508_v53 = vmul.f32 %v507_v52, %v496_v51 }
 0x253   : > { %v509_v54 = vsel %vm447_vm1, %v508_v53, 0.0 }
 0x254   : > { %v510_v55 = vrot.slane %v509_v54, 4 }
 0x256   : > { %v511_v56 = vadd.f32 %v510_v55, %v509_v54 }
 0x258   : > { %v512_v57 = vrot.slane %v511_v56, 2 }
 0x25a   : > { %v513_v58 = vadd.f32 %v512_v57, %v511_v56 }
 0x25c   : > { %v514_v59 = vrot.slane %v513_v58, 1 }
 0x25e   : > { %v515_v61 = vadd.f32 %v514_v59, %v513_v58 }
 0x260   : > { %vm517_vm10 = vcmp.eq.f32.partialorder %v515_v61, %v516_v60 }
 0x261   : > { %v518_v62 = vsel %vm517_vm10, 1.0, %v1108_v8 }
 0x262   : > { %v519_v63 = vmul.f32 %v518_v62, %v506_v49 }
 0x264   : > { %943 = vmatmul.mubr.msk.f32.vlgmr.msra.gmra.mrb[0].mxu1 %vm447_vm1, %v519_v63 }
 0x265   : > { %595 = vmatpush1.msra.mxu1 %v1179_v3  ;;  %658 = vmatprep.mubr.f32.mxu1 %v1108_v8 }
 0x266   : > { %665 = vmatprep.subr.mxu1 %v1181_v4 }
 0x268   : > { %944 = vmatmul.mubr.msk.f32.vlgmr.msra.gmra.mrb[2].mxu1 %vm447_vm1, %v519_v63 }
 0x269   : > { %666 = vmatpush1.msra.mxu1 %v1185_v5  ;;  %729 = vmatprep.mubr.f32.mxu1 %v1108_v8 }
 0x26a   : > { %736 = vmatprep.subr.mxu1 %v1187_v6 }
 0x26c   : > { %945 = vmatmul.mubr.msk.f32.vlgmr.msra.gmra.mrb[4].mxu1 %vm447_vm1, %v519_v63 }
 0x26d   : > { %737 = vmatpush1.msra.mxu1 %v1193_v7  ;;  %800 = vmatprep.mubr.f32.mxu1 %v1108_v8 }
 0x270   : > { %946 = vmatmul.mubr.msk.f32.vlgmr.msra.gmra.mrb[6].mxu1 %vm447_vm1, %v519_v63 }
 0x271   : > { %1025 = shalt.err (!%p1022_p3)
}
 0x272   : > { %s1026_s16 = scalar_lea.hbm %s1246_s3, 16  ;;  %s1030_s22 = scalar_lea.hbm %s1318_s2, 32 }
 0x273   : > { %p1027_p4 = scmp.ne.s32.totalorder %s1246_s3, %s1026_s16  ;;  %p1031_p9 = scmp.lt.u32.totalorder %s1246_s3, %s1318_s2 }
 0x274   : > { %p1032_p10 = scmp.lt.u32.totalorder %s1030_s22, %s1026_s16  ;;  %p1034_p12 = scmp.lt.u32.totalorder %s1026_s16, %s1246_s3 }
 0x275   : > { %p1028_p7 = pnand %p1027_p4, %p1164_p5 }
 0x276   : > { %p1033_p11 = por %p1032_p10, %p1031_p9 }
 0x277   : > { %p1029_p8 = pneg %p1028_p7 }
 0x278   : > { %p1035_p13 = por %p1034_p12, %p1033_p11 }
 0x27a   : > { %p1036_p0 = pnand %p1035_p13, %p1029_p8 }
 0x27c   : > { %1039 = shalt.err (!%p1036_p0)
}
 0x27d   : > { %962 = dma.vmem_to_hbm [thread:$0]  (%p1164_p5), %s850_s4, 16, %s1246_s3, %s823_s5  }
 0x27e   : > { %s940_s25 = sshll.u32 %s1218_s26, 6  ;;  %s954_s28 = sshll.u32 %s1147_s13, 10 }
 0x27f   : > { %s140_s27 = scalar_lea.vmem [#allocation2], %s940_s25  ;;  %s1273_s4 = scalar_lea.hbm %s1317_s1, %s954_s28 }
 0x280   : > { %s836_s29 = sshll.u32 %s140_s27, 4  ;;  %s818_s5 = scalar_lea.sflag [#allocation3], %s1218_s26  ;;  %s1275_s29 = int_to_ptr.vmem [resolvable:$true] %s836_s29 }
 0x281   : > { %s1040_s6 = scalar_lea.vmem %s1275_s29, 1024  ;;  %s1110_s13 = smov [#allocation2]  }
 0x282   : > { %p1041_p1 = scmp.ne.s32.totalorder %s1275_s29, %s1040_s6  ;;  %s1044_s7 = sshll.u32 %s1110_s13, 4  ;;  %s1045_s7 = int_to_ptr.vmem [resolvable:$false] %s1044_s7 }
 0x283   : > { %s1046_s8 = scalar_lea.vmem %s1045_s7, 2048  ;;  %p1047_p4 = scmp.lt.s32.totalorder %s1275_s29, %s1045_s7 }
 0x284   : > { %p1042_p2 = pnand %p1041_p1, %p1164_p5  ;;  %p1048_p7 = scmp.lt.s32.totalorder %s1046_s8, %s1040_s6 }
 0x286   : > { %p1043_p3 = pneg %p1042_p2  ;;  %p1049_p8 = por %p1048_p7, %p1047_p4 }
 0x288   : > { %p1050_p9 = pnand %p1049_p8, %p1043_p3 }
 0x337   : > { %v589_v0 = vpop.f32.mrb[0].mxu1 }
 0x338   : > { %807 = vst [vmem:[%s140_s27] sm:$0xff] %v589_v0  ;;  %v591_v1 = vpop.f32.mrb[1].mxu1 }
 0x339   : > { %808 = vst [vmem:[%s140_s27 + $0x8] sm:$0xff] %v591_v1 }
 0x33b   : > { %v660_v2 = vpop.f32.mrb[2].mxu1 }
 0x33c   : > { %809 = vst [vmem:[%s140_s27 + $0x10] sm:$0xff] %v660_v2  ;;  %v662_v3 = vpop.f32.mrb[3].mxu1 }
 0x33d   : > { %810 = vst [vmem:[%s140_s27 + $0x18] sm:$0xff] %v662_v3 }
 0x33f   : > { %v731_v4 = vpop.f32.mrb[4].mxu1 }
 0x340   : > { %811 = vst [vmem:[%s140_s27 + $0x20] sm:$0xff] %v731_v4  ;;  %v733_v5 = vpop.f32.mrb[5].mxu1 }
 0x341   : > { %812 = vst [vmem:[%s140_s27 + $0x28] sm:$0xff] %v733_v5 }
 0x343   : > { %v802_v6 = vpop.f32.mrb[6].mxu1 }
 0x344   : > { %813 = vst [vmem:[%s140_s27 + $0x30] sm:$0xff] %v802_v6  ;;  %v804_v7 = vpop.f32.mrb[7].mxu1 }
 0x345   : > { %814 = vst [vmem:[%s140_s27 + $0x38] sm:$0xff] %v804_v7 }
 0x346   : > { %1053 = shalt.err (!%p1050_p9)
}
 0x347   : > { %s1054_s26 = scalar_lea.hbm %s1273_s4, 1024  ;;  %s1058_s17 = scalar_lea.hbm %s1317_s1, 2048 }
 0x348   : > { %p1055_p10 = scmp.ne.s32.totalorder %s1273_s4, %s1054_s26  ;;  %p1059_p13 = scmp.lt.u32.totalorder %s1273_s4, %s1317_s1 }
 0x349   : > { %p1060_p0 = scmp.lt.u32.totalorder %s1058_s17, %s1054_s26  ;;  %p1062_p2 = scmp.lt.u32.totalorder %s1054_s26, %s1273_s4 }
 0x34a   : > { %p1056_p11 = pnand %p1055_p10, %p1164_p5 }
 0x34b   : > { %p1061_p1 = por %p1060_p0, %p1059_p13 }
 0x34c   : > { %p1057_p12 = pneg %p1056_p11 }
 0x34d   : > { %p1063_p3 = por %p1062_p2, %p1061_p1 }
 0x34f   : > { %p1064_p4 = pnand %p1063_p3, %p1057_p12 }
 0x351   : > { %1067 = shalt.err (!%p1064_p4)
}
 0x352   : > { %961 = dma.vmem_to_hbm [thread:$0]  (%p1164_p5), %s1275_s29, 1024, %s1273_s4, %s818_s5  }
 0x353 PF: > { %p972_p7 = scmp.ge.s32.totalorder %s1106_s12, 2  ;;  %s861_s23 = sand.u32 1, %s1094_s9  }
 0x354   : > { %s862_s24 = scalar_lea.sflag [#allocation3], %s861_s23 }
 0x355   : > { %p966_p8 = pnand %p972_p7, %p1168_p6 }
 0x357   : > { %1085 = dma.done.wait (!%p966_p8), %s862_s24, 1024  }
 0x358   : > { %1087 = vsyncadd (!%p966_p8), %s862_s24, 4294966272  ;;  %s871_s25 = scalar_lea.sflag [#allocation5], %s861_s23 }
 0x359   : > { %1089 = dma.done.wait (!%p966_p8), %s871_s25, 16  }
 0x35a   : > { %1091 = vsyncadd (!%p966_p8), %s871_s25, 4294967280  ;;  %p16_p5 = scmp.ge.s32.totalorder %s1151_s15, 4   ;;  %s1321_s9 = smov %s1098_s10 }
 0x35b   : > { %s1322_s10 = smov %s1102_s11  ;;  %s1323_s11 = smov %s1162_s18 }
 0x35c   : > { %s1324_s12 = smov %s1151_s15  ;;  %18 = sbr.rel (!%p16_p5) target bundleno = 5 (0x5), region = 76 }
 0x363   :  { %875 = vsyncpa [#allocation3], 1 }
 0x364   :  { %877 = vsyncpa [#allocation3 + $0x1], 1 }
 0x365   :  { %878 = vsyncpa [#allocation5], 1 }
 0x366   :  { %880 = vsyncpa [#allocation5 + $0x1], 1 }

// kernel: orthcaps_device.2
= control target key start
LH: loop header
LB: loop body
LE: loop exit
PB: predicated region body
PF: predicated region fallthrough
CT: control target
= control target key end

     0   :  { %s6847_s21 = smov 0   ;;  %s13511_s0 = inlined_call_operand.vmem [shape: f32[2,256,27], index: 0, kind: input, shape index: {}]   ;;  %s13512_s1 = inlined_call_operand.vmem [shape: f32[27,128], index: 1, kind: input, shape index: {}]   ;;  %s13513_s2 = inlined_call_operand.vmem [shape: f32[1,128], index: 2, kind: input, shape index: {}]   ;;  %s13514_s3 = inlined_call_operand.vmem [shape: f32[1,128], index: 3, kind: input, shape index: {}]   ;;  %s13515_s4 = inlined_call_operand.vmem [shape: f32[81,128], index: 4, kind: input, shape index: {}]   ;;  %s13516_s5 = inlined_call_operand.vmem [shape: f32[1,128], index: 5, kind: input, shape index: {}]   ;;  %s13517_s6 = inlined_call_operand.vmem [shape: f32[2,8,16,64], index: 6, kind: output, shape index: {}]  }
   0x1 LB: > { %s6270_s22 = sadd.s32 4294967295, %s6809_s21   ;;  %p6274_p0 = scmp.ge.s32.totalorder %s6809_s21, 1  ;;  %s6809_s21 = sphi %s6847_s21, %s16_s21  }
   0x2   : > { %p212_p1 = scmp.lt.s32.totalorder %s6809_s21, 3 }
   0x4   : > { %p213_p2 = pnand %p6274_p0, %p212_p1 }
   0x6   : > { %216 = sbr.rel (%p213_p2) target bundleno = 1398 (0x576), region = 44 }
   0xd   : > { %v284_v0 = vld [vmem:[%s13512_s1] sm:$0xff]  ;;  %v285_v1 = vld [vmem:[%s13512_s1 + $0x8] sm:$0xff]  ;;  %v286_v2 = vld [vmem:[%s13512_s1 + $0x10] sm:$0xff]  ;;  %vm385_vm0 = vcmask 1042432   ;;  %p242_p3 = scmp.lt.s32.totalorder %s6270_s22, 1  ;;  %vm6811_vm1 = vmmov 1  }
   0xe   : > { %v6492_v3 = vpack.c.bf16 %v285_v1, %v284_v0  ;;  %v287_v4 = vld [vmem:[%s13512_s1 + $0x18] sm:$0x7]  ;;  %vm6497_vm2 = vmpackc.low %vm385_vm0, %vm6811_vm1  ;;  %vm288_vm3 = vcmask 220160   ;;  %v6943_v38 = vld [vmem:[%s13513_s2] ss:$0 sm:$0xff]  ;;  %vm789_vm4 = vcmask 1046528  }
   0xf   : > { %v6496_v5 = vpack.c.bf16 %v287_v4, %v286_v2  ;;  %s14931_s22 = smov (!%p242_p3, %s6270_s22), 1  ;;  %13966 = vst [vmem:[#allocation2_spill] sm:$0xff] %v6943_v38  ;;  %v6948_v40 = vld [vmem:[%s13514_s3] ss:$0 sm:$0xff]  ;;  %v6954_v43 = vld [vmem:[%s13515_s4 + $0x1] ss:$0 sm:$0xff] }
  0x10   : > { %6493 = vmatprep.subr.bf16.mxu0 %v6492_v3  ;;  %6502 = vmatprep.subr.bf16.mxu1 %v6492_v3  ;;  %s6398_s7 = sshll.u32 %s14931_s22, 8  ;;  %13967 = vst [vmem:[#allocation3_spill] sm:$0xff] %v6948_v40  ;;  %v6959_v44 = vld [vmem:[%s13515_s4 + $0x2] ss:$0 sm:$0xff]  ;;  %v6966_v47 = vld [vmem:[%s13515_s4 + $0x3] ss:$0 sm:$0xff] }
  0x11   : > { %6495 = vmatpush3.bf16.msra.mxu0 %v6492_v3  ;;  %6504 = vmatpush3.bf16.msra.mxu1 %v6492_v3  ;;  %s6874_s10 = scalar_lea.vmem %s13511_s0, %s6398_s7  ;;  %v6971_v48 = vld [vmem:[%s13515_s4 + $0x4] ss:$0 sm:$0xff]  ;;  %v6976_v49 = vld [vmem:[%s13515_s4 + $0x5] ss:$0 sm:$0xff]  ;;  %v6981_v50 = vld [vmem:[%s13515_s4 + $0x6] ss:$0 sm:$0xff] }
  0x12   : > { %6498 = vmatprep.subr.msk.bf16.mxu0 %vm6497_vm2, %v6496_v5  ;;  %6503 = vmatprep.subr.msk.bf16.mxu1 %vm6497_vm2, %v6496_v5  ;;  %v252_v6 = vld [vmem:[%s6874_s10] sm:$0xff]  ;;  %v253_v7 = vld [vmem:[%s6874_s10 + $0x8] sm:$0xff]  ;;  %v254_v8 = vld [vmem:[%s6874_s10 + $0x10] sm:$0xff]  ;;  %vm867_vm5 = vcmask 1045504   ;;  %vm945_vm6 = vcmask 1044480   ;;  %vm1023_vm7 = vcmask 1043456  }
  0x13   : > { %6444 = vmatprep.mubr.msk.f32.mxu0 %vm288_vm3, %v252_v6  ;;  %v268_v9 = vld [vmem:[%s6874_s10 + $0x80] sm:$0xff]  ;;  %v269_v10 = vld [vmem:[%s6874_s10 + $0x88] sm:$0xff]  ;;  %v255_v11 = vld [vmem:[%s6874_s10 + $0x18] sm:$0xff]  ;;  %vm1178_vm8 = vcmask 1041408   ;;  %vm1256_vm9 = vcmask 1040384   ;;  %s6399_s9 = sshll.u32 %s14931_s22, 7 }
  0x14   : > { %6468 = vmatprep.mubr.msk.f32.mxu1 %vm288_vm3, %v268_v9  ;;  %v270_v12 = vld [vmem:[%s6874_s10 + $0x90] sm:$0xff]  ;;  %v256_v13 = vld [vmem:[%s6874_s10 + $0x20] sm:$0xff]  ;;  %v271_v14 = vld [vmem:[%s6874_s10 + $0x98] sm:$0xff]  ;;  %s13474_s12 = scalar_lea.vmem %s13517_s6, %s6399_s9 }
  0x15   : > { %6501 = vmatpush3.bf16.msk.msra.mxu0 %vm6497_vm2, %v6496_v5  ;;  %6505 = vmatpush3.bf16.msk.msra.mxu1 %vm6497_vm2, %v6496_v5  ;;  %v272_v15 = vld [vmem:[%s6874_s10 + $0xa0] sm:$0xff]  ;;  %v257_v16 = vld [vmem:[%s6874_s10 + $0x28] sm:$0xff]  ;;  %v258_v17 = vld [vmem:[%s6874_s10 + $0x30] sm:$0xff] }
  0x16   : > { %v273_v18 = vld [vmem:[%s6874_s10 + $0xa8] sm:$0xff]  ;;  %v274_v19 = vld [vmem:[%s6874_s10 + $0xb0] sm:$0xff]  ;;  %v259_v20 = vld [vmem:[%s6874_s10 + $0x38] sm:$0xff] }
  0x17   : > { %v260_v21 = vld [vmem:[%s6874_s10 + $0x40] sm:$0xff]  ;;  %v275_v22 = vld [vmem:[%s6874_s10 + $0xb8] sm:$0xff]  ;;  %v261_v24 = vld [vmem:[%s6874_s10 + $0x48] sm:$0xff] }
  0x18   : > { %6445 = vmatmul.mubr.msk.f32.vlgmr.msra.gmra.mrb[0].mxu0 %vm288_vm3, %v253_v7  ;;  %6469 = vmatmul.mubr.msk.f32.vlgmr.msra.gmra.mrb[0].mxu1 %vm288_vm3, %v269_v10  ;;  %v276_v23 = vld [vmem:[%s6874_s10 + $0xc0] sm:$0xff]  ;;  %v262_v25 = vld [vmem:[%s6874_s10 + $0x50] sm:$0xff]  ;;  %v277_v26 = vld [vmem:[%s6874_s10 + $0xc8] sm:$0xff] }
  0x19   : > { %6447 = vmatprep.mubr.msk.f32.mxu0 %vm288_vm3, %v254_v8  ;;  %6471 = vmatprep.mubr.msk.f32.mxu1 %vm288_vm3, %v270_v12  ;;  %v278_v27 = vld [vmem:[%s6874_s10 + $0xd0] sm:$0xff]  ;;  %v263_v28 = vld [vmem:[%s6874_s10 + $0x58] sm:$0xff]  ;;  %v264_v29 = vld [vmem:[%s6874_s10 + $0x60] sm:$0xff] }
  0x1a   : > { %v279_v30 = vld [vmem:[%s6874_s10 + $0xd8] sm:$0xff]  ;;  %v280_v31 = vld [vmem:[%s6874_s10 + $0xe0] sm:$0xff]  ;;  %v265_v32 = vld [vmem:[%s6874_s10 + $0x68] sm:$0xff] }
  0x1b   : > { %v266_v33 = vld [vmem:[%s6874_s10 + $0x70] sm:$0xff]  ;;  %v281_v34 = vld [vmem:[%s6874_s10 + $0xe8] sm:$0xff]  ;;  %v267_v36 = vld [vmem:[%s6874_s10 + $0x78] sm:$0xff] }
  0x1c   : > { %6448 = vmatmul.mubr.msk.f32.gmra.mrb[2].mxu0 %vm288_vm3, %v255_v11  ;;  %6472 = vmatmul.mubr.msk.f32.gmra.mrb[2].mxu1 %vm288_vm3, %v271_v14  ;;  %v282_v35 = vld [vmem:[%s6874_s10 + $0xf0] sm:$0xff]  ;;  %v283_v37 = vld [vmem:[%s6874_s10 + $0xf8] sm:$0xff]  ;;  %v6986_v51 = vld [vmem:[%s13515_s4 + $0x7] ss:$0 sm:$0xff] }
  0x1d   : > { %6450 = vmatprep.mubr.msk.f32.mxu0 %vm288_vm3, %v256_v13  ;;  %6474 = vmatprep.mubr.msk.f32.mxu1 %vm288_vm3, %v272_v15  ;;  %v7002_v61 = vld [vmem:[%s13515_s4] ss:$0 sm:$0xff] }
  0x1e   : > { %13968 = vst [vmem:[#allocation4_spill] sm:$0xff] %v7002_v61  ;;  %v7013_v1 = vld [vmem:[%s13516_s5] ss:$0 sm:$0xff] }
  0x1f   : > { %13969 = vst [vmem:[#allocation5_spill] sm:$0xff] %v7013_v1 }
  0x20   : > { %6451 = vmatmul.mubr.msk.f32.gmra.mrb[4].mxu0 %vm288_vm3, %v257_v16  ;;  %6475 = vmatmul.mubr.msk.f32.gmra.mrb[4].mxu1 %vm288_vm3, %v273_v18 }
  0x21   : > { %6453 = vmatprep.mubr.msk.f32.mxu0 %vm288_vm3, %v258_v17  ;;  %6477 = vmatprep.mubr.msk.f32.mxu1 %vm288_vm3, %v274_v19 }
  0x24   : > { %6454 = vmatmul.mubr.msk.f32.gmra.mrb[6].mxu0 %vm288_vm3, %v259_v20  ;;  %6478 = vmatmul.mubr.msk.f32.gmra.mrb[6].mxu1 %vm288_vm3, %v275_v22 }
  0x25   : > { %6456 = vmatprep.mubr.msk.f32.mxu0 %vm288_vm3, %v260_v21  ;;  %6480 = vmatprep.mubr.msk.f32.mxu1 %vm288_vm3, %v276_v23 }
  0x28   : > { %6457 = vmatmul.mubr.msk.f32.gmra.mrb[8].mxu0 %vm288_vm3, %v261_v24  ;;  %6481 = vmatmul.mubr.msk.f32.gmra.mrb[8].mxu1 %vm288_vm3, %v277_v26 }
  0x29   : > { %6459 = vmatprep.mubr.msk.f32.mxu0 %vm288_vm3, %v262_v25  ;;  %6483 = vmatprep.mubr.msk.f32.mxu1 %vm288_vm3, %v278_v27 }
  0x2c   : > { %6460 = vmatmul.mubr.msk.f32.gmra.mrb[10].mxu0 %vm288_vm3, %v263_v28  ;;  %6484 = vmatmul.mubr.msk.f32.gmra.mrb[10].mxu1 %vm288_vm3, %v279_v30 }
  0x2d   : > { %6462 = vmatprep.mubr.msk.f32.mxu0 %vm288_vm3, %v264_v29  ;;  %6486 = vmatprep.mubr.msk.f32.mxu1 %vm288_vm3, %v280_v31 }
  0x30   : > { %6463 = vmatmul.mubr.msk.f32.gmra.mrb[12].mxu0 %vm288_vm3, %v265_v32  ;;  %6487 = vmatmul.mubr.msk.f32.gmra.mrb[12].mxu1 %vm288_vm3, %v281_v34 }
  0x31   : > { %6465 = vmatprep.mubr.msk.f32.mxu0 %vm288_vm3, %v266_v33  ;;  %6489 = vmatprep.mubr.msk.f32.mxu1 %vm288_vm3, %v282_v35 }
  0x34   : > { %6466 = vmatmul.mubr.msk.f32.gmra.mrb[14].mxu0 %vm288_vm3, %v267_v36  ;;  %6490 = vmatmul.mubr.msk.f32.gmra.mrb[14].mxu1 %vm288_vm3, %v283_v37 }
  0xeb   : > { %v6446_v39 = vpop.f32.mrb[0].mxu0 }
  0xec   : > { %v622_v41 = vmul.f32 %v6446_v39, %v6943_v38  ;;  %v455_v42 = vpop.f32.mrb[1].mxu0 }
  0xed   : > { %v621_v45 = vmul.f32 %v6943_v38, %v455_v42 }
  0xee   : > { %v661_v46 = vadd.f32 %v6948_v40, %v622_v41 }
  0xef   : > { %v660_v52 = vadd.f32 %v6948_v40, %v621_v45  ;;  %v6449_v53 = vpop.f32.mrb[2].mxu0 }
  0xf0   : > { %v6989_v54 = vmax.f32 %v661_v46, 0.0  ;;  %v465_v55 = vpop.f32.mrb[3].mxu0  ;;  %v624_v2 = vmul.f32 %v6449_v53, %v6943_v38  ;;  %v7035_v46 = vpop.f32.mrb[0].mxu1 }
  0xf1   : > { %v692_v56 = vmax.f32 %v660_v52, 0.0  ;;  %13970 = vst [vmem:[#allocation6_spill] sm:$0xff] %v7035_v46  ;;  %v623_v52 = vmul.f32 %v6943_v38, %v465_v55 }
  0xf2   : > { %v758_v57 = vmul.f32 %v6954_v43, %v6989_v54  ;;  %v836_v58 = vmul.f32 %v6959_v44, %v6989_v54  ;;  %v914_v59 = vmul.f32 %v6966_v47, %v6989_v54  ;;  %v992_v60 = vmul.f32 %v6971_v48, %v6989_v54 }
  0xf3   : > { %v1070_v62 = vmul.f32 %v6976_v49, %v6989_v54  ;;  %v1147_v63 = vmul.f32 %v6981_v50, %v6989_v54  ;;  %v1225_v0 = vmul.f32 %v6986_v51, %v6989_v54  ;;  %v6452_v3 = vpop.f32.mrb[4].mxu0  ;;  %v736_v12 = vmul.f32 %v7002_v61, %v692_v56 }
  0xf4   : > { %v791_v4 = vrot.slane %v758_v57, 1  ;;  %v869_v5 = vrot.slane %v836_v58, 2  ;;  %v947_v6 = vrot.slane %v914_v59, 3  ;;  %v1025_v7 = vrot.slane %v992_v60, 4  ;;  %v475_v8 = vpop.f32.mrb[5].mxu0 }
  0xf5   : > { %v1102_v9 = vrot.slane %v1070_v62, 5  ;;  %v1180_v10 = vrot.slane %v1147_v63, 6  ;;  %v1258_v11 = vrot.slane %v1225_v0, 7  ;;  %v757_v13 = vmul.f32 %v6954_v43, %v692_v56  ;;  %v7047_v59 = vld [vmem:[%s13515_s4 + $0x8] ss:$0 sm:$0xff] }
  0xf6   : > { %v835_v14 = vmul.f32 %v6959_v44, %v692_v56  ;;  %v913_v15 = vmul.f32 %v6966_v47, %v692_v56  ;;  %v991_v16 = vmul.f32 %v6971_v48, %v692_v56  ;;  %v744_v17 = vadd.f32 %v7013_v1, %v736_v12  ;;  %13972 = vst [vmem:[#allocation8_spill] sm:$0xff] %v7047_v59 }
  0xf7   : > { %v1069_v18 = vmul.f32 %v6976_v49, %v692_v56  ;;  %v1146_v19 = vmul.f32 %v6981_v50, %v692_v56  ;;  %v1224_v20 = vmul.f32 %v6986_v51, %v692_v56  ;;  %v6455_v21 = vpop.f32.mrb[6].mxu0  ;;  %v790_v22 = vrot.slane %v757_v13, 1 }
  0xf8   : > { %v868_v23 = vrot.slane %v835_v14, 2  ;;  %v946_v24 = vrot.slane %v913_v15, 3  ;;  %v1024_v25 = vrot.slane %v991_v16, 4  ;;  %v485_v26 = vpop.f32.mrb[7].mxu0  ;;  %v663_v30 = vadd.f32 %v6948_v40, %v624_v2 }
  0xf9   : > { %v1101_v27 = vrot.slane %v1069_v18, 5  ;;  %v1179_v28 = vrot.slane %v1146_v19, 6  ;;  %v1257_v29 = vrot.slane %v1224_v20, 7  ;;  %v792_v31 = vsel %vm789_vm4, %v790_v22, %v791_v4  ;;  %v7093_v18 = vld [vmem:[%s13515_s4 + $0xb] ss:$0 sm:$0xff] }
  0xfa   : > { %v870_v32 = vsel %vm867_vm5, %v868_v23, %v869_v5  ;;  %v948_v33 = vsel %vm945_vm6, %v946_v24, %v947_v6  ;;  %v1026_v34 = vsel %vm1023_vm7, %v1024_v25, %v1025_v7  ;;  %v822_v35 = vadd.f32 %v792_v31, %v744_v17  ;;  %v7088_v17 = vpop.f32.mrb[1].mxu1  ;;  %v7108_v25 = vld [vmem:[%s13515_s4 + $0x9] ss:$0 sm:$0xff] }
  0xfb   : > { %v1103_v36 = vsel %vm385_vm0, %v1101_v27, %v1102_v9  ;;  %v1181_v37 = vsel %vm1178_vm8, %v1179_v28, %v1180_v10  ;;  %v1259_v39 = vsel %vm1256_vm9, %v1257_v29, %v1258_v11  ;;  %v6458_v41 = vpop.f32.mrb[8].mxu0  ;;  %v7038_v56 = vmax.f32 %v663_v30, 0.0  ;;  %v7070_v10 = vld [vmem:[%s13515_s4 + $0xa] ss:$0 sm:$0xff]  ;;  %13975 = vst [vmem:[#allocation11_spill] sm:$0xff] %v7088_v17  ;;  %13977 = vst [vmem:[#allocation13_spill] sm:$0xff] %v7108_v25 }
  0xfc   : > { %v7033_v42 = vpop.f32.mrb[9].mxu0  ;;  %v900_v45 = vadd.f32 %v870_v32, %v822_v35  ;;  %v662_v62 = vadd.f32 %v6948_v40, %v623_v52  ;;  %v1302_v2 = vmul.f32 %v7047_v59, %v6989_v54  ;;  %v7059_v6 = vmul.f32 %v6452_v3, %v6943_v38 }
  0xfd   : > { %13971 = vst [vmem:[#allocation7_spill] sm:$0xff] %v7038_v56  ;;  %v760_v0 = vmul.f32 %v6954_v43, %v7038_v56  ;;  %v7062_v7 = vmul.f32 %v6943_v38, %v475_v8  ;;  %v7065_v9 = vmul.f32 %v6455_v21, %v6943_v38  ;;  %v838_v54 = vmul.f32 %v6959_v44, %v7038_v56 }
  0xfe   : > { %v978_v53 = vadd.f32 %v948_v33, %v900_v45  ;;  %v7074_v11 = vmax.f32 %v662_v62, 0.0  ;;  %v7077_v12 = vmul.f32 %v6943_v38, %v485_v26  ;;  %v7080_v3 = vmul.f32 %v6458_v41, %v6943_v38  ;;  %v7113_v26 = vld [vmem:[%s13515_s4 + $0xc] ss:$0 sm:$0xff] }
  0xff   : > { %v7040_v57 = vpop.f32.mrb[10].mxu0  ;;  %v794_v13 = vrot.slane %v760_v0, 1  ;;  %v916_v14 = vmul.f32 %v6966_v47, %v7038_v56  ;;  %v994_v15 = vmul.f32 %v6971_v48, %v7038_v56  ;;  %v1072_v27 = vmul.f32 %v6976_v49, %v7038_v56 }
 0x100   : > { %v7042_v58 = vpop.f32.mrb[11].mxu0  ;;  %v1056_v60 = vadd.f32 %v1026_v34, %v978_v53  ;;  %v737_v19 = vmul.f32 %v7002_v61, %v7074_v11  ;;  %v759_v20 = vmul.f32 %v6954_v43, %v7074_v11  ;;  %v837_v21 = vmul.f32 %v6959_v44, %v7074_v11 }
 0x101   : > { %v915_v22 = vmul.f32 %v6966_v47, %v7074_v11  ;;  %v1345_v28 = vmul.f32 %v7070_v10, %v7038_v56  ;;  %v993_v29 = vmul.f32 %v6971_v48, %v7074_v11  ;;  %v872_v30 = vrot.slane %v838_v54, 2 }
 0x102   : > { %v1133_v63 = vadd.f32 %v1103_v36, %v1056_v60  ;;  %v745_v31 = vadd.f32 %v7013_v1, %v737_v19  ;;  %v793_v32 = vrot.slane %v759_v20, 1  ;;  %v871_v33 = vrot.slane %v837_v21, 2  ;;  %v7145_v19 = vld [vmem:[%s13515_s4 + $0xd] ss:$0 sm:$0xff] }
 0x103   : > { %v7052_v55 = vpop.f32.mrb[12].mxu0  ;;  %v950_v34 = vrot.slane %v916_v14, 3  ;;  %v1028_v35 = vrot.slane %v994_v15, 4  ;;  %v1149_v36 = vmul.f32 %v6981_v50, %v7038_v56  ;;  %v949_v45 = vrot.slane %v915_v22, 3  ;;  %13978 = vst [vmem:[#allocation14_spill] sm:$0xff] %v7145_v19 }
 0x104   : > { %v7056_v4 = vpop.f32.mrb[13].mxu0  ;;  %v1211_v5 = vadd.f32 %v1181_v37, %v1133_v63  ;;  %v1422_v37 = vmul.f32 %v7093_v18, %v7038_v56  ;;  %v795_v41 = vsel %vm789_vm4, %v793_v32, %v794_v13  ;;  %v1323_v52 = vmul.f32 %v7108_v25, %v7074_v11 }
 0x105   : > { %13973 = vst [vmem:[#allocation9_spill] sm:$0xff] %v7056_v4  ;;  %v1377_v53 = vrot.slane %v1345_v28, 1  ;;  %v823_v60 = vadd.f32 %v795_v41, %v745_v31  ;;  %v1027_v62 = vrot.slane %v993_v29, 4  ;;  %v1071_v63 = vmul.f32 %v6976_v49, %v7074_v11  ;;  %v7153_v31 = vld [vmem:[%s13515_s4 + $0xe] ss:$0 sm:$0xff] }
 0x106   : > { %v1289_v8 = vadd.f32 %v1259_v39, %v1211_v5  ;;  %v1499_v39 = vmul.f32 %v7113_v26, %v7038_v56  ;;  %v873_v0 = vsel %vm867_vm5, %v871_v33, %v872_v30  ;;  %v1344_v5 = vmul.f32 %v7070_v10, %v7074_v11 }
 0x107   : > { %v7086_v16 = vpop.f32.mrb[14].mxu0  ;;  %v1421_v54 = vmul.f32 %v7093_v18, %v7074_v11  ;;  %v1227_v13 = vmul.f32 %v6986_v51, %v7038_v56  ;;  %v901_v14 = vadd.f32 %v873_v0, %v823_v60  ;;  %v1498_v15 = vmul.f32 %v7113_v26, %v7074_v11  ;;  %v7176_v0 = vpop.f32.mrb[2].mxu1 }
 0x108   : > { %13974 = vst [vmem:[#allocation10_spill] sm:$0xff] %v7086_v16  ;;  %v7103_v23 = vpop.f32.mrb[15].mxu0  ;;  %v1310_v24 = vadd.f32 %v1302_v2, %v1289_v8  ;;  %v1105_v8 = vrot.slane %v1072_v27, 5  ;;  %v1454_v20 = vrot.slane %v1422_v37, 2  ;;  %v951_v21 = vsel %vm945_vm6, %v949_v45, %v950_v34  ;;  %v7160_v34 = vld [vmem:[%s13515_s4 + $0xf] ss:$0 sm:$0xff] }
 0x109   : > { %13976 = vst [vmem:[#allocation12_spill] sm:$0xff] %v7103_v23  ;;  %v1376_v22 = vrot.slane %v1344_v5, 1  ;;  %v1183_v28 = vrot.slane %v1149_v36, 6  ;;  %v979_v29 = vadd.f32 %v951_v21, %v901_v14  ;;  %v1104_v27 = vrot.slane %v1071_v63, 5  ;;  %13979 = vst [vmem:[#allocation15_spill] sm:$0xff] %v7160_v34 }
 0x10a   : > { %v1331_v2 = vadd.f32 %v1323_v52, %v1310_v24  ;;  %v1453_v24 = vrot.slane %v1421_v54, 2  ;;  %v1148_v30 = vmul.f32 %v6981_v50, %v7074_v11  ;;  %v1531_v32 = vrot.slane %v1499_v39, 3  ;;  %v7165_v36 = vld [vmem:[%s13515_s4 + $0x10] ss:$0 sm:$0xff]  ;;  %13981 = vst [vmem:[#allocation17_spill] sm:$0xff] %v7176_v0 }
 0x10b   : > { %v1029_v33 = vsel %vm1023_vm7, %v1027_v62, %v1028_v35  ;;  %v1378_v37 = vsel %vm789_vm4, %v1376_v22, %v1377_v53  ;;  %v1530_v41 = vrot.slane %v1498_v15, 3  ;;  %13980 = vst [vmem:[#allocation16_spill] sm:$0xff] %v7165_v36  ;;  %v1576_v45 = vmul.f32 %v7145_v19, %v7038_v56 }
 0x10c   : > { %v1057_v52 = vadd.f32 %v1029_v33, %v979_v29  ;;  %v1226_v35 = vmul.f32 %v6986_v51, %v7074_v11  ;;  %v1408_v39 = vadd.f32 %v1378_v37, %v1331_v2  ;;  %v1261_v53 = vrot.slane %v1227_v13, 7 }
 0x10d   : > { %v1455_v60 = vsel %vm867_vm5, %v1453_v24, %v1454_v20  ;;  %v1575_v62 = vmul.f32 %v7145_v19, %v7074_v11  ;;  %v667_v63 = vadd.f32 %v6948_v40, %v7065_v9  ;;  %v7180_v5 = vmul.f32 %v7153_v31, %v7038_v56 }
 0x10e   : > { %v1106_v54 = vsel %vm385_vm0, %v1104_v27, %v1105_v8  ;;  %v1182_v14 = vrot.slane %v1148_v30, 6  ;;  %v1485_v15 = vadd.f32 %v1455_v60, %v1408_v39  ;;  %v7185_v2 = vmul.f32 %v7160_v34, %v7038_v56 }
 0x10f   : > { %13982 = vst [vmem:[#allocation18_spill] sm:$0xff] %v7180_v5  ;;  %v7189_v13 = vmul.f32 %v7165_v36, %v7038_v56  ;;  %v1134_v20 = vadd.f32 %v1106_v54, %v1057_v52  ;;  %v1532_v9 = vsel %vm945_vm6, %v1530_v41, %v1531_v32  ;;  %v1608_v21 = vrot.slane %v1576_v45, 4 }
 0x110   : > { %13983 = vst [vmem:[#allocation19_spill] sm:$0xff] %v7185_v2  ;;  %v1260_v22 = vrot.slane %v1226_v35, 7  ;;  %v7192_v24 = vadd.f32 %v1532_v9, %v1485_v15  ;;  %v7196_v8 = vmul.f32 %v7153_v31, %v7074_v11  ;;  %v1607_v29 = vrot.slane %v1575_v62, 4 }
 0x111   : > { %13984 = vst [vmem:[#allocation20_spill] sm:$0xff] %v7189_v13  ;;  %v7200_v27 = vmul.f32 %v7160_v34, %v7074_v11  ;;  %v7202_v30 = vmax.f32 %v667_v63, 0.0  ;;  %v666_v33 = vadd.f32 %v6948_v40, %v7077_v12  ;;  %v1303_v32 = vmul.f32 %v7047_v59, %v7038_v56  ;;  %v7224_v63 = vpop.f32.mrb[3].mxu1 }
 0x112   : > { %13985 = vst [vmem:[#allocation21_spill] sm:$0xff] %v7192_v24  ;;  %13986 = vst [vmem:[#allocation22_spill] sm:$0xff] %v7196_v8  ;;  %v1184_v37 = vsel %vm1178_vm8, %v1182_v14, %v1183_v28  ;;  %v7211_v41 = vmul.f32 %v7165_v36, %v7074_v11  ;;  %v665_v45 = vadd.f32 %v6948_v40, %v7059_v6 }
 0x113   : > { %13987 = vst [vmem:[#allocation23_spill] sm:$0xff] %v7200_v27  ;;  %13988 = vst [vmem:[#allocation24_spill] sm:$0xff] %v7202_v30  ;;  %v1212_v39 = vadd.f32 %v1184_v37, %v1134_v20  ;;  %v664_v12 = vadd.f32 %v6948_v40, %v7062_v7  ;;  %v1262_v62 = vsel %vm1256_vm9, %v1260_v22, %v1261_v53  ;;  %v7234_v7 = vmax.f32 %v666_v33, 0.0 }
 0x114   : > { %13989 = vst [vmem:[#allocation25_spill] sm:$0xff] %v7211_v41  ;;  %v669_v11 = vadd.f32 %v6948_v40, %v7080_v3  ;;  %13990 = vst [vmem:[#allocation26_spill] sm:$0xff] %v7224_v63  ;;  %v7227_v6 = vsel %vm1023_vm7, %v1607_v29, %v1608_v21  ;;  %v7232_v14 = vmul.f32 %v6954_v43, %v7202_v30  ;;  %v7237_v15 = vmax.f32 %v665_v45, 0.0 }
 0x115   : > { %13991 = vst [vmem:[#allocation27_spill] sm:$0xff] %v7227_v6  ;;  %13992 = vst [vmem:[#allocation28_spill] sm:$0xff] %v7234_v7  ;;  %v842_v3 = vmul.f32 %v6959_v44, %v7202_v30  ;;  %v920_v20 = vmul.f32 %v6966_v47, %v7202_v30  ;;  %v1290_v9 = vadd.f32 %v1262_v62, %v1212_v39  ;;  %v7243_v21 = vmax.f32 %v664_v12, 0.0  ;;  %v7340_v6 = vld [vmem:[%s13515_s4 + $0x11] ss:$0 sm:$0xff] }
 0x116   : > { %13993 = vst [vmem:[#allocation29_spill] sm:$0xff] %v7237_v15  ;;  %v998_v22 = vmul.f32 %v6971_v48, %v7202_v30  ;;  %v7249_v29 = vmul.f32 %v6976_v49, %v7202_v30  ;;  %v7253_v33 = vmul.f32 %v6981_v50, %v7202_v30  ;;  %v7257_v37 = vmul.f32 %v6986_v51, %v7202_v30 }
 0x117   : > { %13994 = vst [vmem:[#allocation30_spill] sm:$0xff] %v7243_v21  ;;  %v7261_v45 = vmul.f32 %v7047_v59, %v7202_v30  ;;  %v7263_v39 = vmax.f32 %v669_v11, 0.0  ;;  %v739_v12 = vmul.f32 %v7002_v61, %v7234_v7  ;;  %v763_v62 = vmul.f32 %v6954_v43, %v7234_v7  ;;  %14002 = vst [vmem:[#allocation38_spill] sm:$0xff] %v7340_v6 }
 0x118   : > { %v800_v53 = vrot.slane %v7232_v14, 1  ;;  %v841_v60 = vmul.f32 %v6959_v44, %v7234_v7  ;;  %v878_v54 = vrot.slane %v842_v3, 2  ;;  %v919_v35 = vmul.f32 %v6966_v47, %v7234_v7  ;;  %v7281_v14 = vpop.f32.mrb[4].mxu1 }
 0x119   : > { %13995 = vst [vmem:[#allocation31_spill] sm:$0xff] %v7261_v45  ;;  %13996 = vst [vmem:[#allocation32_spill] sm:$0xff] %v7263_v39  ;;  %v956_v28 = vrot.slane %v920_v20, 3  ;;  %v997_v11 = vmul.f32 %v6971_v48, %v7234_v7  ;;  %v7276_v52 = vadd.f32 %v1303_v32, %v1290_v9  ;;  %v1034_v30 = vrot.slane %v998_v22, 4 }
 0x11a   : > { %v1075_v56 = vmul.f32 %v6976_v49, %v7234_v7  ;;  %v1111_v41 = vrot.slane %v7249_v29, 5  ;;  %13998 = vst [vmem:[#allocation34_spill] sm:$0xff] %v7281_v14  ;;  %v1152_v3 = vmul.f32 %v6981_v50, %v7234_v7  ;;  %v1189_v13 = vrot.slane %v7253_v33, 6 }
 0x11b   : > { %13997 = vst [vmem:[#allocation33_spill] sm:$0xff] %v7276_v52  ;;  %v1230_v20 = vmul.f32 %v6986_v51, %v7234_v7  ;;  %v1267_v15 = vrot.slane %v7257_v37, 7  ;;  %v7291_v32 = vmul.f32 %v7108_v25, %v7234_v7  ;;  %v7294_v9 = vadd.f32 %v7013_v1, %v739_v12 }
 0x11c   : > { %v7298_v22 = vmul.f32 %v6954_v43, %v7263_v39  ;;  %v629_v29 = vmul.f32 %v6943_v38, %v7033_v42  ;;  %v799_v33 = vrot.slane %v763_v62, 1  ;;  %v7304_v52 = vmul.f32 %v6959_v44, %v7263_v39  ;;  %v7318_v42 = vpop.f32.mrb[5].mxu1 }
 0x11d   : > { %13999 = vst [vmem:[#allocation35_spill] sm:$0xff] %v7291_v32  ;;  %v877_v37 = vrot.slane %v841_v60, 2  ;;  %v7308_v7 = vmul.f32 %v6966_v47, %v7263_v39  ;;  %v955_v32 = vrot.slane %v919_v35, 3  ;;  %v7312_v12 = vmul.f32 %v6971_v48, %v7263_v39  ;;  %14000 = vst [vmem:[#allocation36_spill] sm:$0xff] %v7318_v42  ;;  %v7358_v42 = vpop.f32.mrb[6].mxu1 }
 0x11e   : > { %v1033_v21 = vrot.slane %v997_v11, 4  ;;  %v7316_v27 = vmul.f32 %v6976_v49, %v7263_v39  ;;  %v1110_v62 = vrot.slane %v1075_v56, 5  ;;  %v7322_v60 = vmul.f32 %v6981_v50, %v7263_v39  ;;  %14004 = vst [vmem:[#allocation40_spill] sm:$0xff] %v7358_v42 }
 0x11f   : > { %v1188_v2 = vrot.slane %v1152_v3, 6  ;;  %v7326_v35 = vmul.f32 %v6986_v51, %v7263_v39  ;;  %v1266_v8 = vrot.slane %v1230_v20, 7  ;;  %v7330_v11 = vmul.f32 %v7047_v59, %v7263_v39 }
 0x120   : > { %v7334_v5 = vmul.f32 %v7070_v10, %v7263_v39  ;;  %v668_v56 = vadd.f32 %v6948_v40, %v629_v29  ;;  %v7344_v3 = vmul.f32 %v7093_v18, %v7263_v39  ;;  %v7348_v20 = vmul.f32 %v7113_v26, %v7263_v39 }
 0x121   : > { %14001 = vst [vmem:[#allocation37_spill] sm:$0xff] %v7330_v11  ;;  %v7352_v24 = vmul.f32 %v7145_v19, %v7263_v39  ;;  %v7356_v29 = vmul.f32 %v7153_v31, %v7263_v39  ;;  %v7362_v14 = vmul.f32 %v7160_v34, %v7263_v39  ;;  %v7366_v11 = vmul.f32 %v7165_v36, %v7263_v39 }
 0x122   : > { %v7370_v63 = vmul.f32 %v7340_v6, %v7263_v39  ;;  %v801_v0 = vsel %vm789_vm4, %v799_v33, %v800_v53  ;;  %v7375_v17 = vsel %vm867_vm5, %v877_v37, %v878_v54  ;;  %v7379_v46 = vsel %vm945_vm6, %v955_v32, %v956_v28  ;;  %v7396_v32 = vpop.f32.mrb[7].mxu1 }
 0x123   : > { %14003 = vst [vmem:[#allocation39_spill] sm:$0xff] %v7356_v29  ;;  %14005 = vst [vmem:[#allocation41_spill] sm:$0xff] %v7362_v14  ;;  %v7381_v23 = vmax.f32 %v668_v56, 0.0  ;;  %v7385_v4 = vsel %vm1023_vm7, %v1033_v21, %v1034_v30  ;;  %v7389_v53 = vsel %vm385_vm0, %v1110_v62, %v1111_v41  ;;  %v7393_v33 = vsel %vm1178_vm8, %v1188_v2, %v1189_v13  ;;  %v7405_v62 = vpop.f32.mrb[8].mxu1 }
 0x124   : > { %14006 = vst [vmem:[#allocation42_spill] sm:$0xff] %v7366_v11  ;;  %14007 = vst [vmem:[#allocation43_spill] sm:$0xff] %v7370_v63  ;;  %v7399_v37 = vsel %vm1256_vm9, %v1266_v8, %v1267_v15  ;;  %v632_v41 = vmul.f32 %v7040_v57, %v6943_v38  ;;  %v7411_v54 = vpop.f32.mrb[9].mxu1 }
 0x125   : > { %14008 = vst [vmem:[#allocation44_spill] sm:$0xff] %v7379_v46  ;;  %14009 = vst [vmem:[#allocation45_spill] sm:$0xff] %v7381_v23  ;;  %v740_v8 = vmul.f32 %v7002_v61, %v7381_v23  ;;  %v765_v15 = vmul.f32 %v6954_v43, %v7381_v23  ;;  %v843_v56 = vmul.f32 %v6959_v44, %v7381_v23 }
 0x126   : > { %14010 = vst [vmem:[#allocation46_spill] sm:$0xff] %v7385_v4  ;;  %14011 = vst [vmem:[#allocation47_spill] sm:$0xff] %v7389_v53  ;;  %v921_v13 = vmul.f32 %v6966_v47, %v7381_v23  ;;  %v7425_v28 = vmul.f32 %v6971_v48, %v7381_v23  ;;  %v7429_v2 = vmul.f32 %v6976_v49, %v7381_v23 }
 0x127   : > { %14012 = vst [vmem:[#allocation48_spill] sm:$0xff] %v7393_v33  ;;  %14013 = vst [vmem:[#allocation49_spill] sm:$0xff] %v7396_v32  ;;  %v7433_v30 = vmul.f32 %v6981_v50, %v7381_v23  ;;  %v7437_v21 = vmul.f32 %v6986_v51, %v7381_v23  ;;  %v7441_v57 = vmul.f32 %v7108_v25, %v7381_v23  ;;  %v802_v33 = vrot.slane %v765_v15, 1  ;;  %v7570_v15 = vld [vmem:[%s13515_s4 + $0x14] ss:$0 sm:$0xff] }
 0x128   : > { %14014 = vst [vmem:[#allocation50_spill] sm:$0xff] %v7399_v37  ;;  %14015 = vst [vmem:[#allocation51_spill] sm:$0xff] %v7405_v62  ;;  %v671_v39 = vadd.f32 %v6948_v40, %v632_v41  ;;  %v7446_v16 = vmul.f32 %v7070_v10, %v7381_v23  ;;  %v7450_v42 = vmul.f32 %v7093_v18, %v7381_v23  ;;  %v880_v53 = vrot.slane %v843_v56, 2 }
 0x129   : > { %14016 = vst [vmem:[#allocation52_spill] sm:$0xff] %v7411_v54  ;;  %14017 = vst [vmem:[#allocation53_spill] sm:$0xff] %v7441_v57  ;;  %v7454_v45 = vmul.f32 %v7113_v26, %v7381_v23  ;;  %v7458_v63 = vmul.f32 %v7145_v19, %v7381_v23  ;;  %v7460_v54 = vpop.f32.mrb[10].mxu1  ;;  %v7464_v41 = vmul.f32 %v7153_v31, %v7381_v23  ;;  %v958_v4 = vrot.slane %v921_v13, 3 }
 0x12a   : > { %14018 = vst [vmem:[#allocation54_spill] sm:$0xff] %v7460_v54  ;;  %v7468_v62 = vmul.f32 %v7160_v34, %v7381_v23  ;;  %v7472_v32 = vmul.f32 %v7165_v36, %v7381_v23  ;;  %v7475_v57 = vadd.f32 %v7013_v1, %v740_v8  ;;  %v7477_v37 = vpop.f32.mrb[11].mxu1  ;;  %v825_v54 = vadd.f32 %v801_v0, %v7294_v9 }
 0x12b   : > { %14020 = vst [vmem:[#allocation56_spill] sm:$0xff] %v7477_v37  ;;  %v7480_v46 = vpop.f32.mrb[12].mxu1  ;;  %v7482_v11 = vmax.f32 %v671_v39, 0.0  ;;  %v1036_v14 = vrot.slane %v7425_v28, 4  ;;  %v1113_v29 = vrot.slane %v7429_v2, 5  ;;  %v1191_v23 = vrot.slane %v7433_v30, 6 }
 0x12c   : > { %14019 = vst [vmem:[#allocation55_spill] sm:$0xff] %v7475_v57  ;;  %14021 = vst [vmem:[#allocation57_spill] sm:$0xff] %v7480_v46  ;;  %v1269_v8 = vrot.slane %v7437_v21, 7  ;;  %v1385_v57 = vrot.slane %v7446_v16, 1  ;;  %v631_v0 = vmul.f32 %v6943_v38, %v7042_v58  ;;  %v14023_v30 = vrot.slane %v7298_v22, 1  ;;  %v7510_v39 = vpop.f32.mrb[13].mxu1 }
 0x12d   : > { %14022 = vst [vmem:[#allocation58_spill] sm:$0xff] %v7482_v11  ;;  %v14025_v16 = vrot.slane %v7304_v52, 2  ;;  %v7508_v58 = vadd.f32 %v7375_v17, %v825_v54  ;;  %14028 = vst [vmem:[#allocation62_spill] sm:$0xff] %v7510_v39  ;;  %v7514_v28 = vmul.f32 %v6954_v43, %v7482_v11  ;;  %v7518_v22 = vmul.f32 %v6959_v44, %v7482_v11  ;;  %v7529_v17 = vpop.f32.mrb[14].mxu1  ;;  %v7591_v37 = vld [vmem:[%s13515_s4 + $0x15] ss:$0 sm:$0xff] }
 0x12e   : > { %v7500_v21 = vsel %vm789_vm4, %v802_v33, %v14023_v30  ;;  %v7522_v33 = vmul.f32 %v6966_v47, %v7482_v11  ;;  %v14029_v52 = vrot.slane %v7308_v7, 3  ;;  %14031 = vst [vmem:[#allocation64_spill] sm:$0xff] %v7529_v17  ;;  %v7533_v54 = vmul.f32 %v6971_v48, %v7482_v11  ;;  %v7544_v7 = vpop.f32.mrb[15].mxu1  ;;  %14037 = vst [vmem:[#allocation70_spill] sm:$0xff] %v7570_v15 }
 0x12f   : > { %14024 = vst [vmem:[#allocation59_spill] sm:$0xff] %v7500_v21  ;;  %v7505_v13 = vsel %vm867_vm5, %v880_v53, %v14025_v16  ;;  %14027 = vst [vmem:[#allocation61_spill] sm:$0xff] %v7508_v58  ;;  %v7537_v30 = vmul.f32 %v6976_v49, %v7482_v11  ;;  %v7541_v16 = vmul.f32 %v6981_v50, %v7482_v11 }
 0x130   : > { %14026 = vst [vmem:[#allocation60_spill] sm:$0xff] %v7505_v13  ;;  %v7527_v53 = vsel %vm945_vm6, %v958_v4, %v14029_v52  ;;  %v670_v2 = vadd.f32 %v6948_v40, %v631_v0  ;;  %14032 = vst [vmem:[#allocation65_spill] sm:$0xff] %v7544_v7  ;;  %v7548_v4 = vmul.f32 %v6986_v51, %v7482_v11  ;;  %v7565_v0 = vld [vmem:[%s13515_s4 + $0x13] ss:$0 sm:$0xff] }
 0x131   : > { %14030 = vst [vmem:[#allocation63_spill] sm:$0xff] %v7527_v53  ;;  %v7552_v52 = vmul.f32 %v7047_v59, %v7482_v11  ;;  %v7556_v56 = vmul.f32 %v7070_v10, %v7482_v11  ;;  %v7560_v9 = vmul.f32 %v7093_v18, %v7482_v11  ;;  %14036 = vst [vmem:[#allocation69_spill] sm:$0xff] %v7565_v0  ;;  %v7601_v53 = vld [vmem:[%s13515_s4 + $0x17] ss:$0 sm:$0xff] }
 0x132   : > { %v7574_v7 = vmul.f32 %v7113_v26, %v7482_v11  ;;  %v7578_v17 = vmul.f32 %v7145_v19, %v7482_v11  ;;  %v7582_v39 = vmul.f32 %v7153_v31, %v7482_v11  ;;  %v7586_v46 = vmul.f32 %v7160_v34, %v7482_v11  ;;  %14042 = vst [vmem:[#allocation75_spill] sm:$0xff] %v7591_v37 }
 0x133   : > { %14033 = vst [vmem:[#allocation66_spill] sm:$0xff] %v7552_v52  ;;  %14034 = vst [vmem:[#allocation67_spill] sm:$0xff] %v7556_v56  ;;  %v7596_v52 = vld [vmem:[%s13515_s4 + $0x16] ss:$0 sm:$0xff]  ;;  %v7605_v13 = vmul.f32 %v7165_v36, %v7482_v11  ;;  %v7609_v59 = vmul.f32 %v7340_v6, %v7482_v11  ;;  %v7613_v58 = vmul.f32 %v7565_v0, %v7482_v11 }
 0x134   : > { %14035 = vst [vmem:[#allocation68_spill] sm:$0xff] %v7560_v9  ;;  %14038 = vst [vmem:[#allocation71_spill] sm:$0xff] %v7574_v7  ;;  %v7617_v21 = vmul.f32 %v7570_v15, %v7482_v11  ;;  %v7621_v1 = vmul.f32 %v7591_v37, %v7482_v11  ;;  %v7625_v40 = vmul.f32 %v7596_v52, %v7482_v11  ;;  %v14052_v15 = vrot.slane %v7312_v12, 4  ;;  %v14104_v9 = vld [vmem:[#allocation44_spill] sm:$0xff] }
 0x135   : > { %14039 = vst [vmem:[#allocation72_spill] sm:$0xff] %v7578_v17  ;;  %14040 = vst [vmem:[#allocation73_spill] sm:$0xff] %v7582_v39  ;;  %v7629_v6 = vmul.f32 %v7601_v53, %v7482_v11  ;;  %v14058_v12 = vrot.slane %v7326_v35, 7  ;;  %v14098_v17 = vld [vmem:[#allocation5_spill] sm:$0xff] }
 0x136   : > { %14041 = vst [vmem:[#allocation74_spill] sm:$0xff] %v7586_v46  ;;  %14043 = vst [vmem:[#allocation76_spill] sm:$0xff] %v7596_v52 }
 0x137   : > { %14044 = vst [vmem:[#allocation77_spill] sm:$0xff] %v7605_v13  ;;  %14045 = vst [vmem:[#allocation78_spill] sm:$0xff] %v7609_v59  ;;  %v7631_v59 = vmax.f32 %v670_v2, 0.0  ;;  %v14064_v2 = vrot.slane %v7450_v42, 2  ;;  %v14103_v13 = vld [vmem:[#allocation61_spill] sm:$0xff] }
 0x138   : > { %14046 = vst [vmem:[#allocation79_spill] sm:$0xff] %v7613_v58  ;;  %14047 = vst [vmem:[#allocation80_spill] sm:$0xff] %v7617_v21  ;;  %v14056_v58 = vrot.slane %v7322_v60, 6  ;;  %v14063_v21 = vrot.slane %v7344_v3, 2 }
 0x139   : > { %14048 = vst [vmem:[#allocation81_spill] sm:$0xff] %v7621_v1  ;;  %14049 = vst [vmem:[#allocation82_spill] sm:$0xff] %v7625_v40  ;;  %v7639_v1 = vsel %vm1023_vm7, %v1036_v14, %v14052_v15  ;;  %v14054_v40 = vrot.slane %v7316_v27, 5  ;;  %v7657_v14 = vsel %vm1256_vm9, %v1269_v8, %v14058_v12  ;;  %v14060_v27 = vrot.slane %v7334_v5, 1 }
 0x13a   : > { %14050 = vst [vmem:[#allocation83_spill] sm:$0xff] %v7629_v6  ;;  %14051 = vst [vmem:[#allocation84_spill] sm:$0xff] %v7631_v59  ;;  %v7651_v0 = vsel %vm1178_vm8, %v1191_v23, %v14056_v58  ;;  %v741_v60 = vmul.f32 %v7002_v61, %v7631_v59  ;;  %v7669_v23 = vmul.f32 %v6954_v43, %v7631_v59 }
 0x13b   : > { %14053 = vst [vmem:[#allocation85_spill] sm:$0xff] %v7639_v1  ;;  %v7645_v11 = vsel %vm385_vm0, %v1113_v29, %v14054_v40  ;;  %14057 = vst [vmem:[#allocation87_spill] sm:$0xff] %v7651_v0  ;;  %v7663_v40 = vsel %vm789_vm4, %v1385_v57, %v14060_v27  ;;  %v7673_v35 = vmul.f32 %v6959_v44, %v7631_v59  ;;  %v14066_v0 = vrot.slane %v7348_v20, 3 }
 0x13c   : > { %14055 = vst [vmem:[#allocation86_spill] sm:$0xff] %v7645_v11  ;;  %14059 = vst [vmem:[#allocation88_spill] sm:$0xff] %v7657_v14  ;;  %v7678_v8 = vmul.f32 %v6966_v47, %v7631_v59  ;;  %v7682_v5 = vmul.f32 %v6971_v48, %v7631_v59  ;;  %v7686_v57 = vmul.f32 %v6976_v49, %v7631_v59  ;;  %v14067_v11 = vrot.slane %v7454_v45, 3 }
 0x13d   : > { %14061 = vst [vmem:[#allocation89_spill] sm:$0xff] %v7663_v40  ;;  %v7690_v58 = vmul.f32 %v6981_v50, %v7631_v59  ;;  %v7694_v12 = vmul.f32 %v6986_v51, %v7631_v59  ;;  %v7698_v27 = vmul.f32 %v7108_v25, %v7631_v59  ;;  %v7702_v29 = vmul.f32 %v7070_v10, %v7631_v59 }
 0x13e   : > { %v7706_v15 = vmul.f32 %v7093_v18, %v7631_v59  ;;  %v7713_v52 = vsel %vm867_vm5, %v14064_v2, %v14063_v21  ;;  %v634_v14 = vmul.f32 %v7052_v55, %v6943_v38  ;;  %v7727_v3 = vsel %vm945_vm6, %v14067_v11, %v14066_v0  ;;  %v14073_v11 = vld [vmem:[#allocation39_spill] sm:$0xff] }
 0x13f   : > { %14062 = vst [vmem:[#allocation90_spill] sm:$0xff] %v7698_v27  ;;  %14065 = vst [vmem:[#allocation91_spill] sm:$0xff] %v7713_v52  ;;  %v7718_v27 = vmul.f32 %v7113_v26, %v7631_v59  ;;  %v7732_v21 = vmul.f32 %v7145_v19, %v7631_v59  ;;  %v14069_v2 = vrot.slane %v7352_v24, 4  ;;  %v14070_v40 = vrot.slane %v7458_v63, 4  ;;  %v7757_v63 = vld [vmem:[%s13515_s4 + $0x12] ss:$0 sm:$0xff] }
 0x140   : > { %14068 = vst [vmem:[#allocation92_spill] sm:$0xff] %v7727_v3  ;;  %v7744_v45 = vmul.f32 %v7153_v31, %v7631_v59  ;;  %v14074_v20 = vrot.slane %v14073_v11, 5  ;;  %v14075_v0 = vrot.slane %v7464_v41, 5  ;;  %14077 = vst [vmem:[#allocation95_spill] sm:$0xff] %v7757_v63  ;;  %v14081_v11 = vrot.slane %v7468_v62, 6  ;;  %v14084_v24 = vld [vmem:[#allocation42_spill] sm:$0xff] }
 0x141   : > { %v7739_v52 = vsel %vm1023_vm7, %v14070_v40, %v14069_v2  ;;  %v7761_v40 = vmul.f32 %v7160_v34, %v7631_v59  ;;  %v14079_v2 = vld [vmem:[#allocation41_spill] sm:$0xff]  ;;  %v7785_v62 = vmul.f32 %v7757_v63, %v7631_v59  ;;  %v7810_v46 = vmul.f32 %v7601_v53, %v7631_v59 }
 0x142   : > { %14071 = vst [vmem:[#allocation93_spill] sm:$0xff] %v7739_v52  ;;  %14072 = vst [vmem:[#allocation94_spill] sm:$0xff] %v7744_v45  ;;  %v7751_v42 = vsel %vm385_vm0, %v14075_v0, %v14074_v20  ;;  %v14080_v55 = vrot.slane %v14079_v2, 6  ;;  %v7773_v0 = vmul.f32 %v7165_v36, %v7631_v59  ;;  %v14086_v52 = vrot.slane %v7472_v32, 7  ;;  %v14090_v20 = vld [vmem:[#allocation69_spill] sm:$0xff] }
 0x143   : > { %14076 = vst [vmem:[#allocation39_spill] sm:$0xff] %v7751_v42  ;;  %14078 = vst [vmem:[#allocation96_spill] sm:$0xff] %v7761_v40  ;;  %v14085_v42 = vrot.slane %v14084_v24, 7  ;;  %v14093_v24 = vld [vmem:[#allocation70_spill] sm:$0xff]  ;;  %v7800_v2 = vmul.f32 %v7591_v37, %v7631_v59  ;;  %v883_v61 = vrot.slane %v7673_v35, 2  ;;  %v961_v39 = vrot.slane %v7678_v8, 3 }
 0x144   : > { %v7768_v41 = vsel %vm1178_vm8, %v14081_v11, %v14080_v55  ;;  %14083 = vst [vmem:[#allocation97_spill] sm:$0xff] %v7773_v0  ;;  %14088 = vst [vmem:[#allocation98_spill] sm:$0xff] %v7785_v62  ;;  %v14089_v55 = vld [vmem:[#allocation3_spill] sm:$0xff]  ;;  %v7795_v32 = vmul.f32 %v14093_v24, %v7631_v59  ;;  %v1039_v56 = vrot.slane %v7682_v5, 4  ;;  %v1116_v1 = vrot.slane %v7686_v57, 5  ;;  %v14113_v0 = vld [vmem:[#allocation38_spill] sm:$0xff] }
 0x145   : > { %14082 = vst [vmem:[#allocation41_spill] sm:$0xff] %v7768_v41  ;;  %v7780_v3 = vsel %vm1256_vm9, %v14086_v52, %v14085_v42  ;;  %v673_v11 = vadd.f32 %v14089_v55, %v634_v14  ;;  %v7790_v41 = vmul.f32 %v14090_v20, %v7631_v59  ;;  %v14096_v14 = vld [vmem:[#allocation76_spill] sm:$0xff]  ;;  %v7814_v42 = vadd.f32 %v14098_v17, %v741_v60  ;;  %v14101_v62 = vld [vmem:[#allocation55_spill] sm:$0xff] }
 0x146   : > { %14087 = vst [vmem:[#allocation42_spill] sm:$0xff] %v7780_v3  ;;  %v7805_v63 = vmul.f32 %v14096_v14, %v7631_v59  ;;  %v805_v52 = vrot.slane %v7669_v23, 1  ;;  %v14102_v3 = vld [vmem:[#allocation59_spill] sm:$0xff]  ;;  %v981_v59 = vadd.f32 %v14104_v9, %v14103_v13  ;;  %v1194_v60 = vrot.slane %v7690_v58, 6 }
 0x147   : > { %14091 = vst [vmem:[#allocation99_spill] sm:$0xff] %v7790_v41  ;;  %14099 = vst [vmem:[#allocation70_spill] sm:$0xff] %v7814_v42  ;;  %v7817_v7 = vmax.f32 %v673_v11, 0.0  ;;  %v826_v25 = vadd.f32 %v14102_v3, %v14101_v62  ;;  %v1272_v23 = vrot.slane %v7694_v12, 7  ;;  %v1388_v11 = vrot.slane %v7702_v29, 1  ;;  %v14105_v29 = vld [vmem:[#allocation9_spill] sm:$0xff] }
 0x148   : > { %v1465_v42 = vrot.slane %v7706_v15, 2  ;;  %v633_v58 = vmul.f32 %v6943_v38, %v14105_v29  ;;  %v14106_v29 = vld [vmem:[#allocation8_spill] sm:$0xff] }
 0x149   : > { %14100 = vst [vmem:[#allocation100_spill] sm:$0xff] %v7817_v7  ;;  %v7838_v5 = vmul.f32 %v6954_v43, %v7817_v7  ;;  %v7842_v57 = vmul.f32 %v6959_v44, %v7817_v7  ;;  %v7849_v12 = vmul.f32 %v6966_v47, %v7817_v7  ;;  %v7853_v62 = vmul.f32 %v6971_v48, %v7817_v7 }
 0x14a   : > { %v7857_v13 = vmul.f32 %v6976_v49, %v7817_v7  ;;  %v7861_v9 = vmul.f32 %v6981_v50, %v7817_v7  ;;  %v7865_v15 = vmul.f32 %v6986_v51, %v7817_v7  ;;  %v7869_v8 = vmul.f32 %v14106_v29, %v7817_v7 }
 0x14b   : > { %v7873_v35 = vmul.f32 %v7070_v10, %v7817_v7  ;;  %v7877_v3 = vmul.f32 %v7093_v18, %v7817_v7  ;;  %v7881_v17 = vmul.f32 %v7113_v26, %v7817_v7  ;;  %v7885_v6 = vmul.f32 %v7145_v19, %v7817_v7 }
 0x14c   : > { %14107 = vst [vmem:[#allocation55_spill] sm:$0xff] %v7869_v8  ;;  %v7889_v29 = vmul.f32 %v7153_v31, %v7817_v7  ;;  %v7893_v8 = vmul.f32 %v7160_v34, %v7817_v7  ;;  %v7897_v41 = vmul.f32 %v7165_v36, %v7817_v7  ;;  %v7901_v40 = vmul.f32 %v14113_v0, %v7817_v7 }
 0x14d   : > { %14108 = vst [vmem:[#allocation59_spill] sm:$0xff] %v7881_v17  ;;  %14109 = vst [vmem:[#allocation61_spill] sm:$0xff] %v7885_v6  ;;  %v7905_v45 = vmul.f32 %v14090_v20, %v7817_v7  ;;  %v672_v38 = vadd.f32 %v14089_v55, %v633_v58  ;;  %v7915_v36 = vmul.f32 %v7591_v37, %v7817_v7  ;;  %v14124_v55 = vrot.slane %v7522_v33, 3 }
 0x14e   : > { %14110 = vst [vmem:[#allocation44_spill] sm:$0xff] %v7889_v29  ;;  %14111 = vst [vmem:[#allocation9_spill] sm:$0xff] %v7893_v8  ;;  %v7910_v29 = vmul.f32 %v14093_v24, %v7817_v7  ;;  %v2043_v8 = vrot.slane %v7795_v32, 2  ;;  %v7925_v58 = vmul.f32 %v7601_v53, %v7817_v7  ;;  %v14120_v32 = vrot.slane %v7514_v28, 1 }
 0x14f   : > { %14112 = vst [vmem:[#allocation101_spill] sm:$0xff] %v7897_v41  ;;  %14114 = vst [vmem:[#allocation102_spill] sm:$0xff] %v7901_v40  ;;  %v7920_v40 = vmul.f32 %v14096_v14, %v7817_v7  ;;  %v14121_v41 = vrot.slane %v7518_v22, 2  ;;  %v14123_v7 = vld [vmem:[#allocation60_spill] sm:$0xff]  ;;  %v7948_v28 = vsel %vm945_vm6, %v961_v39, %v14124_v55  ;;  %v14131_v33 = vrot.slane %v7541_v16, 6 }
 0x150   : > { %14115 = vst [vmem:[#allocation103_spill] sm:$0xff] %v7905_v45  ;;  %14116 = vst [vmem:[#allocation104_spill] sm:$0xff] %v7910_v29  ;;  %v7931_v29 = vsel %vm789_vm4, %v805_v52, %v14120_v32  ;;  %v14126_v32 = vrot.slane %v7533_v54, 4  ;;  %v14133_v54 = vrot.slane %v7548_v4, 7  ;;  %v14138_v16 = vld [vmem:[#allocation68_spill] sm:$0xff]  ;;  %v14152_v52 = vrot.slane %v7732_v21, 4 }
 0x151   : > { %14117 = vst [vmem:[#allocation105_spill] sm:$0xff] %v7915_v36  ;;  %14118 = vst [vmem:[#allocation106_spill] sm:$0xff] %v7920_v40  ;;  %v7937_v14 = vsel %vm867_vm5, %v883_v61, %v14121_v41  ;;  %v7940_v40 = vmax.f32 %v672_v38, 0.0  ;;  %v14128_v41 = vld [vmem:[#allocation46_spill] sm:$0xff]  ;;  %v7969_v55 = vsel %vm1178_vm8, %v1194_v60, %v14131_v33  ;;  %v14139_v39 = vrot.slane %v14138_v16, 2  ;;  %v14141_v33 = vld [vmem:[#allocation4_spill] sm:$0xff] }
 0x152   : > { %14119 = vst [vmem:[#allocation107_spill] sm:$0xff] %v7925_v58  ;;  %v7943_v58 = vadd.f32 %v14123_v7, %v826_v25  ;;  %14125 = vst [vmem:[#allocation60_spill] sm:$0xff] %v7948_v28  ;;  %v7954_v22 = vsel %vm1023_vm7, %v1039_v56, %v14126_v32  ;;  %v7958_v38 = vadd.f32 %v14128_v41, %v981_v59  ;;  %v14129_v25 = vrot.slane %v7537_v30, 5  ;;  %v14135_v30 = vld [vmem:[#allocation67_spill] sm:$0xff]  ;;  %v14150_v56 = vld [vmem:[#allocation72_spill] sm:$0xff] }
 0x153   : > { %14122 = vst [vmem:[#allocation108_spill] sm:$0xff] %v7940_v40  ;;  %14127 = vst [vmem:[#allocation109_spill] sm:$0xff] %v7954_v22  ;;  %v7975_v32 = vsel %vm1256_vm9, %v1272_v23, %v14133_v54  ;;  %v14136_v41 = vrot.slane %v14135_v30, 1  ;;  %v7987_v60 = vsel %vm867_vm5, %v1465_v42, %v14139_v39  ;;  %v742_v4 = vmul.f32 %v14141_v33, %v7940_v40  ;;  %v14145_v16 = vld [vmem:[#allocation71_spill] sm:$0xff]  ;;  %v14157_v36 = vld [vmem:[#allocation73_spill] sm:$0xff] }
 0x154   : > { %v7963_v7 = vsel %vm385_vm0, %v1116_v1, %v14129_v25  ;;  %14132 = vst [vmem:[#allocation110_spill] sm:$0xff] %v7969_v55  ;;  %14134 = vst [vmem:[#allocation111_spill] sm:$0xff] %v7975_v32  ;;  %v7993_v23 = vmul.f32 %v6954_v43, %v7940_v40  ;;  %v7997_v54 = vmul.f32 %v6959_v44, %v7940_v40  ;;  %v14146_v33 = vrot.slane %v14145_v16, 3  ;;  %v14190_v22 = vld [vmem:[#allocation3_spill] sm:$0xff]  ;;  %v14207_v21 = vld [vmem:[#allocation5_spill] sm:$0xff] }
 0x155   : > { %14130 = vst [vmem:[#allocation46_spill] sm:$0xff] %v7963_v7  ;;  %v7981_v1 = vsel %vm789_vm4, %v1388_v11, %v14136_v41  ;;  %14140 = vst [vmem:[#allocation68_spill] sm:$0xff] %v7987_v60  ;;  %v8002_v30 = vmul.f32 %v6966_v47, %v7940_v40  ;;  %v8006_v42 = vmul.f32 %v6971_v48, %v7940_v40  ;;  %v14142_v41 = vld [vmem:[#allocation13_spill] sm:$0xff]  ;;  %v14151_v61 = vrot.slane %v14150_v56, 4  ;;  %v14159_v60 = vld [vmem:[#allocation94_spill] sm:$0xff] }
 0x156   : > { %14137 = vst [vmem:[#allocation67_spill] sm:$0xff] %v7981_v1  ;;  %v8010_v39 = vmul.f32 %v6976_v49, %v7940_v40  ;;  %v8014_v43 = vmul.f32 %v6981_v50, %v7940_v40  ;;  %v8018_v44 = vmul.f32 %v6986_v51, %v7940_v40  ;;  %v8022_v47 = vmul.f32 %v14142_v41, %v7940_v40  ;;  %v14174_v1 = vld [vmem:[#allocation97_spill] sm:$0xff]  ;;  %v6587_v45 = vld [vmem:[%s13515_s4 + $0x7] ss:$0 sm:$0xff] }
 0x157   : > { %v8026_v48 = vmul.f32 %v7070_v10, %v7940_v40  ;;  %v8030_v49 = vmul.f32 %v7093_v18, %v7940_v40  ;;  %v8034_v50 = vmul.f32 %v7113_v26, %v7940_v40  ;;  %v14147_v51 = vrot.slane %v7718_v27, 3 }
 0x158   : > { %14143 = vst [vmem:[#allocation4_spill] sm:$0xff] %v8022_v47  ;;  %v8046_v59 = vmul.f32 %v7145_v19, %v7940_v40  ;;  %v8053_v0 = vsel %vm1023_vm7, %v14152_v52, %v14151_v61  ;;  %v8058_v27 = vmul.f32 %v7153_v31, %v7940_v40  ;;  %v14160_v47 = vrot.slane %v14159_v60, 5  ;;  %v14164_v61 = vld [vmem:[#allocation74_spill] sm:$0xff]  ;;  %v14170_v60 = vld [vmem:[#allocation16_spill] sm:$0xff] }
 0x159   : > { %14144 = vst [vmem:[#allocation13_spill] sm:$0xff] %v8034_v50  ;;  %v8041_v11 = vsel %vm945_vm6, %v14147_v51, %v14146_v33  ;;  %14153 = vst [vmem:[#allocation72_spill] sm:$0xff] %v8053_v0  ;;  %v14155_v33 = vld [vmem:[#allocation2_spill] sm:$0xff]  ;;  %v8072_v52 = vmul.f32 %v7160_v34, %v7940_v40  ;;  %v14165_v16 = vrot.slane %v14164_v61, 6  ;;  %v14166_v0 = vld [vmem:[#allocation96_spill] sm:$0xff] }
 0x15a   : > { %14148 = vst [vmem:[#allocation71_spill] sm:$0xff] %v8041_v11  ;;  %14149 = vst [vmem:[#allocation112_spill] sm:$0xff] %v8046_v59  ;;  %v14156_v51 = vld [vmem:[#allocation10_spill] sm:$0xff]  ;;  %v14158_v11 = vrot.slane %v14157_v36, 5  ;;  %v14167_v32 = vrot.slane %v14166_v0, 6  ;;  %v14178_v0 = vld [vmem:[#allocation95_spill] sm:$0xff] }
 0x15b   : > { %14154 = vst [vmem:[#allocation113_spill] sm:$0xff] %v8058_v27  ;;  %v636_v25 = vmul.f32 %v14156_v51, %v14155_v33  ;;  %14163 = vst [vmem:[#allocation10_spill] sm:$0xff] %v8072_v52  ;;  %v8084_v51 = vmul.f32 %v14170_v60, %v7940_v40  ;;  %v8096_v28 = vmul.f32 %v14178_v0, %v7940_v40  ;;  %v14197_v0 = vld [vmem:[#allocation82_spill] sm:$0xff] }
 0x15c   : > { %v8067_v56 = vsel %vm385_vm0, %v14160_v47, %v14158_v11  ;;  %v8079_v55 = vsel %vm1178_vm8, %v14167_v32, %v14165_v16  ;;  %v14172_v11 = vld [vmem:[#allocation77_spill] sm:$0xff]  ;;  %v8100_v32 = vmul.f32 %v14090_v20, %v7940_v40  ;;  %v14181_v16 = vld [vmem:[#allocation79_spill] sm:$0xff]  ;;  %v14220_v50 = vld [vmem:[#allocation38_spill] sm:$0xff] }
 0x15d   : > { %14161 = vst [vmem:[#allocation2_spill] sm:$0xff] %v8067_v56  ;;  %14168 = vst [vmem:[#allocation73_spill] sm:$0xff] %v8079_v55  ;;  %v14173_v47 = vrot.slane %v14172_v11, 7  ;;  %v14175_v56 = vrot.slane %v14174_v1, 7  ;;  %v14182_v36 = vrot.slane %v14181_v16, 1  ;;  %v14183_v55 = vld [vmem:[#allocation99_spill] sm:$0xff]  ;;  %v675_v16 = vadd.f32 %v14190_v22, %v636_v25 }
 0x15e   : > { %14171 = vst [vmem:[#allocation94_spill] sm:$0xff] %v8084_v51  ;;  %14179 = vst [vmem:[#allocation96_spill] sm:$0xff] %v8096_v28  ;;  %v14184_v33 = vrot.slane %v14183_v55, 1  ;;  %v8123_v55 = vmul.f32 %v7591_v37, %v7940_v40  ;;  %v14193_v1 = vrot.slane %v7800_v2, 3  ;;  %v14199_v22 = vrot.slane %v7805_v63, 4 }
 0x15f   : > { %v8091_v7 = vsel %vm1256_vm9, %v14175_v56, %v14173_v47  ;;  %14180 = vst [vmem:[#allocation16_spill] sm:$0xff] %v8100_v32  ;;  %v8112_v56 = vmul.f32 %v14093_v24, %v7940_v40  ;;  %v14186_v47 = vld [vmem:[#allocation80_spill] sm:$0xff]  ;;  %v8147_v2 = vmul.f32 %v7601_v53, %v7940_v40  ;;  %v8158_v63 = vadd.f32 %v14207_v21, %v742_v4  ;;  %v14212_v4 = vld [vmem:[#allocation47_spill] sm:$0xff] }
 0x160   : > { %14176 = vst [vmem:[#allocation74_spill] sm:$0xff] %v8091_v7  ;;  %v8107_v11 = vsel %vm789_vm4, %v14184_v33, %v14182_v36  ;;  %v14187_v61 = vrot.slane %v14186_v47, 2  ;;  %v14191_v33 = vld [vmem:[#allocation81_spill] sm:$0xff]  ;;  %v14204_v47 = vrot.slane %v7810_v46, 5  ;;  %v14211_v46 = vld [vmem:[#allocation63_spill] sm:$0xff]  ;;  %v1136_v21 = vadd.f32 %v14212_v4, %v7958_v38  ;;  %v14215_v32 = vld [vmem:[#allocation8_spill] sm:$0xff] }
 0x161   : > { %14185 = vst [vmem:[#allocation77_spill] sm:$0xff] %v8107_v11  ;;  %v14192_v36 = vrot.slane %v14191_v33, 3  ;;  %14208 = vst [vmem:[#allocation3_spill] sm:$0xff] %v8158_v63  ;;  %v6580_v38 = vld [vmem:[%s13515_s4 + $0x1] ss:$0 sm:$0xff] }
 0x162   : > { %v8117_v28 = vsel %vm867_vm5, %v2043_v8, %v14187_v61  ;;  %v14196_v8 = vld [vmem:[#allocation76_spill] sm:$0xff] }
 0x163   : > { %14188 = vst [vmem:[#allocation97_spill] sm:$0xff] %v8117_v28  ;;  %v8130_v11 = vsel %vm945_vm6, %v14193_v1, %v14192_v36  ;;  %v8135_v61 = vmul.f32 %v14196_v8, %v7940_v40  ;;  %v14198_v28 = vrot.slane %v14197_v0, 4  ;;  %v14202_v1 = vld [vmem:[#allocation83_spill] sm:$0xff]  ;;  %v886_v40 = vrot.slane %v7997_v54, 2  ;;  %v6584_v54 = vld [vmem:[%s13515_s4 + $0x4] ss:$0 sm:$0xff] }
 0x164   : > { %14194 = vst [vmem:[#allocation79_spill] sm:$0xff] %v8130_v11  ;;  %v14203_v36 = vrot.slane %v14202_v1, 5  ;;  %v964_v1 = vrot.slane %v8002_v30, 3  ;;  %v1119_v0 = vrot.slane %v8010_v39, 5  ;;  %v8198_v39 = vld [vmem:[%s13513_s2] ss:$0 sm:$0xff] }
 0x165   : > { %v8142_v25 = vsel %vm1023_vm7, %v14199_v22, %v14198_v28  ;;  %v808_v28 = vrot.slane %v7993_v23, 1  ;;  %v14209_v22 = vld [vmem:[#allocation70_spill] sm:$0xff]  ;;  %v1197_v23 = vrot.slane %v8014_v43, 6  ;;  %14213 = vst [vmem:[#allocation82_spill] sm:$0xff] %v8198_v39 }
 0x166   : > { %14200 = vst [vmem:[#allocation99_spill] sm:$0xff] %v8142_v25  ;;  %v8154_v11 = vsel %vm385_vm0, %v14204_v47, %v14203_v36  ;;  %v827_v33 = vadd.f32 %v7931_v29, %v14209_v22  ;;  %v8163_v25 = vmax.f32 %v675_v16, 0.0  ;;  %v982_v47 = vadd.f32 %v14211_v46, %v7943_v58  ;;  %v6583_v22 = vld [vmem:[%s13515_s4 + $0x3] ss:$0 sm:$0xff]  ;;  %v6585_v16 = vld [vmem:[%s13515_s4 + $0x5] ss:$0 sm:$0xff] }
 0x167   : > { %14205 = vst [vmem:[#allocation80_spill] sm:$0xff] %v8154_v11  ;;  %v1042_v36 = vrot.slane %v8006_v42, 4  ;;  %v1275_v29 = vrot.slane %v8018_v44, 7  ;;  %v6581_v44 = vld [vmem:[%s13515_s4 + $0x2] ss:$0 sm:$0xff]  ;;  %v14214_v42 = vld [vmem:[#allocation12_spill] sm:$0xff] }
 0x168   : > { %14210 = vst [vmem:[#allocation81_spill] sm:$0xff] %v8163_v25  ;;  %v8186_v43 = vmul.f32 %v6580_v38, %v8163_v25  ;;  %v8192_v46 = vmul.f32 %v6581_v44, %v8163_v25  ;;  %v635_v58 = vmul.f32 %v8198_v39, %v14214_v42  ;;  %v8206_v30 = vmul.f32 %v6583_v22, %v8163_v25  ;;  %v6586_v11 = vld [vmem:[%s13515_s4 + $0x6] ss:$0 sm:$0xff] }
 0x169   : > { %v8212_v4 = vmul.f32 %v6584_v54, %v8163_v25  ;;  %v8218_v42 = vmul.f32 %v6585_v16, %v8163_v25  ;;  %v8224_v63 = vmul.f32 %v6586_v11, %v8163_v25  ;;  %v8230_v7 = vmul.f32 %v6587_v45, %v8163_v25 }
 0x16a   : > { %v8234_v51 = vmul.f32 %v14215_v32, %v8163_v25  ;;  %v8238_v52 = vmul.f32 %v7070_v10, %v8163_v25  ;;  %v8242_v27 = vmul.f32 %v7093_v18, %v8163_v25  ;;  %v8246_v39 = vmul.f32 %v7113_v26, %v8163_v25 }
 0x16b   : > { %v8250_v59 = vmul.f32 %v7145_v19, %v8163_v25  ;;  %v8254_v32 = vmul.f32 %v7153_v31, %v8163_v25  ;;  %v8262_v6 = vmul.f32 %v14170_v60, %v8163_v25  ;;  %v8266_v17 = vmul.f32 %v14220_v50, %v8163_v25 }
 0x16c   : > { %14216 = vst [vmem:[#allocation83_spill] sm:$0xff] %v8234_v51  ;;  %v8258_v51 = vmul.f32 %v7160_v34, %v8163_v25  ;;  %v8270_v19 = vmul.f32 %v14090_v20, %v8163_v25  ;;  %v14229_v50 = vrot.slane %v7842_v57, 2  ;;  %v14278_v20 = vld [vmem:[#allocation94_spill] sm:$0xff] }
 0x16d   : > { %14217 = vst [vmem:[#allocation5_spill] sm:$0xff] %v8254_v32  ;;  %14219 = vst [vmem:[#allocation63_spill] sm:$0xff] %v8262_v6  ;;  %v8275_v32 = vld [vmem:[%s13514_s3] ss:$0 sm:$0xff]  ;;  %v14228_v6 = vrot.slane %v7838_v5, 1 }
 0x16e   : > { %14218 = vst [vmem:[#allocation70_spill] sm:$0xff] %v8258_v51  ;;  %14221 = vst [vmem:[#allocation47_spill] sm:$0xff] %v8266_v17  ;;  %v674_v34 = vadd.f32 %v8275_v32, %v635_v58  ;;  %v8280_v51 = vmul.f32 %v14093_v24, %v8163_v25  ;;  %v8285_v17 = vmul.f32 %v7591_v37, %v8163_v25 }
 0x16f   : > { %14222 = vst [vmem:[#allocation12_spill] sm:$0xff] %v8270_v19  ;;  %14223 = vst [vmem:[#allocation8_spill] sm:$0xff] %v8275_v32  ;;  %v8290_v19 = vmul.f32 %v14196_v8, %v8163_v25  ;;  %v8295_v58 = vmul.f32 %v7601_v53, %v8163_v25  ;;  %v8301_v32 = vsel %vm789_vm4, %v808_v28, %v14228_v6  ;;  %v14233_v28 = vrot.slane %v7853_v62, 4 }
 0x170   : > { %14224 = vst [vmem:[#allocation114_spill] sm:$0xff] %v8280_v51  ;;  %14225 = vst [vmem:[#allocation115_spill] sm:$0xff] %v8285_v17  ;;  %v8307_v8 = vsel %vm867_vm5, %v886_v40, %v14229_v50  ;;  %v8313_v25 = vadd.f32 %v7937_v14, %v827_v33  ;;  %v14231_v51 = vrot.slane %v7849_v12, 3  ;;  %v14235_v50 = vld [vmem:[#allocation85_spill] sm:$0xff]  ;;  %v14236_v14 = vrot.slane %v7857_v13, 5  ;;  %v14261_v12 = vld [vmem:[#allocation6_spill] sm:$0xff] }
 0x171   : > { %14226 = vst [vmem:[#allocation116_spill] sm:$0xff] %v8290_v19  ;;  %14227 = vst [vmem:[#allocation117_spill] sm:$0xff] %v8295_v58  ;;  %v8310_v19 = vmax.f32 %v674_v34, 0.0  ;;  %v8324_v57 = vsel %vm1023_vm7, %v1042_v36, %v14233_v28  ;;  %v8328_v34 = vadd.f32 %v14235_v50, %v982_v47  ;;  %v14240_v36 = vld [vmem:[#allocation48_spill] sm:$0xff]  ;;  %v14241_v47 = vrot.slane %v7865_v15, 7 }
 0x172   : > { %v8318_v5 = vsel %vm945_vm6, %v964_v1, %v14231_v51  ;;  %14234 = vst [vmem:[#allocation120_spill] sm:$0xff] %v8324_v57  ;;  %v8333_v33 = vsel %vm385_vm0, %v1119_v0, %v14236_v14  ;;  %v14238_v51 = vrot.slane %v7861_v9, 6  ;;  %v8343_v28 = vadd.f32 %v14240_v36, %v1136_v21  ;;  %v6589_v21 = vld [vmem:[%s13515_s4] ss:$0 sm:$0xff] }
 0x173   : > { %14230 = vst [vmem:[#allocation118_spill] sm:$0xff] %v8310_v19  ;;  %14232 = vst [vmem:[#allocation119_spill] sm:$0xff] %v8318_v5  ;;  %v8348_v50 = vsel %vm1256_vm9, %v1275_v29, %v14241_v47  ;;  %v14243_v0 = vrot.slane %v7873_v35, 1  ;;  %v14244_v14 = vrot.slane %v8026_v48, 1  ;;  %v743_v15 = vmul.f32 %v6589_v21, %v8310_v19  ;;  %v14252_v21 = vld [vmem:[#allocation13_spill] sm:$0xff] }
 0x174   : > { %14237 = vst [vmem:[#allocation85_spill] sm:$0xff] %v8333_v33  ;;  %v8339_v1 = vsel %vm1178_vm8, %v1197_v23, %v14238_v51  ;;  %14242 = vst [vmem:[#allocation48_spill] sm:$0xff] %v8348_v50  ;;  %v8364_v29 = vmul.f32 %v6580_v38, %v8310_v19  ;;  %v8367_v51 = vmul.f32 %v6581_v44, %v8310_v19  ;;  %v14246_v35 = vrot.slane %v7877_v3, 2 }
 0x175   : > { %14239 = vst [vmem:[#allocation121_spill] sm:$0xff] %v8339_v1  ;;  %v8356_v9 = vsel %vm789_vm4, %v14244_v14, %v14243_v0  ;;  %v14247_v48 = vrot.slane %v8030_v49, 2  ;;  %v8377_v47 = vmul.f32 %v6583_v22, %v8310_v19  ;;  %v8380_v0 = vmul.f32 %v6584_v54, %v8310_v19  ;;  %v14287_v1 = vld [vmem:[#allocation16_spill] sm:$0xff] }
 0x176   : > { %14245 = vst [vmem:[#allocation122_spill] sm:$0xff] %v8356_v9  ;;  %v8383_v14 = vmul.f32 %v6585_v16, %v8310_v19  ;;  %v8386_v38 = vmul.f32 %v6586_v11, %v8310_v19  ;;  %v8389_v44 = vmul.f32 %v6587_v45, %v8310_v19  ;;  %v8393_v3 = vmul.f32 %v14142_v41, %v8310_v19  ;;  %v14250_v45 = vld [vmem:[#allocation59_spill] sm:$0xff]  ;;  %v14258_v16 = vld [vmem:[#allocation112_spill] sm:$0xff]  ;;  %v14319_v9 = vld [vmem:[#allocation38_spill] sm:$0xff] }
 0x177   : > { %v8374_v36 = vsel %vm867_vm5, %v14247_v48, %v14246_v35  ;;  %v8397_v49 = vmul.f32 %v7070_v10, %v8310_v19  ;;  %v8401_v54 = vmul.f32 %v7093_v18, %v8310_v19  ;;  %v8406_v11 = vmul.f32 %v7113_v26, %v8310_v19  ;;  %v14255_v48 = vld [vmem:[#allocation14_spill] sm:$0xff]  ;;  %v14256_v18 = vld [vmem:[#allocation61_spill] sm:$0xff]  ;;  %v14295_v5 = vld [vmem:[#allocation8_spill] sm:$0xff] }
 0x178   : > { %14248 = vst [vmem:[#allocation123_spill] sm:$0xff] %v8374_v36  ;;  %14249 = vst [vmem:[#allocation124_spill] sm:$0xff] %v8393_v3  ;;  %v14251_v22 = vrot.slane %v14250_v45, 3  ;;  %v14253_v35 = vrot.slane %v14252_v21, 3  ;;  %v8418_v23 = vmul.f32 %v14255_v48, %v8310_v19  ;;  %v14257_v13 = vrot.slane %v14256_v18, 4  ;;  %v14262_v21 = vld [vmem:[#allocation82_spill] sm:$0xff] }
 0x179   : > { %v14259_v62 = vrot.slane %v14258_v16, 4  ;;  %v638_v40 = vmul.f32 %v14262_v21, %v14261_v12  ;;  %v14265_v48 = vld [vmem:[#allocation113_spill] sm:$0xff]  ;;  %v14272_v12 = vld [vmem:[#allocation10_spill] sm:$0xff]  ;;  %v14288_v33 = vrot.slane %v14287_v1, 1  ;;  %v14305_v1 = vrot.slane %v8135_v61, 4 }
 0x17a   : > { %v8413_v41 = vsel %vm945_vm6, %v14253_v35, %v14251_v22  ;;  %v8432_v22 = vmul.f32 %v7153_v31, %v8310_v19  ;;  %v14263_v35 = vld [vmem:[#allocation44_spill] sm:$0xff]  ;;  %v14266_v6 = vrot.slane %v14265_v48, 5  ;;  %v14268_v16 = vld [vmem:[#allocation5_spill] sm:$0xff]  ;;  %v8456_v48 = vmul.f32 %v14170_v60, %v8310_v19  ;;  %v6590_v61 = vld [vmem:[%s13516_s5] ss:$0 sm:$0xff] }
 0x17b   : > { %14254 = vst [vmem:[#allocation59_spill] sm:$0xff] %v8413_v41  ;;  %v8425_v26 = vsel %vm1023_vm7, %v14259_v62, %v14257_v13  ;;  %v14264_v10 = vrot.slane %v14263_v35, 5  ;;  %v14269_v62 = vld [vmem:[#allocation15_spill] sm:$0xff]  ;;  %v14270_v45 = vld [vmem:[#allocation9_spill] sm:$0xff]  ;;  %v1394_v58 = vrot.slane %v8397_v49, 1 }
 0x17c   : > { %14260 = vst [vmem:[#allocation13_spill] sm:$0xff] %v8425_v26  ;;  %v8444_v13 = vmul.f32 %v14269_v62, %v8310_v19  ;;  %v14271_v17 = vrot.slane %v14270_v45, 6  ;;  %v14273_v26 = vrot.slane %v14272_v12, 6  ;;  %v14282_v12 = vld [vmem:[#allocation95_spill] sm:$0xff]  ;;  %v14291_v45 = vld [vmem:[#allocation104_spill] sm:$0xff]  ;;  %v1702_v49 = vrot.slane %v8432_v22, 5 }
 0x17d   : > { %v8439_v18 = vsel %vm385_vm0, %v14266_v6, %v14264_v10  ;;  %v14276_v6 = vld [vmem:[#allocation101_spill] sm:$0xff]  ;;  %v8468_v50 = vmul.f32 %v14282_v12, %v8310_v19  ;;  %v14285_v35 = vld [vmem:[#allocation103_spill] sm:$0xff] }
 0x17e   : > { %14267 = vst [vmem:[#allocation14_spill] sm:$0xff] %v8439_v18  ;;  %v8451_v41 = vsel %vm1178_vm8, %v14273_v26, %v14271_v17  ;;  %v14277_v10 = vrot.slane %v14276_v6, 7  ;;  %v14279_v18 = vrot.slane %v14278_v20, 7  ;;  %v14284_v17 = vld [vmem:[#allocation69_spill] sm:$0xff] }
 0x17f   : > { %14274 = vst [vmem:[#allocation61_spill] sm:$0xff] %v8451_v41  ;;  %14283 = vst [vmem:[#allocation6_spill] sm:$0xff] %v8468_v50  ;;  %v8472_v26 = vmul.f32 %v14284_v17, %v8310_v19  ;;  %v14286_v41 = vrot.slane %v14285_v35, 1  ;;  %v14293_v50 = vrot.slane %v8112_v56, 2  ;;  %v677_v35 = vadd.f32 %v14295_v5, %v638_v40  ;;  %v14303_v40 = vld [vmem:[#allocation106_spill] sm:$0xff] }
 0x180   : > { %v8463_v3 = vsel %vm1256_vm9, %v14279_v18, %v14277_v10  ;;  %v8484_v10 = vmul.f32 %v14093_v24, %v8310_v19  ;;  %v14310_v56 = vrot.slane %v8147_v2, 5  ;;  %v889_v2 = vrot.slane %v8367_v51, 2  ;;  %v14318_v51 = vld [vmem:[#allocation11_spill] sm:$0xff] }
 0x181   : > { %14280 = vst [vmem:[#allocation112_spill] sm:$0xff] %v8463_v3  ;;  %v8479_v6 = vsel %vm789_vm4, %v14288_v33, %v14286_v41  ;;  %v14292_v3 = vrot.slane %v14291_v45, 2  ;;  %v8497_v33 = vmul.f32 %v7591_v37, %v8310_v19  ;;  %v14297_v41 = vld [vmem:[#allocation105_spill] sm:$0xff]  ;;  %v1972_v36 = vrot.slane %v8472_v26, 1 }
 0x182   : > { %14289 = vst [vmem:[#allocation82_spill] sm:$0xff] %v8479_v6  ;;  %v14298_v18 = vrot.slane %v14297_v41, 3  ;;  %v14299_v6 = vrot.slane %v8123_v55, 3  ;;  %v8521_v55 = vmul.f32 %v7601_v53, %v8310_v19  ;;  %v8537_v41 = vmax.f32 %v677_v35, 0.0 }
 0x183   : > { %v8491_v57 = vsel %vm867_vm5, %v14293_v50, %v14292_v3  ;;  %v14302_v50 = vld [vmem:[#allocation76_spill] sm:$0xff]  ;;  %v1278_v35 = vrot.slane %v8389_v44, 7 }
 0x184   : > { %14294 = vst [vmem:[#allocation44_spill] sm:$0xff] %v8491_v57  ;;  %v8504_v20 = vsel %vm945_vm6, %v14299_v6, %v14298_v18  ;;  %v8509_v3 = vmul.f32 %v14302_v50, %v8310_v19  ;;  %v14304_v57 = vrot.slane %v14303_v40, 4  ;;  %v14308_v6 = vld [vmem:[#allocation107_spill] sm:$0xff]  ;;  %14313 = vst [vmem:[#allocation10_spill] sm:$0xff] %v8537_v41  ;;  %v1122_v19 = vrot.slane %v8383_v14, 5 }
 0x185   : > { %14300 = vst [vmem:[#allocation113_spill] sm:$0xff] %v8504_v20  ;;  %v14309_v18 = vrot.slane %v14308_v6, 5  ;;  %v1625_v14 = vrot.slane %v8418_v23, 4  ;;  %v6593_v23 = vld [vmem:[%s13515_s4 + $0xc] ss:$0 sm:$0xff]  ;;  %v8591_v22 = vmul.f32 %v14269_v62, %v8537_v41  ;;  %v8610_v62 = vmul.f32 %v14093_v24, %v8537_v41 }
 0x186   : > { %v8516_v12 = vsel %vm1023_vm7, %v14305_v1, %v14304_v57  ;;  %v8534_v57 = vadd.f32 %v6590_v61, %v743_v15  ;;  %v811_v1 = vrot.slane %v8364_v29, 1  ;;  %v14316_v15 = vld [vmem:[#allocation86_spill] sm:$0xff]  ;;  %v1200_v29 = vrot.slane %v8386_v38, 6 }
 0x187   : > { %14306 = vst [vmem:[#allocation5_spill] sm:$0xff] %v8516_v12  ;;  %v8528_v20 = vsel %vm385_vm0, %v14310_v56, %v14309_v18  ;;  %v14314_v12 = vld [vmem:[#allocation3_spill] sm:$0xff]  ;;  %v967_v56 = vrot.slane %v8377_v47, 3  ;;  %v14315_v18 = vld [vmem:[#allocation60_spill] sm:$0xff]  ;;  %v1137_v61 = vadd.f32 %v14316_v15, %v8328_v34  ;;  %v637_v47 = vmul.f32 %v14262_v21, %v14318_v51  ;;  %14321 = vst [vmem:[#allocation94_spill] sm:$0xff] %v8610_v62 }
 0x188   : > { %14311 = vst [vmem:[#allocation15_spill] sm:$0xff] %v8528_v20  ;;  %14312 = vst [vmem:[#allocation9_spill] sm:$0xff] %v8534_v57  ;;  %v828_v6 = vadd.f32 %v8301_v32, %v14314_v12  ;;  %v983_v40 = vadd.f32 %v14315_v18, %v8313_v25  ;;  %v1045_v20 = vrot.slane %v8380_v0, 4  ;;  %v14317_v32 = vld [vmem:[#allocation50_spill] sm:$0xff]  ;;  %v1471_v25 = vrot.slane %v8401_v54, 2 }
 0x189   : > { %v1292_v12 = vadd.f32 %v14317_v32, %v8343_v28  ;;  %v1548_v0 = vrot.slane %v8406_v11, 3  ;;  %v6591_v34 = vld [vmem:[%s13515_s4 + $0xa] ss:$0 sm:$0xff]  ;;  %v6592_v28 = vld [vmem:[%s13515_s4 + $0xb] ss:$0 sm:$0xff]  ;;  %v1779_v54 = vrot.slane %v8444_v13, 6  ;;  %v8577_v11 = vmul.f32 %v6593_v23, %v8537_v41 }
 0x18a   : > { %v8563_v38 = vmul.f32 %v6591_v34, %v8537_v41  ;;  %v8569_v44 = vmul.f32 %v6592_v28, %v8537_v41  ;;  %v6594_v18 = vld [vmem:[%s13515_s4 + $0xd] ss:$0 sm:$0xff]  ;;  %v8587_v32 = vmul.f32 %v7153_v31, %v8537_v41  ;;  %v8595_v13 = vmul.f32 %v14170_v60, %v8537_v41 }
 0x18b   : > { %v8583_v15 = vmul.f32 %v6594_v18, %v8537_v41  ;;  %v1856_v51 = vrot.slane %v8456_v48, 7  ;;  %v8600_v57 = vmul.f32 %v14319_v9, %v8537_v41  ;;  %v676_v45 = vadd.f32 %v14295_v5, %v637_v47 }
 0x18c   : > { %v8605_v31 = vmul.f32 %v14284_v17, %v8537_v41  ;;  %v2049_v60 = vrot.slane %v8484_v10, 2  ;;  %v8615_v48 = vmul.f32 %v7591_v37, %v8537_v41  ;;  %v2126_v9 = vrot.slane %v8497_v33, 3 }
 0x18d   : > { %14320 = vst [vmem:[#allocation101_spill] sm:$0xff] %v8600_v57  ;;  %v8620_v47 = vmul.f32 %v14302_v50, %v8537_v41  ;;  %v2203_v57 = vrot.slane %v8509_v3, 4  ;;  %v8625_v26 = vmul.f32 %v7601_v53, %v8537_v41  ;;  %v2280_v5 = vrot.slane %v8521_v55, 5 }
 0x18e   : > { %14322 = vst [vmem:[#allocation69_spill] sm:$0xff] %v8615_v48  ;;  %v14324_v10 = vrot.slane %v8186_v43, 1  ;;  %v14325_v48 = vrot.slane %v8192_v46, 2  ;;  %v8636_v37 = vmax.f32 %v676_v45, 0.0  ;;  %v14327_v3 = vrot.slane %v8206_v30, 3  ;;  %v14332_v30 = vld [vmem:[#allocation87_spill] sm:$0xff] }
 0x18f   : > { %14323 = vst [vmem:[#allocation103_spill] sm:$0xff] %v8620_v47  ;;  %v906_v47 = vadd.f32 %v8307_v8, %v828_v6  ;;  %v14328_v55 = vrot.slane %v8212_v4, 4  ;;  %v14330_v46 = vrot.slane %v8218_v42, 5  ;;  %v14331_v45 = vrot.slane %v8224_v63, 6 }
 0x190   : > { %v813_v62 = vsel %vm789_vm4, %v811_v1, %v14324_v10  ;;  %v8634_v33 = vsel %vm867_vm5, %v889_v2, %v14325_v48  ;;  %14326 = vst [vmem:[#allocation16_spill] sm:$0xff] %v8636_v37  ;;  %v8642_v41 = vsel %vm945_vm6, %v967_v56, %v14327_v3  ;;  %v14329_v1 = vld [vmem:[#allocation109_spill] sm:$0xff]  ;;  %v1215_v6 = vadd.f32 %v14332_v30, %v1137_v61 }
 0x191   : > { %v8647_v43 = vsel %vm1023_vm7, %v1045_v20, %v14328_v55  ;;  %v1061_v10 = vadd.f32 %v14329_v1, %v983_v40  ;;  %v8653_v2 = vsel %vm385_vm0, %v1122_v19, %v14330_v46  ;;  %v8658_v8 = vsel %vm1178_vm8, %v1200_v29, %v14331_v45  ;;  %v14334_v20 = vld [vmem:[#allocation31_spill] sm:$0xff]  ;;  %v14342_v45 = vld [vmem:[#allocation17_spill] sm:$0xff]  ;;  %v14363_v19 = vld [vmem:[#allocation8_spill] sm:$0xff] }
 0x192   : > { %v14333_v56 = vrot.slane %v8230_v7, 7  ;;  %v1313_v48 = vadd.f32 %v14334_v20, %v1292_v12  ;;  %v14335_v40 = vrot.slane %v8238_v52, 1  ;;  %v14336_v63 = vrot.slane %v8242_v27, 2  ;;  %v6595_v52 = vld [vmem:[%s13515_s4 + $0x9] ss:$0 sm:$0xff] }
 0x193   : > { %v14337_v7 = vrot.slane %v8246_v39, 3  ;;  %v8692_v27 = vmul.f32 %v6591_v34, %v8636_v37  ;;  %v14338_v39 = vrot.slane %v8250_v59, 4  ;;  %v8703_v3 = vmul.f32 %v6593_v23, %v8636_v37  ;;  %v6596_v34 = vld [vmem:[%s13515_s4 + $0xe] ss:$0 sm:$0xff]  ;;  %v14367_v23 = vld [vmem:[#allocation88_spill] sm:$0xff] }
 0x194   : > { %v8664_v4 = vsel %vm1256_vm9, %v1278_v35, %v14333_v56  ;;  %v8670_v42 = vsel %vm789_vm4, %v1394_v58, %v14335_v40  ;;  %v8676_v29 = vsel %vm867_vm5, %v1471_v25, %v14336_v63  ;;  %v8689_v58 = vmul.f32 %v6595_v52, %v8636_v37  ;;  %v14343_v56 = vld [vmem:[#allocation70_spill] sm:$0xff]  ;;  %v14358_v1 = vld [vmem:[#allocation75_spill] sm:$0xff] }
 0x195   : > { %v8682_v35 = vsel %vm945_vm6, %v1548_v0, %v14337_v7  ;;  %v8695_v25 = vmul.f32 %v6592_v28, %v8636_v37  ;;  %v8700_v0 = vsel %vm1023_vm7, %v1625_v14, %v14338_v39  ;;  %v8706_v55 = vmul.f32 %v6594_v18, %v8636_v37  ;;  %v6597_v18 = vld [vmem:[%s13515_s4 + $0xf] ss:$0 sm:$0xff] }
 0x196   : > { %14339 = vst [vmem:[#allocation104_spill] sm:$0xff] %v8700_v0  ;;  %v8713_v28 = vmul.f32 %v6596_v34, %v8636_v37  ;;  %v14340_v59 = vrot.slane %v14268_v16, 5  ;;  %v8725_v46 = vmul.f32 %v6597_v18, %v8636_v37  ;;  %v640_v30 = vmul.f32 %v14262_v21, %v14342_v45  ;;  %v14346_v7 = vld [vmem:[#allocation63_spill] sm:$0xff]  ;;  %v14351_v45 = vld [vmem:[#allocation12_spill] sm:$0xff]  ;;  %v14357_v16 = vld [vmem:[#allocation94_spill] sm:$0xff] }
 0x197   : > { %v14344_v20 = vrot.slane %v14343_v56, 6  ;;  %v14347_v52 = vrot.slane %v14346_v7, 7  ;;  %v8753_v18 = vmul.f32 %v14284_v17, %v8636_v37  ;;  %v14352_v56 = vrot.slane %v14351_v45, 1  ;;  %v14354_v7 = vld [vmem:[#allocation114_spill] sm:$0xff]  ;;  %v14359_v45 = vld [vmem:[#allocation115_spill] sm:$0xff] }
 0x198   : > { %v8718_v14 = vsel %vm385_vm0, %v1702_v49, %v14340_v59  ;;  %v6598_v49 = vld [vmem:[%s13515_s4 + $0x10] ss:$0 sm:$0xff]  ;;  %v14349_v59 = vld [vmem:[#allocation95_spill] sm:$0xff]  ;;  %v8773_v12 = vmul.f32 %v14358_v1, %v8636_v37 }
 0x199   : > { %14341 = vst [vmem:[#allocation105_spill] sm:$0xff] %v8718_v14  ;;  %v8732_v40 = vsel %vm1178_vm8, %v1779_v54, %v14344_v20  ;;  %v8739_v63 = vmul.f32 %v6598_v49, %v8636_v37  ;;  %v8744_v39 = vsel %vm1256_vm9, %v1856_v51, %v14347_v52  ;;  %v8749_v54 = vmul.f32 %v14349_v59, %v8636_v37  ;;  %v14362_v49 = vld [vmem:[#allocation69_spill] sm:$0xff] }
 0x19a   : > { %14345 = vst [vmem:[#allocation76_spill] sm:$0xff] %v8732_v40  ;;  %14348 = vst [vmem:[#allocation106_spill] sm:$0xff] %v8744_v39  ;;  %v8758_v20 = vsel %vm789_vm4, %v1972_v36, %v14352_v56  ;;  %v8763_v51 = vmul.f32 %v14093_v24, %v8636_v37  ;;  %v14355_v52 = vrot.slane %v14354_v7, 2  ;;  %v14360_v36 = vrot.slane %v14359_v45, 3  ;;  %v14365_v39 = vld [vmem:[#allocation119_spill] sm:$0xff]  ;;  %v14368_v45 = vld [vmem:[#allocation116_spill] sm:$0xff] }
 0x19b   : > { %14350 = vst [vmem:[#allocation107_spill] sm:$0xff] %v8749_v54  ;;  %14353 = vst [vmem:[#allocation3_spill] sm:$0xff] %v8758_v20  ;;  %v679_v54 = vadd.f32 %v14363_v19, %v640_v30  ;;  %v14364_v20 = vld [vmem:[#allocation9_spill] sm:$0xff]  ;;  %v1293_v40 = vadd.f32 %v14367_v23, %v1215_v6  ;;  %v8788_v14 = vmul.f32 %v14302_v50, %v8636_v37  ;;  %v14369_v0 = vrot.slane %v14368_v45, 4  ;;  %v14372_v30 = vld [vmem:[#allocation26_spill] sm:$0xff] }
 0x19c   : > { %v8768_v34 = vsel %vm867_vm5, %v2049_v60, %v14355_v52  ;;  %v8778_v56 = vsel %vm945_vm6, %v2126_v9, %v14360_v36  ;;  %v829_v7 = vadd.f32 %v813_v62, %v14364_v20  ;;  %v984_v60 = vadd.f32 %v14365_v39, %v906_v47  ;;  %v14366_v52 = vld [vmem:[#allocation46_spill] sm:$0xff]  ;;  %v14371_v36 = vld [vmem:[#allocation53_spill] sm:$0xff]  ;;  %v14373_v20 = vld [vmem:[#allocation103_spill] sm:$0xff] }
 0x19d   : > { %14356 = vst [vmem:[#allocation60_spill] sm:$0xff] %v8768_v34  ;;  %14361 = vst [vmem:[#allocation86_spill] sm:$0xff] %v8778_v56  ;;  %v1138_v34 = vadd.f32 %v14366_v52, %v1061_v10  ;;  %v8793_v9 = vsel %vm1023_vm7, %v2203_v57, %v14369_v0  ;;  %v1334_v61 = vadd.f32 %v14371_v36, %v1313_v48  ;;  %v14374_v6 = vld [vmem:[#allocation117_spill] sm:$0xff]  ;;  %v8809_v57 = vmax.f32 %v679_v54, 0.0 }
 0x19e   : > { %14370 = vst [vmem:[#allocation50_spill] sm:$0xff] %v8793_v9  ;;  %v639_v62 = vmul.f32 %v14262_v21, %v14372_v30  ;;  %v8801_v10 = vmul.f32 %v7601_v53, %v8636_v37  ;;  %v14375_v23 = vrot.slane %v14374_v6, 5  ;;  %v1397_v48 = vrot.slane %v8692_v27, 1  ;;  %v14378_v30 = vld [vmem:[#allocation120_spill] sm:$0xff]  ;;  %v14379_v9 = vld [vmem:[#allocation110_spill] sm:$0xff]  ;;  %v14380_v6 = vld [vmem:[#allocation37_spill] sm:$0xff] }
 0x19f   : > { %14377 = vst [vmem:[#allocation38_spill] sm:$0xff] %v8809_v57  ;;  %v1474_v0 = vrot.slane %v8695_v25, 2  ;;  %v1551_v45 = vrot.slane %v8703_v3, 3  ;;  %v907_v36 = vadd.f32 %v8634_v33, %v829_v7  ;;  %v1062_v47 = vadd.f32 %v14378_v30, %v984_v60  ;;  %v14381_v52 = vld [vmem:[#allocation89_spill] sm:$0xff] }
 0x1a0   : > { %v8806_v39 = vsel %vm385_vm0, %v2280_v5, %v14375_v23  ;;  %v1216_v56 = vadd.f32 %v14379_v9, %v1138_v34  ;;  %v1314_v37 = vadd.f32 %v14380_v6, %v1293_v40  ;;  %v1628_v5 = vrot.slane %v8706_v55, 4  ;;  %v14382_v60 = vld [vmem:[#allocation85_spill] sm:$0xff]  ;;  %v14383_v9 = vld [vmem:[#allocation111_spill] sm:$0xff] }
 0x1a1   : > { %14376 = vst [vmem:[#allocation11_spill] sm:$0xff] %v8806_v39  ;;  %v1705_v23 = vrot.slane %v8713_v28, 5  ;;  %v678_v54 = vadd.f32 %v14363_v19, %v639_v62  ;;  %v1411_v27 = vadd.f32 %v14381_v52, %v1334_v61  ;;  %v1782_v25 = vrot.slane %v8725_v46, 6  ;;  %v14384_v62 = vld [vmem:[#allocation90_spill] sm:$0xff] }
 0x1a2   : > { %v1859_v3 = vrot.slane %v8739_v63, 7  ;;  %v1975_v33 = vrot.slane %v8753_v18, 1  ;;  %v2052_v7 = vrot.slane %v8763_v51, 2  ;;  %v8828_v34 = vmul.f32 %v14284_v17, %v8809_v57 }
 0x1a3   : > { %v2129_v55 = vrot.slane %v8773_v12, 3  ;;  %v2206_v28 = vrot.slane %v8788_v14, 4  ;;  %v2283_v40 = vrot.slane %v8801_v10, 5  ;;  %v985_v61 = vadd.f32 %v8642_v41, %v907_v36  ;;  %v14386_v14 = vld [vmem:[#allocation91_spill] sm:$0xff] }
 0x1a4   : > { %v1139_v46 = vadd.f32 %v14382_v60, %v1062_v47  ;;  %v1294_v63 = vadd.f32 %v14383_v9, %v1216_v56  ;;  %v1335_v18 = vadd.f32 %v14384_v62, %v1314_v37  ;;  %v8839_v51 = vmul.f32 %v14093_v24, %v8809_v57  ;;  %v14390_v60 = vld [vmem:[#allocation121_spill] sm:$0xff]  ;;  %v14391_v62 = vld [vmem:[#allocation66_spill] sm:$0xff] }
 0x1a5   : > { %v8843_v52 = vmul.f32 %v14358_v1, %v8809_v57  ;;  %v8845_v12 = vmax.f32 %v678_v54, 0.0  ;;  %v1488_v10 = vadd.f32 %v14386_v14, %v1411_v27  ;;  %v8850_v41 = vmul.f32 %v14302_v50, %v8809_v57 }
 0x1a6   : > { %v8854_v56 = vmul.f32 %v7601_v53, %v8809_v57  ;;  %v14387_v37 = vrot.slane %v8563_v38, 1  ;;  %v14388_v36 = vrot.slane %v8569_v44, 2  ;;  %v14389_v6 = vrot.slane %v8577_v11, 3  ;;  %v14394_v11 = vld [vmem:[#allocation67_spill] sm:$0xff] }
 0x1a7   : > { %14385 = vst [vmem:[#allocation109_spill] sm:$0xff] %v8845_v12  ;;  %v1063_v27 = vadd.f32 %v8647_v43, %v985_v61  ;;  %v1217_v9 = vadd.f32 %v14390_v60, %v1139_v46  ;;  %v1315_v14 = vadd.f32 %v14391_v62, %v1294_v63  ;;  %v14392_v38 = vrot.slane %v8583_v15, 4  ;;  %v14404_v60 = vld [vmem:[#allocation68_spill] sm:$0xff] }
 0x1a8   : > { %v8859_v47 = vsel %vm789_vm4, %v1397_v48, %v14387_v37  ;;  %v8864_v30 = vsel %vm867_vm5, %v1474_v0, %v14388_v36  ;;  %v8869_v54 = vsel %vm945_vm6, %v1551_v45, %v14389_v6  ;;  %v14393_v44 = vrot.slane %v8587_v32, 5  ;;  %v14395_v45 = vld [vmem:[#allocation92_spill] sm:$0xff] }
 0x1a9   : > { %v8877_v48 = vsel %vm1023_vm7, %v1628_v5, %v14392_v38  ;;  %v1412_v37 = vadd.f32 %v14394_v11, %v1335_v18  ;;  %v1565_v36 = vadd.f32 %v14395_v45, %v1488_v10  ;;  %v14396_v43 = vrot.slane %v8591_v22, 6  ;;  %v14403_v10 = vld [vmem:[#allocation4_spill] sm:$0xff]  ;;  %v14410_v11 = vld [vmem:[#allocation122_spill] sm:$0xff]  ;;  %v14411_v45 = vld [vmem:[#allocation71_spill] sm:$0xff] }
 0x1aa   : > { %v8882_v0 = vsel %vm385_vm0, %v1705_v23, %v14393_v44  ;;  %v14397_v46 = vrot.slane %v8595_v13, 7  ;;  %v8898_v32 = vmul.f32 %v14349_v59, %v8845_v12  ;;  %v14400_v5 = vrot.slane %v8605_v31, 1  ;;  %v14402_v13 = vld [vmem:[#allocation48_spill] sm:$0xff]  ;;  %v14405_v31 = vld [vmem:[#allocation93_spill] sm:$0xff] }
 0x1ab   : > { %v8889_v61 = vsel %vm1178_vm8, %v1782_v25, %v14396_v43  ;;  %v1939_v22 = vmul.f32 %v14284_v17, %v8845_v12  ;;  %v1979_v25 = vrot.slane %v8828_v34, 1  ;;  %v1140_v63 = vadd.f32 %v8653_v2, %v1063_v27  ;;  %v14408_v34 = vld [vmem:[#allocation55_spill] sm:$0xff] }
 0x1ac   : > { %v8894_v15 = vsel %vm1256_vm9, %v1859_v3, %v14397_v46  ;;  %14399 = vst [vmem:[#allocation31_spill] sm:$0xff] %v8898_v32  ;;  %v8903_v23 = vsel %vm789_vm4, %v1975_v33, %v14400_v5  ;;  %v1295_v18 = vadd.f32 %v14402_v13, %v1217_v9  ;;  %v2016_v3 = vmul.f32 %v14093_v24, %v8845_v12  ;;  %v14409_v9 = vld [vmem:[#allocation34_spill] sm:$0xff]  ;;  %v14412_v43 = vld [vmem:[#allocation39_spill] sm:$0xff]  ;;  %v14415_v46 = vld [vmem:[#allocation124_spill] sm:$0xff] }
 0x1ad   : > { %14398 = vst [vmem:[#allocation87_spill] sm:$0xff] %v8894_v15  ;;  %14401 = vst [vmem:[#allocation17_spill] sm:$0xff] %v8903_v23  ;;  %v1336_v6 = vadd.f32 %v14403_v10, %v1315_v14  ;;  %v1489_v62 = vadd.f32 %v14404_v60, %v1412_v37  ;;  %v1642_v38 = vadd.f32 %v14405_v31, %v1565_v36  ;;  %v14406_v33 = vrot.slane %v14357_v16, 2  ;;  %v14416_v13 = vld [vmem:[#allocation123_spill] sm:$0xff]  ;;  %v14417_v10 = vld [vmem:[#allocation72_spill] sm:$0xff] }
 0x1ae   : > { %v2056_v17 = vrot.slane %v8839_v51, 2  ;;  %v1218_v2 = vadd.f32 %v8658_v8, %v1140_v63  ;;  %v1316_v27 = vadd.f32 %v14408_v34, %v1295_v18  ;;  %v642_v24 = vmul.f32 %v14262_v21, %v14409_v9  ;;  %v14418_v60 = vld [vmem:[#allocation41_spill] sm:$0xff]  ;;  %v14425_v9 = vld [vmem:[#allocation59_spill] sm:$0xff] }
 0x1af   : > { %v8918_v44 = vsel %vm867_vm5, %v2052_v7, %v14406_v33  ;;  %v1413_v14 = vadd.f32 %v14410_v11, %v1336_v6  ;;  %v1566_v37 = vadd.f32 %v14411_v45, %v1489_v62  ;;  %v1719_v36 = vadd.f32 %v14412_v43, %v1642_v38 }
 0x1b0   : > { %14407 = vst [vmem:[#allocation70_spill] sm:$0xff] %v8918_v44  ;;  %v2093_v16 = vmul.f32 %v14358_v1, %v8845_v12  ;;  %v14413_v7 = vrot.slane %v14362_v49, 3  ;;  %v1296_v8 = vadd.f32 %v8664_v4, %v1218_v2  ;;  %v1337_v5 = vadd.f32 %v14415_v46, %v1316_v27  ;;  %v14423_v2 = vld [vmem:[#allocation83_spill] sm:$0xff]  ;;  %v14424_v27 = vld [vmem:[#allocation36_spill] sm:$0xff] }
 0x1b1   : > { %v2133_v63 = vrot.slane %v8843_v52, 3  ;;  %v1490_v18 = vadd.f32 %v14416_v13, %v1413_v14  ;;  %v1643_v6 = vadd.f32 %v14417_v10, %v1566_v37  ;;  %v1796_v62 = vadd.f32 %v14418_v60, %v1719_v36  ;;  %v14432_v13 = vld [vmem:[#allocation52_spill] sm:$0xff]  ;;  %v14433_v10 = vld [vmem:[#allocation54_spill] sm:$0xff]  ;;  %v14434_v60 = vld [vmem:[#allocation13_spill] sm:$0xff] }
 0x1b2   : > { %v8933_v51 = vsel %vm945_vm6, %v2129_v55, %v14413_v7  ;;  %v2170_v1 = vmul.f32 %v14302_v50, %v8845_v12  ;;  %v14419_v49 = vrot.slane %v14373_v20, 4  ;;  %v2210_v4 = vrot.slane %v8850_v41, 4  ;;  %v14429_v7 = vld [vmem:[#allocation49_spill] sm:$0xff] }
 0x1b3   : > { %14414 = vst [vmem:[#allocation63_spill] sm:$0xff] %v8933_v51  ;;  %v2247_v31 = vmul.f32 %v7601_v53, %v8845_v12  ;;  %v14421_v52 = vrot.slane %v8625_v26, 5  ;;  %v681_v33 = vadd.f32 %v14363_v19, %v642_v24  ;;  %v1317_v34 = vadd.f32 %v14423_v2, %v1296_v8  ;;  %v14426_v26 = vld [vmem:[#allocation2_spill] sm:$0xff]  ;;  %v14428_v24 = vld [vmem:[#allocation40_spill] sm:$0xff]  ;;  %v9308_v12 = vld [vmem:[%s13515_s4 + $0x2b] ss:$0 sm:$0xff] }
 0x1b4   : > { %v8946_v55 = vsel %vm1023_vm7, %v2206_v28, %v14419_v49  ;;  %v1414_v50 = vadd.f32 %v8670_v42, %v1337_v5  ;;  %v2287_v20 = vrot.slane %v8854_v56, 5  ;;  %v1978_v28 = vrot.slane %v1939_v22, 1  ;;  %v14430_v56 = vld [vmem:[#allocation51_spill] sm:$0xff]  ;;  %v14436_v49 = vld [vmem:[#allocation73_spill] sm:$0xff]  ;;  %v9224_v51 = vld [vmem:[%s13515_s4 + $0x22] ss:$0 sm:$0xff] }
 0x1b5   : > { %14420 = vst [vmem:[#allocation95_spill] sm:$0xff] %v8946_v55  ;;  %v8954_v38 = vsel %vm385_vm0, %v2283_v40, %v14421_v52  ;;  %v641_v41 = vmul.f32 %v14262_v21, %v14424_v27  ;;  %v1567_v11 = vadd.f32 %v14425_v9, %v1490_v18  ;;  %v2055_v53 = vrot.slane %v2016_v3, 2  ;;  %v14427_v40 = vld [vmem:[#allocation42_spill] sm:$0xff]  ;;  %v14499_v55 = vld [vmem:[#allocation99_spill] sm:$0xff]  ;;  %14501 = vst [vmem:[#allocation66_spill] sm:$0xff] %v9224_v51 }
 0x1b6   : > { %14422 = vst [vmem:[#allocation12_spill] sm:$0xff] %v8954_v38  ;;  %v2132_v14 = vrot.slane %v2093_v16, 3  ;;  %v1720_v45 = vadd.f32 %v14426_v26, %v1643_v6  ;;  %v1873_v37 = vadd.f32 %v14427_v40, %v1796_v62  ;;  %v2209_v43 = vrot.slane %v2170_v1, 4  ;;  %v14443_v26 = vld [vmem:[#allocation14_spill] sm:$0xff]  ;;  %14512 = vst [vmem:[#allocation122_spill] sm:$0xff] %v9308_v12 }
 0x1b7   : > { %v644_v36 = vmul.f32 %v14262_v21, %v14428_v24  ;;  %v643_v42 = vmul.f32 %v14262_v21, %v14429_v7  ;;  %v646_v22 = vmul.f32 %v14262_v21, %v14430_v56  ;;  %v8971_v8 = vmax.f32 %v681_v33, 0.0  ;;  %v14450_v24 = vld [vmem:[#allocation57_spill] sm:$0xff] }
 0x1b8   : > { %v2286_v46 = vrot.slane %v2247_v31, 5  ;;  %v1338_v3 = vadd.f32 %v8689_v58, %v1317_v34  ;;  %v1491_v16 = vadd.f32 %v8676_v29, %v1414_v50  ;;  %v680_v5 = vadd.f32 %v14363_v19, %v641_v41  ;;  %v14437_v31 = vld [vmem:[#allocation43_spill] sm:$0xff]  ;;  %v14438_v58 = vld [vmem:[#allocation56_spill] sm:$0xff] }
 0x1b9   : > { %14431 = vst [vmem:[#allocation114_spill] sm:$0xff] %v8971_v8  ;;  %v645_v18 = vmul.f32 %v14262_v21, %v14432_v13  ;;  %v648_v6 = vmul.f32 %v14262_v21, %v14433_v10  ;;  %v1644_v62 = vadd.f32 %v14434_v60, %v1567_v11  ;;  %v8982_v1 = vsel %vm789_vm4, %v1978_v28, %v1979_v25  ;;  %v14457_v10 = vld [vmem:[#allocation61_spill] sm:$0xff]  ;;  %v14458_v60 = vld [vmem:[#allocation18_spill] sm:$0xff] }
 0x1ba   : > { %14435 = vst [vmem:[#allocation94_spill] sm:$0xff] %v8982_v1  ;;  %v1797_v52 = vadd.f32 %v14436_v49, %v1720_v45  ;;  %v1894_v33 = vadd.f32 %v14437_v31, %v1873_v37  ;;  %v647_v29 = vmul.f32 %v14262_v21, %v14438_v58  ;;  %v8989_v2 = vsel %vm867_vm5, %v2055_v53, %v2056_v17  ;;  %v14446_v37 = vld [vmem:[#allocation98_spill] sm:$0xff] }
 0x1bb   : > { %14439 = vst [vmem:[#allocation75_spill] sm:$0xff] %v8989_v2  ;;  %v683_v34 = vadd.f32 %v14363_v19, %v644_v36  ;;  %v682_v50 = vadd.f32 %v14363_v19, %v643_v42  ;;  %v685_v27 = vadd.f32 %v14363_v19, %v646_v22  ;;  %v8995_v41 = vsel %vm945_vm6, %v2132_v14, %v2133_v63  ;;  %v14445_v14 = vld [vmem:[#allocation74_spill] sm:$0xff]  ;;  %v14451_v42 = vld [vmem:[#allocation104_spill] sm:$0xff] }
 0x1bc   : > { %14440 = vst [vmem:[#allocation115_spill] sm:$0xff] %v8995_v41  ;;  %v8998_v25 = vsel %vm1023_vm7, %v2209_v43, %v2210_v4  ;;  %v1415_v28 = vadd.f32 %v8859_v47, %v1338_v3  ;;  %v1568_v9 = vadd.f32 %v8682_v35, %v1491_v16  ;;  %v9003_v11 = vsel %vm385_vm0, %v2286_v46, %v2287_v20  ;;  %v14452_v22 = vld [vmem:[#allocation62_spill] sm:$0xff]  ;;  %v14453_v3 = vld [vmem:[#allocation21_spill] sm:$0xff]  ;;  %v14454_v16 = vld [vmem:[#allocation27_spill] sm:$0xff] }
 0x1bd   : > { %14441 = vst [vmem:[#allocation69_spill] sm:$0xff] %v8998_v25  ;;  %14442 = vst [vmem:[#allocation8_spill] sm:$0xff] %v9003_v11  ;;  %v684_v17 = vadd.f32 %v14363_v19, %v645_v18  ;;  %v687_v53 = vadd.f32 %v14363_v19, %v648_v6  ;;  %v1721_v45 = vadd.f32 %v14443_v26, %v1644_v62  ;;  %v9008_v40 = vmax.f32 %v680_v5, 0.0  ;;  %v14460_v49 = vld [vmem:[#allocation22_spill] sm:$0xff]  ;;  %v9052_v26 = vld [vmem:[%s13515_s4 + $0x13] ss:$0 sm:$0xff] }
 0x1be   : > { %v686_v63 = vadd.f32 %v14363_v19, %v647_v29  ;;  %v1874_v4 = vadd.f32 %v14445_v14, %v1797_v52  ;;  %v1915_v43 = vadd.f32 %v14446_v37, %v1894_v33  ;;  %v9013_v47 = vmax.f32 %v683_v34, 0.0  ;;  %v14463_v33 = vld [vmem:[#allocation78_spill] sm:$0xff]  ;;  %v14471_v14 = vld [vmem:[#allocation29_spill] sm:$0xff]  ;;  %v14495_v25 = vld [vmem:[#allocation44_spill] sm:$0xff] }
 0x1bf   : > { %14444 = vst [vmem:[#allocation9_spill] sm:$0xff] %v9008_v40  ;;  %v9015_v35 = vmax.f32 %v682_v50, 0.0  ;;  %v9017_v20 = vmax.f32 %v685_v27, 0.0  ;;  %v650_v36 = vmul.f32 %v14262_v21, %v14450_v24  ;;  %v1492_v7 = vadd.f32 %v8864_v30, %v1415_v28  ;;  %v14466_v27 = vld [vmem:[#allocation19_spill] sm:$0xff]  ;;  %v14473_v24 = vld [vmem:[#allocation105_spill] sm:$0xff] }
 0x1c0   : > { %14447 = vst [vmem:[#allocation119_spill] sm:$0xff] %v9013_v47  ;;  %v1645_v56 = vadd.f32 %v14451_v42, %v1568_v9  ;;  %v649_v46 = vmul.f32 %v14262_v21, %v14452_v22  ;;  %v1639_v5 = vadd.f32 %v14454_v16, %v14453_v3  ;;  %v9027_v13 = vmax.f32 %v684_v17, 0.0  ;;  %v14464_v21 = vld [vmem:[#allocation77_spill] sm:$0xff]  ;;  %v14468_v9 = vld [vmem:[#allocation23_spill] sm:$0xff]  ;;  %v14474_v22 = vld [vmem:[#allocation112_spill] sm:$0xff] }
 0x1c1   : > { %14448 = vst [vmem:[#allocation46_spill] sm:$0xff] %v9015_v35  ;;  %14449 = vst [vmem:[#allocation88_spill] sm:$0xff] %v9017_v20  ;;  %v9029_v18 = vmax.f32 %v687_v53, 0.0  ;;  %v1798_v6 = vadd.f32 %v14457_v10, %v1721_v45  ;;  %v14459_v62 = vrot.slane %v14458_v60, 5  ;;  %v14461_v52 = vrot.slane %v14460_v49, 5  ;;  %v14470_v45 = vld [vmem:[#allocation30_spill] sm:$0xff] }
 0x1c2   : > { %14455 = vst [vmem:[#allocation116_spill] sm:$0xff] %v9027_v13  ;;  %v9037_v31 = vmax.f32 %v686_v63, 0.0  ;;  %v1895_v58 = vadd.f32 %v14463_v33, %v1874_v4  ;;  %v1992_v29 = vadd.f32 %v14464_v21, %v1915_v43  ;;  %v9042_v50 = vadd.f32 %v14363_v19, %v650_v36  ;;  %v14475_v16 = vld [vmem:[#allocation20_spill] sm:$0xff]  ;;  %v14477_v10 = vld [vmem:[#allocation25_spill] sm:$0xff] }
 0x1c3   : > { %14456 = vst [vmem:[#allocation53_spill] sm:$0xff] %v9029_v18  ;;  %v1686_v30 = vsel %vm385_vm0, %v14461_v52, %v14459_v62  ;;  %v14467_v28 = vrot.slane %v14466_v27, 6  ;;  %v14469_v17 = vrot.slane %v14468_v9, 6  ;;  %v1925_v63 = vmul.f32 %v9052_v26, %v14470_v45  ;;  %v9072_v49 = vld [vmem:[%s13515_s4 + $0x14] ss:$0 sm:$0xff]  ;;  %v14480_v52 = vld [vmem:[#allocation7_spill] sm:$0xff] }
 0x1c4   : > { %14462 = vst [vmem:[#allocation26_spill] sm:$0xff] %v9037_v31  ;;  %v1716_v34 = vadd.f32 %v1686_v30, %v1639_v5  ;;  %14465 = vst [vmem:[#allocation103_spill] sm:$0xff] %v9042_v50  ;;  %v1926_v4 = vmul.f32 %v9052_v26, %v14471_v14  ;;  %v9059_v37 = vadd.f32 %v14363_v19, %v649_v46  ;;  %v14476_v5 = vrot.slane %v14475_v16, 7  ;;  %v9089_v33 = vld [vmem:[%s13515_s4 + $0x15] ss:$0 sm:$0xff] }
 0x1c5   : > { %v1763_v53 = vsel %vm1178_vm8, %v14469_v17, %v14467_v28  ;;  %v1569_v43 = vadd.f32 %v8869_v54, %v1492_v7  ;;  %v1722_v36 = vadd.f32 %v14473_v24, %v1645_v56  ;;  %v1875_v3 = vadd.f32 %v14474_v22, %v1798_v6  ;;  %v14479_v7 = vld [vmem:[#allocation96_spill] sm:$0xff]  ;;  %v9201_v50 = vld [vmem:[%s13515_s4 + $0x1a] ss:$0 sm:$0xff] }
 0x1c6   : > { %14472 = vst [vmem:[#allocation117_spill] sm:$0xff] %v9059_v37  ;;  %v1793_v42 = vadd.f32 %v1763_v53, %v1716_v34  ;;  %v14478_v60 = vrot.slane %v14477_v10, 7  ;;  %v2002_v19 = vmul.f32 %v9072_v49, %v14470_v45  ;;  %v2003_v54 = vmul.f32 %v9072_v49, %v14471_v14  ;;  %v9082_v6 = vld [vmem:[%s13515_s4 + $0x11] ss:$0 sm:$0xff]  ;;  %v14481_v34 = vld [vmem:[#allocation97_spill] sm:$0xff]  ;;  %14496 = vst [vmem:[#allocation111_spill] sm:$0xff] %v9201_v50 }
 0x1c7   : > { %v1916_v56 = vadd.f32 %v14479_v7, %v1895_v58  ;;  %v1883_v30 = vmul.f32 %v9082_v6, %v14480_v52  ;;  %v2079_v21 = vmul.f32 %v9089_v33, %v14470_v45  ;;  %v2069_v27 = vadd.f32 %v14481_v34, %v1992_v29  ;;  %v14482_v53 = vld [vmem:[#allocation76_spill] sm:$0xff]  ;;  %v14485_v52 = vld [vmem:[#allocation79_spill] sm:$0xff] }
 0x1c8   : > { %v1840_v62 = vsel %vm1256_vm9, %v14478_v60, %v14476_v5  ;;  %v1957_v58 = vrot.slane %v1925_v63, 1  ;;  %v1958_v28 = vrot.slane %v1926_v4, 1  ;;  %v2080_v9 = vmul.f32 %v9089_v33, %v14471_v14  ;;  %v9103_v10 = vld [vmem:[%s13515_s4 + $0x16] ss:$0 sm:$0xff]  ;;  %v14483_v4 = vld [vmem:[#allocation102_spill] sm:$0xff] }
 0x1c9   : > { %v1870_v46 = vadd.f32 %v1840_v62, %v1793_v42  ;;  %v1646_v17 = vadd.f32 %v8877_v48, %v1569_v43  ;;  %v1799_v24 = vadd.f32 %v14482_v53, %v1722_v36  ;;  %v1904_v22 = vmul.f32 %v14349_v59, %v14470_v45  ;;  %v9112_v48 = vld [vmem:[%s13515_s4 + $0x18] ss:$0 sm:$0xff]  ;;  %v14484_v43 = vld [vmem:[#allocation82_spill] sm:$0xff] }
 0x1ca   : > { %v2034_v16 = vrot.slane %v2002_v19, 2  ;;  %v2035_v5 = vrot.slane %v2003_v54, 2  ;;  %v2156_v29 = vmul.f32 %v9103_v10, %v14470_v45  ;;  %v2157_v63 = vmul.f32 %v9103_v10, %v14471_v14  ;;  %v9119_v19 = vld [vmem:[%s13515_s4 + $0x19] ss:$0 sm:$0xff] }
 0x1cb   : > { %v1891_v42 = vadd.f32 %v1883_v30, %v1870_v46  ;;  %v1896_v59 = vadd.f32 %v14483_v4, %v1875_v3  ;;  %v1993_v36 = vadd.f32 %v14484_v43, %v1916_v56  ;;  %v2111_v62 = vrot.slane %v2079_v21, 3  ;;  %v9125_v46 = vld [vmem:[%s13515_s4 + $0x17] ss:$0 sm:$0xff]  ;;  %v14487_v4 = vld [vmem:[#allocation106_spill] sm:$0xff] }
 0x1cc   : > { %v1959_v54 = vsel %vm789_vm4, %v1957_v58, %v1958_v28  ;;  %v2112_v7 = vrot.slane %v2080_v9, 3  ;;  %v2233_v3 = vmul.f32 %v9125_v46, %v14470_v45  ;;  %v2234_v56 = vmul.f32 %v9125_v46, %v14471_v14 }
 0x1cd   : > { %v1912_v60 = vadd.f32 %v1904_v22, %v1891_v42  ;;  %v2146_v30 = vadd.f32 %v14485_v52, %v2069_v27  ;;  %v2310_v34 = vmul.f32 %v9112_v48, %v14470_v45  ;;  %v2311_v58 = vmul.f32 %v9112_v48, %v14471_v14  ;;  %v9142_v22 = vld [vmem:[%s13515_s4 + $0x1c] ss:$0 sm:$0xff] }
 0x1ce   : > { %v2036_v28 = vsel %vm867_vm5, %v2034_v16, %v2035_v5  ;;  %v2188_v9 = vrot.slane %v2156_v29, 4  ;;  %v2189_v53 = vrot.slane %v2157_v63, 4  ;;  %v2387_v42 = vmul.f32 %v9119_v19, %v14470_v45  ;;  %14486 = vst [vmem:[#allocation120_spill] sm:$0xff] %v9142_v22  ;;  %v9156_v5 = vld [vmem:[%s13515_s4 + $0x1d] ss:$0 sm:$0xff] }
 0x1cf   : > { %v1989_v21 = vadd.f32 %v1959_v54, %v1912_v60  ;;  %v9145_v27 = vadd.f32 %v8882_v0, %v1646_v17  ;;  %v9148_v43 = vadd.f32 %v14487_v4, %v1799_v24  ;;  %v14488_v60 = vld [vmem:[#allocation6_spill] sm:$0xff]  ;;  %14489 = vst [vmem:[#allocation110_spill] sm:$0xff] %v9156_v5  ;;  %v2113_v29 = vsel %vm945_vm6, %v2111_v62, %v2112_v7  ;;  %v9164_v17 = vld [vmem:[%s13515_s4 + $0x1e] ss:$0 sm:$0xff]  ;;  %v9171_v62 = vld [vmem:[%s13515_s4 + $0x1f] ss:$0 sm:$0xff] }
 0x1d0   : > { %v9151_v54 = vadd.f32 %v14488_v60, %v1896_v59  ;;  %v2265_v63 = vrot.slane %v2233_v3, 5  ;;  %v2266_v52 = vrot.slane %v2234_v56, 5  ;;  %v2388_v0 = vmul.f32 %v9119_v19, %v14471_v14  ;;  %14490 = vst [vmem:[#allocation37_spill] sm:$0xff] %v9164_v17  ;;  %14492 = vst [vmem:[#allocation89_spill] sm:$0xff] %v9171_v62  ;;  %v14493_v56 = vld [vmem:[#allocation24_spill] sm:$0xff] }
 0x1d1   : > { %v2066_v16 = vadd.f32 %v2036_v28, %v1989_v21  ;;  %v2342_v59 = vrot.slane %v2310_v34, 6  ;;  %v2343_v21 = vrot.slane %v2311_v58, 6  ;;  %v14491_v28 = vld [vmem:[#allocation28_spill] sm:$0xff]  ;;  %v2190_v7 = vsel %vm1023_vm7, %v2188_v9, %v2189_v53  ;;  %v9187_v9 = vld [vmem:[%s13515_s4 + $0x20] ss:$0 sm:$0xff] }
 0x1d2   : > { %v2506_v4 = vmul.f32 %v9142_v22, %v14491_v28  ;;  %v2419_v3 = vrot.slane %v2387_v42, 7  ;;  %v2507_v60 = vmul.f32 %v9142_v22, %v14493_v56  ;;  %v2583_v11 = vmul.f32 %v9156_v5, %v14491_v28  ;;  %14494 = vst [vmem:[#allocation85_spill] sm:$0xff] %v9187_v9 }
 0x1d3   : > { %v2143_v24 = vadd.f32 %v2113_v29, %v2066_v16  ;;  %v2584_v34 = vmul.f32 %v9156_v5, %v14493_v56  ;;  %v2660_v58 = vmul.f32 %v9164_v17, %v14491_v28  ;;  %v2661_v29 = vmul.f32 %v9164_v17, %v14493_v56 }
 0x1d4   : > { %v2267_v53 = vsel %vm385_vm0, %v2265_v63, %v2266_v52  ;;  %v2420_v42 = vrot.slane %v2388_v0, 7  ;;  %v9195_v41 = vadd.f32 %v14495_v25, %v1993_v36  ;;  %v2344_v37 = vsel %vm1178_vm8, %v2342_v59, %v2343_v21  ;;  %v9206_v63 = vld [vmem:[%s13515_s4 + $0x1b] ss:$0 sm:$0xff]  ;;  %v9215_v59 = vld [vmem:[%s13515_s4 + $0x21] ss:$0 sm:$0xff] }
 0x1d5   : > { %v2220_v16 = vadd.f32 %v2190_v7, %v2143_v24  ;;  %v2737_v24 = vmul.f32 %v9171_v62, %v14491_v28  ;;  %v2738_v7 = vmul.f32 %v9171_v62, %v14493_v56  ;;  %v2538_v38 = vrot.slane %v2506_v4, 1  ;;  %14497 = vst [vmem:[#allocation90_spill] sm:$0xff] %v9206_v63  ;;  %14498 = vst [vmem:[#allocation91_spill] sm:$0xff] %v9215_v59 }
 0x1d6   : > { %v2539_v52 = vrot.slane %v2507_v60, 1  ;;  %v2615_v0 = vrot.slane %v2583_v11, 2  ;;  %v2814_v25 = vmul.f32 %v9187_v9, %v14491_v28  ;;  %v2815_v36 = vmul.f32 %v9187_v9, %v14493_v56 }
 0x1d7   : > { %v2297_v2 = vadd.f32 %v2267_v53, %v2220_v16  ;;  %v2616_v4 = vrot.slane %v2584_v34, 2  ;;  %v2692_v16 = vrot.slane %v2660_v58, 3  ;;  %v2693_v53 = vrot.slane %v2661_v29, 3  ;;  %v9243_v29 = vld [vmem:[%s13515_s4 + $0x26] ss:$0 sm:$0xff] }
 0x1d8   : > { %v9218_v18 = vadd.f32 %v14499_v55, %v2146_v30  ;;  %v2421_v11 = vsel %vm1256_vm9, %v2419_v3, %v2420_v42  ;;  %v2769_v60 = vrot.slane %v2737_v24, 4  ;;  %v2770_v31 = vrot.slane %v2738_v7, 4  ;;  %14503 = vst [vmem:[#allocation92_spill] sm:$0xff] %v9243_v29 }
 0x1d9   : > { %v2374_v21 = vadd.f32 %v2344_v37, %v2297_v2  ;;  %v2464_v39 = vmul.f32 %v9201_v50, %v14471_v14  ;;  %v2485_v2 = vmul.f32 %v9206_v63, %v14491_v28  ;;  %v2891_v55 = vmul.f32 %v9215_v59, %v14491_v28  ;;  %v9235_v37 = vld [vmem:[%s13515_s4 + $0x25] ss:$0 sm:$0xff] }
 0x1da   : > { %14500 = vst [vmem:[#allocation121_spill] sm:$0xff] %v9218_v18  ;;  %14502 = vst [vmem:[#allocation67_spill] sm:$0xff] %v9235_v37  ;;  %v2540_v30 = vsel %vm789_vm4, %v2538_v38, %v2539_v52  ;;  %v2846_v3 = vrot.slane %v2814_v25, 5  ;;  %v2847_v34 = vrot.slane %v2815_v36, 5  ;;  %v2892_v58 = vmul.f32 %v9215_v59, %v14493_v56  ;;  %v9252_v38 = vld [vmem:[%s13515_s4 + $0x23] ss:$0 sm:$0xff] }
 0x1db   : > { %v2451_v1 = vadd.f32 %v2421_v11, %v2374_v21  ;;  %v2617_v24 = vsel %vm867_vm5, %v2615_v0, %v2616_v4  ;;  %v2694_v7 = vsel %vm945_vm6, %v2692_v16, %v2693_v53  ;;  %v2968_v21 = vmul.f32 %v9224_v51, %v14491_v28  ;;  %14504 = vst [vmem:[#allocation48_spill] sm:$0xff] %v9252_v38  ;;  %v9257_v52 = vld [vmem:[%s13515_s4 + $0x27] ss:$0 sm:$0xff]  ;;  %v14507_v36 = vld [vmem:[#allocation32_spill] sm:$0xff]  ;;  %v9269_v16 = vld [vmem:[%s13515_s4 + $0x28] ss:$0 sm:$0xff] }
 0x1dc   : > { %14505 = vst [vmem:[#allocation4_spill] sm:$0xff] %v9257_v52  ;;  %v2771_v25 = vsel %vm1023_vm7, %v2769_v60, %v2770_v31  ;;  %v3088_v4 = vmul.f32 %v9235_v37, %v14507_v36  ;;  %14508 = vst [vmem:[#allocation68_spill] sm:$0xff] %v9269_v16  ;;  %v2923_v11 = vrot.slane %v2891_v55, 6  ;;  %v3165_v31 = vmul.f32 %v9243_v29, %v14507_v36  ;;  %v14526_v18 = vld [vmem:[#allocation108_spill] sm:$0xff] }
 0x1dd   : > { %v2472_v42 = vadd.f32 %v2464_v39, %v2451_v1  ;;  %v2969_v39 = vmul.f32 %v9224_v51, %v14493_v56  ;;  %v14506_v1 = vld [vmem:[#allocation45_spill] sm:$0xff]  ;;  %v2848_v60 = vsel %vm385_vm0, %v2846_v3, %v2847_v34  ;;  %v2924_v13 = vrot.slane %v2892_v58, 6  ;;  %v9296_v58 = vld [vmem:[%s13515_s4 + $0x2a] ss:$0 sm:$0xff]  ;;  %v14527_v59 = vld [vmem:[#allocation100_spill] sm:$0xff] }
 0x1de   : > { %v3087_v0 = vmul.f32 %v9235_v37, %v14506_v1  ;;  %v3164_v20 = vmul.f32 %v9243_v29, %v14506_v1  ;;  %v9278_v44 = vmul.f32 %v9252_v38, %v14493_v56  ;;  %v3241_v32 = vmul.f32 %v9257_v52, %v14506_v1  ;;  %14510 = vst [vmem:[#allocation55_spill] sm:$0xff] %v9296_v58  ;;  %v9319_v38 = vld [vmem:[%s13515_s4 + $0x2e] ss:$0 sm:$0xff]  ;;  %v9418_v37 = vld [vmem:[%s13515_s4 + $0x37] ss:$0 sm:$0xff] }
 0x1df   : > { %v2493_v53 = vadd.f32 %v2485_v2, %v2472_v42  ;;  %v9285_v2 = vld [vmem:[%s13515_s4 + $0x29] ss:$0 sm:$0xff]  ;;  %v3242_v42 = vmul.f32 %v9257_v52, %v14507_v36  ;;  %v3318_v3 = vmul.f32 %v9269_v16, %v14506_v1  ;;  %v3319_v34 = vmul.f32 %v9269_v16, %v14507_v36  ;;  %14513 = vst [vmem:[#allocation71_spill] sm:$0xff] %v9319_v38 }
 0x1e0   : > { %14509 = vst [vmem:[#allocation93_spill] sm:$0xff] %v9285_v2  ;;  %v3000_v47 = vrot.slane %v2968_v21, 7  ;;  %v3001_v35 = vrot.slane %v2969_v39, 7  ;;  %v3119_v23 = vrot.slane %v3087_v0, 1  ;;  %v3120_v8 = vrot.slane %v3088_v4, 1  ;;  %14524 = vst [vmem:[#allocation2_spill] sm:$0xff] %v9418_v37 }
 0x1e1   : > { %v2570_v55 = vadd.f32 %v2540_v30, %v2493_v53  ;;  %v9301_v30 = vld [vmem:[%s13515_s4 + $0x24] ss:$0 sm:$0xff]  ;;  %v3196_v53 = vrot.slane %v3164_v20, 2  ;;  %v3197_v15 = vrot.slane %v3165_v31, 2  ;;  %v3395_v57 = vmul.f32 %v9285_v2, %v14506_v1 }
 0x1e2   : > { %14511 = vst [vmem:[#allocation34_spill] sm:$0xff] %v9301_v30  ;;  %v3273_v21 = vrot.slane %v3241_v32, 3  ;;  %v3396_v39 = vmul.f32 %v9285_v2, %v14507_v36  ;;  %v3473_v0 = vmul.f32 %v9296_v58, %v14507_v36  ;;  %v3274_v4 = vrot.slane %v3242_v42, 3 }
 0x1e3   : > { %v2647_v40 = vadd.f32 %v2617_v24, %v2570_v55  ;;  %v3472_v24 = vmul.f32 %v9296_v58, %v14506_v1  ;;  %v3350_v31 = vrot.slane %v3318_v3, 4  ;;  %v3351_v55 = vrot.slane %v3319_v34, 4  ;;  %v9333_v34 = vld [vmem:[%s13515_s4 + $0x2c] ss:$0 sm:$0xff] }
 0x1e4   : > { %v2925_v32 = vsel %vm1178_vm8, %v2923_v11, %v2924_v13  ;;  %v3066_v2 = vmul.f32 %v9301_v30, %v14506_v1  ;;  %v3549_v16 = vmul.f32 %v9308_v12, %v14506_v1  ;;  %v3550_v58 = vmul.f32 %v9308_v12, %v14507_v36  ;;  %14514 = vst [vmem:[#allocation39_spill] sm:$0xff] %v9333_v34  ;;  %v9338_v13 = vld [vmem:[%s13515_s4 + $0x2f] ss:$0 sm:$0xff]  ;;  %v14516_v12 = vld [vmem:[#allocation84_spill] sm:$0xff] }
 0x1e5   : > { %v2724_v20 = vadd.f32 %v2694_v7, %v2647_v40  ;;  %v3002_v7 = vsel %vm1256_vm9, %v3000_v47, %v3001_v35  ;;  %v3121_v42 = vsel %vm789_vm4, %v3119_v23, %v3120_v8  ;;  %v3427_v3 = vrot.slane %v3395_v57, 5  ;;  %14515 = vst [vmem:[#allocation124_spill] sm:$0xff] %v9338_v13  ;;  %v9345_v57 = vld [vmem:[%s13515_s4 + $0x30] ss:$0 sm:$0xff] }
 0x1e6   : > { %v3428_v11 = vrot.slane %v3396_v39, 5  ;;  %v3504_v30 = vrot.slane %v3472_v24, 6  ;;  %v3505_v52 = vrot.slane %v3473_v0, 6  ;;  %14517 = vst [vmem:[#allocation123_spill] sm:$0xff] %v9345_v57  ;;  %v3198_v8 = vsel %vm867_vm5, %v3196_v53, %v3197_v15  ;;  %v9357_v39 = vld [vmem:[%s13515_s4 + $0x2d] ss:$0 sm:$0xff] }
 0x1e7   : > { %v2801_v40 = vadd.f32 %v2771_v25, %v2724_v20  ;;  %v3668_v25 = vmul.f32 %v9319_v38, %v14516_v12  ;;  %v9349_v47 = vsel %vm945_vm6, %v3273_v21, %v3274_v4  ;;  %v9352_v35 = vsel %vm1023_vm7, %v3350_v31, %v3351_v55  ;;  %14518 = vst [vmem:[#allocation72_spill] sm:$0xff] %v9357_v39  ;;  %v9368_v53 = vld [vmem:[%s13515_s4 + $0x31] ss:$0 sm:$0xff]  ;;  %v9379_v31 = vld [vmem:[%s13515_s4 + $0x32] ss:$0 sm:$0xff] }
 0x1e8   : > { %v3581_v24 = vrot.slane %v3549_v16, 7  ;;  %v3582_v0 = vrot.slane %v3550_v58, 7  ;;  %v9361_v20 = vmul.f32 %v9333_v34, %v14507_v36  ;;  %14520 = vst [vmem:[#allocation41_spill] sm:$0xff] %v9368_v53  ;;  %v3745_v4 = vmul.f32 %v9338_v13, %v14516_v12  ;;  %14521 = vst [vmem:[#allocation83_spill] sm:$0xff] %v9379_v31 }
 0x1e9   : > { %v2878_v23 = vadd.f32 %v2848_v60, %v2801_v40  ;;  %v14519_v60 = vld [vmem:[#allocation58_spill] sm:$0xff]  ;;  %v3822_v58 = vmul.f32 %v9345_v57, %v14516_v12  ;;  %v9382_v55 = vsel %vm385_vm0, %v3427_v3, %v3428_v11  ;;  %v9385_v40 = vsel %vm1178_vm8, %v3504_v30, %v3505_v52  ;;  %v9400_v52 = vld [vmem:[%s13515_s4 + $0x33] ss:$0 sm:$0xff]  ;;  %v9405_v30 = vld [vmem:[%s13515_s4 + $0x34] ss:$0 sm:$0xff] }
 0x1ea   : > { %v3669_v15 = vmul.f32 %v9319_v38, %v14519_v60  ;;  %v3746_v16 = vmul.f32 %v9338_v13, %v14519_v60  ;;  %v3823_v38 = vmul.f32 %v9345_v57, %v14519_v60  ;;  %v3899_v34 = vmul.f32 %v9368_v53, %v14516_v12  ;;  %14522 = vst [vmem:[#allocation36_spill] sm:$0xff] %v9400_v52 }
 0x1eb   : > { %v2955_v21 = vadd.f32 %v2925_v32, %v2878_v23  ;;  %v9389_v32 = vmul.f32 %v9357_v39, %v14516_v12  ;;  %v3700_v23 = vrot.slane %v3668_v25, 1  ;;  %v3900_v29 = vmul.f32 %v9368_v53, %v14519_v60  ;;  %14523 = vst [vmem:[#allocation59_spill] sm:$0xff] %v9405_v30 }
 0x1ec   : > { %v3701_v3 = vrot.slane %v3669_v15, 1  ;;  %v3976_v11 = vmul.f32 %v9379_v31, %v14516_v12  ;;  %v3977_v25 = vmul.f32 %v9379_v31, %v14519_v60  ;;  %v3777_v53 = vrot.slane %v3745_v4, 2 }
 0x1ed   : > { %v3032_v13 = vadd.f32 %v3002_v7, %v2955_v21  ;;  %v9408_v7 = vsel %vm1256_vm9, %v3581_v24, %v3582_v0  ;;  %v3778_v57 = vrot.slane %v3746_v16, 2  ;;  %v3854_v39 = vrot.slane %v3822_v58, 3 }
 0x1ee   : > { %v4053_v24 = vmul.f32 %v9400_v52, %v14516_v12  ;;  %v4054_v0 = vmul.f32 %v9400_v52, %v14519_v60  ;;  %v4130_v15 = vmul.f32 %v9405_v30, %v14516_v12  ;;  %v3855_v16 = vrot.slane %v3823_v38, 3 }
 0x1ef   : > { %v3053_v21 = vadd.f32 %v9278_v44, %v3032_v13  ;;  %v4131_v44 = vmul.f32 %v9405_v30, %v14519_v60  ;;  %v9431_v13 = vld [vmem:[%s13515_s4 + $0x38] ss:$0 sm:$0xff]  ;;  %v3931_v58 = vrot.slane %v3899_v34, 4  ;;  %v3932_v31 = vrot.slane %v3900_v29, 4  ;;  %v9447_v29 = vld [vmem:[%s13515_s4 + $0x39] ss:$0 sm:$0xff] }
 0x1f0   : > { %14525 = vst [vmem:[#allocation42_spill] sm:$0xff] %v9431_v13  ;;  %v4008_v51 = vrot.slane %v3976_v11, 5  ;;  %v4009_v63 = vrot.slane %v3977_v25, 5  ;;  %v4249_v52 = vmul.f32 %v9418_v37, %v14526_v18  ;;  %v4250_v12 = vmul.f32 %v9418_v37, %v14527_v59  ;;  %14528 = vst [vmem:[#allocation40_spill] sm:$0xff] %v9447_v29 }
 0x1f1   : > { %v3074_v4 = vadd.f32 %v3066_v2, %v3053_v21  ;;  %v9438_v30 = vsel %vm789_vm4, %v3700_v23, %v3701_v3  ;;  %v4326_v62 = vmul.f32 %v9431_v13, %v14526_v18  ;;  %v4327_v38 = vmul.f32 %v9431_v13, %v14527_v59 }
 0x1f2   : > { %v4085_v2 = vrot.slane %v4053_v24, 6  ;;  %v4086_v34 = vrot.slane %v4054_v0, 6  ;;  %v4162_v11 = vrot.slane %v4130_v15, 7  ;;  %v4163_v25 = vrot.slane %v4131_v44, 7  ;;  %v9466_v24 = vld [vmem:[%s13515_s4 + $0x36] ss:$0 sm:$0xff] }
 0x1f3   : > { %v3151_v9 = vadd.f32 %v3121_v42, %v3074_v4  ;;  %v9450_v42 = vsel %vm867_vm5, %v3777_v53, %v3778_v57  ;;  %v9453_v23 = vsel %vm945_vm6, %v3854_v39, %v3855_v16  ;;  %v9456_v3 = vsel %vm1023_vm7, %v3931_v58, %v3932_v31  ;;  %v9461_v4 = vld [vmem:[%s13515_s4 + $0x35] ss:$0 sm:$0xff]  ;;  %14530 = vst [vmem:[#allocation51_spill] sm:$0xff] %v9466_v24  ;;  %v9476_v53 = vld [vmem:[%s13515_s4 + $0x3a] ss:$0 sm:$0xff] }
 0x1f4   : > { %14529 = vst [vmem:[#allocation49_spill] sm:$0xff] %v9461_v4  ;;  %v4281_v57 = vrot.slane %v4249_v52, 1  ;;  %v4403_v39 = vmul.f32 %v9447_v29, %v14526_v18  ;;  %14531 = vst [vmem:[#allocation52_spill] sm:$0xff] %v9476_v53  ;;  %v9481_v31 = vld [vmem:[%s13515_s4 + $0x3b] ss:$0 sm:$0xff]  ;;  %v4358_v15 = vrot.slane %v4326_v62, 2  ;;  %v9492_v52 = vsel %vm1178_vm8, %v4085_v2, %v4086_v34 }
 0x1f5   : > { %v3228_v21 = vadd.f32 %v3198_v8, %v3151_v9  ;;  %v9469_v9 = vsel %vm385_vm0, %v4008_v51, %v4009_v63  ;;  %v4282_v8 = vrot.slane %v4250_v12, 1  ;;  %14532 = vst [vmem:[#allocation54_spill] sm:$0xff] %v9481_v31  ;;  %v4359_v51 = vrot.slane %v4327_v38, 2  ;;  %v9489_v63 = vld [vmem:[%s13515_s4 + $0x3c] ss:$0 sm:$0xff] }
 0x1f6   : > { %v4404_v12 = vmul.f32 %v9447_v29, %v14527_v59  ;;  %14533 = vst [vmem:[#allocation13_spill] sm:$0xff] %v9489_v63  ;;  %v9495_v44 = vsel %vm1256_vm9, %v4162_v11, %v4163_v25  ;;  %v9499_v16 = vmul.f32 %v9461_v4, %v14519_v60  ;;  %v9503_v62 = vmul.f32 %v9466_v24, %v14526_v18  ;;  %v9515_v34 = vld [vmem:[%s13515_s4 + $0x3d] ss:$0 sm:$0xff]  ;;  %v9520_v11 = vld [vmem:[%s13515_s4 + $0x40] ss:$0 sm:$0xff] }
 0x1f7   : > { %v3305_v0 = vadd.f32 %v9349_v47, %v3228_v21  ;;  %v4480_v58 = vmul.f32 %v9476_v53, %v14526_v18  ;;  %v4481_v38 = vmul.f32 %v9476_v53, %v14527_v59  ;;  %v4557_v2 = vmul.f32 %v9481_v31, %v14526_v18  ;;  %14534 = vst [vmem:[#allocation73_spill] sm:$0xff] %v9515_v34 }
 0x1f8   : > { %14535 = vst [vmem:[#allocation43_spill] sm:$0xff] %v9520_v11  ;;  %v4435_v25 = vrot.slane %v4403_v39, 3  ;;  %v4558_v21 = vmul.f32 %v9481_v31, %v14527_v59  ;;  %v9531_v53 = vsel %vm867_vm5, %v4358_v15, %v4359_v51  ;;  %v4436_v29 = vrot.slane %v4404_v12, 3  ;;  %v14537_v31 = vld [vmem:[#allocation118_spill] sm:$0xff]  ;;  %v14538_v15 = vld [vmem:[#allocation81_spill] sm:$0xff] }
 0x1f9   : > { %v3382_v47 = vadd.f32 %v9352_v35, %v3305_v0  ;;  %v9523_v35 = vsel %vm789_vm4, %v4281_v57, %v4282_v8  ;;  %v4634_v0 = vmul.f32 %v9489_v63, %v14526_v18  ;;  %v4635_v13 = vmul.f32 %v9489_v63, %v14527_v59  ;;  %v9538_v57 = vld [vmem:[%s13515_s4 + $0x41] ss:$0 sm:$0xff]  ;;  %v9551_v12 = vld [vmem:[%s13515_s4 + $0x42] ss:$0 sm:$0xff] }
 0x1fa   : > { %14536 = vst [vmem:[#allocation56_spill] sm:$0xff] %v9538_v57  ;;  %v4711_v8 = vmul.f32 %v9515_v34, %v14526_v18  ;;  %v4712_v39 = vmul.f32 %v9515_v34, %v14527_v59  ;;  %v4831_v51 = vmul.f32 %v9520_v11, %v14538_v15  ;;  %14539 = vst [vmem:[#allocation14_spill] sm:$0xff] %v9551_v12  ;;  %v4512_v63 = vrot.slane %v4480_v58, 4  ;;  %v9557_v34 = vld [vmem:[%s13515_s4 + $0x3e] ss:$0 sm:$0xff] }
 0x1fb   : > { %v3459_v24 = vadd.f32 %v9382_v55, %v3382_v47  ;;  %v4830_v55 = vmul.f32 %v9520_v11, %v14537_v31  ;;  %v4513_v37 = vrot.slane %v4481_v38, 4  ;;  %v4589_v4 = vrot.slane %v4557_v2, 5  ;;  %14540 = vst [vmem:[#allocation74_spill] sm:$0xff] %v9557_v34 }
 0x1fc   : > { %v4590_v18 = vrot.slane %v4558_v21, 5  ;;  %v4666_v60 = vrot.slane %v4634_v0, 6  ;;  %v4907_v11 = vmul.f32 %v9538_v57, %v14537_v31  ;;  %v4908_v17 = vmul.f32 %v9538_v57, %v14538_v15 }
 0x1fd   : > { %v3536_v47 = vadd.f32 %v9385_v40, %v3459_v24  ;;  %v4667_v50 = vrot.slane %v4635_v13, 6  ;;  %v9567_v40 = vld [vmem:[%s13515_s4 + $0x3f] ss:$0 sm:$0xff]  ;;  %v4984_v24 = vmul.f32 %v9551_v12, %v14537_v31  ;;  %v4985_v58 = vmul.f32 %v9551_v12, %v14538_v15  ;;  %v9587_v12 = vld [vmem:[%s13515_s4 + $0x43] ss:$0 sm:$0xff] }
 0x1fe   : > { %14541 = vst [vmem:[#allocation98_spill] sm:$0xff] %v9567_v40  ;;  %v4743_v38 = vrot.slane %v4711_v8, 7  ;;  %v4744_v2 = vrot.slane %v4712_v39, 7  ;;  %v4862_v21 = vrot.slane %v4830_v55, 1  ;;  %v4863_v0 = vrot.slane %v4831_v51, 1  ;;  %14542 = vst [vmem:[#allocation57_spill] sm:$0xff] %v9587_v12 }
 0x1ff   : > { %v3613_v5 = vadd.f32 %v9408_v7, %v3536_v47  ;;  %v9575_v7 = vsel %vm945_vm6, %v4435_v25, %v4436_v29  ;;  %v9578_v13 = vsel %vm1023_vm7, %v4512_v63, %v4513_v37  ;;  %v9582_v47 = vmul.f32 %v9557_v34, %v14527_v59  ;;  %v9599_v37 = vld [vmem:[%s13515_s4 + $0x44] ss:$0 sm:$0xff]  ;;  %v9604_v63 = vld [vmem:[%s13515_s4 + $0x45] ss:$0 sm:$0xff] }
 0x200   : > { %v9590_v8 = vsel %vm385_vm0, %v4589_v4, %v4590_v18  ;;  %v4940_v29 = vrot.slane %v4908_v17, 2  ;;  %14543 = vst [vmem:[#allocation104_spill] sm:$0xff] %v9599_v37  ;;  %14544 = vst [vmem:[#allocation62_spill] sm:$0xff] %v9604_v63  ;;  %v9608_v18 = vsel %vm1178_vm8, %v4666_v60, %v4667_v50  ;;  %v5016_v4 = vrot.slane %v4984_v24, 3  ;;  %v9613_v17 = vld [vmem:[%s13515_s4 + $0x46] ss:$0 sm:$0xff] }
 0x201   : > { %v3634_v57 = vadd.f32 %v9361_v20, %v3613_v5  ;;  %v9594_v5 = vmul.f32 %v9567_v40, %v14537_v31  ;;  %v4939_v20 = vrot.slane %v4907_v11, 2  ;;  %v5017_v39 = vrot.slane %v4985_v58, 3  ;;  %14545 = vst [vmem:[#allocation21_spill] sm:$0xff] %v9613_v17  ;;  %v9628_v60 = vld [vmem:[%s13515_s4 + $0x49] ss:$0 sm:$0xff]  ;;  %v14549_v34 = vld [vmem:[#allocation10_spill] sm:$0xff] }
 0x202   : > { %v9616_v11 = vsel %vm1256_vm9, %v4743_v38, %v4744_v2  ;;  %v9619_v55 = vsel %vm789_vm4, %v4862_v21, %v4863_v0  ;;  %v5061_v51 = vmul.f32 %v9587_v12, %v14537_v31  ;;  %v5062_v50 = vmul.f32 %v9587_v12, %v14538_v15  ;;  %14546 = vst [vmem:[#allocation27_spill] sm:$0xff] %v9628_v60  ;;  %v9640_v38 = vld [vmem:[%s13515_s4 + $0x4a] ss:$0 sm:$0xff]  ;;  %v14548_v12 = vld [vmem:[#allocation16_spill] sm:$0xff] }
 0x203   : > { %v3655_v25 = vadd.f32 %v9389_v32, %v3634_v57  ;;  %v5138_v57 = vmul.f32 %v9599_v37, %v14537_v31  ;;  %v5139_v24 = vmul.f32 %v9599_v37, %v14538_v15  ;;  %v5215_v58 = vmul.f32 %v9604_v63, %v14537_v31  ;;  %14547 = vst [vmem:[#allocation61_spill] sm:$0xff] %v9640_v38 }
 0x204   : > { %v9643_v2 = vsel %vm867_vm5, %v4939_v20, %v4940_v29  ;;  %v5292_v21 = vmul.f32 %v9613_v17, %v14537_v31  ;;  %v5293_v0 = vmul.f32 %v9613_v17, %v14538_v15  ;;  %v9653_v37 = vsel %vm945_vm6, %v5016_v4, %v5017_v39  ;;  %v9662_v29 = vld [vmem:[%s13515_s4 + $0x4b] ss:$0 sm:$0xff] }
 0x205   : > { %v3732_v32 = vadd.f32 %v9438_v30, %v3655_v25  ;;  %v5216_v30 = vmul.f32 %v9604_v63, %v14538_v15  ;;  %v5411_v40 = vmul.f32 %v9628_v60, %v14548_v12  ;;  %v5412_v20 = vmul.f32 %v9628_v60, %v14549_v34  ;;  %14550 = vst [vmem:[#allocation18_spill] sm:$0xff] %v9662_v29  ;;  %v9672_v60 = vld [vmem:[%s13515_s4 + $0x4c] ss:$0 sm:$0xff] }
 0x206   : > { %v5093_v63 = vrot.slane %v5061_v51, 4  ;;  %v5094_v31 = vrot.slane %v5062_v50, 4  ;;  %v5488_v17 = vmul.f32 %v9640_v38, %v14548_v12  ;;  %v5170_v39 = vrot.slane %v5138_v57, 5  ;;  %14551 = vst [vmem:[#allocation22_spill] sm:$0xff] %v9672_v60  ;;  %v9677_v50 = vld [vmem:[%s13515_s4 + $0x47] ss:$0 sm:$0xff] }
 0x207   : > { %v3809_v25 = vadd.f32 %v9450_v42, %v3732_v32  ;;  %v5489_v42 = vmul.f32 %v9640_v38, %v14549_v34  ;;  %v5171_v32 = vrot.slane %v5139_v24, 5  ;;  %v5247_v59 = vrot.slane %v5215_v58, 6  ;;  %14552 = vst [vmem:[#allocation78_spill] sm:$0xff] %v9677_v50  ;;  %v9685_v57 = vld [vmem:[%s13515_s4 + $0x48] ss:$0 sm:$0xff] }
 0x208   : > { %v5248_v36 = vrot.slane %v5216_v30, 6  ;;  %v5324_v22 = vrot.slane %v5292_v21, 7  ;;  %v5325_v51 = vrot.slane %v5293_v0, 7  ;;  %v5565_v38 = vmul.f32 %v9662_v29, %v14548_v12  ;;  %14553 = vst [vmem:[#allocation77_spill] sm:$0xff] %v9685_v57 }
 0x209   : > { %v3886_v4 = vadd.f32 %v9453_v23, %v3809_v25  ;;  %v5443_v24 = vrot.slane %v5411_v40, 1  ;;  %v5444_v58 = vrot.slane %v5412_v20, 1  ;;  %v5566_v30 = vmul.f32 %v9662_v29, %v14549_v34 }
 0x20a   : > { %v5520_v21 = vrot.slane %v5488_v17, 2  ;;  %v5521_v0 = vrot.slane %v5489_v42, 2  ;;  %v9691_v25 = vmul.f32 %v9672_v60, %v14548_v12  ;;  %v9695_v1 = vmul.f32 %v9672_v60, %v14549_v34 }
 0x20b   : > { %v3963_v23 = vadd.f32 %v9456_v3, %v3886_v4  ;;  %v9700_v3 = vld [vmem:[%s13515_s4 + $0x4d] ss:$0 sm:$0xff]  ;;  %v9704_v20 = vsel %vm1023_vm7, %v5093_v63, %v5094_v31  ;;  %v9707_v17 = vsel %vm385_vm0, %v5170_v39, %v5171_v32  ;;  %v9711_v42 = vmul.f32 %v9677_v50, %v14538_v15 }
 0x20c   : > { %14554 = vst [vmem:[#allocation19_spill] sm:$0xff] %v9700_v3  ;;  %v9714_v4 = vsel %vm1178_vm8, %v5247_v59, %v5248_v36  ;;  %v9717_v60 = vsel %vm1256_vm9, %v5324_v22, %v5325_v51  ;;  %v9721_v29 = vmul.f32 %v9685_v57, %v14548_v12  ;;  %v9725_v63 = vsel %vm789_vm4, %v5443_v24, %v5444_v58  ;;  %v9748_v24 = vld [vmem:[%s13515_s4 + $0xa] ss:$0 sm:$0xff] }
 0x20d   : > { %v4040_v40 = vadd.f32 %v9469_v9, %v3963_v23  ;;  %v5597_v9 = vrot.slane %v5565_v38, 3  ;;  %v5598_v39 = vrot.slane %v5566_v30, 3  ;;  %v9729_v32 = vmul.f32 %v9700_v3, %v14548_v12  ;;  %v6605_v38 = vld [vmem:[%s13515_s4 + $0x9] ss:$0 sm:$0xff]  ;;  %14556 = vst [vmem:[#allocation30_spill] sm:$0xff] %v9748_v24  ;;  %v14557_v30 = vld [vmem:[#allocation33_spill] sm:$0xff] }
 0x20e   : > { %v9732_v59 = vsel %vm867_vm5, %v5520_v21, %v5521_v0  ;;  %v5674_v22 = vrot.slane %v9691_v25, 4  ;;  %v5675_v36 = vrot.slane %v9695_v1, 4  ;;  %v9743_v23 = vmul.f32 %v9700_v3, %v14549_v34 }
 0x20f   : > { %v4117_v31 = vadd.f32 %v9492_v52, %v4040_v40  ;;  %14555 = vst [vmem:[#allocation23_spill] sm:$0xff] %v9732_v59  ;;  %v1324_v52 = vmul.f32 %v6605_v38, %v14470_v45  ;;  %v1346_v1 = vmul.f32 %v9748_v24, %v14470_v45  ;;  %v1347_v58 = vmul.f32 %v9748_v24, %v14471_v14  ;;  %v9767_v40 = vld [vmem:[%s13515_s4 + $0xc] ss:$0 sm:$0xff] }
 0x210   : > { %v1501_v24 = vmul.f32 %v9767_v40, %v14471_v14 }
 0x211   : > { %v4194_v51 = vadd.f32 %v9495_v44, %v4117_v31  ;;  %v1332_v21 = vadd.f32 %v1324_v52, %v14557_v30  ;;  %v9758_v44 = vld [vmem:[%s13515_s4 + $0xb] ss:$0 sm:$0xff]  ;;  %v1500_v31 = vmul.f32 %v9767_v40, %v14470_v45  ;;  %v1379_v52 = vrot.slane %v1346_v1, 1 }
 0x212   : > { %14558 = vst [vmem:[#allocation29_spill] sm:$0xff] %v9758_v44  ;;  %v1423_v0 = vmul.f32 %v9758_v44, %v14470_v45  ;;  %v1424_v25 = vmul.f32 %v9758_v44, %v14471_v14  ;;  %v1380_v30 = vrot.slane %v1347_v58, 1  ;;  %v9777_v44 = vld [vmem:[%s13515_s4 + $0xd] ss:$0 sm:$0xff]  ;;  %v9786_v58 = vsel %vm945_vm6, %v5597_v9, %v5598_v39 }
 0x213   : > { %v4215_v38 = vadd.f32 %v9499_v16, %v4194_v51  ;;  %v1533_v50 = vrot.slane %v1500_v31, 3  ;;  %14559 = vst [vmem:[#allocation105_spill] sm:$0xff] %v9777_v44  ;;  %v1577_v15 = vmul.f32 %v9777_v44, %v14470_v45  ;;  %v1534_v51 = vrot.slane %v1501_v24, 3  ;;  %v9792_v31 = vld [vmem:[%s13515_s4 + $0xe] ss:$0 sm:$0xff] }
 0x214   : > { %v1456_v3 = vrot.slane %v1423_v0, 2  ;;  %v1457_v57 = vrot.slane %v1424_v25, 2  ;;  %v1381_v16 = vsel %vm789_vm4, %v1379_v52, %v1380_v30  ;;  %v1578_v1 = vmul.f32 %v9777_v44, %v14471_v14  ;;  %14560 = vst [vmem:[#allocation112_spill] sm:$0xff] %v9792_v31  ;;  %v9800_v24 = vld [vmem:[%s13515_s4 + $0x4e] ss:$0 sm:$0xff] }
 0x215   : > { %v4236_v59 = vadd.f32 %v9503_v62, %v4215_v38  ;;  %v1409_v0 = vadd.f32 %v1381_v16, %v1332_v21  ;;  %v1654_v62 = vmul.f32 %v9792_v31, %v14470_v45  ;;  %v1610_v9 = vrot.slane %v1577_v15, 4  ;;  %v9808_v52 = vld [vmem:[%s13515_s4 + $0xf] ss:$0 sm:$0xff] }
 0x216   : > { %v1458_v25 = vsel %vm867_vm5, %v1456_v3, %v1457_v57  ;;  %v1611_v39 = vrot.slane %v1578_v1, 4  ;;  %v1655_v57 = vmul.f32 %v9792_v31, %v14471_v14  ;;  %v1535_v21 = vsel %vm945_vm6, %v1533_v50, %v1534_v51  ;;  %14561 = vst [vmem:[#allocation20_spill] sm:$0xff] %v9808_v52  ;;  %v9818_v1 = vld [vmem:[%s13515_s4 + $0x10] ss:$0 sm:$0xff] }
 0x217   : > { %v4313_v38 = vadd.f32 %v9523_v35, %v4236_v59  ;;  %v1486_v3 = vadd.f32 %v1458_v25, %v1409_v0  ;;  %v1731_v35 = vmul.f32 %v9808_v52, %v14470_v45  ;;  %v1732_v59 = vmul.f32 %v9808_v52, %v14471_v14 }
 0x218   : > { %v1687_v30 = vrot.slane %v1654_v62, 5  ;;  %v1688_v16 = vrot.slane %v1655_v57, 5  ;;  %v1808_v50 = vmul.f32 %v9818_v1, %v14470_v45  ;;  %v5751_v51 = vrot.slane %v9729_v32, 5 }
 0x219   : > { %v4390_v15 = vadd.f32 %v9531_v53, %v4313_v38  ;;  %v9825_v0 = vmul.f32 %v9800_v24, %v14548_v12  ;;  %v1563_v25 = vadd.f32 %v1535_v21, %v1486_v3  ;;  %v1809_v53 = vmul.f32 %v9818_v1, %v14471_v14  ;;  %v9833_v38 = vld [vmem:[%s13515_s4 + $0x4f] ss:$0 sm:$0xff] }
 0x21a   : > { %v1612_v57 = vsel %vm1023_vm7, %v1610_v9, %v1611_v39  ;;  %v1764_v52 = vrot.slane %v1731_v35, 6  ;;  %v1765_v31 = vrot.slane %v1732_v59, 6  ;;  %v9837_v32 = vsel %vm1023_vm7, %v5674_v22, %v5675_v36 }
 0x21b   : > { %v4467_v62 = vadd.f32 %v9575_v7, %v4390_v15  ;;  %v5752_v44 = vrot.slane %v9743_v23, 5  ;;  %v9842_v3 = vmul.f32 %v9800_v24, %v14549_v34  ;;  %v1640_v21 = vadd.f32 %v1612_v57, %v1563_v25  ;;  %v9848_v15 = vld [vmem:[%s13515_s4 + $0x50] ss:$0 sm:$0xff] }
 0x21c   : > { %v1689_v9 = vsel %vm385_vm0, %v1687_v30, %v1688_v16  ;;  %v1841_v39 = vrot.slane %v1808_v50, 7  ;;  %v1842_v35 = vrot.slane %v1809_v53, 7  ;;  %v9853_v22 = vmul.f32 %v9833_v38, %v14548_v12 }
 0x21d   : > { %v4544_v7 = vadd.f32 %v9578_v13, %v4467_v62  ;;  %v1717_v36 = vadd.f32 %v1689_v9, %v1640_v21  ;;  %v1927_v23 = vmul.f32 %v9052_v26, %v14491_v28  ;;  %v1928_v13 = vmul.f32 %v9052_v26, %v14493_v56 }
 0x21e   : > { %v5828_v25 = vrot.slane %v9825_v0, 6  ;;  %v1766_v62 = vsel %vm1178_vm8, %v1764_v52, %v1765_v31  ;;  %v2004_v30 = vmul.f32 %v9072_v49, %v14491_v28  ;;  %v9866_v16 = vmul.f32 %v9833_v38, %v14549_v34 }
 0x21f   : > { %v4621_v59 = vadd.f32 %v9590_v8, %v4544_v7  ;;  %v9870_v50 = vmul.f32 %v9848_v15, %v14549_v34  ;;  %v1794_v53 = vadd.f32 %v1766_v62, %v1717_v36  ;;  %v2005_v26 = vmul.f32 %v9072_v49, %v14493_v56  ;;  %v9887_v49 = vld [vmem:[%s13515_s4 + $0x12] ss:$0 sm:$0xff] }
 0x220   : > { %v9876_v0 = vsel %vm385_vm0, %v5751_v51, %v5752_v44  ;;  %v1843_v31 = vsel %vm1256_vm9, %v1841_v39, %v1842_v35  ;;  %v1884_v52 = vmul.f32 %v9082_v6, %v14471_v14  ;;  %v1960_v21 = vrot.slane %v1927_v23, 1 }
 0x221   : > { %v4698_v8 = vadd.f32 %v9608_v18, %v4621_v59  ;;  %v1871_v57 = vadd.f32 %v1843_v31, %v1794_v53  ;;  %v1961_v7 = vrot.slane %v1928_v13, 1  ;;  %v2081_v9 = vmul.f32 %v9089_v33, %v14491_v28 }
 0x222   : > { %v1905_v18 = vmul.f32 %v9887_v49, %v14491_v28  ;;  %v2037_v44 = vrot.slane %v2004_v30, 2  ;;  %v2082_v6 = vmul.f32 %v9089_v33, %v14493_v56  ;;  %v2038_v39 = vrot.slane %v2005_v26, 2 }
 0x223   : > { %v4775_v36 = vadd.f32 %v9616_v11, %v4698_v8  ;;  %v1892_v51 = vadd.f32 %v1884_v52, %v1871_v57  ;;  %v2158_v35 = vmul.f32 %v9103_v10, %v14491_v28  ;;  %v2159_v11 = vmul.f32 %v9103_v10, %v14493_v56 }
 0x224   : > { %v5829_v13 = vrot.slane %v9842_v3, 6  ;;  %v5905_v59 = vrot.slane %v9853_v22, 7  ;;  %v9902_v62 = vadd.f32 %v8889_v61, %v9145_v27  ;;  %v5906_v33 = vrot.slane %v9866_v16, 7 }
 0x225   : > { %v4796_v23 = vadd.f32 %v9582_v47, %v4775_v36  ;;  %v1913_v30 = vadd.f32 %v1905_v18, %v1892_v51  ;;  %v1962_v53 = vsel %vm789_vm4, %v1960_v21, %v1961_v7  ;;  %v2114_v26 = vrot.slane %v2081_v9, 3  ;;  %v14562_v9 = vld [vmem:[#allocation47_spill] sm:$0xff] }
 0x226   : > { %v2115_v31 = vrot.slane %v2082_v6, 3  ;;  %v2235_v10 = vmul.f32 %v9125_v46, %v14491_v28  ;;  %v2236_v47 = vmul.f32 %v9125_v46, %v14493_v56  ;;  %v2039_v52 = vsel %vm867_vm5, %v2037_v44, %v2038_v39  ;;  %v14563_v46 = vld [vmem:[#allocation3_spill] sm:$0xff] }
 0x227   : > { %v4817_v8 = vadd.f32 %v9594_v5, %v4796_v23  ;;  %v1990_v3 = vadd.f32 %v1962_v53, %v1913_v30  ;;  %v2191_v61 = vrot.slane %v2158_v35, 4  ;;  %v2192_v27 = vrot.slane %v2159_v11, 4 }
 0x228   : > { %v2312_v21 = vmul.f32 %v9112_v48, %v14491_v28  ;;  %v2313_v5 = vmul.f32 %v9112_v48, %v14493_v56  ;;  %v2389_v7 = vmul.f32 %v9119_v19, %v14491_v28  ;;  %v9921_v36 = vadd.f32 %v14562_v9, %v9148_v43  ;;  %v14564_v43 = vld [vmem:[#allocation113_spill] sm:$0xff] }
 0x229   : > { %v4894_v57 = vadd.f32 %v9619_v55, %v4817_v8  ;;  %v9925_v18 = vadd.f32 %v14563_v46, %v9151_v54  ;;  %v2067_v44 = vadd.f32 %v2039_v52, %v1990_v3  ;;  %v2390_v55 = vmul.f32 %v9119_v19, %v14493_v56  ;;  %v14568_v52 = vld [vmem:[#allocation111_spill] sm:$0xff] }
 0x22a   : > { %v2116_v51 = vsel %vm945_vm6, %v2114_v26, %v2115_v31  ;;  %v2268_v48 = vrot.slane %v2235_v10, 5  ;;  %v2269_v39 = vrot.slane %v2236_v47, 5  ;;  %v9932_v35 = vsel %vm1178_vm8, %v5828_v25, %v5829_v13  ;;  %v14565_v26 = vld [vmem:[#allocation45_spill] sm:$0xff]  ;;  %v14566_v31 = vld [vmem:[#allocation120_spill] sm:$0xff] }
 0x22b   : > { %v4971_v6 = vadd.f32 %v9643_v2, %v4894_v57  ;;  %v9936_v11 = vadd.f32 %v14564_v43, %v9195_v41  ;;  %v2144_v23 = vadd.f32 %v2116_v51, %v2067_v44  ;;  %v2193_v54 = vsel %vm1023_vm7, %v2191_v61, %v2192_v27  ;;  %v14567_v47 = vld [vmem:[#allocation32_spill] sm:$0xff]  ;;  %v14571_v44 = vld [vmem:[#allocation89_spill] sm:$0xff] }
 0x22c   : > { %v2345_v53 = vrot.slane %v2312_v21, 6  ;;  %v2346_v19 = vrot.slane %v2313_v5, 6  ;;  %v2422_v8 = vrot.slane %v2389_v7, 7  ;;  %v2423_v3 = vrot.slane %v2390_v55, 7  ;;  %v14570_v5 = vld [vmem:[#allocation37_spill] sm:$0xff] }
 0x22d   : > { %v5048_v30 = vadd.f32 %v9653_v37, %v4971_v6  ;;  %v2221_v2 = vadd.f32 %v2193_v54, %v2144_v23  ;;  %v2508_v10 = vmul.f32 %v14566_v31, %v14565_v26  ;;  %v2509_v25 = vmul.f32 %v14566_v31, %v14567_v47  ;;  %v14569_v37 = vld [vmem:[#allocation110_spill] sm:$0xff] }
 0x22e   : > { %v2270_v41 = vsel %vm385_vm0, %v2268_v48, %v2269_v39  ;;  %v2465_v61 = vmul.f32 %v14568_v52, %v14493_v56  ;;  %v2585_v27 = vmul.f32 %v14569_v37, %v14565_v26  ;;  %v2586_v21 = vmul.f32 %v14569_v37, %v14567_v47 }
 0x22f   : > { %v5125_v13 = vadd.f32 %v9704_v20, %v5048_v30  ;;  %v2298_v57 = vadd.f32 %v2270_v41, %v2221_v2  ;;  %v2662_v7 = vmul.f32 %v14570_v5, %v14565_v26  ;;  %v2663_v9 = vmul.f32 %v14570_v5, %v14567_v47  ;;  %v14572_v30 = vld [vmem:[#allocation85_spill] sm:$0xff] }
 0x230   : > { %v2347_v46 = vsel %vm1178_vm8, %v2345_v53, %v2346_v19  ;;  %v2739_v55 = vmul.f32 %v14571_v44, %v14565_v26  ;;  %v2740_v6 = vmul.f32 %v14571_v44, %v14567_v47  ;;  %v2424_v48 = vsel %vm1256_vm9, %v2422_v8, %v2423_v3  ;;  %v14573_v8 = vld [vmem:[#allocation91_spill] sm:$0xff] }
 0x231   : > { %v5202_v20 = vadd.f32 %v9707_v17, %v5125_v13  ;;  %v2375_v51 = vadd.f32 %v2347_v46, %v2298_v57  ;;  %v2541_v39 = vrot.slane %v2508_v10, 1  ;;  %v2542_v43 = vrot.slane %v2509_v25, 1  ;;  %v14574_v10 = vld [vmem:[#allocation121_spill] sm:$0xff]  ;;  %v14575_v25 = vld [vmem:[#allocation80_spill] sm:$0xff] }
 0x232   : > { %v2618_v54 = vrot.slane %v2585_v27, 2  ;;  %v2816_v2 = vmul.f32 %v14572_v30, %v14565_v26  ;;  %v2817_v17 = vmul.f32 %v14572_v30, %v14567_v47  ;;  %v2619_v19 = vrot.slane %v2586_v21, 2  ;;  %v14577_v21 = vld [vmem:[#allocation90_spill] sm:$0xff] }
 0x233   : > { %v5279_v23 = vadd.f32 %v9714_v4, %v5202_v20  ;;  %v2452_v53 = vadd.f32 %v2424_v48, %v2375_v51  ;;  %v2695_v31 = vrot.slane %v2662_v7, 3  ;;  %v2696_v13 = vrot.slane %v2663_v9, 3  ;;  %v14579_v48 = vld [vmem:[#allocation84_spill] sm:$0xff] }
 0x234   : > { %v2772_v52 = vrot.slane %v2739_v55, 4  ;;  %v2773_v37 = vrot.slane %v2740_v6, 4  ;;  %v2893_v3 = vmul.f32 %v14573_v8, %v14565_v26  ;;  %v9976_v4 = vsel %vm1256_vm9, %v5905_v59, %v5906_v33  ;;  %v14578_v55 = vld [vmem:[#allocation66_spill] sm:$0xff] }
 0x235   : > { %v5356_v41 = vadd.f32 %v9717_v60, %v5279_v23  ;;  %v9980_v27 = vadd.f32 %v14575_v25, %v14574_v10  ;;  %v2473_v57 = vadd.f32 %v2465_v61, %v2452_v53  ;;  %v2486_v60 = vmul.f32 %v14577_v21, %v14565_v26  ;;  %v14580_v23 = vld [vmem:[#allocation67_spill] sm:$0xff] }
 0x236   : > { %v2849_v7 = vrot.slane %v2816_v2, 5  ;;  %v2850_v9 = vrot.slane %v2817_v17, 5  ;;  %v2894_v16 = vmul.f32 %v14573_v8, %v14567_v47  ;;  %v2543_v22 = vsel %vm789_vm4, %v2541_v39, %v2542_v43  ;;  %v14581_v39 = vld [vmem:[#allocation58_spill] sm:$0xff]  ;;  %v14582_v17 = vld [vmem:[#allocation92_spill] sm:$0xff] }
 0x237   : > { %14576 = vst [vmem:[#allocation25_spill] sm:$0xff] %v9980_v27  ;;  %v5377_v5 = vadd.f32 %v9711_v42, %v5356_v41  ;;  %v2494_v20 = vadd.f32 %v2486_v60, %v2473_v57  ;;  %v2620_v59 = vsel %vm867_vm5, %v2618_v54, %v2619_v19  ;;  %v2697_v33 = vsel %vm945_vm6, %v2695_v31, %v2696_v13  ;;  %v14583_v13 = vld [vmem:[#allocation4_spill] sm:$0xff] }
 0x238   : > { %v2774_v61 = vsel %vm1023_vm7, %v2772_v52, %v2773_v37  ;;  %v2926_v44 = vrot.slane %v2893_v3, 6  ;;  %v2970_v42 = vmul.f32 %v14578_v55, %v14565_v26  ;;  %v2971_v51 = vmul.f32 %v14578_v55, %v14567_v47  ;;  %v14584_v37 = vld [vmem:[#allocation23_spill] sm:$0xff] }
 0x239   : > { %v5398_v46 = vadd.f32 %v9721_v29, %v5377_v5  ;;  %v2571_v6 = vadd.f32 %v2543_v22, %v2494_v20  ;;  %v3089_v30 = vmul.f32 %v14580_v23, %v14579_v48  ;;  %v3090_v43 = vmul.f32 %v14580_v23, %v14581_v39 }
 0x23a   : > { %v2851_v29 = vsel %vm385_vm0, %v2849_v7, %v2850_v9  ;;  %v2927_v2 = vrot.slane %v2894_v16, 6  ;;  %v3166_v53 = vmul.f32 %v14582_v17, %v14579_v48  ;;  %v3167_v31 = vmul.f32 %v14582_v17, %v14581_v39  ;;  %v14586_v16 = vld [vmem:[#allocation93_spill] sm:$0xff]  ;;  %v14589_v17 = vld [vmem:[#allocation34_spill] sm:$0xff] }
 0x23b   : > { %v5475_v54 = vadd.f32 %v9725_v63, %v5398_v46  ;;  %v2648_v19 = vadd.f32 %v2620_v59, %v2571_v6  ;;  %v3243_v41 = vmul.f32 %v14583_v13, %v14579_v48  ;;  %v3244_v52 = vmul.f32 %v14583_v13, %v14581_v39  ;;  %v14585_v63 = vld [vmem:[#allocation68_spill] sm:$0xff] }
 0x23c   : > { %v3003_v3 = vrot.slane %v2970_v42, 7  ;;  %v3320_v10 = vmul.f32 %v14585_v63, %v14579_v48  ;;  %v3321_v25 = vmul.f32 %v14585_v63, %v14581_v39  ;;  %v3004_v21 = vrot.slane %v2971_v51, 7  ;;  %v14587_v51 = vld [vmem:[#allocation55_spill] sm:$0xff] }
 0x23d   : > { %v5552_v8 = vadd.f32 %v14584_v37, %v5475_v54  ;;  %v2725_v57 = vadd.f32 %v2697_v33, %v2648_v19  ;;  %v3122_v60 = vrot.slane %v3089_v30, 1  ;;  %v3123_v5 = vrot.slane %v3090_v43, 1 }
 0x23e   : > { %v3199_v9 = vrot.slane %v3166_v53, 2  ;;  %v3397_v20 = vmul.f32 %v14586_v16, %v14579_v48  ;;  %v3398_v22 = vmul.f32 %v14586_v16, %v14581_v39  ;;  %v3200_v46 = vrot.slane %v3167_v31, 2 }
 0x23f   : > { %v5629_v7 = vadd.f32 %v9786_v58, %v5552_v8  ;;  %v2802_v59 = vadd.f32 %v2774_v61, %v2725_v57  ;;  %v3276_v55 = vrot.slane %v3243_v41, 3  ;;  %v3277_v42 = vrot.slane %v3244_v52, 3  ;;  %v14588_v58 = vld [vmem:[#allocation48_spill] sm:$0xff] }
 0x240   : > { %v3353_v23 = vrot.slane %v3320_v10, 4  ;;  %v3354_v33 = vrot.slane %v3321_v25, 4  ;;  %v3474_v30 = vmul.f32 %v14587_v51, %v14579_v48  ;;  %v3046_v54 = vmul.f32 %v14588_v58, %v14567_v47 }
 0x241   : > { %v5706_v6 = vadd.f32 %v9837_v32, %v5629_v7  ;;  %v2879_v43 = vadd.f32 %v2851_v29, %v2802_v59  ;;  %v3067_v53 = vmul.f32 %v14589_v17, %v14579_v48  ;;  %v3475_v61 = vmul.f32 %v14587_v51, %v14581_v39 }
 0x242   : > { %v2928_v31 = vsel %vm1178_vm8, %v2926_v44, %v2927_v2  ;;  %v3430_v32 = vrot.slane %v3397_v20, 5  ;;  %v3431_v13 = vrot.slane %v3398_v22, 5  ;;  %v3005_v52 = vsel %vm1256_vm9, %v3003_v3, %v3004_v21  ;;  %v14590_v44 = vld [vmem:[#allocation122_spill] sm:$0xff]  ;;  %v14594_v22 = vld [vmem:[#allocation71_spill] sm:$0xff] }
 0x243   : > { %v5783_v19 = vadd.f32 %v9876_v0, %v5706_v6  ;;  %v2956_v41 = vadd.f32 %v2928_v31, %v2879_v43  ;;  %v3124_v29 = vsel %vm789_vm4, %v3122_v60, %v3123_v5  ;;  %v3201_v37 = vsel %vm867_vm5, %v3199_v9, %v3200_v46  ;;  %v14591_v60 = vld [vmem:[#allocation39_spill] sm:$0xff]  ;;  %v14592_v5 = vld [vmem:[#allocation108_spill] sm:$0xff] }
 0x244   : > { %v3278_v63 = vsel %vm945_vm6, %v3276_v55, %v3277_v42  ;;  %v3355_v10 = vsel %vm1023_vm7, %v3353_v23, %v3354_v33  ;;  %v3507_v25 = vrot.slane %v3474_v30, 6  ;;  %v3508_v0 = vrot.slane %v3475_v61, 6  ;;  %v14593_v9 = vld [vmem:[#allocation72_spill] sm:$0xff]  ;;  %v14597_v33 = vld [vmem:[#allocation123_spill] sm:$0xff] }
 0x245   : > { %v5860_v8 = vadd.f32 %v9932_v35, %v5783_v19  ;;  %v3033_v57 = vadd.f32 %v3005_v52, %v2956_v41  ;;  %v3551_v2 = vmul.f32 %v14590_v44, %v14579_v48  ;;  %v3552_v7 = vmul.f32 %v14590_v44, %v14581_v39  ;;  %v14595_v46 = vld [vmem:[#allocation100_spill] sm:$0xff]  ;;  %v14599_v31 = vld [vmem:[#allocation83_spill] sm:$0xff] }
 0x246   : > { %v3432_v21 = vsel %vm385_vm0, %v3430_v32, %v3431_v13  ;;  %v10045_v35 = vmul.f32 %v14591_v60, %v14581_v39  ;;  %v10049_v16 = vmul.f32 %v14593_v9, %v14592_v5  ;;  %v3670_v59 = vmul.f32 %v14594_v22, %v14592_v5  ;;  %v14596_v42 = vld [vmem:[#allocation124_spill] sm:$0xff] }
 0x247   : > { %v5937_v3 = vadd.f32 %v9976_v4, %v5860_v8  ;;  %v3054_v20 = vadd.f32 %v3046_v54, %v3033_v57  ;;  %v3671_v55 = vmul.f32 %v14594_v22, %v14595_v46  ;;  %v3747_v4 = vmul.f32 %v14596_v42, %v14592_v5  ;;  %v14598_v54 = vld [vmem:[#allocation41_spill] sm:$0xff]  ;;  %v14600_v22 = vld [vmem:[#allocation36_spill] sm:$0xff] }
 0x248   : > { %v3748_v23 = vmul.f32 %v14596_v42, %v14595_v46  ;;  %v3824_v51 = vmul.f32 %v14597_v33, %v14592_v5  ;;  %v3825_v30 = vmul.f32 %v14597_v33, %v14595_v46  ;;  %v3584_v58 = vrot.slane %v3551_v2, 7 }
 0x249   : > { %v10058_v6 = vadd.f32 %v9870_v50, %v5937_v3  ;;  %v3075_v43 = vadd.f32 %v3067_v53, %v3054_v20  ;;  %v3901_v17 = vmul.f32 %v14598_v54, %v14592_v5  ;;  %v3902_v61 = vmul.f32 %v14598_v54, %v14595_v46 }
 0x24a   : > { %v3585_v19 = vrot.slane %v3552_v7, 7  ;;  %v3978_v32 = vmul.f32 %v14599_v31, %v14592_v5  ;;  %v3979_v13 = vmul.f32 %v14599_v31, %v14595_v46  ;;  %v3703_v52 = vrot.slane %v3670_v59, 1 }
 0x24b   : > { %v5966_v50 = vmul.f32 %v10058_v6, %v10058_v6  ;;  %v3152_v41 = vadd.f32 %v3124_v29, %v3075_v43  ;;  %v3704_v53 = vrot.slane %v3671_v55, 1  ;;  %v3780_v8 = vrot.slane %v3747_v4, 2  ;;  %v14601_v4 = vld [vmem:[#allocation59_spill] sm:$0xff] }
 0x24c   : > { %v3781_v44 = vrot.slane %v3748_v23, 2  ;;  %v3857_v2 = vrot.slane %v3824_v51, 3  ;;  %v3858_v3 = vrot.slane %v3825_v30, 3  ;;  %v3934_v9 = vrot.slane %v3901_v17, 4 }
 0x24d   : > { %v5974_v57 = vrot.slane %v5966_v50, 4  ;;  %v3229_v60 = vadd.f32 %v3201_v37, %v3152_v41  ;;  %v3935_v20 = vrot.slane %v3902_v61, 4  ;;  %v4055_v7 = vmul.f32 %v14600_v22, %v14592_v5 }
 0x24e   : > { %v4011_v33 = vrot.slane %v3978_v32, 5  ;;  %v4012_v54 = vrot.slane %v3979_v13, 5  ;;  %v4056_v31 = vmul.f32 %v14600_v22, %v14595_v46  ;;  %v3509_v59 = vsel %vm1178_vm8, %v3507_v25, %v3508_v0 }
 0x24f   : > { %v5975_v42 = vadd.f32 %v5974_v57, %v5966_v50  ;;  %v3306_v29 = vadd.f32 %v3278_v63, %v3229_v60  ;;  %v3586_v55 = vsel %vm1256_vm9, %v3584_v58, %v3585_v19  ;;  %v4132_v23 = vmul.f32 %v14601_v4, %v14592_v5  ;;  %v14602_v19 = vld [vmem:[#allocation49_spill] sm:$0xff] }
 0x250   : > { %v3705_v51 = vsel %vm789_vm4, %v3703_v52, %v3704_v53  ;;  %v3782_v30 = vsel %vm867_vm5, %v3780_v8, %v3781_v44  ;;  %v10087_v43 = vsel %vm945_vm6, %v3857_v2, %v3858_v3  ;;  %v10090_v61 = vsel %vm1023_vm7, %v3934_v9, %v3935_v20  ;;  %v14603_v52 = vld [vmem:[#allocation118_spill] sm:$0xff]  ;;  %v14605_v8 = vld [vmem:[#allocation81_spill] sm:$0xff]  ;;  %v14607_v9 = vld [vmem:[#allocation40_spill] sm:$0xff] }
 0x251   : > { %v5976_v37 = vrot.slane %v5975_v42, 2  ;;  %v3383_v17 = vadd.f32 %v3355_v10, %v3306_v29  ;;  %v4088_v63 = vrot.slane %v4055_v7, 6  ;;  %v4133_v25 = vmul.f32 %v14601_v4, %v14595_v46  ;;  %v14604_v10 = vld [vmem:[#allocation2_spill] sm:$0xff]  ;;  %v14608_v7 = vld [vmem:[#allocation52_spill] sm:$0xff]  ;;  %v14609_v29 = vld [vmem:[#allocation51_spill] sm:$0xff] }
 0x252   : > { %v10095_v58 = vsel %vm385_vm0, %v4011_v33, %v4012_v54  ;;  %v4089_v50 = vrot.slane %v4056_v31, 6  ;;  %v10099_v32 = vmul.f32 %v14602_v19, %v14595_v46  ;;  %v4165_v41 = vrot.slane %v4132_v23, 7  ;;  %v14606_v2 = vld [vmem:[#allocation42_spill] sm:$0xff] }
 0x253   : > { %v5977_v0 = vadd.f32 %v5976_v37, %v5975_v42  ;;  %v3460_v13 = vadd.f32 %v3432_v21, %v3383_v17  ;;  %v4251_v53 = vmul.f32 %v14604_v10, %v14603_v52  ;;  %v4252_v57 = vmul.f32 %v14604_v10, %v14605_v8  ;;  %v14610_v23 = vld [vmem:[#allocation54_spill] sm:$0xff] }
 0x254   : > { %v4328_v3 = vmul.f32 %v14606_v2, %v14603_v52  ;;  %v4329_v60 = vmul.f32 %v14606_v2, %v14605_v8  ;;  %v4405_v20 = vmul.f32 %v14607_v9, %v14603_v52  ;;  %v4406_v21 = vmul.f32 %v14607_v9, %v14605_v8 }
 0x255   : > { %v5978_v44 = vrot.slane %v5977_v0, 1  ;;  %v3537_v22 = vadd.f32 %v3509_v59, %v3460_v13  ;;  %v4482_v42 = vmul.f32 %v14608_v7, %v14603_v52  ;;  %v4483_v33 = vmul.f32 %v14608_v7, %v14605_v8 }
 0x256   : > { %v4166_v31 = vrot.slane %v4133_v25, 7  ;;  %v10121_v4 = vmul.f32 %v14609_v29, %v14603_v52  ;;  %v4559_v37 = vmul.f32 %v14610_v23, %v14603_v52  ;;  %v4284_v17 = vrot.slane %v4251_v53, 1 }
 0x257   : > { %v10117_v54 = vadd.f32 %v5978_v44, %v5977_v0  ;;  %v3614_v59 = vadd.f32 %v3586_v55, %v3537_v22  ;;  %v4285_v19 = vrot.slane %v4252_v57, 1  ;;  %v4560_v13 = vmul.f32 %v14610_v23, %v14605_v8  ;;  %v14611_v55 = vld [vmem:[#allocation13_spill] sm:$0xff] }
 0x258   : > { %v4361_v10 = vrot.slane %v4328_v3, 2  ;;  %v4362_v2 = vrot.slane %v4329_v60, 2  ;;  %v4438_v0 = vrot.slane %v4405_v20, 3  ;;  %v4439_v44 = vrot.slane %v4406_v21, 3  ;;  %v14612_v3 = vld [vmem:[#allocation73_spill] sm:$0xff] }
 0x259   : > { %6516 = vrsqrt.f32 %v10117_v54  ;;  %v3635_v25 = vadd.f32 %v10045_v35, %v3614_v59  ;;  %v4515_v9 = vrot.slane %v4482_v42, 4  ;;  %v4516_v7 = vrot.slane %v4483_v33, 4 }
 0x25a   : > { %v4090_v29 = vsel %vm1178_vm8, %v4088_v63, %v4089_v50  ;;  %v4592_v27 = vrot.slane %v4559_v37, 5  ;;  %v4636_v53 = vmul.f32 %v14611_v55, %v14603_v52  ;;  %v4637_v57 = vmul.f32 %v14611_v55, %v14605_v8  ;;  %v14613_v50 = vld [vmem:[#allocation43_spill] sm:$0xff] }
 0x25b   : > { %v3656_v22 = vadd.f32 %v10049_v16, %v3635_v25  ;;  %v4593_v23 = vrot.slane %v4560_v13, 5  ;;  %v4713_v60 = vmul.f32 %v14612_v3, %v14603_v52  ;;  %v4714_v35 = vmul.f32 %v14612_v3, %v14605_v8 }
 0x25c   : > { %v4167_v20 = vsel %vm1256_vm9, %v4165_v41, %v4166_v31  ;;  %v10141_v63 = vsel %vm789_vm4, %v4284_v17, %v4285_v19  ;;  %v4832_v21 = vmul.f32 %v14613_v50, %v14548_v12  ;;  %v4833_v42 = vmul.f32 %v14613_v50, %v14549_v34  ;;  %v14614_v17 = vld [vmem:[#allocation56_spill] sm:$0xff] }
 0x25d   : > { %v3733_v33 = vadd.f32 %v3705_v51, %v3656_v22  ;;  %v10148_v16 = vsel %vm867_vm5, %v4361_v10, %v4362_v2  ;;  %v10151_v37 = vsel %vm945_vm6, %v4438_v0, %v4439_v44  ;;  %v10154_v59 = vsel %vm1023_vm7, %v4515_v9, %v4516_v7  ;;  %v14615_v44 = vld [vmem:[#allocation14_spill] sm:$0xff] }
 0x25e   : > { %v4669_v41 = vrot.slane %v4636_v53, 6  ;;  %v4670_v31 = vrot.slane %v4637_v57, 6  ;;  %v4909_v19 = vmul.f32 %v14614_v17, %v14548_v12  ;;  %v4910_v13 = vmul.f32 %v14614_v17, %v14549_v34  ;;  %v14616_v22 = vld [vmem:[#allocation74_spill] sm:$0xff]  ;;  %v14618_v17 = vld [vmem:[#allocation57_spill] sm:$0xff] }
 0x25f   : > { %v3810_v25 = vadd.f32 %v3782_v30, %v3733_v33  ;;  %v10161_v51 = vsel %vm385_vm0, %v4592_v27, %v4593_v23  ;;  %v4746_v10 = vrot.slane %v4713_v60, 7  ;;  %v4747_v2 = vrot.slane %v4714_v35, 7 }
 0x260   : > { %v4865_v55 = vrot.slane %v4832_v21, 1  ;;  %v4866_v0 = vrot.slane %v4833_v42, 1  ;;  %v4986_v9 = vmul.f32 %v14615_v44, %v14548_v12  ;;  %v4987_v7 = vmul.f32 %v14615_v44, %v14549_v34  ;;  %v14617_v42 = vld [vmem:[#allocation98_spill] sm:$0xff] }
 0x261   : > { %vm6024_vm10 = vcmp.eq.f32.partialorder %v10117_v54, inf  ;;  %vm6026_vm11 = vcmp.eq.f32.partialorder %v10117_v54, 0.0  ;;  %v6027_v53 = vand.u32 2147483648, %v10117_v54  ;;  %v3887_v30 = vadd.f32 %v10087_v43, %v3810_v25 }
 0x262   : > { %v10172_v57 = vsel %vm1178_vm8, %v4669_v41, %v4670_v31  ;;  %v10176_v23 = vmul.f32 %v14616_v22, %v14605_v8  ;;  %v4942_v3 = vrot.slane %v4909_v19, 2  ;;  %v4943_v60 = vrot.slane %v4910_v13, 2  ;;  %v14621_v22 = vld [vmem:[#allocation21_spill] sm:$0xff] }
 0x263   : > { %v6517_v27 = vpop.eup %6516  ;;  %v3964_v50 = vadd.f32 %v10090_v61, %v3887_v30  ;;  %v10181_v21 = vsel %vm1256_vm9, %v4746_v10, %v4747_v2  ;;  %v10185_v43 = vmul.f32 %v14617_v42, %v14548_v12  ;;  %v10188_v33 = vsel %vm789_vm4, %v4865_v55, %v4866_v0  ;;  %v14619_v10 = vld [vmem:[#allocation104_spill] sm:$0xff]  ;;  %v14624_v42 = vld [vmem:[#allocation38_spill] sm:$0xff] }
 0x264   : > { %v6023_v35 = vmul.f32 %v6517_v27, %v10117_v54  ;;  %v5019_v41 = vrot.slane %v4986_v9, 3  ;;  %v5020_v31 = vrot.slane %v4987_v7, 3  ;;  %v5063_v19 = vmul.f32 %v14618_v17, %v14548_v12  ;;  %v14620_v9 = vld [vmem:[#allocation62_spill] sm:$0xff] }
 0x265   : > { %v4041_v61 = vadd.f32 %v10095_v58, %v3964_v50  ;;  %v5064_v25 = vmul.f32 %v14618_v17, %v14549_v34  ;;  %v5140_v2 = vmul.f32 %v14619_v10, %v14548_v12  ;;  %v10203_v0 = vsel %vm867_vm5, %v4942_v3, %v4943_v60  ;;  %v14623_v3 = vld [vmem:[#allocation27_spill] sm:$0xff] }
 0x266   : > { %v6025_v13 = vsel %vm6024_vm10, %v10117_v54, %v6023_v35  ;;  %v5141_v44 = vmul.f32 %v14619_v10, %v14549_v34  ;;  %v5217_v7 = vmul.f32 %v14620_v9, %v14548_v12  ;;  %v5218_v27 = vmul.f32 %v14620_v9, %v14549_v34  ;;  %v14625_v9 = vld [vmem:[#allocation61_spill] sm:$0xff] }
 0x267   : > { %v6028_v55 = vsel %vm6026_vm11, %v6027_v53, %v6025_v13  ;;  %v4118_v58 = vadd.f32 %v4090_v29, %v4041_v61  ;;  %v5294_v35 = vmul.f32 %v14621_v22, %v14548_v12  ;;  %v5096_v50 = vrot.slane %v5063_v19, 4  ;;  %v14622_v53 = vld [vmem:[#allocation109_spill] sm:$0xff] }
 0x268   : > { %v6078_v30 = vmin.f32 %v6028_v55, 80.0  ;;  %v5295_v54 = vmul.f32 %v14621_v22, %v14549_v34  ;;  %v5413_v60 = vmul.f32 %v14623_v3, %v14622_v53  ;;  %v5414_v17 = vmul.f32 %v14623_v3, %v14624_v42 }
 0x269   : > { %v4195_v10 = vadd.f32 %v4167_v20, %v4118_v58  ;;  %v5097_v8 = vrot.slane %v5064_v25, 4  ;;  %v5173_v29 = vrot.slane %v5140_v2, 5  ;;  %v5174_v61 = vrot.slane %v5141_v44, 5  ;;  %v14626_v2 = vld [vmem:[#allocation18_spill] sm:$0xff] }
 0x26a   : > { %v6086_v13 = vmul.f32 1.442695, %v6078_v30  ;;  %v5250_v52 = vrot.slane %v5217_v7, 6  ;;  %v5490_v46 = vmul.f32 %v14625_v9, %v14622_v53  ;;  %v5491_v19 = vmul.f32 %v14625_v9, %v14624_v42 }
 0x26b   : > { %v4216_v22 = vadd.f32 %v10099_v32, %v4195_v10  ;;  %v5251_v12 = vrot.slane %v5218_v27, 6  ;;  %v5327_v5 = vrot.slane %v5294_v35, 7  ;;  %v6134_v39 = vadd.f32 1e-20, %v6028_v55  ;;  %v14627_v27 = vld [vmem:[#allocation22_spill] sm:$0xff] }
 0x26c   : > { %6518 = vpow2.f32 %v6086_v13  ;;  %v5328_v48 = vrot.slane %v5295_v54, 7  ;;  %v5446_v3 = vrot.slane %v5413_v60, 1  ;;  %v5447_v30 = vrot.slane %v5414_v17, 1  ;;  %v14629_v60 = vld [vmem:[#allocation77_spill] sm:$0xff] }
 0x26d   : > { %v4237_v20 = vadd.f32 %v10121_v4, %v4216_v22  ;;  %v10226_v25 = vsel %vm945_vm6, %v5019_v41, %v5020_v31  ;;  %v10230_v44 = vmul.f32 %v14626_v2, %v14622_v53  ;;  %v10234_v7 = vmul.f32 %v14626_v2, %v14624_v42  ;;  %v14628_v31 = vld [vmem:[#allocation78_spill] sm:$0xff] }
 0x26e   : > { %v10237_v32 = vsel %vm1023_vm7, %v5096_v50, %v5097_v8  ;;  %v5523_v55 = vrot.slane %v5490_v46, 2  ;;  %v5524_v58 = vrot.slane %v5491_v19, 2  ;;  %v10241_v35 = vmul.f32 %v14627_v27, %v14622_v53  ;;  %v6615_v19 = vld [vmem:[%s13515_s4 + $0x1] ss:$0 sm:$0xff] }
 0x26f   : > { %v4314_v4 = vadd.f32 %v10141_v63, %v4237_v20  ;;  %v10245_v41 = vsel %vm385_vm0, %v5173_v29, %v5174_v61  ;;  %v10249_v54 = vmul.f32 %v14628_v31, %v14549_v34  ;;  %v10253_v17 = vmul.f32 %v14629_v60, %v14622_v53 }
 0x270   : > { %6520 = vrcp.f32 %v6134_v39  ;;  %v10256_v46 = vsel %vm1178_vm8, %v5250_v52, %v5251_v12  ;;  %v10259_v8 = vsel %vm1256_vm9, %v5327_v5, %v5328_v48  ;;  %v10262_v63 = vsel %vm789_vm4, %v5446_v3, %v5447_v30  ;;  %v14630_v48 = vld [vmem:[#allocation19_spill] sm:$0xff]  ;;  %v6614_v52 = vld [vmem:[%s13515_s4] ss:$0 sm:$0xff]  ;;  %v6619_v12 = vld [vmem:[%s13515_s4 + $0x4] ss:$0 sm:$0xff] }
 0x271   : > { %v4391_v50 = vadd.f32 %v10148_v16, %v4314_v4  ;;  %v5600_v13 = vrot.slane %v10230_v44, 3  ;;  %v5601_v10 = vrot.slane %v10234_v7, 3  ;;  %v10269_v29 = vmul.f32 %v14627_v27, %v14624_v42  ;;  %v6616_v30 = vld [vmem:[%s13516_s5] ss:$0 sm:$0xff]  ;;  %v6618_v7 = vld [vmem:[%s13515_s4 + $0x3] ss:$0 sm:$0xff] }
 0x272   : > { %v10272_v39 = vsel %vm867_vm5, %v5523_v55, %v5524_v58  ;;  %v10277_v5 = vmul.f32 %v14630_v48, %v14622_v53  ;;  %v738_v16 = vmul.f32 %v6614_v52, %v14470_v45  ;;  %v10286_v9 = vmul.f32 %v14630_v48, %v14624_v42 }
 0x273   : > { %v4468_v61 = vadd.f32 %v10151_v37, %v4391_v50  ;;  %v761_v22 = vmul.f32 %v6615_v19, %v14470_v45  ;;  %v762_v3 = vmul.f32 %v6615_v19, %v14471_v14  ;;  %v6617_v37 = vld [vmem:[%s13515_s4 + $0x2] ss:$0 sm:$0xff]  ;;  %v917_v55 = vmul.f32 %v6618_v7, %v14470_v45 }
 0x274   : > { %v746_v20 = vadd.f32 %v6616_v30, %v738_v16  ;;  %v839_v2 = vmul.f32 %v6617_v37, %v14470_v45  ;;  %v840_v44 = vmul.f32 %v6617_v37, %v14471_v14  ;;  %v918_v60 = vmul.f32 %v6618_v7, %v14471_v14 }
 0x275   : > { %v4545_v27 = vadd.f32 %v10154_v59, %v4468_v61  ;;  %v796_v4 = vrot.slane %v761_v22, 1  ;;  %v797_v31 = vrot.slane %v762_v3, 1  ;;  %v952_v16 = vrot.slane %v917_v55, 3 }
 0x276   : > { %v6519_v58 = vpop.eup %6518  ;;  %v874_v48 = vrot.slane %v839_v2, 2  ;;  %v875_v52 = vrot.slane %v840_v44, 2  ;;  %v953_v37 = vrot.slane %v918_v60, 3  ;;  %v995_v34 = vmul.f32 %v6619_v12, %v14470_v45  ;;  %v6620_v44 = vld [vmem:[%s13515_s4 + $0x5] ss:$0 sm:$0xff] }
 0x277   : > { %v6102_v50 = vadd.f32 1e-20, %v6519_v58  ;;  %v4622_v19 = vadd.f32 %v10161_v51, %v4545_v27  ;;  %v798_v30 = vsel %vm789_vm4, %v796_v4, %v797_v31  ;;  %v996_v22 = vmul.f32 %v6619_v12, %v14471_v14  ;;  %v6621_v12 = vld [vmem:[%s13515_s4 + $0x6] ss:$0 sm:$0xff]  ;;  %v6622_v60 = vld [vmem:[%s13515_s4 + $0x7] ss:$0 sm:$0xff] }
 0x278   : > { %v824_v59 = vadd.f32 %v798_v30, %v746_v20  ;;  %v876_v61 = vsel %vm867_vm5, %v874_v48, %v875_v52  ;;  %v954_v2 = vsel %vm945_vm6, %v952_v16, %v953_v37  ;;  %v1030_v51 = vrot.slane %v995_v34, 4 }
 0x279   : > { %6522 = vrcp.f32 %v6102_v50  ;;  %v4699_v3 = vadd.f32 %v10172_v57, %v4622_v19  ;;  %v1073_v7 = vmul.f32 %v6620_v44, %v14470_v45  ;;  %v1031_v27 = vrot.slane %v996_v22, 4 }
 0x27a   : > { %v6521_v55 = vpop.eup %6520  ;;  %v902_v58 = vadd.f32 %v876_v61, %v824_v59  ;;  %v1074_v20 = vmul.f32 %v6620_v44, %v14471_v14  ;;  %v1150_v57 = vmul.f32 %v6621_v12, %v14470_v45  ;;  %v1151_v31 = vmul.f32 %v6621_v12, %v14471_v14 }
 0x27b   : > { %v4776_v4 = vadd.f32 %v10181_v21, %v4699_v3  ;;  %v1107_v34 = vrot.slane %v1073_v7, 5  ;;  %v1228_v50 = vmul.f32 %v6622_v60, %v14470_v45  ;;  %v10333_v48 = vsel %vm945_vm6, %v5600_v13, %v5601_v10  ;;  %v14631_v7 = vld [vmem:[#allocation30_spill] sm:$0xff] }
 0x27c   : > { %v980_v52 = vadd.f32 %v954_v2, %v902_v58  ;;  %v1032_v16 = vsel %vm1023_vm7, %v1030_v51, %v1031_v27  ;;  %v1108_v19 = vrot.slane %v1074_v20, 5  ;;  %v1185_v37 = vrot.slane %v1150_v57, 6 }
 0x27d   : > { %v4797_v30 = vadd.f32 %v10176_v23, %v4776_v4  ;;  %v1186_v21 = vrot.slane %v1151_v31, 6  ;;  %v1229_v59 = vmul.f32 %v6622_v60, %v14471_v14  ;;  %v5678_v61 = vrot.slane %v10269_v29, 4 }
 0x27e   : > { %v5754_v22 = vrot.slane %v10277_v5, 5  ;;  %v10342_v45 = vmul.f32 %v9800_v24, %v14622_v53  ;;  %v1058_v13 = vadd.f32 %v1032_v16, %v980_v52  ;;  %v1109_v3 = vsel %vm385_vm0, %v1107_v34, %v1108_v19  ;;  %v14633_v34 = vld [vmem:[#allocation29_spill] sm:$0xff] }
 0x27f   : > { %v4818_v10 = vadd.f32 %v10185_v43, %v4797_v30  ;;  %v1263_v2 = vrot.slane %v1228_v50, 7  ;;  %v1264_v51 = vrot.slane %v1229_v59, 7  ;;  %v5755_v23 = vrot.slane %v10286_v9, 5 }
 0x280   : > { %v1135_v44 = vadd.f32 %v1109_v3, %v1058_v13  ;;  %v1348_v58 = vmul.f32 %v14631_v7, %v14491_v28  ;;  %v1349_v29 = vmul.f32 %v14631_v7, %v14493_v56  ;;  %v10354_v27 = vmul.f32 %v9800_v24, %v14624_v42  ;;  %v14634_v3 = vld [vmem:[#allocation105_spill] sm:$0xff] }
 0x281   : > { %v4895_v5 = vadd.f32 %v10188_v33, %v4818_v10  ;;  %v10358_v43 = vmul.f32 %v9833_v38, %v14622_v53  ;;  %v1187_v20 = vsel %vm1178_vm8, %v1185_v37, %v1186_v21  ;;  %v14632_v12 = vrot.slane %v10241_v35, 4  ;;  %v6623_v35 = vld [vmem:[%s13515_s4 + $0x8] ss:$0 sm:$0xff] }
 0x282   : > { %v1213_v4 = vadd.f32 %v1187_v20, %v1135_v44  ;;  %v1425_v33 = vmul.f32 %v14633_v34, %v14491_v28  ;;  %v1426_v24 = vmul.f32 %v14633_v34, %v14493_v56  ;;  %v5831_v50 = vrot.slane %v10342_v45, 6 }
 0x283   : > { %v6523_v9 = vpop.eup %6522  ;;  %v10364_v57 = vsel %vm1023_vm7, %v14632_v12, %v5678_v61  ;;  %v4972_v60 = vadd.f32 %v10203_v0, %v4895_v5  ;;  %v1265_v52 = vsel %vm1256_vm9, %v1263_v2, %v1264_v51  ;;  %v1304_v19 = vmul.f32 %v6623_v35, %v14471_v14 }
 0x284   : > { %v6126_v31 = vsub.f32 1.0, %v6523_v9  ;;  %v1291_v16 = vadd.f32 %v1265_v52, %v1213_v4  ;;  %v1382_v30 = vrot.slane %v1348_v58, 1  ;;  %v1383_v37 = vrot.slane %v1349_v29, 1  ;;  %v14636_v58 = vld [vmem:[#allocation112_spill] sm:$0xff] }
 0x285   : > { %v5049_v59 = vadd.f32 %v10226_v25, %v4972_v60  ;;  %v1502_v61 = vmul.f32 %v9767_v40, %v14491_v28  ;;  %v1503_v0 = vmul.f32 %v9767_v40, %v14493_v56  ;;  %v1459_v13 = vrot.slane %v1425_v33, 2  ;;  %v14635_v40 = vld [vmem:[#allocation35_spill] sm:$0xff]  ;;  %v14637_v33 = vld [vmem:[#allocation20_spill] sm:$0xff] }
 0x286   : > { %v6143_v21 = vmul.f32 %v6521_v55, %v6126_v31  ;;  %v1312_v45 = vadd.f32 %v1304_v19, %v1291_v16  ;;  %v1460_v10 = vrot.slane %v1426_v24, 2  ;;  %v1579_v2 = vmul.f32 %v14634_v3, %v14491_v28 }
 0x287   : > { %v5126_v14 = vadd.f32 %v10237_v32, %v5049_v59  ;;  %v10388_v55 = vmul.f32 %v9833_v38, %v14624_v42  ;;  %v1580_v25 = vmul.f32 %v14634_v3, %v14493_v56  ;;  %v10393_v44 = vsel %vm385_vm0, %v5754_v22, %v5755_v23 }
 0x288   : > { %v6158_v51 = vmul.f32 %v6143_v21, %v10058_v6  ;;  %v1333_v7 = vadd.f32 %v14635_v40, %v1312_v45  ;;  %v1656_v29 = vmul.f32 %v14636_v58, %v14491_v28  ;;  %v1657_v6 = vmul.f32 %v14636_v58, %v14493_v56  ;;  %v14638_v21 = vld [vmem:[#allocation87_spill] sm:$0xff]  ;;  %v6626_v58 = vld [vmem:[%s13515_s4 + $0x15] ss:$0 sm:$0xff] }
 0x289   : > { %v5203_v32 = vadd.f32 %v10245_v41, %v5126_v14  ;;  %v1384_v38 = vsel %vm789_vm4, %v1382_v30, %v1383_v37  ;;  %v1536_v5 = vrot.slane %v1502_v61, 3  ;;  %v1537_v20 = vrot.slane %v1503_v0, 3 }
 0x28a   : > { %6166 = vxpose.xlu0.b32.start [1/8] (short) %v6158_v51, 128  ;;  %v5832_v9 = vrot.slane %v10354_v27, 6  ;;  %v1410_v12 = vadd.f32 %v1384_v38, %v1333_v7  ;;  %v1461_v22 = vsel %vm867_vm5, %v1459_v13, %v1460_v10  ;;  %v1613_v23 = vrot.slane %v1579_v2, 4  ;;  %v6627_v38 = vld [vmem:[%s13515_s4 + $0x11] ss:$0 sm:$0xff] }
 0x28b   : > { %v5280_v4 = vadd.f32 %v10256_v46, %v5203_v32  ;;  %v1614_v34 = vrot.slane %v1580_v25, 4  ;;  %v1733_v24 = vmul.f32 %v14637_v33, %v14491_v28  ;;  %v1734_v31 = vmul.f32 %v14637_v33, %v14493_v56 }
 0x28c   : > { %v5908_v41 = vrot.slane %v10358_v43, 7  ;;  %v1487_v60 = vadd.f32 %v1461_v22, %v1410_v12  ;;  %v1690_v52 = vrot.slane %v1656_v29, 5  ;;  %v1691_v16 = vrot.slane %v1657_v6, 5  ;;  %v10499_v43 = vld [vmem:[%s13515_s4 + $0x19] ss:$0 sm:$0xff] }
 0x28d   : > { %v5357_v27 = vadd.f32 %v10259_v8, %v5280_v4  ;;  %v1538_v35 = vsel %vm945_vm6, %v1536_v5, %v1537_v20  ;;  %v1810_v19 = vmul.f32 %v9818_v1, %v14491_v28  ;;  %v1811_v46 = vmul.f32 %v9818_v1, %v14493_v56  ;;  %v14639_v1 = vld [vmem:[#allocation107_spill] sm:$0xff] }
 0x28e   : > { %v5909_v30 = vrot.slane %v10388_v55, 7  ;;  %v10419_v37 = vmul.f32 %v9848_v15, %v14624_v42  ;;  %v10423_v59 = vadd.f32 %v14638_v21, %v9902_v62  ;;  %v1564_v61 = vadd.f32 %v1538_v35, %v1487_v60  ;;  %v14640_v21 = vld [vmem:[#allocation60_spill] sm:$0xff] }
 0x28f   : > { %v5378_v8 = vadd.f32 %v10249_v54, %v5357_v27  ;;  %v1615_v0 = vsel %vm1023_vm7, %v1613_v23, %v1614_v34  ;;  %v1767_v45 = vrot.slane %v1733_v24, 6  ;;  %v1768_v28 = vrot.slane %v1734_v31, 6  ;;  %v6624_v54 = vld [vmem:[%s13515_s4 + $0x13] ss:$0 sm:$0xff] }
 0x290   : > { %v5833_v13 = vsel %vm1178_vm8, %v5831_v50, %v5832_v9  ;;  %v10430_v10 = vadd.f32 %v14639_v1, %v9921_v36  ;;  %v1641_v3 = vadd.f32 %v1615_v0, %v1564_v61  ;;  %v1692_v15 = vsel %vm385_vm0, %v1690_v52, %v1691_v16  ;;  %v6625_v36 = vld [vmem:[%s13515_s4 + $0x14] ss:$0 sm:$0xff]  ;;  %v6629_v16 = vld [vmem:[%s13515_s4 + $0x17] ss:$0 sm:$0xff]  ;;  %v10482_v0 = vld [vmem:[%s13515_s4 + $0x18] ss:$0 sm:$0xff] }
 0x291   : > { %v5399_v2 = vadd.f32 %v10253_v17, %v5378_v8  ;;  %v1844_v62 = vrot.slane %v1810_v19, 7  ;;  %v1845_v51 = vrot.slane %v1811_v46, 7  ;;  %v1929_v14 = vmul.f32 %v6624_v54, %v14565_v26 }
 0x292   : > { %v1718_v55 = vadd.f32 %v1692_v15, %v1641_v3  ;;  %v1930_v50 = vmul.f32 %v6624_v54, %v14567_v47  ;;  %v2006_v25 = vmul.f32 %v6625_v36, %v14565_v26  ;;  %v2007_v40 = vmul.f32 %v6625_v36, %v14567_v47 }
 0x293   : > { %v5476_v17 = vadd.f32 %v10262_v63, %v5399_v2  ;;  %v1769_v7 = vsel %vm1178_vm8, %v1767_v45, %v1768_v28  ;;  %v2083_v29 = vmul.f32 %v6626_v58, %v14565_v26  ;;  %v2084_v6 = vmul.f32 %v6626_v58, %v14567_v47  ;;  %v6628_v63 = vld [vmem:[%s13515_s4 + $0x16] ss:$0 sm:$0xff] }
 0x294   : > { %v1795_v32 = vadd.f32 %v1769_v7, %v1718_v55  ;;  %v1885_v5 = vmul.f32 %v6627_v38, %v14493_v56  ;;  %v2160_v20 = vmul.f32 %v6628_v63, %v14565_v26  ;;  %v2161_v9 = vmul.f32 %v6628_v63, %v14567_v47  ;;  %v10508_v55 = vld [vmem:[%s13515_s4 + $0x1c] ss:$0 sm:$0xff] }
 0x295   : > { %v5553_v12 = vadd.f32 %v10272_v39, %v5476_v17  ;;  %v1846_v22 = vsel %vm1256_vm9, %v1844_v62, %v1845_v51  ;;  %v1906_v23 = vmul.f32 %v9887_v49, %v14565_v26  ;;  %v1963_v4 = vrot.slane %v1929_v14, 1 }
 0x296   : > { %v1872_v34 = vadd.f32 %v1846_v22, %v1795_v32  ;;  %v1964_v33 = vrot.slane %v1930_v50, 1  ;;  %v2040_v24 = vrot.slane %v2006_v25, 2  ;;  %v2041_v56 = vrot.slane %v2007_v40, 2  ;;  %v14644_v50 = vld [vmem:[#allocation84_spill] sm:$0xff]  ;;  %v14645_v40 = vld [vmem:[#allocation58_spill] sm:$0xff] }
 0x297   : > { %v5630_v31 = vadd.f32 %v10333_v48, %v5553_v12  ;;  %v2117_v60 = vrot.slane %v2083_v29, 3  ;;  %v2118_v52 = vrot.slane %v2084_v6, 3  ;;  %v2237_v39 = vmul.f32 %v6629_v16, %v14565_v26  ;;  %v14642_v48 = vld [vmem:[#allocation5_spill] sm:$0xff] }
 0x298   : > { %v1893_v27 = vadd.f32 %v1885_v5, %v1872_v34  ;;  %v2194_v35 = vrot.slane %v2160_v20, 4  ;;  %v2195_v19 = vrot.slane %v2161_v9, 4  ;;  %v2238_v49 = vmul.f32 %v6629_v16, %v14567_v47  ;;  %v10526_v6 = vld [vmem:[%s13515_s4 + $0x1e] ss:$0 sm:$0xff]  ;;  %v10536_v20 = vld [vmem:[%s13515_s4 + $0x1f] ss:$0 sm:$0xff] }
 0x299   : > { %v5707_v46 = vadd.f32 %v10364_v57, %v5630_v31  ;;  %v10473_v61 = vadd.f32 %v14640_v21, %v9925_v18  ;;  %v10477_v8 = vadd.f32 %v14642_v48, %v9936_v11  ;;  %v2314_v45 = vmul.f32 %v10482_v0, %v14565_v26  ;;  %v10564_v48 = vld [vmem:[%s13515_s4 + $0x1a] ss:$0 sm:$0xff] }
 0x29a   : > { %v5910_v57 = vsel %vm1256_vm9, %v5908_v41, %v5909_v30  ;;  %v1914_v28 = vadd.f32 %v1906_v23, %v1893_v27  ;;  %v1965_v18 = vsel %vm789_vm4, %v1963_v4, %v1964_v33  ;;  %v2042_v1 = vsel %vm867_vm5, %v2040_v24, %v2041_v56 }
 0x29b   : > { %14641 = vst [vmem:[#allocation96_spill] sm:$0xff] %v10473_v61  ;;  %14643 = vst [vmem:[#allocation7_spill] sm:$0xff] %v10477_v8  ;;  %v5784_v11 = vadd.f32 %v10393_v44, %v5707_v46  ;;  %v2119_v3 = vsel %vm945_vm6, %v2117_v60, %v2118_v52  ;;  %v2271_v15 = vrot.slane %v2237_v39, 5  ;;  %v2315_v2 = vmul.f32 %v10482_v0, %v14567_v47  ;;  %v10550_v39 = vld [vmem:[%s13515_s4 + $0x20] ss:$0 sm:$0xff] }
 0x29c   : > { %v1991_v62 = vadd.f32 %v1965_v18, %v1914_v28  ;;  %v2196_v51 = vsel %vm1023_vm7, %v2194_v35, %v2195_v19  ;;  %v2272_v54 = vrot.slane %v2238_v49, 5  ;;  %v2391_v41 = vmul.f32 %v10499_v43, %v14565_v26  ;;  %v10517_v26 = vld [vmem:[%s13515_s4 + $0x1d] ss:$0 sm:$0xff] }
 0x29d   : > { %v5861_v30 = vadd.f32 %v5833_v13, %v5784_v11  ;;  %v2348_v44 = vrot.slane %v2314_v45, 6  ;;  %v2392_v14 = vmul.f32 %v10499_v43, %v14567_v47  ;;  %v2510_v36 = vmul.f32 %v10508_v55, %v14644_v50  ;;  %v10581_v11 = vld [vmem:[%s13515_s4 + $0x1b] ss:$0 sm:$0xff] }
 0x29e   : > { %v2068_v25 = vadd.f32 %v2042_v1, %v1991_v62  ;;  %v2511_v17 = vmul.f32 %v10508_v55, %v14645_v40  ;;  %v2587_v13 = vmul.f32 %v10517_v26, %v14644_v50  ;;  %v2588_v7 = vmul.f32 %v10517_v26, %v14645_v40 }
 0x29f   : > { %v5938_v58 = vadd.f32 %v5910_v57, %v5861_v30  ;;  %v2349_v29 = vrot.slane %v2315_v2, 6  ;;  %v2664_v32 = vmul.f32 %v10526_v6, %v14644_v50  ;;  %v2665_v38 = vmul.f32 %v10526_v6, %v14645_v40  ;;  %v10571_v57 = vld [vmem:[%s13515_s4 + $0x21] ss:$0 sm:$0xff] }
 0x2a0   : > { %v2145_v5 = vadd.f32 %v2119_v3, %v2068_v25  ;;  %v2273_v63 = vsel %vm385_vm0, %v2271_v15, %v2272_v54  ;;  %v2741_v9 = vmul.f32 %v10536_v20, %v14644_v50  ;;  %v2742_v12 = vmul.f32 %v10536_v20, %v14645_v40  ;;  %v10597_v25 = vld [vmem:[%s13515_s4 + $0x22] ss:$0 sm:$0xff] }
 0x2a1   : > { %v10543_v22 = vadd.f32 %v10419_v37, %v5938_v58  ;;  %v2425_v23 = vrot.slane %v2391_v41, 7  ;;  %v2426_v4 = vrot.slane %v2392_v14, 7  ;;  %v2544_v34 = vrot.slane %v2510_v36, 1 }
 0x2a2   : > { %v2222_v33 = vadd.f32 %v2196_v51, %v2145_v5  ;;  %v2545_v24 = vrot.slane %v2511_v17, 1  ;;  %v2621_v56 = vrot.slane %v2587_v13, 2  ;;  %v2622_v31 = vrot.slane %v2588_v7, 2  ;;  %v14647_v5 = vld [vmem:[#allocation100_spill] sm:$0xff] }
 0x2a3   : > { %v5967_v60 = vmul.f32 %v10543_v22, %v10543_v22  ;;  %v2698_v52 = vrot.slane %v2664_v32, 3  ;;  %v2699_v16 = vrot.slane %v2665_v38, 3  ;;  %v10554_v37 = vmul.f32 %v10550_v39, %v14644_v50  ;;  %v14646_v32 = vld [vmem:[#allocation108_spill] sm:$0xff] }
 0x2a4   : > { %v2299_v27 = vadd.f32 %v2273_v63, %v2222_v33  ;;  %v2775_v35 = vrot.slane %v2741_v9, 4  ;;  %v2776_v19 = vrot.slane %v2742_v12, 4  ;;  %v10558_v49 = vmul.f32 %v10550_v39, %v14645_v40  ;;  %v10615_v12 = vld [vmem:[%s13515_s4 + $0x26] ss:$0 sm:$0xff] }
 0x2a5   : > { %v5980_v46 = vrot.slane %v5967_v60, 4  ;;  %v2350_v21 = vsel %vm1178_vm8, %v2348_v44, %v2349_v29  ;;  %v2466_v45 = vmul.f32 %v10564_v48, %v14567_v47  ;;  %v10575_v28 = vmul.f32 %v10571_v57, %v14644_v50  ;;  %v10606_v29 = vld [vmem:[%s13515_s4 + $0x25] ss:$0 sm:$0xff]  ;;  %14648 = vst [vmem:[#allocation97_spill] sm:$0xff] %v10615_v12 }
 0x2a6   : > { %v2376_v18 = vadd.f32 %v2350_v21, %v2299_v27  ;;  %v2427_v1 = vsel %vm1256_vm9, %v2425_v23, %v2426_v4  ;;  %v2487_v47 = vmul.f32 %v10581_v11, %v14644_v50  ;;  %v2896_v3 = vmul.f32 %v10571_v57, %v14645_v40  ;;  %v10642_v27 = vld [vmem:[%s13515_s4 + $0x29] ss:$0 sm:$0xff] }
 0x2a7   : > { %v5981_v15 = vadd.f32 %v5980_v46, %v5967_v60  ;;  %v2546_v2 = vsel %vm789_vm4, %v2544_v34, %v2545_v24  ;;  %v2623_v62 = vsel %vm867_vm5, %v2621_v56, %v2622_v31  ;;  %v2700_v51 = vsel %vm945_vm6, %v2698_v52, %v2699_v16  ;;  %v10624_v34 = vld [vmem:[%s13515_s4 + $0x27] ss:$0 sm:$0xff]  ;;  %v10633_v31 = vld [vmem:[%s13515_s4 + $0x28] ss:$0 sm:$0xff]  ;;  %14651 = vst [vmem:[#allocation82_spill] sm:$0xff] %v10642_v27 }
 0x2a8   : > { %v2453_v54 = vadd.f32 %v2427_v1, %v2376_v18  ;;  %v2777_v41 = vsel %vm1023_vm7, %v2775_v35, %v2776_v19  ;;  %v2852_v30 = vrot.slane %v10554_v37, 5  ;;  %v2853_v44 = vrot.slane %v10558_v49, 5  ;;  %14649 = vst [vmem:[#allocation76_spill] sm:$0xff] %v10624_v34  ;;  %14650 = vst [vmem:[#allocation102_spill] sm:$0xff] %v10633_v31 }
 0x2a9   : > { %v5982_v14 = vrot.slane %v5981_v15, 2  ;;  %v2929_v36 = vrot.slane %v10575_v28, 6  ;;  %v2972_v17 = vmul.f32 %v10597_v25, %v14644_v50  ;;  %v2973_v13 = vmul.f32 %v10597_v25, %v14645_v40 }
 0x2aa   : > { %v2474_v7 = vadd.f32 %v2466_v45, %v2453_v54  ;;  %v2930_v58 = vrot.slane %v2896_v3, 6  ;;  %v3091_v38 = vmul.f32 %v10606_v29, %v14646_v32  ;;  %v3092_v63 = vmul.f32 %v10606_v29, %v14647_v5 }
 0x2ab   : > { %v5983_v9 = vadd.f32 %v5982_v14, %v5981_v15  ;;  %v3168_v23 = vmul.f32 %v10615_v12, %v14646_v32  ;;  %v3169_v4 = vmul.f32 %v10615_v12, %v14647_v5  ;;  %v3245_v33 = vmul.f32 %v10624_v34, %v14646_v32  ;;  %v10968_v12 = vld [vmem:[%s13515_s4 + $0x3f] ss:$0 sm:$0xff] }
 0x2ac   : > { %v2495_v24 = vadd.f32 %v2487_v47, %v2474_v7  ;;  %v3246_v56 = vmul.f32 %v10624_v34, %v14647_v5  ;;  %v3322_v60 = vmul.f32 %v10633_v31, %v14646_v32  ;;  %v3323_v52 = vmul.f32 %v10633_v31, %v14647_v5  ;;  %v10849_v34 = vld [vmem:[%s13515_s4 + $0x35] ss:$0 sm:$0xff]  ;;  %14683 = vst [vmem:[#allocation23_spill] sm:$0xff] %v10968_v12 }
 0x2ad   : > { %v5984_v16 = vrot.slane %v5983_v9, 1  ;;  %v3006_v37 = vrot.slane %v2972_v17, 7  ;;  %v3399_v35 = vmul.f32 %v10642_v27, %v14646_v32  ;;  %v3400_v19 = vmul.f32 %v10642_v27, %v14647_v5  ;;  %14673 = vst [vmem:[#allocation89_spill] sm:$0xff] %v10849_v34 }
 0x2ae   : > { %v2572_v49 = vadd.f32 %v2546_v2, %v2495_v24  ;;  %v3007_v46 = vrot.slane %v2973_v13, 7  ;;  %v3125_v21 = vrot.slane %v3091_v38, 1  ;;  %v3126_v45 = vrot.slane %v3092_v63, 1  ;;  %v10654_v2 = vld [vmem:[%s13515_s4 + $0x2a] ss:$0 sm:$0xff] }
 0x2af   : > { %v10648_v28 = vadd.f32 %v5984_v16, %v5983_v9  ;;  %v3202_v18 = vrot.slane %v3168_v23, 2  ;;  %v3203_v1 = vrot.slane %v3169_v4, 2  ;;  %v3279_v47 = vrot.slane %v3245_v33, 3  ;;  %14652 = vst [vmem:[#allocation79_spill] sm:$0xff] %v10654_v2  ;;  %v10669_v23 = vld [vmem:[%s13515_s4 + $0x24] ss:$0 sm:$0xff] }
 0x2b0   : > { %v2649_v3 = vadd.f32 %v2623_v62, %v2572_v49  ;;  %v3280_v15 = vrot.slane %v3246_v56, 3  ;;  %v3356_v54 = vrot.slane %v3322_v60, 4  ;;  %v3357_v14 = vrot.slane %v3323_v52, 4  ;;  %v10662_v62 = vld [vmem:[%s13515_s4 + $0x23] ss:$0 sm:$0xff]  ;;  %14654 = vst [vmem:[#allocation6_spill] sm:$0xff] %v10669_v23 }
 0x2b1   : > { %6524 = vrsqrt.f32 %v10648_v28  ;;  %v3433_v17 = vrot.slane %v3399_v35, 5  ;;  %v3434_v7 = vrot.slane %v3400_v19, 5  ;;  %v3476_v13 = vmul.f32 %v10654_v2, %v14646_v32  ;;  %14653 = vst [vmem:[#allocation106_spill] sm:$0xff] %v10662_v62  ;;  %v10687_v52 = vld [vmem:[%s13515_s4 + $0x2b] ss:$0 sm:$0xff]  ;;  %v14657_v49 = vld [vmem:[#allocation118_spill] sm:$0xff] }
 0x2b2   : > { %v2726_v38 = vadd.f32 %v2700_v51, %v2649_v3  ;;  %v2854_v63 = vsel %vm385_vm0, %v2852_v30, %v2853_v44  ;;  %v3047_v9 = vmul.f32 %v10662_v62, %v14645_v40  ;;  %v3068_v4 = vmul.f32 %v10669_v23, %v14646_v32  ;;  %14655 = vst [vmem:[#allocation28_spill] sm:$0xff] %v10687_v52  ;;  %v10702_v19 = vld [vmem:[%s13515_s4 + $0x2e] ss:$0 sm:$0xff] }
 0x2b3   : > { %v2931_v51 = vsel %vm1178_vm8, %v2929_v36, %v2930_v58  ;;  %v3008_v30 = vsel %vm1256_vm9, %v3006_v37, %v3007_v46  ;;  %v3127_v44 = vsel %vm789_vm4, %v3125_v21, %v3126_v45  ;;  %v3477_v33 = vmul.f32 %v10654_v2, %v14647_v5  ;;  %14656 = vst [vmem:[#allocation24_spill] sm:$0xff] %v10702_v19  ;;  %v14658_v21 = vld [vmem:[#allocation81_spill] sm:$0xff] }
 0x2b4   : > { %v2803_v24 = vadd.f32 %v2777_v41, %v2726_v38  ;;  %v10679_v56 = vsel %vm867_vm5, %v3202_v18, %v3203_v1  ;;  %v10682_v60 = vsel %vm945_vm6, %v3279_v47, %v3280_v15  ;;  %v3553_v36 = vmul.f32 %v10687_v52, %v14646_v32  ;;  %v10711_v18 = vld [vmem:[%s13515_s4 + $0x2f] ss:$0 sm:$0xff]  ;;  %v10720_v15 = vld [vmem:[%s13515_s4 + $0x30] ss:$0 sm:$0xff] }
 0x2b5   : > { %v10692_v58 = vsel %vm1023_vm7, %v3356_v54, %v3357_v14  ;;  %v10695_v16 = vsel %vm385_vm0, %v3433_v17, %v3434_v7  ;;  %v3510_v41 = vrot.slane %v3476_v13, 6  ;;  %v3554_v37 = vmul.f32 %v10687_v52, %v14647_v5  ;;  %14659 = vst [vmem:[#allocation44_spill] sm:$0xff] %v10711_v18  ;;  %14660 = vst [vmem:[#allocation99_spill] sm:$0xff] %v10720_v15  ;;  %v10729_v13 = vld [vmem:[%s13515_s4 + $0x2c] ss:$0 sm:$0xff] }
 0x2b6   : > { %v2880_v35 = vadd.f32 %v2854_v63, %v2803_v24  ;;  %v3672_v46 = vmul.f32 %v10702_v19, %v14657_v49  ;;  %v3673_v45 = vmul.f32 %v10702_v19, %v14658_v21  ;;  %v3749_v1 = vmul.f32 %v10711_v18, %v14657_v49  ;;  %14661 = vst [vmem:[#allocation33_spill] sm:$0xff] %v10729_v13  ;;  %v10738_v63 = vld [vmem:[%s13515_s4 + $0x2d] ss:$0 sm:$0xff]  ;;  %v10748_v24 = vld [vmem:[%s13515_s4 + $0x31] ss:$0 sm:$0xff] }
 0x2b7   : > { %v3511_v47 = vrot.slane %v3477_v33, 6  ;;  %v3750_v3 = vmul.f32 %v10711_v18, %v14658_v21  ;;  %v3826_v54 = vmul.f32 %v10720_v15, %v14657_v49  ;;  %v3827_v14 = vmul.f32 %v10720_v15, %v14658_v21  ;;  %14662 = vst [vmem:[#allocation47_spill] sm:$0xff] %v10738_v63  ;;  %14663 = vst [vmem:[#allocation3_spill] sm:$0xff] %v10748_v24 }
 0x2b8   : > { %v2957_v17 = vadd.f32 %v2931_v51, %v2880_v35  ;;  %v3587_v7 = vrot.slane %v3553_v36, 7  ;;  %v10733_v38 = vmul.f32 %v10729_v13, %v14647_v5  ;;  %v10742_v33 = vmul.f32 %v10738_v63, %v14657_v49 }
 0x2b9   : > { %vm6031_vm12 = vcmp.eq.f32.partialorder %v10648_v28, inf  ;;  %v3588_v51 = vrot.slane %v3554_v37, 7  ;;  %v3903_v36 = vmul.f32 %v10748_v24, %v14657_v49  ;;  %v3904_v35 = vmul.f32 %v10748_v24, %v14658_v21  ;;  %v10757_v37 = vld [vmem:[%s13515_s4 + $0x32] ss:$0 sm:$0xff] }
 0x2ba   : > { %v3034_v13 = vadd.f32 %v3008_v30, %v2957_v17  ;;  %v3706_v15 = vrot.slane %v3672_v46, 1  ;;  %v3707_v18 = vrot.slane %v3673_v45, 1  ;;  %v3783_v19 = vrot.slane %v3749_v1, 2  ;;  %14664 = vst [vmem:[#allocation113_spill] sm:$0xff] %v10757_v37 }
 0x2bb   : > { %v6525_v63 = vpop.eup %6524  ;;  %v3784_v52 = vrot.slane %v3750_v3, 2  ;;  %v3860_v2 = vrot.slane %v3826_v54, 3  ;;  %v3861_v27 = vrot.slane %v3827_v14, 3  ;;  %v3980_v31 = vmul.f32 %v10757_v37, %v14657_v49 }
 0x2bc   : > { %v6030_v23 = vmul.f32 %v6525_v63, %v10648_v28  ;;  %vm6033_vm13 = vcmp.eq.f32.partialorder %v10648_v28, 0.0  ;;  %v6034_v30 = vand.u32 2147483648, %v10648_v28  ;;  %v3055_v46 = vadd.f32 %v3047_v9, %v3034_v13 }
 0x2bd   : > { %v3512_v45 = vsel %vm1178_vm8, %v3510_v41, %v3511_v47  ;;  %v3937_v1 = vrot.slane %v3903_v36, 4  ;;  %v3938_v3 = vrot.slane %v3904_v35, 4  ;;  %v3981_v54 = vmul.f32 %v10757_v37, %v14658_v21  ;;  %v14669_v35 = vld [vmem:[#allocation10_spill] sm:$0xff] }
 0x2be   : > { %v6032_v14 = vsel %vm6031_vm12, %v10648_v28, %v6030_v23  ;;  %v3076_v17 = vadd.f32 %v3068_v4, %v3055_v46  ;;  %v10771_v24 = vsel %vm1256_vm9, %v3587_v7, %v3588_v51  ;;  %v10774_v63 = vsel %vm789_vm4, %v3706_v15, %v3707_v18  ;;  %v10785_v28 = vld [vmem:[%s13515_s4 + $0x33] ss:$0 sm:$0xff]  ;;  %v10807_v15 = vld [vmem:[%s13515_s4 + $0x37] ss:$0 sm:$0xff]  ;;  %v10816_v46 = vld [vmem:[%s13515_s4 + $0x38] ss:$0 sm:$0xff] }
 0x2bf   : > { %v6035_v62 = vsel %vm6033_vm13, %v6034_v30, %v6032_v14  ;;  %v10777_v9 = vsel %vm867_vm5, %v3783_v19, %v3784_v52  ;;  %v10780_v41 = vsel %vm945_vm6, %v3860_v2, %v3861_v27  ;;  %v4014_v47 = vrot.slane %v3980_v31, 5  ;;  %14665 = vst [vmem:[#allocation45_spill] sm:$0xff] %v10785_v28  ;;  %v10797_v31 = vld [vmem:[%s13515_s4 + $0x34] ss:$0 sm:$0xff]  ;;  %14667 = vst [vmem:[#allocation32_spill] sm:$0xff] %v10807_v15 }
 0x2c0   : > { %v6079_v13 = vmin.f32 %v6035_v62, 80.0  ;;  %v3153_v36 = vadd.f32 %v3127_v44, %v3076_v17  ;;  %v4057_v23 = vmul.f32 %v10785_v28, %v14657_v49  ;;  %v4058_v4 = vmul.f32 %v10785_v28, %v14658_v21  ;;  %14666 = vst [vmem:[#allocation120_spill] sm:$0xff] %v10797_v31  ;;  %v14668_v7 = vld [vmem:[#allocation16_spill] sm:$0xff]  ;;  %14670 = vst [vmem:[#allocation111_spill] sm:$0xff] %v10816_v46 }
 0x2c1   : > { %v10792_v52 = vsel %vm1023_vm7, %v3937_v1, %v3938_v3  ;;  %v4015_v19 = vrot.slane %v3981_v54, 5  ;;  %v4134_v27 = vmul.f32 %v10797_v31, %v14657_v49  ;;  %v4135_v2 = vmul.f32 %v10797_v31, %v14658_v21  ;;  %v10825_v3 = vld [vmem:[%s13515_s4 + $0x39] ss:$0 sm:$0xff] }
 0x2c2   : > { %v6088_v44 = vmul.f32 1.442695, %v6079_v13  ;;  %v3230_v18 = vadd.f32 %v10679_v56, %v3153_v36  ;;  %v4253_v51 = vmul.f32 %v10807_v15, %v14668_v7  ;;  %v4254_v30 = vmul.f32 %v10807_v15, %v14669_v35  ;;  %14671 = vst [vmem:[#allocation110_spill] sm:$0xff] %v10825_v3 }
 0x2c3   : > { %v4330_v1 = vmul.f32 %v10816_v46, %v14668_v7  ;;  %v4331_v56 = vmul.f32 %v10816_v46, %v14669_v35  ;;  %v4407_v54 = vmul.f32 %v10825_v3, %v14668_v7  ;;  %v4408_v14 = vmul.f32 %v10825_v3, %v14669_v35  ;;  %v10835_v46 = vld [vmem:[%s13515_s4 + $0x3a] ss:$0 sm:$0xff] }
 0x2c4   : > { %6526 = vpow2.f32 %v6088_v44  ;;  %v3307_v17 = vadd.f32 %v10682_v60, %v3230_v18  ;;  %v4091_v13 = vrot.slane %v4057_v23, 6  ;;  %v4092_v36 = vrot.slane %v4058_v4, 6  ;;  %14672 = vst [vmem:[#allocation37_spill] sm:$0xff] %v10835_v46 }
 0x2c5   : > { %v4168_v15 = vrot.slane %v4134_v27, 7  ;;  %v4169_v31 = vrot.slane %v4135_v2, 7  ;;  %v4484_v28 = vmul.f32 %v10835_v46, %v14668_v7  ;;  %v4485_v37 = vmul.f32 %v10835_v46, %v14669_v35 }
 0x2c6   : > { %v6135_v8 = vadd.f32 1e-20, %v6035_v62  ;;  %v3384_v44 = vadd.f32 %v10692_v58, %v3307_v17  ;;  %v4287_v3 = vrot.slane %v4253_v51, 1  ;;  %v4288_v60 = vrot.slane %v4254_v30, 1  ;;  %v10858_v58 = vld [vmem:[%s13515_s4 + $0x3b] ss:$0 sm:$0xff] }
 0x2c7   : > { %v4364_v23 = vrot.slane %v4330_v1, 2  ;;  %v4365_v4 = vrot.slane %v4331_v56, 2  ;;  %v4441_v27 = vrot.slane %v4407_v54, 3  ;;  %v4442_v2 = vrot.slane %v4408_v14, 3  ;;  %14674 = vst [vmem:[#allocation85_spill] sm:$0xff] %v10858_v58 }
 0x2c8   : > { %v3461_v18 = vadd.f32 %v10695_v16, %v3384_v44  ;;  %v10844_v61 = vsel %vm385_vm0, %v4014_v47, %v4015_v19  ;;  %v10853_v62 = vmul.f32 %v10849_v34, %v14658_v21  ;;  %v4561_v16 = vmul.f32 %v10858_v58, %v14668_v7  ;;  %v10867_v30 = vld [vmem:[%s13515_s4 + $0x3c] ss:$0 sm:$0xff]  ;;  %v10903_v44 = vld [vmem:[%s13515_s4 + $0x3d] ss:$0 sm:$0xff] }
 0x2c9   : > { %v4518_v51 = vrot.slane %v4484_v28, 4  ;;  %v4519_v47 = vrot.slane %v4485_v37, 4  ;;  %v4562_v19 = vmul.f32 %v10858_v58, %v14669_v35  ;;  %14675 = vst [vmem:[#allocation91_spill] sm:$0xff] %v10867_v30  ;;  %v10871_v1 = vmul.f32 %v10867_v30, %v14668_v7  ;;  %v10882_v37 = vld [vmem:[%s13515_s4 + $0x36] ss:$0 sm:$0xff]  ;;  %14677 = vst [vmem:[#allocation80_spill] sm:$0xff] %v10903_v44 }
 0x2ca   : > { %v3538_v56 = vadd.f32 %v3512_v45, %v3461_v18  ;;  %v10874_v54 = vsel %vm1178_vm8, %v4091_v13, %v4092_v36  ;;  %v10877_v14 = vsel %vm1256_vm9, %v4168_v15, %v4169_v31  ;;  %14676 = vst [vmem:[#allocation121_spill] sm:$0xff] %v10882_v37  ;;  %v10886_v28 = vmul.f32 %v10882_v37, %v14668_v7 }
 0x2cb   : > { %6528 = vrcp.f32 %v6135_v8  ;;  %v10889_v17 = vsel %vm789_vm4, %v4287_v3, %v4288_v60  ;;  %v10892_v45 = vsel %vm867_vm5, %v4364_v23, %v4365_v4  ;;  %v10895_v13 = vsel %vm945_vm6, %v4441_v27, %v4442_v2  ;;  %v10917_v2 = vld [vmem:[%s13515_s4 + $0x40] ss:$0 sm:$0xff] }
 0x2cc   : > { %v3615_v31 = vadd.f32 %v10771_v24, %v3538_v56  ;;  %v4595_v15 = vrot.slane %v4561_v16, 5  ;;  %v4639_v36 = vmul.f32 %v10867_v30, %v14669_v35  ;;  %v4715_v8 = vmul.f32 %v10903_v44, %v14668_v7  ;;  %14678 = vst [vmem:[#allocation90_spill] sm:$0xff] %v10917_v2 }
 0x2cd   : > { %v10908_v3 = vsel %vm1023_vm7, %v4518_v51, %v4519_v47  ;;  %v4596_v60 = vrot.slane %v4562_v19, 5  ;;  %v4672_v23 = vrot.slane %v10871_v1, 6  ;;  %v4716_v24 = vmul.f32 %v10903_v44, %v14669_v35  ;;  %v10926_v51 = vld [vmem:[%s13515_s4 + $0x41] ss:$0 sm:$0xff]  ;;  %v10935_v1 = vld [vmem:[%s13515_s4 + $0x42] ss:$0 sm:$0xff] }
 0x2ce   : > { %v6527_v4 = vpop.eup %6526  ;;  %v3636_v27 = vadd.f32 %v10733_v38, %v3615_v31  ;;  %v4834_v18 = vmul.f32 %v10917_v2, %v14622_v53  ;;  %v4835_v16 = vmul.f32 %v10917_v2, %v14624_v42  ;;  %14679 = vst [vmem:[#allocation66_spill] sm:$0xff] %v10926_v51  ;;  %v4911_v47 = vmul.f32 %v10926_v51, %v14622_v53 }
 0x2cf   : > { %v6103_v38 = vadd.f32 1e-20, %v6527_v4  ;;  %v4912_v19 = vmul.f32 %v10926_v51, %v14624_v42  ;;  %14680 = vst [vmem:[#allocation67_spill] sm:$0xff] %v10935_v1  ;;  %v4988_v56 = vmul.f32 %v10935_v1, %v14622_v53  ;;  %v4989_v31 = vmul.f32 %v10935_v1, %v14624_v42  ;;  %v10945_v4 = vld [vmem:[%s13515_s4 + $0x43] ss:$0 sm:$0xff] }
 0x2d0   : > { %v3657_v2 = vadd.f32 %v10742_v33, %v3636_v27  ;;  %v4673_v44 = vrot.slane %v4639_v36, 6  ;;  %v4749_v30 = vrot.slane %v4715_v8, 7  ;;  %14681 = vst [vmem:[#allocation92_spill] sm:$0xff] %v10945_v4  ;;  %v5065_v51 = vmul.f32 %v10945_v4, %v14622_v53  ;;  %v10955_v1 = vld [vmem:[%s13515_s4 + $0x3e] ss:$0 sm:$0xff] }
 0x2d1   : > { %6530 = vrcp.f32 %v6103_v38  ;;  %v10950_v58 = vsel %vm385_vm0, %v4595_v15, %v4596_v60  ;;  %14682 = vst [vmem:[#allocation4_spill] sm:$0xff] %v10955_v1  ;;  %v10959_v33 = vmul.f32 %v10955_v1, %v14669_v35  ;;  %v5066_v36 = vmul.f32 %v10945_v4, %v14624_v42 }
 0x2d2   : > { %v3734_v8 = vadd.f32 %v10774_v63, %v3657_v2  ;;  %v4750_v27 = vrot.slane %v4716_v24, 7  ;;  %v4868_v46 = vrot.slane %v4834_v18, 1  ;;  %v4869_v38 = vrot.slane %v4835_v16, 1  ;;  %v10977_v63 = vld [vmem:[%s13515_s4 + $0x44] ss:$0 sm:$0xff] }
 0x2d3   : > { %v4945_v37 = vrot.slane %v4911_v47, 2  ;;  %v4946_v15 = vrot.slane %v4912_v19, 2  ;;  %v5022_v60 = vrot.slane %v4988_v56, 3  ;;  %v5023_v34 = vrot.slane %v4989_v31, 3  ;;  %14684 = vst [vmem:[#allocation68_spill] sm:$0xff] %v10977_v63 }
 0x2d4   : > { %v3811_v7 = vadd.f32 %v10777_v9, %v3734_v8  ;;  %v10972_v1 = vmul.f32 %v10968_v12, %v14622_v53  ;;  %v5099_v4 = vrot.slane %v5065_v51, 4  ;;  %v5142_v24 = vmul.f32 %v10977_v63, %v14622_v53  ;;  %v10986_v16 = vld [vmem:[%s13515_s4 + $0x45] ss:$0 sm:$0xff]  ;;  %v10999_v31 = vld [vmem:[%s13515_s4 + $0x46] ss:$0 sm:$0xff] }
 0x2d5   : > { %v6529_v2 = vpop.eup %6528  ;;  %v5100_v9 = vrot.slane %v5066_v36, 4  ;;  %v5143_v18 = vmul.f32 %v10977_v63, %v14624_v42  ;;  %14685 = vst [vmem:[#allocation93_spill] sm:$0xff] %v10986_v16  ;;  %v5219_v51 = vmul.f32 %v10986_v16, %v14622_v53  ;;  %v5220_v47 = vmul.f32 %v10986_v16, %v14624_v42  ;;  %14686 = vst [vmem:[#allocation55_spill] sm:$0xff] %v10999_v31  ;;  %v11021_v12 = vld [vmem:[%s13515_s4 + $0x49] ss:$0 sm:$0xff] }
 0x2d6   : > { %v3888_v19 = vadd.f32 %v10780_v41, %v3811_v7  ;;  %v10994_v56 = vsel %vm1178_vm8, %v4672_v23, %v4673_v44  ;;  %v5296_v36 = vmul.f32 %v10999_v31, %v14622_v53  ;;  %v5297_v8 = vmul.f32 %v10999_v31, %v14624_v42  ;;  %14688 = vst [vmem:[#allocation34_spill] sm:$0xff] %v11021_v12  ;;  %v14689_v31 = vld [vmem:[#allocation9_spill] sm:$0xff] }
 0x2d7   : > { %v11006_v63 = vsel %vm1256_vm9, %v4749_v30, %v4750_v27  ;;  %v11009_v16 = vsel %vm789_vm4, %v4868_v46, %v4869_v38  ;;  %v11012_v41 = vsel %vm867_vm5, %v4945_v37, %v4946_v15  ;;  %v11015_v7 = vsel %vm945_vm6, %v5022_v60, %v5023_v34  ;;  %v14690_v27 = vld [vmem:[#allocation114_spill] sm:$0xff] }
 0x2d8   : > { %14687 = vst [vmem:[#allocation48_spill] sm:$0xff] %v11015_v7  ;;  %v3965_v44 = vadd.f32 %v10792_v52, %v3888_v19  ;;  %v5176_v23 = vrot.slane %v5142_v24, 5  ;;  %v5415_v30 = vmul.f32 %v11021_v12, %v14689_v31  ;;  %v5416_v46 = vmul.f32 %v11021_v12, %v14690_v27  ;;  %v11034_v19 = vld [vmem:[%s13515_s4 + $0x47] ss:$0 sm:$0xff] }
 0x2d9   : > { %v11028_v37 = vsel %vm1023_vm7, %v5099_v4, %v5100_v9  ;;  %v5177_v38 = vrot.slane %v5143_v18, 5  ;;  %v5253_v34 = vrot.slane %v5219_v51, 6  ;;  %v5254_v15 = vrot.slane %v5220_v47, 6  ;;  %14692 = vst [vmem:[#allocation39_spill] sm:$0xff] %v11034_v19  ;;  %v11043_v4 = vld [vmem:[%s13515_s4 + $0x4a] ss:$0 sm:$0xff] }
 0x2da   : > { %14691 = vst [vmem:[#allocation122_spill] sm:$0xff] %v11028_v37  ;;  %v4042_v52 = vadd.f32 %v10844_v61, %v3965_v44  ;;  %v5330_v60 = vrot.slane %v5296_v36, 7  ;;  %v5331_v24 = vrot.slane %v5297_v8, 7  ;;  %v11038_v53 = vmul.f32 %v11034_v19, %v14624_v42  ;;  %14694 = vst [vmem:[#allocation71_spill] sm:$0xff] %v11043_v4  ;;  %v11052_v18 = vld [vmem:[%s13515_s4 + $0x4b] ss:$0 sm:$0xff] }
 0x2db   : > { %v6531_v12 = vpop.eup %6530  ;;  %v5492_v61 = vmul.f32 %v11043_v4, %v14689_v31  ;;  %v5493_v9 = vmul.f32 %v11043_v4, %v14690_v27  ;;  %14695 = vst [vmem:[#allocation124_spill] sm:$0xff] %v11052_v18  ;;  %v5569_v51 = vmul.f32 %v11052_v18, %v14689_v31  ;;  %v5570_v47 = vmul.f32 %v11052_v18, %v14690_v27  ;;  %v11065_v4 = vld [vmem:[%s13515_s4 + $0x48] ss:$0 sm:$0xff] }
 0x2dc   : > { %14693 = vst [vmem:[#allocation72_spill] sm:$0xff] %v11038_v53  ;;  %v6127_v36 = vsub.f32 1.0, %v6531_v12  ;;  %v4119_v8 = vadd.f32 %v10874_v54, %v4042_v52  ;;  %v5449_v44 = vrot.slane %v5415_v30, 1  ;;  %v5450_v19 = vrot.slane %v5416_v46, 1  ;;  %14697 = vst [vmem:[#allocation41_spill] sm:$0xff] %v11065_v4 }
 0x2dd   : > { %v11060_v42 = vsel %vm385_vm0, %v5176_v23, %v5177_v38  ;;  %v11069_v53 = vmul.f32 %v11065_v4, %v14689_v31  ;;  %v11074_v12 = vld [vmem:[%s13515_s4 + $0x4c] ss:$0 sm:$0xff]  ;;  %v11082_v38 = vsel %vm1178_vm8, %v5253_v34, %v5254_v15  ;;  %v11085_v52 = vsel %vm1256_vm9, %v5330_v60, %v5331_v24 }
 0x2de   : > { %14696 = vst [vmem:[#allocation123_spill] sm:$0xff] %v11060_v42  ;;  %v5646_v54 = vmul.f32 %v11074_v12, %v14689_v31  ;;  %v5647_v23 = vmul.f32 %v11074_v12, %v14690_v27  ;;  %v6145_v30 = vmul.f32 %v6529_v2, %v6127_v36  ;;  %v4196_v46 = vadd.f32 %v10877_v14, %v4119_v8  ;;  %v11095_v14 = vld [vmem:[%s13515_s4 + $0x4d] ss:$0 sm:$0xff] }
 0x2df   : > { %14698 = vst [vmem:[#allocation83_spill] sm:$0xff] %v11069_v53  ;;  %v5526_v4 = vrot.slane %v5492_v61, 2  ;;  %v5527_v18 = vrot.slane %v5493_v9, 2  ;;  %v5603_v53 = vrot.slane %v5569_v51, 3  ;;  %v5604_v35 = vrot.slane %v5570_v47, 3 }
 0x2e0   : > { %v6159_v42 = vmul.f32 %v6145_v30, %v10543_v22  ;;  %v4217_v37 = vadd.f32 %v10853_v62, %v4196_v46  ;;  %v11090_v7 = vsel %vm789_vm4, %v5449_v44, %v5450_v19  ;;  %v5723_v2 = vmul.f32 %v11095_v14, %v14689_v31  ;;  %v14699_v46 = vld [vmem:[#allocation25_spill] sm:$0xff] }
 0x2e1   : > { %v5680_v34 = vrot.slane %v5646_v54, 4  ;;  %v5681_v15 = vrot.slane %v5647_v23, 4  ;;  %v5724_v60 = vmul.f32 %v11095_v14, %v14690_v27  ;;  %v2316_v22 = vmul.f32 %v10482_v0, %v14644_v50  ;;  %v11143_v23 = vld [vmem:[%s13515_s4 + $0x4f] ss:$0 sm:$0xff] }
 0x2e2   : > { %6167 = vxpose.xlu0.b32.cont [2/8] (short) %v6159_v42, 128  ;;  %v4238_v62 = vadd.f32 %v10886_v28, %v4217_v37  ;;  %v2317_v24 = vmul.f32 %v10482_v0, %v14645_v40  ;;  %v2393_v19 = vmul.f32 %v10499_v43, %v14644_v50  ;;  %v2394_v61 = vmul.f32 %v10499_v43, %v14645_v40  ;;  %v11119_v42 = vld [vmem:[%s13515_s4 + $0x4e] ss:$0 sm:$0xff] }
 0x2e3   : > { %v11111_v9 = vsel %vm867_vm5, %v5526_v4, %v5527_v18  ;;  %v11114_v51 = vsel %vm945_vm6, %v5603_v53, %v5604_v35  ;;  %v11123_v0 = vmul.f32 %v11119_v42, %v14689_v31  ;;  %v2351_v28 = vrot.slane %v2316_v22, 6 }
 0x2e4   : > { %v4315_v50 = vadd.f32 %v10889_v17, %v4238_v62  ;;  %v2352_v37 = vrot.slane %v2317_v24, 6  ;;  %v2428_v43 = vrot.slane %v2393_v19, 7  ;;  %v2429_v47 = vrot.slane %v2394_v61, 7 }
 0x2e5   : > { %v11127_v4 = vsel %vm1023_vm7, %v5680_v34, %v5681_v15  ;;  %v5757_v53 = vrot.slane %v5723_v2, 5  ;;  %v5758_v35 = vrot.slane %v5724_v60, 5  ;;  %v11131_v18 = vmul.f32 %v11119_v42, %v14690_v27 }
 0x2e6   : > { %v4392_v36 = vadd.f32 %v10892_v45, %v4315_v50  ;;  %v2353_v8 = vsel %vm1178_vm8, %v2351_v28, %v2352_v37  ;;  %v2512_v44 = vmul.f32 %v10508_v55, %v14646_v32  ;;  %v2513_v17 = vmul.f32 %v10508_v55, %v14647_v5 }
 0x2e7   : > { %v5834_v54 = vrot.slane %v11123_v0, 6  ;;  %v5877_v30 = vmul.f32 %v11143_v23, %v14689_v31  ;;  %v2377_v45 = vadd.f32 %v2353_v8, %v14699_v46  ;;  %v2589_v2 = vmul.f32 %v10517_v26, %v14646_v32 }
 0x2e8   : > { %v4469_v34 = vadd.f32 %v10895_v13, %v4392_v36  ;;  %v5878_v55 = vmul.f32 %v11143_v23, %v14690_v27  ;;  %v2430_v15 = vsel %vm1256_vm9, %v2428_v43, %v2429_v47  ;;  %v2590_v60 = vmul.f32 %v10517_v26, %v14647_v5 }
 0x2e9   : > { %v2454_v22 = vadd.f32 %v2430_v15, %v2377_v45  ;;  %v2467_v62 = vmul.f32 %v10564_v48, %v14645_v40  ;;  %v2666_v24 = vmul.f32 %v10526_v6, %v14646_v32  ;;  %v2667_v19 = vmul.f32 %v10526_v6, %v14647_v5 }
 0x2ea   : > { %v4546_v13 = vadd.f32 %v10908_v3, %v4469_v34  ;;  %v11164_v61 = vsel %vm385_vm0, %v5757_v53, %v5758_v35  ;;  %v2547_v0 = vrot.slane %v2512_v44, 1  ;;  %v2548_v28 = vrot.slane %v2513_v17, 1 }
 0x2eb   : > { %v5835_v50 = vrot.slane %v11131_v18, 6  ;;  %v2475_v26 = vadd.f32 %v2467_v62, %v2454_v22  ;;  %v2488_v37 = vmul.f32 %v10581_v11, %v14646_v32  ;;  %v2624_v40 = vrot.slane %v2589_v2, 2 }
 0x2ec   : > { %v4623_v48 = vadd.f32 %v10950_v58, %v4546_v13  ;;  %v2625_v43 = vrot.slane %v2590_v60, 2  ;;  %v2743_v6 = vmul.f32 %v10536_v20, %v14646_v32  ;;  %v2744_v3 = vmul.f32 %v10536_v20, %v14647_v5 }
 0x2ed   : > { %v2496_v47 = vadd.f32 %v2488_v37, %v2475_v26  ;;  %v2701_v53 = vrot.slane %v2666_v24, 3  ;;  %v2702_v35 = vrot.slane %v2667_v19, 3  ;;  %v2820_v18 = vmul.f32 %v10550_v39, %v14646_v32  ;;  %v14700_v24 = vld [vmem:[#allocation101_spill] sm:$0xff] }
 0x2ee   : > { %v4700_v36 = vadd.f32 %v10994_v56, %v4623_v48  ;;  %v5911_v8 = vrot.slane %v5877_v30, 7  ;;  %v2549_v11 = vsel %vm789_vm4, %v2547_v0, %v2548_v28  ;;  %v2821_v58 = vmul.f32 %v10550_v39, %v14647_v5  ;;  %v11189_v30 = vld [vmem:[%s13515_s4 + $0x50] ss:$0 sm:$0xff] }
 0x2ef   : > { %v5912_v44 = vrot.slane %v5878_v55, 7  ;;  %v2573_v17 = vadd.f32 %v2549_v11, %v2496_v47  ;;  %v2897_v46 = vmul.f32 %v10571_v57, %v14646_v32  ;;  %v2898_v20 = vmul.f32 %v10571_v57, %v14647_v5  ;;  %v14703_v11 = vld [vmem:[#allocation76_spill] sm:$0xff] }
 0x2f0   : > { %v4777_v45 = vadd.f32 %v11006_v63, %v4700_v36  ;;  %v2626_v2 = vsel %vm867_vm5, %v2624_v40, %v2625_v43  ;;  %v2778_v34 = vrot.slane %v2743_v6, 4  ;;  %v2779_v56 = vrot.slane %v2744_v3, 4 }
 0x2f1   : > { %v11193_v39 = vmul.f32 %v11189_v30, %v14690_v27  ;;  %v2650_v55 = vadd.f32 %v2626_v2, %v2573_v17  ;;  %v2703_v15 = vsel %vm945_vm6, %v2701_v53, %v2702_v35  ;;  %v2855_v60 = vrot.slane %v2820_v18, 5 }
 0x2f2   : > { %v4798_v57 = vadd.f32 %v10959_v33, %v4777_v45  ;;  %v2856_v63 = vrot.slane %v2821_v58, 5  ;;  %v2974_v22 = vmul.f32 %v10597_v25, %v14646_v32  ;;  %v2975_v62 = vmul.f32 %v10597_v25, %v14647_v5  ;;  %v14704_v58 = vld [vmem:[#allocation96_spill] sm:$0xff] }
 0x2f3   : > { %v11203_v19 = vadd.f32 %v14700_v24, %v10423_v59  ;;  %v2727_v13 = vadd.f32 %v2703_v15, %v2650_v55  ;;  %v2932_v0 = vrot.slane %v2897_v46, 6  ;;  %v2933_v28 = vrot.slane %v2898_v20, 6  ;;  %v14701_v59 = vld [vmem:[#allocation17_spill] sm:$0xff]  ;;  %v14706_v46 = vld [vmem:[#allocation7_spill] sm:$0xff]  ;;  %v14709_v15 = vld [vmem:[#allocation106_spill] sm:$0xff] }
 0x2f4   : > { %v4819_v26 = vadd.f32 %v10972_v1, %v4798_v57  ;;  %v2780_v37 = vsel %vm1023_vm7, %v2778_v34, %v2779_v56  ;;  %v3093_v33 = vmul.f32 %v10606_v29, %v14657_v49  ;;  %v3094_v40 = vmul.f32 %v10606_v29, %v14658_v21  ;;  %v14707_v20 = vld [vmem:[#allocation15_spill] sm:$0xff]  ;;  %v14708_v56 = vld [vmem:[#allocation48_spill] sm:$0xff]  ;;  %v14710_v57 = vld [vmem:[#allocation6_spill] sm:$0xff] }
 0x2f5   : > { %v11212_v48 = vsel %vm1178_vm8, %v5834_v54, %v5835_v50  ;;  %v11215_v25 = vsel %vm1256_vm9, %v5911_v8, %v5912_v44  ;;  %v11219_v43 = vadd.f32 %v14701_v59, %v10430_v10  ;;  %v2804_v6 = vadd.f32 %v2780_v37, %v2727_v13  ;;  %v14702_v54 = vld [vmem:[#allocation97_spill] sm:$0xff]  ;;  %v14705_v44 = vld [vmem:[#allocation86_spill] sm:$0xff] }
 0x2f6   : > { %v4896_v1 = vadd.f32 %v11009_v16, %v4819_v26  ;;  %v2857_v3 = vsel %vm385_vm0, %v2855_v60, %v2856_v63  ;;  %v3009_v47 = vrot.slane %v2974_v22, 7  ;;  %v3010_v53 = vrot.slane %v2975_v62, 7  ;;  %v14711_v13 = vld [vmem:[#allocation102_spill] sm:$0xff] }
 0x2f7   : > { %v2881_v35 = vadd.f32 %v2857_v3, %v2804_v6  ;;  %v2934_v29 = vsel %vm1178_vm8, %v2932_v0, %v2933_v28  ;;  %v3170_v50 = vmul.f32 %v14702_v54, %v14657_v49  ;;  %v3171_v18 = vmul.f32 %v14702_v54, %v14658_v21  ;;  %v14712_v28 = vld [vmem:[#allocation122_spill] sm:$0xff] }
 0x2f8   : > { %v4973_v36 = vadd.f32 %v11012_v41, %v4896_v1  ;;  %v3128_v10 = vrot.slane %v3093_v33, 1  ;;  %v3129_v8 = vrot.slane %v3094_v40, 1  ;;  %v3247_v16 = vmul.f32 %v14703_v11, %v14657_v49  ;;  %v14713_v1 = vld [vmem:[#allocation82_spill] sm:$0xff] }
 0x2f9   : > { %v11233_v17 = vadd.f32 %v14705_v44, %v14704_v58  ;;  %v11237_v45 = vadd.f32 %v14707_v20, %v14706_v46  ;;  %v2958_v2 = vadd.f32 %v2934_v29, %v2881_v35  ;;  %v3248_v34 = vmul.f32 %v14703_v11, %v14658_v21  ;;  %v14715_v29 = vld [vmem:[#allocation79_spill] sm:$0xff]  ;;  %v14717_v46 = vld [vmem:[#allocation16_spill] sm:$0xff] }
 0x2fa   : > { %v5050_v55 = vadd.f32 %v14708_v56, %v4973_v36  ;;  %v3011_v41 = vsel %vm1256_vm9, %v3009_v47, %v3010_v53  ;;  %v3048_v60 = vmul.f32 %v14709_v15, %v14647_v5  ;;  %v3069_v63 = vmul.f32 %v14710_v57, %v14657_v49  ;;  %v14714_v53 = vld [vmem:[#allocation123_spill] sm:$0xff]  ;;  %v14718_v20 = vld [vmem:[#allocation24_spill] sm:$0xff] }
 0x2fb   : > { %v3035_v22 = vadd.f32 %v3011_v41, %v2958_v2  ;;  %v3205_v62 = vrot.slane %v3170_v50, 2  ;;  %v3206_v24 = vrot.slane %v3171_v18, 2  ;;  %v3324_v0 = vmul.f32 %v14711_v13, %v14657_v49  ;;  %v14716_v18 = vld [vmem:[#allocation28_spill] sm:$0xff] }
 0x2fc   : > { %v5127_v26 = vadd.f32 %v14712_v28, %v5050_v55  ;;  %v3130_v37 = vsel %vm789_vm4, %v3128_v10, %v3129_v8  ;;  %v3282_v33 = vrot.slane %v3247_v16, 3  ;;  %v3325_v40 = vmul.f32 %v14711_v13, %v14658_v21 }
 0x2fd   : > { %v3056_v59 = vadd.f32 %v3048_v60, %v3035_v22  ;;  %v3283_v6 = vrot.slane %v3248_v34, 3  ;;  %v3401_v3 = vmul.f32 %v14713_v1, %v14657_v49  ;;  %v3402_v47 = vmul.f32 %v14713_v1, %v14658_v21  ;;  %v14719_v34 = vld [vmem:[#allocation10_spill] sm:$0xff]  ;;  %v14722_v1 = vld [vmem:[#allocation99_spill] sm:$0xff] }
 0x2fe   : > { %v5204_v35 = vadd.f32 %v14714_v53, %v5127_v26  ;;  %v3478_v54 = vmul.f32 %v14715_v29, %v14657_v49  ;;  %v3479_v50 = vmul.f32 %v14715_v29, %v14658_v21  ;;  %v3555_v36 = vmul.f32 %v14716_v18, %v14657_v49  ;;  %v14721_v26 = vld [vmem:[#allocation72_spill] sm:$0xff]  ;;  %v14723_v53 = vld [vmem:[#allocation83_spill] sm:$0xff] }
 0x2ff   : > { %v3077_v10 = vadd.f32 %v3069_v63, %v3056_v59  ;;  %v3207_v8 = vsel %vm867_vm5, %v3205_v62, %v3206_v24  ;;  %v3359_v11 = vrot.slane %v3324_v0, 4  ;;  %v3556_v16 = vmul.f32 %v14716_v18, %v14658_v21  ;;  %v14725_v18 = vld [vmem:[#allocation47_spill] sm:$0xff] }
 0x300   : > { %v5281_v58 = vadd.f32 %v11082_v38, %v5204_v35  ;;  %v3360_v44 = vrot.slane %v3325_v40, 4  ;;  %v3674_v2 = vmul.f32 %v14718_v20, %v14717_v46  ;;  %v3675_v56 = vmul.f32 %v14718_v20, %v14719_v34  ;;  %v14720_v38 = vld [vmem:[#allocation44_spill] sm:$0xff]  ;;  %v14726_v20 = vld [vmem:[#allocation3_spill] sm:$0xff] }
 0x301   : > { %v3154_v55 = vadd.f32 %v3130_v37, %v3077_v10  ;;  %v3284_v41 = vsel %vm945_vm6, %v3282_v33, %v3283_v6  ;;  %v3436_v15 = vrot.slane %v3401_v3, 5  ;;  %v3437_v60 = vrot.slane %v3402_v47, 5 }
 0x302   : > { %v5358_v57 = vadd.f32 %v11085_v52, %v5281_v58  ;;  %v3513_v63 = vrot.slane %v3478_v54, 6  ;;  %v3514_v22 = vrot.slane %v3479_v50, 6  ;;  %v3590_v62 = vrot.slane %v3555_v36, 7  ;;  %v14724_v54 = vld [vmem:[#allocation33_spill] sm:$0xff] }
 0x303   : > { %v3231_v24 = vadd.f32 %v3207_v8, %v3154_v55  ;;  %v3591_v13 = vrot.slane %v3556_v16, 7  ;;  %v3751_v0 = vmul.f32 %v14720_v38, %v14717_v46  ;;  %v3752_v28 = vmul.f32 %v14720_v38, %v14719_v34 }
 0x304   : > { %v5379_v40 = vadd.f32 %v14721_v26, %v5358_v57  ;;  %v3361_v37 = vsel %vm1023_vm7, %v3359_v11, %v3360_v44  ;;  %v3709_v33 = vrot.slane %v3674_v2, 1  ;;  %v3710_v59 = vrot.slane %v3675_v56, 1 }
 0x305   : > { %v3308_v6 = vadd.f32 %v3284_v41, %v3231_v24  ;;  %v3438_v52 = vsel %vm385_vm0, %v3436_v15, %v3437_v60  ;;  %v3828_v3 = vmul.f32 %v14722_v1, %v14717_v46  ;;  %v3829_v47 = vmul.f32 %v14722_v1, %v14719_v34  ;;  %v14727_v60 = vld [vmem:[#allocation113_spill] sm:$0xff] }
 0x306   : > { %v5400_v35 = vadd.f32 %v14723_v53, %v5379_v40  ;;  %v3515_v29 = vsel %vm1178_vm8, %v3513_v63, %v3514_v22  ;;  %v3629_v50 = vmul.f32 %v14724_v54, %v14658_v21  ;;  %v3650_v36 = vmul.f32 %v14725_v18, %v14717_v46 }
 0x307   : > { %v3385_v10 = vadd.f32 %v3361_v37, %v3308_v6  ;;  %v3592_v8 = vsel %vm1256_vm9, %v3590_v62, %v3591_v13  ;;  %v3786_v11 = vrot.slane %v3751_v0, 2  ;;  %v3787_v16 = vrot.slane %v3752_v28, 2  ;;  %v14729_v0 = vld [vmem:[#allocation120_spill] sm:$0xff] }
 0x308   : > { %v5477_v58 = vadd.f32 %v11090_v7, %v5400_v35  ;;  %v3711_v44 = vsel %vm789_vm4, %v3709_v33, %v3710_v59  ;;  %v3905_v2 = vmul.f32 %v14726_v20, %v14717_v46  ;;  %v3906_v56 = vmul.f32 %v14726_v20, %v14719_v34  ;;  %v14728_v7 = vld [vmem:[#allocation45_spill] sm:$0xff]  ;;  %v14731_v59 = vld [vmem:[#allocation32_spill] sm:$0xff] }
 0x309   : > { %v3462_v55 = vadd.f32 %v3438_v52, %v3385_v10  ;;  %v3863_v41 = vrot.slane %v3828_v3, 3  ;;  %v3864_v15 = vrot.slane %v3829_v47, 3  ;;  %v3982_v57 = vmul.f32 %v14727_v60, %v14717_v46  ;;  %v14730_v33 = vld [vmem:[#allocation109_spill] sm:$0xff]  ;;  %v14732_v47 = vld [vmem:[#allocation38_spill] sm:$0xff] }
 0x30a   : > { %v5554_v63 = vadd.f32 %v11111_v9, %v5477_v58  ;;  %v3983_v22 = vmul.f32 %v14727_v60, %v14719_v34  ;;  %v4059_v62 = vmul.f32 %v14728_v7, %v14717_v46  ;;  %v4060_v24 = vmul.f32 %v14728_v7, %v14719_v34 }
 0x30b   : > { %v3539_v13 = vadd.f32 %v3515_v29, %v3462_v55  ;;  %v3788_v38 = vsel %vm867_vm5, %v3786_v11, %v3787_v16  ;;  %v4136_v28 = vmul.f32 %v14729_v0, %v14717_v46  ;;  %v4137_v26 = vmul.f32 %v14729_v0, %v14719_v34  ;;  %v14733_v16 = vld [vmem:[#allocation111_spill] sm:$0xff] }
 0x30c   : > { %v5631_v9 = vadd.f32 %v11114_v51, %v5554_v63  ;;  %v3940_v40 = vrot.slane %v3905_v2, 4  ;;  %v3941_v37 = vrot.slane %v3906_v56, 4  ;;  %v4255_v6 = vmul.f32 %v14731_v59, %v14730_v33 }
 0x30d   : > { %v3616_v52 = vadd.f32 %v3592_v8, %v3539_v13  ;;  %v3865_v1 = vsel %vm945_vm6, %v3863_v41, %v3864_v15  ;;  %v4017_v3 = vrot.slane %v3982_v57, 5  ;;  %v4256_v53 = vmul.f32 %v14731_v59, %v14732_v47 }
 0x30e   : > { %v5708_v35 = vadd.f32 %v11127_v4, %v5631_v9  ;;  %v4018_v29 = vrot.slane %v3983_v22, 5  ;;  %v4094_v54 = vrot.slane %v4059_v62, 6  ;;  %v4095_v18 = vrot.slane %v4060_v24, 6  ;;  %v14734_v4 = vld [vmem:[#allocation110_spill] sm:$0xff]  ;;  %v14736_v22 = vld [vmem:[#allocation121_spill] sm:$0xff] }
 0x30f   : > { %v3637_v10 = vadd.f32 %v3629_v50, %v3616_v52  ;;  %v4171_v11 = vrot.slane %v4136_v28, 7  ;;  %v4172_v51 = vrot.slane %v4137_v26, 7  ;;  %v4332_v58 = vmul.f32 %v14733_v16, %v14730_v33  ;;  %v14738_v52 = vld [vmem:[#allocation85_spill] sm:$0xff] }
 0x310   : > { %v5785_v20 = vadd.f32 %v11164_v61, %v5708_v35  ;;  %v3942_v8 = vsel %vm1023_vm7, %v3940_v40, %v3941_v37  ;;  %v4290_v2 = vrot.slane %v4255_v6, 1  ;;  %v4333_v56 = vmul.f32 %v14733_v16, %v14732_v47  ;;  %v14735_v61 = vld [vmem:[#allocation89_spill] sm:$0xff] }
 0x311   : > { %v3658_v55 = vadd.f32 %v3650_v36, %v3637_v10  ;;  %v4291_v41 = vrot.slane %v4256_v53, 1  ;;  %v4409_v15 = vmul.f32 %v14734_v4, %v14730_v33  ;;  %v4410_v50 = vmul.f32 %v14734_v4, %v14732_v47  ;;  %v14739_v53 = vld [vmem:[#allocation91_spill] sm:$0xff] }
 0x312   : > { %v5862_v60 = vadd.f32 %v11212_v48, %v5785_v20  ;;  %v4019_v57 = vsel %vm385_vm0, %v4017_v3, %v4018_v29  ;;  %v4210_v63 = vmul.f32 %v14735_v61, %v14719_v34  ;;  %v11335_v7 = vmul.f32 %v14736_v22, %v14730_v33  ;;  %v14737_v48 = vld [vmem:[#allocation37_spill] sm:$0xff] }
 0x313   : > { %v3735_v62 = vadd.f32 %v3711_v44, %v3658_v55  ;;  %v4096_v36 = vsel %vm1178_vm8, %v4094_v54, %v4095_v18  ;;  %v4173_v24 = vsel %vm1256_vm9, %v4171_v11, %v4172_v51  ;;  %v4367_v13 = vrot.slane %v4332_v58, 2  ;;  %v14740_v54 = vld [vmem:[#allocation80_spill] sm:$0xff] }
 0x314   : > { %v5939_v0 = vadd.f32 %v11215_v25, %v5862_v60  ;;  %v4368_v28 = vrot.slane %v4333_v56, 2  ;;  %v4486_v26 = vmul.f32 %v14737_v48, %v14730_v33  ;;  %v4487_v9 = vmul.f32 %v14737_v48, %v14732_v47 }
 0x315   : > { %v3812_v40 = vadd.f32 %v3788_v38, %v3735_v62  ;;  %v11345_v37 = vsel %vm789_vm4, %v4290_v2, %v4291_v41  ;;  %v4444_v59 = vrot.slane %v4409_v15, 3  ;;  %v4445_v44 = vrot.slane %v4410_v50, 3 }
 0x316   : > { %v11348_v6 = vadd.f32 %v11193_v39, %v5939_v0  ;;  %v4563_v3 = vmul.f32 %v14738_v52, %v14730_v33  ;;  %v4564_v25 = vmul.f32 %v14738_v52, %v14732_v47  ;;  %v4640_v35 = vmul.f32 %v14739_v53, %v14730_v33  ;;  %v14744_v52 = vld [vmem:[#allocation4_spill] sm:$0xff] }
 0x317   : > { %v3889_v29 = vadd.f32 %v3865_v1, %v3812_v40  ;;  %v4641_v38 = vmul.f32 %v14739_v53, %v14732_v47  ;;  %v4717_v18 = vmul.f32 %v14740_v54, %v14730_v33  ;;  %v4718_v39 = vmul.f32 %v14740_v54, %v14732_v47  ;;  %v14741_v1 = vld [vmem:[#allocation90_spill] sm:$0xff] }
 0x318   : > { %v5968_v10 = vmul.f32 %v11348_v6, %v11348_v6  ;;  %v4369_v11 = vsel %vm867_vm5, %v4367_v13, %v4368_v28  ;;  %v4521_v51 = vrot.slane %v4486_v26, 4  ;;  %v4522_v16 = vrot.slane %v4487_v9, 4  ;;  %v14743_v28 = vld [vmem:[#allocation67_spill] sm:$0xff] }
 0x319   : > { %v3966_v58 = vadd.f32 %v3942_v8, %v3889_v29  ;;  %v11366_v20 = vsel %vm945_vm6, %v4444_v59, %v4445_v44  ;;  %v4836_v2 = vmul.f32 %v14741_v1, %v14689_v31  ;;  %v4837_v56 = vmul.f32 %v14741_v1, %v14690_v27  ;;  %v14742_v8 = vld [vmem:[#allocation66_spill] sm:$0xff]  ;;  %v14745_v29 = vld [vmem:[#allocation23_spill] sm:$0xff] }
 0x31a   : > { %v5986_v55 = vrot.slane %v5968_v10, 4  ;;  %v4598_v41 = vrot.slane %v4563_v3, 5  ;;  %v4599_v4 = vrot.slane %v4564_v25, 5  ;;  %v4675_v15 = vrot.slane %v4640_v35, 6 }
 0x31b   : > { %v4043_v50 = vadd.f32 %v4019_v57, %v3966_v58  ;;  %v4676_v60 = vrot.slane %v4641_v38, 6  ;;  %v4752_v61 = vrot.slane %v4717_v18, 7  ;;  %v4753_v22 = vrot.slane %v4718_v39, 7 }
 0x31c   : > { %v5987_v62 = vadd.f32 %v5986_v55, %v5968_v10  ;;  %v4913_v13 = vmul.f32 %v14742_v8, %v14689_v31  ;;  %v4914_v0 = vmul.f32 %v14742_v8, %v14690_v27  ;;  %v4990_v48 = vmul.f32 %v14743_v28, %v14689_v31  ;;  %v14747_v55 = vld [vmem:[#allocation68_spill] sm:$0xff] }
 0x31d   : > { %v4120_v26 = vadd.f32 %v4096_v36, %v4043_v50  ;;  %v4523_v9 = vsel %vm1023_vm7, %v4521_v51, %v4522_v16  ;;  %v4871_v40 = vrot.slane %v4836_v2, 1  ;;  %v4872_v59 = vrot.slane %v4837_v56, 1 }
 0x31e   : > { %v5988_v44 = vrot.slane %v5987_v62, 2  ;;  %v4600_v57 = vsel %vm385_vm0, %v4598_v41, %v4599_v4  ;;  %v11382_v3 = vmul.f32 %v14744_v52, %v14732_v47  ;;  %v4991_v25 = vmul.f32 %v14743_v28, %v14690_v27 }
 0x31f   : > { %v4197_v53 = vadd.f32 %v4173_v24, %v4120_v26  ;;  %v11387_v35 = vsel %vm1178_vm8, %v4675_v15, %v4676_v60  ;;  %v11390_v36 = vsel %vm1256_vm9, %v4752_v61, %v4753_v22  ;;  %v11394_v38 = vmul.f32 %v14745_v29, %v14689_v31  ;;  %v14746_v24 = vld [vmem:[#allocation92_spill] sm:$0xff]  ;;  %v14749_v61 = vld [vmem:[#allocation55_spill] sm:$0xff] }
 0x320   : > { %v5989_v54 = vadd.f32 %v5988_v44, %v5987_v62  ;;  %v4948_v18 = vrot.slane %v4913_v13, 2  ;;  %v4949_v39 = vrot.slane %v4914_v0, 2  ;;  %v5025_v10 = vrot.slane %v4990_v48, 3  ;;  %v14750_v13 = vld [vmem:[#allocation46_spill] sm:$0xff]  ;;  %v14752_v48 = vld [vmem:[#allocation119_spill] sm:$0xff] }
 0x321   : > { %v4218_v51 = vadd.f32 %v4210_v63, %v4197_v53  ;;  %v11397_v16 = vsel %vm789_vm4, %v4871_v40, %v4872_v59  ;;  %v5067_v58 = vmul.f32 %v14746_v24, %v14689_v31  ;;  %v5068_v1 = vmul.f32 %v14746_v24, %v14690_v27  ;;  %v14748_v63 = vld [vmem:[#allocation93_spill] sm:$0xff]  ;;  %v14751_v0 = vld [vmem:[#allocation34_spill] sm:$0xff]  ;;  %v14753_v59 = vld [vmem:[#allocation71_spill] sm:$0xff] }
 0x322   : > { %v5990_v2 = vrot.slane %v5989_v54, 1  ;;  %v5026_v56 = vrot.slane %v4991_v25, 3  ;;  %v5144_v41 = vmul.f32 %v14747_v55, %v14689_v31  ;;  %v5145_v4 = vmul.f32 %v14747_v55, %v14690_v27 }
 0x323   : > { %v4239_v15 = vadd.f32 %v11335_v7, %v4218_v51  ;;  %v5221_v50 = vmul.f32 %v14748_v63, %v14689_v31  ;;  %v5222_v60 = vmul.f32 %v14748_v63, %v14690_v27  ;;  %v5298_v22 = vmul.f32 %v14749_v61, %v14689_v31 }
 0x324   : > { %v11414_v62 = vadd.f32 %v5990_v2, %v5989_v54  ;;  %v5299_v8 = vmul.f32 %v14749_v61, %v14690_v27  ;;  %v5417_v28 = vmul.f32 %v14751_v0, %v14750_v13  ;;  %v5418_v7 = vmul.f32 %v14751_v0, %v14752_v48 }
 0x325   : > { %v4316_v26 = vadd.f32 %v11345_v37, %v4239_v15  ;;  %v5102_v40 = vrot.slane %v5067_v58, 4  ;;  %v5494_v44 = vmul.f32 %v14753_v59, %v14750_v13  ;;  %v5495_v52 = vmul.f32 %v14753_v59, %v14752_v48  ;;  %v14754_v59 = vld [vmem:[#allocation124_spill] sm:$0xff] }
 0x326   : > { %6532 = vrsqrt.f32 %v11414_v62  ;;  %v5103_v25 = vrot.slane %v5068_v1, 4  ;;  %v5179_v53 = vrot.slane %v5144_v41, 5  ;;  %v5180_v29 = vrot.slane %v5145_v4, 5  ;;  %v14755_v4 = vld [vmem:[#allocation39_spill] sm:$0xff] }
 0x327   : > { %v4393_v54 = vadd.f32 %v4369_v11, %v4316_v26  ;;  %v11429_v51 = vsel %vm867_vm5, %v4948_v18, %v4949_v39  ;;  %v5256_v24 = vrot.slane %v5221_v50, 6  ;;  %v5257_v2 = vrot.slane %v5222_v60, 6 }
 0x328   : > { %v5333_v55 = vrot.slane %v5298_v22, 7  ;;  %v5334_v37 = vrot.slane %v5299_v8, 7  ;;  %v5452_v58 = vrot.slane %v5417_v28, 1  ;;  %v5453_v15 = vrot.slane %v5418_v7, 1 }
 0x329   : > { %v4470_v63 = vadd.f32 %v11366_v20, %v4393_v54  ;;  %v5529_v61 = vrot.slane %v5494_v44, 2  ;;  %v5530_v0 = vrot.slane %v5495_v52, 2  ;;  %v5571_v31 = vmul.f32 %v14754_v59, %v14750_v13 }
 0x32a   : > { %v11435_v1 = vsel %vm945_vm6, %v5025_v10, %v5026_v56  ;;  %v11438_v11 = vsel %vm1023_vm7, %v5102_v40, %v5103_v25  ;;  %v11441_v18 = vsel %vm385_vm0, %v5179_v53, %v5180_v29  ;;  %v5572_v39 = vmul.f32 %v14754_v59, %v14752_v48  ;;  %v14756_v10 = vld [vmem:[#allocation41_spill] sm:$0xff] }
 0x32b   : > { %v4547_v41 = vadd.f32 %v4523_v9, %v4470_v63  ;;  %v11446_v20 = vsel %vm1178_vm8, %v5256_v24, %v5257_v2  ;;  %v11450_v50 = vmul.f32 %v14755_v4, %v14690_v27  ;;  %v11454_v56 = vmul.f32 %v14756_v10, %v14750_v13  ;;  %v11484_v25 = vld [vmem:[%s13515_s4 + $0x18] ss:$0 sm:$0xff] }
 0x32c   : > { %vm6038_vm14 = vcmp.eq.f32.partialorder %v11414_v62, inf  ;;  %vm6040_vm15 = vcmp.eq.f32.partialorder %v11414_v62, 0.0  ;;  %v6041_v60 = vand.u32 2147483648, %v11414_v62  ;;  %v11460_v22 = vsel %vm1256_vm9, %v5333_v55, %v5334_v37 }
 0x32d   : > { %v4624_v9 = vadd.f32 %v4600_v57, %v4547_v41  ;;  %v11463_v8 = vsel %vm789_vm4, %v5452_v58, %v5453_v15  ;;  %v11466_v28 = vsel %vm867_vm5, %v5529_v61, %v5530_v0  ;;  %v5606_v7 = vrot.slane %v5571_v31, 3  ;;  %v11519_v0 = vld [vmem:[%s13515_s4 + $0x1c] ss:$0 sm:$0xff] }
 0x32e   : > { %v5607_v26 = vrot.slane %v5572_v39, 3  ;;  %v11470_v40 = vmul.f32 %v11074_v12, %v14750_v13  ;;  %v11474_v44 = vmul.f32 %v11074_v12, %v14752_v48  ;;  %v11478_v52 = vmul.f32 %v11095_v14, %v14750_v13  ;;  %v11493_v12 = vld [vmem:[%s13515_s4 + $0x19] ss:$0 sm:$0xff] }
 0x32f   : > { %v4701_v57 = vadd.f32 %v11387_v35, %v4624_v9  ;;  %v2318_v31 = vmul.f32 %v11484_v25, %v14646_v32  ;;  %v2319_v53 = vmul.f32 %v11484_v25, %v14647_v5  ;;  %v2395_v29 = vmul.f32 %v11493_v12, %v14646_v32 }
 0x330   : > { %v6533_v35 = vpop.eup %6532  ;;  %v11499_v54 = vmul.f32 %v11095_v14, %v14752_v48  ;;  %v11503_v24 = vmul.f32 %v11119_v42, %v14750_v13  ;;  %v11507_v2 = vmul.f32 %v11119_v42, %v14752_v48  ;;  %v2396_v55 = vmul.f32 %v11493_v12, %v14647_v5 }
 0x331   : > { %v6037_v37 = vmul.f32 %v6533_v35, %v11414_v62  ;;  %v4778_v32 = vadd.f32 %v11390_v36, %v4701_v57  ;;  %v2354_v58 = vrot.slane %v2318_v31, 6  ;;  %v2355_v15 = vrot.slane %v2319_v53, 6  ;;  %v11553_v53 = vld [vmem:[%s13515_s4 + $0x1b] ss:$0 sm:$0xff]  ;;  %v11562_v35 = vld [vmem:[%s13515_s4 + $0x1e] ss:$0 sm:$0xff] }
 0x332   : > { %v11514_v14 = vsel %vm945_vm6, %v5606_v7, %v5607_v26  ;;  %v2431_v63 = vrot.slane %v2395_v29, 7  ;;  %v2432_v61 = vrot.slane %v2396_v55, 7  ;;  %v2514_v42 = vmul.f32 %v11519_v0, %v14657_v49  ;;  %v11537_v7 = vld [vmem:[%s13515_s4 + $0x1d] ss:$0 sm:$0xff] }
 0x333   : > { %v6039_v59 = vsel %vm6038_vm14, %v11414_v62, %v6037_v37  ;;  %v4799_v36 = vadd.f32 %v11382_v3, %v4778_v32  ;;  %v2356_v39 = vsel %vm1178_vm8, %v2354_v58, %v2355_v15  ;;  %v2515_v41 = vmul.f32 %v11519_v0, %v14658_v21  ;;  %v11546_v62 = vld [vmem:[%s13515_s4 + $0x1a] ss:$0 sm:$0xff] }
 0x334   : > { %v6042_v4 = vsel %vm6040_vm15, %v6041_v60, %v6039_v59  ;;  %v5683_v10 = vrot.slane %v11470_v40, 4  ;;  %v2378_v9 = vadd.f32 %v2356_v39, %v11237_v45  ;;  %v2591_v3 = vmul.f32 %v11537_v7, %v14657_v49  ;;  %v11573_v39 = vld [vmem:[%s13515_s4 + $0x1f] ss:$0 sm:$0xff] }
 0x335   : > { %v6080_v26 = vmin.f32 %v6042_v4, 80.0  ;;  %v4820_v57 = vadd.f32 %v11394_v38, %v4799_v36  ;;  %v2433_v31 = vsel %vm1256_vm9, %v2431_v63, %v2432_v61  ;;  %v2468_v45 = vmul.f32 %v11546_v62, %v14647_v5 }
 0x336   : > { %v2455_v60 = vadd.f32 %v2433_v31, %v2378_v9  ;;  %v2489_v29 = vmul.f32 %v11553_v53, %v14657_v49  ;;  %v2592_v38 = vmul.f32 %v11537_v7, %v14658_v21  ;;  %v2668_v5 = vmul.f32 %v11562_v35, %v14657_v49 }
 0x337   : > { %v6090_v55 = vmul.f32 1.442695, %v6080_v26  ;;  %v4897_v37 = vadd.f32 %v11397_v16, %v4820_v57  ;;  %v2550_v32 = vrot.slane %v2514_v42, 1  ;;  %v2551_v58 = vrot.slane %v2515_v41, 1  ;;  %v11582_v26 = vld [vmem:[%s13515_s4 + $0x20] ss:$0 sm:$0xff] }
 0x338   : > { %v2476_v15 = vadd.f32 %v2468_v45, %v2455_v60  ;;  %v2627_v63 = vrot.slane %v2591_v3, 2  ;;  %v2628_v61 = vrot.slane %v2592_v38, 2  ;;  %v2669_v59 = vmul.f32 %v11562_v35, %v14658_v21 }
 0x339   : > { %6534 = vpow2.f32 %v6090_v55  ;;  %v4974_v36 = vadd.f32 %v11429_v51, %v4897_v37  ;;  %v2745_v9 = vmul.f32 %v11573_v39, %v14657_v49  ;;  %v2746_v16 = vmul.f32 %v11573_v39, %v14658_v21 }
 0x33a   : > { %v2497_v42 = vadd.f32 %v2489_v29, %v2476_v15  ;;  %v2704_v41 = vrot.slane %v2668_v5, 3  ;;  %v2705_v3 = vrot.slane %v2669_v59, 3  ;;  %v2822_v51 = vmul.f32 %v11582_v26, %v14657_v49 }
 0x33b   : > { %v5051_v57 = vadd.f32 %v11435_v1, %v4974_v36  ;;  %v5684_v31 = vrot.slane %v11474_v44, 4  ;;  %v2552_v45 = vsel %vm789_vm4, %v2550_v32, %v2551_v58  ;;  %v2823_v60 = vmul.f32 %v11582_v26, %v14658_v21  ;;  %v11597_v1 = vld [vmem:[%s13515_s4 + $0x21] ss:$0 sm:$0xff] }
 0x33c   : > { %v2574_v38 = vadd.f32 %v2552_v45, %v2497_v42  ;;  %v2629_v5 = vsel %vm867_vm5, %v2627_v63, %v2628_v61  ;;  %v2781_v55 = vrot.slane %v2745_v9, 4  ;;  %v2782_v15 = vrot.slane %v2746_v16, 4  ;;  %v11609_v9 = vld [vmem:[%s13515_s4 + $0x22] ss:$0 sm:$0xff] }
 0x33d   : > { %v5128_v37 = vadd.f32 %v11438_v11, %v5051_v57  ;;  %v2899_v44 = vmul.f32 %v11597_v1, %v14657_v49  ;;  %v2900_v32 = vmul.f32 %v11597_v1, %v14658_v21  ;;  %v2706_v63 = vsel %vm945_vm6, %v2704_v41, %v2705_v3 }
 0x33e   : > { %v2651_v59 = vadd.f32 %v2629_v5, %v2574_v38  ;;  %v2858_v61 = vrot.slane %v2822_v51, 5  ;;  %v2859_v36 = vrot.slane %v2823_v60, 5  ;;  %v2976_v16 = vmul.f32 %v11609_v9, %v14657_v49 }
 0x33f   : > { %v5205_v11 = vadd.f32 %v11441_v18, %v5128_v37  ;;  %v2977_v42 = vmul.f32 %v11609_v9, %v14658_v21  ;;  %v6136_v57 = vadd.f32 1e-20, %v6042_v4  ;;  %v2783_v51 = vsel %vm1023_vm7, %v2781_v55, %v2782_v15 }
 0x340   : > { %v2728_v3 = vadd.f32 %v2706_v63, %v2651_v59  ;;  %v2935_v60 = vrot.slane %v2899_v44, 6  ;;  %v2936_v38 = vrot.slane %v2900_v32, 6  ;;  %v5685_v5 = vsel %vm1023_vm7, %v5683_v10, %v5684_v31  ;;  %v11635_v10 = vld [vmem:[%s13515_s4 + $0x25] ss:$0 sm:$0xff] }
 0x341   : > { %v5282_v18 = vadd.f32 %v11446_v20, %v5205_v11  ;;  %v11624_v37 = vmul.f32 %v11143_v23, %v14750_v13  ;;  %v11628_v4 = vmul.f32 %v11143_v23, %v14752_v48  ;;  %v2860_v55 = vsel %vm385_vm0, %v2858_v61, %v2859_v36 }
 0x342   : > { %v2805_v45 = vadd.f32 %v2783_v51, %v2728_v3  ;;  %v3012_v15 = vrot.slane %v2976_v16, 7  ;;  %v3013_v44 = vrot.slane %v2977_v42, 7  ;;  %v3095_v31 = vmul.f32 %v11635_v10, %v14717_v46  ;;  %v11651_v16 = vld [vmem:[%s13515_s4 + $0x23] ss:$0 sm:$0xff]  ;;  %v11669_v51 = vld [vmem:[%s13515_s4 + $0x24] ss:$0 sm:$0xff] }
 0x343   : > { %v6535_v59 = vpop.eup %6534  ;;  %v5359_v20 = vadd.f32 %v11460_v22, %v5282_v18  ;;  %v3096_v23 = vmul.f32 %v11635_v10, %v14719_v34  ;;  %6536 = vrcp.f32 %v6136_v57  ;;  %v11644_v63 = vmul.f32 %v11189_v30, %v14752_v48  ;;  %14757 = vst [vmem:[#allocation36_spill] sm:$0xff] %v11651_v16  ;;  %v11660_v30 = vld [vmem:[%s13515_s4 + $0x26] ss:$0 sm:$0xff]  ;;  %14758 = vst [vmem:[#allocation59_spill] sm:$0xff] %v11669_v51 }
 0x344   : > { %v6104_v32 = vadd.f32 1e-20, %v6535_v59  ;;  %v2882_v40 = vadd.f32 %v2860_v55, %v2805_v45  ;;  %v2937_v61 = vsel %vm1178_vm8, %v2935_v60, %v2936_v38  ;;  %v5914_v11 = vrot.slane %v11624_v37, 7  ;;  %v11677_v59 = vld [vmem:[%s13515_s4 + $0x27] ss:$0 sm:$0xff] }
 0x345   : > { %v5380_v22 = vadd.f32 %v11450_v50, %v5359_v20  ;;  %v3049_v42 = vmul.f32 %v11651_v16, %v14658_v21  ;;  %v3014_v57 = vsel %vm1256_vm9, %v3012_v15, %v3013_v44  ;;  %v3172_v45 = vmul.f32 %v11660_v30, %v14717_v46  ;;  %v11686_v15 = vld [vmem:[%s13515_s4 + $0x28] ss:$0 sm:$0xff] }
 0x346   : > { %6538 = vrcp.f32 %v6104_v32  ;;  %v2959_v36 = vadd.f32 %v2937_v61, %v2882_v40  ;;  %v3173_v3 = vmul.f32 %v11660_v30, %v14719_v34  ;;  %v3131_v60 = vrot.slane %v3095_v31, 1  ;;  %14759 = vst [vmem:[#allocation49_spill] sm:$0xff] %v11686_v15  ;;  %v11695_v40 = vld [vmem:[%s13515_s4 + $0x29] ss:$0 sm:$0xff] }
 0x347   : > { %v5401_v50 = vadd.f32 %v11454_v56, %v5380_v22  ;;  %v3070_v56 = vmul.f32 %v11669_v51, %v14717_v46  ;;  %v3132_v38 = vrot.slane %v3096_v23, 1  ;;  %v3249_v20 = vmul.f32 %v11677_v59, %v14717_v46  ;;  %14760 = vst [vmem:[#allocation2_spill] sm:$0xff] %v11695_v40 }
 0x348   : > { %v3036_v18 = vadd.f32 %v3014_v57, %v2959_v36  ;;  %v3250_v55 = vmul.f32 %v11677_v59, %v14719_v34  ;;  %v3326_v44 = vmul.f32 %v11686_v15, %v14717_v46  ;;  %v3327_v32 = vmul.f32 %v11686_v15, %v14719_v34 }
 0x349   : > { %v5478_v37 = vadd.f32 %v11463_v8, %v5401_v50  ;;  %v3403_v31 = vmul.f32 %v11695_v40, %v14717_v46  ;;  %v3404_v23 = vmul.f32 %v11695_v40, %v14719_v34  ;;  %v5915_v61 = vrot.slane %v11628_v4, 7 }
 0x34a   : > { %v3057_v8 = vadd.f32 %v3049_v42, %v3036_v18  ;;  %v3208_v36 = vrot.slane %v3172_v45, 2  ;;  %v3209_v42 = vrot.slane %v3173_v3, 2  ;;  %v3133_v57 = vsel %vm789_vm4, %v3131_v60, %v3132_v38  ;;  %v11707_v18 = vld [vmem:[%s13515_s4 + $0x2a] ss:$0 sm:$0xff] }
 0x34b   : > { %v5555_v22 = vadd.f32 %v11466_v28, %v5478_v37  ;;  %14761 = vst [vmem:[#allocation42_spill] sm:$0xff] %v11707_v18  ;;  %v3480_v41 = vmul.f32 %v11707_v18, %v14717_v46  ;;  %v3481_v29 = vmul.f32 %v11707_v18, %v14719_v34  ;;  %v3285_v37 = vrot.slane %v3249_v20, 3 }
 0x34c   : > { %v3078_v50 = vadd.f32 %v3070_v56, %v3057_v8  ;;  %v3286_v4 = vrot.slane %v3250_v55, 3  ;;  %v3362_v45 = vrot.slane %v3326_v44, 4  ;;  %v3363_v56 = vrot.slane %v3327_v32, 4 }
 0x34d   : > { %v5632_v28 = vadd.f32 %v11514_v14, %v5555_v22  ;;  %v3439_v8 = vrot.slane %v3403_v31, 5  ;;  %v3440_v60 = vrot.slane %v3404_v23, 5  ;;  %v6537_v38 = vpop.eup %6536  ;;  %v14762_v40 = vrot.slane %v11499_v54, 5  ;;  %v11723_v14 = vld [vmem:[%s13515_s4 + $0x2b] ss:$0 sm:$0xff] }
 0x34e   : > { %v3155_v3 = vadd.f32 %v3133_v57, %v3078_v50  ;;  %v14763_v15 = vrot.slane %v11478_v52, 5  ;;  %v3210_v16 = vsel %vm867_vm5, %v3208_v36, %v3209_v42  ;;  %14764 = vst [vmem:[#allocation40_spill] sm:$0xff] %v11723_v14  ;;  %v3557_v20 = vmul.f32 %v11723_v14, %v14717_v46 }
 0x34f   : > { %v5709_v58 = vadd.f32 %v5685_v5, %v5632_v28  ;;  %v3516_v32 = vrot.slane %v3480_v41, 6  ;;  %v3517_v5 = vrot.slane %v3481_v29, 6  ;;  %v3558_v54 = vmul.f32 %v11723_v14, %v14719_v34 }
 0x350   : > { %v5762_v51 = vsel %vm385_vm0, %v14763_v15, %v14762_v40  ;;  %v6539_v55 = vpop.eup %6538  ;;  %v3232_v44 = vadd.f32 %v3210_v16, %v3155_v3  ;;  %v14765_v15 = vrot.slane %v11507_v2, 6  ;;  %v14766_v40 = vrot.slane %v11503_v24, 6  ;;  %v11741_v2 = vld [vmem:[%s13515_s4 + $0x2c] ss:$0 sm:$0xff]  ;;  %v11759_v3 = vld [vmem:[%s13515_s4 + $0x2f] ss:$0 sm:$0xff] }
 0x351   : > { %v6128_v52 = vsub.f32 1.0, %v6539_v55  ;;  %v5786_v31 = vadd.f32 %v5762_v51, %v5709_v58  ;;  %v3287_v22 = vsel %vm945_vm6, %v3285_v37, %v3286_v4  ;;  %v5916_v36 = vsel %vm1256_vm9, %v5914_v11, %v5915_v61  ;;  %14767 = vst [vmem:[#allocation52_spill] sm:$0xff] %v11741_v2  ;;  %v11749_v61 = vld [vmem:[%s13515_s4 + $0x2e] ss:$0 sm:$0xff]  ;;  %14769 = vst [vmem:[#allocation54_spill] sm:$0xff] %v11759_v3 }
 0x352   : > { %v5839_v23 = vsel %vm1178_vm8, %v14766_v40, %v14765_v15  ;;  %v3309_v42 = vadd.f32 %v3287_v22, %v3232_v44  ;;  %v3364_v16 = vsel %vm1023_vm7, %v3362_v45, %v3363_v56  ;;  %v3441_v29 = vsel %vm385_vm0, %v3439_v8, %v3440_v60  ;;  %14768 = vst [vmem:[#allocation51_spill] sm:$0xff] %v11749_v61  ;;  %v11780_v44 = vld [vmem:[%s13515_s4 + $0x31] ss:$0 sm:$0xff]  ;;  %v11797_v15 = vld [vmem:[%s13515_s4 + $0x2d] ss:$0 sm:$0xff] }
 0x353   : > { %v6147_v41 = vmul.f32 %v6537_v38, %v6128_v52  ;;  %v5863_v50 = vadd.f32 %v5839_v23, %v5786_v31  ;;  %v3593_v57 = vrot.slane %v3557_v20, 7  ;;  %v3630_v24 = vmul.f32 %v11741_v2, %v14719_v34  ;;  %14771 = vst [vmem:[#allocation73_spill] sm:$0xff] %v11780_v44  ;;  %14773 = vst [vmem:[#allocation56_spill] sm:$0xff] %v11797_v15 }
 0x354   : > { %v3386_v58 = vadd.f32 %v3364_v16, %v3309_v42  ;;  %v3518_v51 = vsel %vm1178_vm8, %v3516_v32, %v3517_v5  ;;  %v3594_v11 = vrot.slane %v3558_v54, 7  ;;  %v3676_v28 = vmul.f32 %v11749_v61, %v14730_v33  ;;  %v11789_v54 = vld [vmem:[%s13515_s4 + $0x32] ss:$0 sm:$0xff] }
 0x355   : > { %v6160_v37 = vmul.f32 %v6147_v41, %v11348_v6  ;;  %v5940_v4 = vadd.f32 %v5916_v36, %v5863_v50  ;;  %v3677_v45 = vmul.f32 %v11749_v61, %v14732_v47  ;;  %v3753_v56 = vmul.f32 %v11759_v3, %v14730_v33  ;;  %v11768_v6 = vld [vmem:[%s13515_s4 + $0x30] ss:$0 sm:$0xff]  ;;  %14772 = vst [vmem:[#allocation43_spill] sm:$0xff] %v11789_v54 }
 0x356   : > { %v3463_v8 = vadd.f32 %v3441_v29, %v3386_v58  ;;  %v3754_v60 = vmul.f32 %v11759_v3, %v14732_v47  ;;  %14770 = vst [vmem:[#allocation13_spill] sm:$0xff] %v11768_v6  ;;  %v3830_v38 = vmul.f32 %v11768_v6, %v14730_v33  ;;  %v3831_v20 = vmul.f32 %v11768_v6, %v14732_v47 }
 0x357   : > { %6168 = vxpose.xlu0.b32.cont [3/8] (short) %v6160_v37, 128  ;;  %v11775_v55 = vadd.f32 %v11644_v63, %v5940_v4  ;;  %v3907_v32 = vmul.f32 %v11780_v44, %v14730_v33  ;;  %v3908_v5 = vmul.f32 %v11780_v44, %v14732_v47  ;;  %v3984_v63 = vmul.f32 %v11789_v54, %v14730_v33 }
 0x358   : > { %v3540_v52 = vadd.f32 %v3518_v51, %v3463_v8  ;;  %v3595_v31 = vsel %vm1256_vm9, %v3593_v57, %v3594_v11  ;;  %v3651_v40 = vmul.f32 %v11797_v15, %v14730_v33  ;;  %v3985_v23 = vmul.f32 %v11789_v54, %v14732_v47  ;;  %v11808_v15 = vld [vmem:[%s13515_s4 + $0x33] ss:$0 sm:$0xff] }
 0x359   : > { %v5969_v22 = vmul.f32 %v11775_v55, %v11775_v55  ;;  %v3712_v36 = vrot.slane %v3676_v28, 1  ;;  %v3713_v42 = vrot.slane %v3677_v45, 1  ;;  %v3789_v16 = vrot.slane %v3753_v56, 2  ;;  %14774 = vst [vmem:[#allocation14_spill] sm:$0xff] %v11808_v15 }
 0x35a   : > { %v3617_v29 = vadd.f32 %v3595_v31, %v3540_v52  ;;  %v3790_v41 = vrot.slane %v3754_v60, 2  ;;  %v3866_v50 = vrot.slane %v3830_v38, 3  ;;  %v3867_v57 = vrot.slane %v3831_v20, 3  ;;  %v14775_v60 = vld [vmem:[#allocation31_spill] sm:$0xff]  ;;  %v14780_v52 = vld [vmem:[#allocation50_spill] sm:$0xff] }
 0x35b   : > { %v5992_v58 = vrot.slane %v5969_v22, 4  ;;  %v3943_v51 = vrot.slane %v3907_v32, 4  ;;  %v3944_v11 = vrot.slane %v3908_v5, 4  ;;  %v4020_v37 = vrot.slane %v3984_v63, 5  ;;  %v14778_v5 = vld [vmem:[#allocation70_spill] sm:$0xff] }
 0x35c   : > { %v3638_v4 = vadd.f32 %v3630_v24, %v3617_v29  ;;  %v4021_v8 = vrot.slane %v3985_v23, 5  ;;  %v4061_v28 = vmul.f32 %v11808_v15, %v14730_v33  ;;  %v4062_v45 = vmul.f32 %v11808_v15, %v14732_v47  ;;  %v11821_v24 = vld [vmem:[%s13515_s4 + $0x34] ss:$0 sm:$0xff] }
 0x35d   : > { %v5993_v56 = vadd.f32 %v5992_v58, %v5969_v22  ;;  %v11816_v38 = vadd.f32 %v14775_v60, %v11203_v19  ;;  %14777 = vst [vmem:[#allocation98_spill] sm:$0xff] %v11821_v24  ;;  %v4138_v20 = vmul.f32 %v11821_v24, %v14730_v33  ;;  %v4139_v32 = vmul.f32 %v11821_v24, %v14732_v47 }
 0x35e   : > { %v11829_v63 = vadd.f32 %v14778_v5, %v11219_v43  ;;  %v11833_v31 = vadd.f32 %v14780_v52, %v11233_v17  ;;  %v3659_v19 = vadd.f32 %v3651_v40, %v3638_v4  ;;  %v3714_v23 = vsel %vm789_vm4, %v3712_v36, %v3713_v42  ;;  %v11843_v17 = vld [vmem:[%s13515_s4 + $0x35] ss:$0 sm:$0xff]  ;;  %v11850_v42 = vld [vmem:[%s13515_s4 + $0x37] ss:$0 sm:$0xff] }
 0x35f   : > { %14776 = vst [vmem:[#allocation74_spill] sm:$0xff] %v11816_v38  ;;  %v5994_v22 = vrot.slane %v5993_v56, 2  ;;  %v3791_v29 = vsel %vm867_vm5, %v3789_v16, %v3790_v41  ;;  %v3868_v58 = vsel %vm945_vm6, %v3866_v50, %v3867_v57  ;;  %v3945_v60 = vsel %vm1023_vm7, %v3943_v51, %v3944_v11  ;;  %14781 = vst [vmem:[#allocation104_spill] sm:$0xff] %v11843_v17  ;;  %v14783_v16 = vld [vmem:[#allocation9_spill] sm:$0xff] }
 0x360   : > { %14779 = vst [vmem:[#allocation57_spill] sm:$0xff] %v11829_v63  ;;  %v3736_v2 = vadd.f32 %v3714_v23, %v3659_v19  ;;  %v4022_v24 = vsel %vm385_vm0, %v4020_v37, %v4021_v8  ;;  %v4097_v15 = vrot.slane %v4061_v28, 6  ;;  %v4098_v43 = vrot.slane %v4062_v45, 6  ;;  %14782 = vst [vmem:[#allocation62_spill] sm:$0xff] %v11850_v42  ;;  %v11859_v57 = vld [vmem:[%s13515_s4 + $0x38] ss:$0 sm:$0xff] }
 0x361   : > { %v5995_v5 = vadd.f32 %v5994_v22, %v5993_v56  ;;  %v4174_v63 = vrot.slane %v4138_v20, 7  ;;  %v4175_v54 = vrot.slane %v4139_v32, 7  ;;  %v4211_v40 = vmul.f32 %v11843_v17, %v14732_v47  ;;  %14784 = vst [vmem:[#allocation21_spill] sm:$0xff] %v11859_v57  ;;  %v11868_v37 = vld [vmem:[%s13515_s4 + $0x39] ss:$0 sm:$0xff] }
 0x362   : > { %v3813_v36 = vadd.f32 %v3791_v29, %v3736_v2  ;;  %v4257_v41 = vmul.f32 %v11850_v42, %v14783_v16  ;;  %v4258_v50 = vmul.f32 %v11850_v42, %v14690_v27  ;;  %v4334_v51 = vmul.f32 %v11859_v57, %v14783_v16  ;;  %14785 = vst [vmem:[#allocation27_spill] sm:$0xff] %v11868_v37  ;;  %v11877_v45 = vld [vmem:[%s13515_s4 + $0x3a] ss:$0 sm:$0xff]  ;;  %v11886_v32 = vld [vmem:[%s13515_s4 + $0x3b] ss:$0 sm:$0xff] }
 0x363   : > { %v5996_v2 = vrot.slane %v5995_v5, 1  ;;  %v4335_v11 = vmul.f32 %v11859_v57, %v14690_v27  ;;  %v4411_v4 = vmul.f32 %v11868_v37, %v14783_v16  ;;  %v4412_v8 = vmul.f32 %v11868_v37, %v14690_v27  ;;  %14786 = vst [vmem:[#allocation61_spill] sm:$0xff] %v11877_v45  ;;  %14787 = vst [vmem:[#allocation18_spill] sm:$0xff] %v11886_v32  ;;  %v11896_v22 = vld [vmem:[%s13515_s4 + $0x36] ss:$0 sm:$0xff] }
 0x364   : > { %v3890_v28 = vadd.f32 %v3868_v58, %v3813_v36  ;;  %v4488_v56 = vmul.f32 %v11877_v45, %v14783_v16  ;;  %v4489_v20 = vmul.f32 %v11877_v45, %v14690_v27  ;;  %v4565_v52 = vmul.f32 %v11886_v32, %v14783_v16  ;;  %14788 = vst [vmem:[#allocation22_spill] sm:$0xff] %v11896_v22 }
 0x365   : > { %v11890_v19 = vadd.f32 %v5996_v2, %v5995_v5  ;;  %v4099_v23 = vsel %vm1178_vm8, %v4097_v15, %v4098_v43  ;;  %v4232_v29 = vmul.f32 %v11896_v22, %v14783_v16  ;;  %v4566_v58 = vmul.f32 %v11886_v32, %v14690_v27  ;;  %v11906_v22 = vld [vmem:[%s13515_s4 + $0x3c] ss:$0 sm:$0xff] }
 0x366   : > { %v3967_v36 = vadd.f32 %v3945_v60, %v3890_v28  ;;  %v4293_v17 = vrot.slane %v4257_v41, 1  ;;  %v4294_v45 = vrot.slane %v4258_v50, 1  ;;  %v4370_v37 = vrot.slane %v4334_v51, 2  ;;  %14789 = vst [vmem:[#allocation78_spill] sm:$0xff] %v11906_v22  ;;  %v11915_v50 = vld [vmem:[%s13515_s4 + $0x3d] ss:$0 sm:$0xff] }
 0x367   : > { %6540 = vrsqrt.f32 %v11890_v19  ;;  %v4371_v5 = vrot.slane %v4335_v11, 2  ;;  %v4447_v2 = vrot.slane %v4411_v4, 3  ;;  %v4448_v15 = vrot.slane %v4412_v8, 3  ;;  %14790 = vst [vmem:[#allocation77_spill] sm:$0xff] %v11915_v50 }
 0x368   : > { %v4044_v43 = vadd.f32 %v4022_v24, %v3967_v36  ;;  %v4524_v57 = vrot.slane %v4488_v56, 4  ;;  %v4525_v42 = vrot.slane %v4489_v20, 4  ;;  %v4601_v44 = vrot.slane %v4565_v52, 5  ;;  %v11928_v20 = vld [vmem:[%s13515_s4 + $0x40] ss:$0 sm:$0xff] }
 0x369   : > { %v4602_v6 = vrot.slane %v4566_v58, 5  ;;  %v4642_v60 = vmul.f32 %v11906_v22, %v14783_v16  ;;  %v4643_v41 = vmul.f32 %v11906_v22, %v14690_v27  ;;  %v4719_v24 = vmul.f32 %v11915_v50, %v14783_v16  ;;  %14791 = vst [vmem:[#allocation19_spill] sm:$0xff] %v11928_v20 }
 0x36a   : > { %v4121_v51 = vadd.f32 %v4099_v23, %v4044_v43  ;;  %v4176_v11 = vsel %vm1256_vm9, %v4174_v63, %v4175_v54  ;;  %v4295_v4 = vsel %vm789_vm4, %v4293_v17, %v4294_v45  ;;  %v4720_v8 = vmul.f32 %v11915_v50, %v14690_v27 }
 0x36b   : > { %v4372_v28 = vsel %vm867_vm5, %v4370_v37, %v4371_v5  ;;  %v4449_v56 = vsel %vm945_vm6, %v4447_v2, %v4448_v15  ;;  %v4838_v52 = vmul.f32 %v11928_v20, %v14750_v13  ;;  %v4839_v54 = vmul.f32 %v11928_v20, %v14752_v48  ;;  %v11938_v37 = vld [vmem:[%s13515_s4 + $0x41] ss:$0 sm:$0xff]  ;;  %v11951_v15 = vld [vmem:[%s13515_s4 + $0x3e] ss:$0 sm:$0xff] }
 0x36c   : > { %v4198_v63 = vadd.f32 %v4176_v11, %v4121_v51  ;;  %v4526_v17 = vsel %vm1023_vm7, %v4524_v57, %v4525_v42  ;;  %14792 = vst [vmem:[#allocation30_spill] sm:$0xff] %v11938_v37  ;;  %v4915_v45 = vmul.f32 %v11938_v37, %v14750_v13  ;;  %v4916_v23 = vmul.f32 %v11938_v37, %v14752_v48 }
 0x36d   : > { %v11945_v58 = vsel %vm385_vm0, %v4601_v44, %v4602_v6  ;;  %v4678_v36 = vrot.slane %v4642_v60, 6  ;;  %v4679_v5 = vrot.slane %v4643_v41, 6  ;;  %v4755_v2 = vrot.slane %v4719_v24, 7  ;;  %14793 = vst [vmem:[#allocation29_spill] sm:$0xff] %v11951_v15  ;;  %v11960_v6 = vld [vmem:[%s13515_s4 + $0x42] ss:$0 sm:$0xff] }
 0x36e   : > { %vm6045_vm1 = vcmp.eq.f32.partialorder %v11890_v19, inf  ;;  %v4219_v42 = vadd.f32 %v4211_v40, %v4198_v63  ;;  %v4756_v57 = vrot.slane %v4720_v8, 7  ;;  %v11955_v43 = vmul.f32 %v11951_v15, %v14690_v27  ;;  %14794 = vst [vmem:[#allocation105_spill] sm:$0xff] %v11960_v6  ;;  %v11969_v8 = vld [vmem:[%s13515_s4 + $0x43] ss:$0 sm:$0xff] }
 0x36f   : > { %v4874_v51 = vrot.slane %v4838_v52, 1  ;;  %v4875_v11 = vrot.slane %v4839_v54, 1  ;;  %v4992_v44 = vmul.f32 %v11960_v6, %v14750_v13  ;;  %v4993_v40 = vmul.f32 %v11960_v6, %v14752_v48  ;;  %14795 = vst [vmem:[#allocation35_spill] sm:$0xff] %v11969_v8  ;;  %v11983_v6 = vld [vmem:[%s13515_s4 + $0x3f] ss:$0 sm:$0xff] }
 0x370   : > { %v4240_v60 = vadd.f32 %v4232_v29, %v4219_v42  ;;  %v4951_v41 = vrot.slane %v4915_v45, 2  ;;  %v4952_v24 = vrot.slane %v4916_v23, 2  ;;  %v5069_v52 = vmul.f32 %v11969_v8, %v14750_v13  ;;  %14796 = vst [vmem:[#allocation112_spill] sm:$0xff] %v11983_v6 }
 0x371   : > { %v6541_v54 = vpop.eup %6540  ;;  %vm6047_vm2 = vcmp.eq.f32.partialorder %v11890_v19, 0.0  ;;  %v6048_v63 = vand.u32 2147483648, %v11890_v19  ;;  %v4680_v15 = vsel %vm1178_vm8, %v4678_v36, %v4679_v5  ;;  %v5070_v29 = vmul.f32 %v11969_v8, %v14752_v48  ;;  %v12012_v8 = vld [vmem:[%s13515_s4 + $0x45] ss:$0 sm:$0xff] }
 0x372   : > { %v6044_v45 = vmul.f32 %v6541_v54, %v11890_v19  ;;  %v4317_v23 = vadd.f32 %v4295_v4, %v4240_v60  ;;  %v4757_v42 = vsel %vm1256_vm9, %v4755_v2, %v4756_v57  ;;  %v11987_v37 = vmul.f32 %v11983_v6, %v14750_v13  ;;  %v11995_v4 = vld [vmem:[%s13515_s4 + $0x44] ss:$0 sm:$0xff]  ;;  %14798 = vst [vmem:[#allocation87_spill] sm:$0xff] %v12012_v8 }
 0x373   : > { %v11990_v20 = vsel %vm789_vm4, %v4874_v51, %v4875_v11  ;;  %v5028_v36 = vrot.slane %v4992_v44, 3  ;;  %v5029_v5 = vrot.slane %v4993_v40, 3  ;;  %14797 = vst [vmem:[#allocation20_spill] sm:$0xff] %v11995_v4  ;;  %v5146_v2 = vmul.f32 %v11995_v4, %v14750_v13 }
 0x374   : > { %v6046_v57 = vsel %vm6045_vm1, %v11890_v19, %v6044_v45  ;;  %v4394_v60 = vadd.f32 %v4372_v28, %v4317_v23  ;;  %v12003_v54 = vsel %vm867_vm5, %v4951_v41, %v4952_v24  ;;  %v5105_v51 = vrot.slane %v5069_v52, 4  ;;  %v12021_v19 = vld [vmem:[%s13515_s4 + $0x46] ss:$0 sm:$0xff] }
 0x375   : > { %v6049_v11 = vsel %vm6047_vm2, %v6048_v63, %v6046_v57  ;;  %v5106_v44 = vrot.slane %v5070_v29, 4  ;;  %v5147_v40 = vmul.f32 %v11995_v4, %v14752_v48  ;;  %v5223_v45 = vmul.f32 %v12012_v8, %v14750_v13  ;;  %14799 = vst [vmem:[#allocation107_spill] sm:$0xff] %v12021_v19  ;;  %v12030_v29 = vld [vmem:[%s13515_s4 + $0x49] ss:$0 sm:$0xff] }
 0x376   : > { %v6081_v28 = vmin.f32 %v6049_v11, 80.0  ;;  %v4471_v23 = vadd.f32 %v4449_v56, %v4394_v60  ;;  %v5224_v41 = vmul.f32 %v12012_v8, %v14752_v48  ;;  %v5300_v24 = vmul.f32 %v12021_v19, %v14750_v13  ;;  %14800 = vst [vmem:[#allocation60_spill] sm:$0xff] %v12030_v29  ;;  %v14801_v56 = vld [vmem:[#allocation116_spill] sm:$0xff]  ;;  %v12048_v13 = vld [vmem:[%s13515_s4 + $0x4b] ss:$0 sm:$0xff] }
 0x377   : > { %v5182_v52 = vrot.slane %v5146_v2, 5  ;;  %v5301_v63 = vmul.f32 %v12021_v19, %v14752_v48  ;;  %v5419_v57 = vmul.f32 %v12030_v29, %v14801_v56  ;;  %v14802_v60 = vld [vmem:[#allocation88_spill] sm:$0xff]  ;;  %v12039_v2 = vld [vmem:[%s13515_s4 + $0x4a] ss:$0 sm:$0xff]  ;;  %v5183_v22 = vrot.slane %v5147_v40, 5  ;;  %14804 = vst [vmem:[#allocation84_spill] sm:$0xff] %v12048_v13 }
 0x378   : > { %v5420_v8 = vmul.f32 %v12030_v29, %v14802_v60  ;;  %v6092_v4 = vmul.f32 1.442695, %v6081_v28  ;;  %v4548_v6 = vadd.f32 %v4526_v17, %v4471_v23  ;;  %14803 = vst [vmem:[#allocation5_spill] sm:$0xff] %v12039_v2  ;;  %v5496_v19 = vmul.f32 %v12039_v2, %v14801_v56 }
 0x379   : > { %v5497_v50 = vmul.f32 %v12039_v2, %v14802_v60  ;;  %v5259_v32 = vrot.slane %v5223_v45, 6  ;;  %v5573_v17 = vmul.f32 %v12048_v13, %v14801_v56  ;;  %v5574_v28 = vmul.f32 %v12048_v13, %v14802_v60  ;;  %v12060_v13 = vld [vmem:[%s13515_s4 + $0x47] ss:$0 sm:$0xff] }
 0x37a   : > { %6542 = vpow2.f32 %v6092_v4  ;;  %v4625_v23 = vadd.f32 %v11945_v58, %v4548_v6  ;;  %v5260_v29 = vrot.slane %v5224_v41, 6  ;;  %v5336_v3 = vrot.slane %v5300_v24, 7 }
 0x37b   : > { %v6137_v27 = vadd.f32 1e-20, %v6049_v11  ;;  %v5337_v2 = vrot.slane %v5301_v63, 7  ;;  %v5455_v40 = vrot.slane %v5419_v57, 1  ;;  %v5456_v45 = vrot.slane %v5420_v8, 1 }
 0x37c   : > { %v4702_v61 = vadd.f32 %v4680_v15, %v4625_v23  ;;  %v5030_v16 = vsel %vm945_vm6, %v5028_v36, %v5029_v5  ;;  %v5532_v14 = vrot.slane %v5496_v19, 2  ;;  %v5533_v38 = vrot.slane %v5497_v50, 2  ;;  %v12073_v50 = vld [vmem:[%s13515_s4 + $0x4c] ss:$0 sm:$0xff]  ;;  %v12135_v23 = vld [vmem:[%s13515_s4 + $0x4e] ss:$0 sm:$0xff] }
 0x37d   : > { %v5107_v18 = vsel %vm1023_vm7, %v5105_v51, %v5106_v44  ;;  %v12064_v58 = vmul.f32 %v12060_v13, %v14752_v48  ;;  %v5609_v6 = vrot.slane %v5573_v17, 3  ;;  %v5610_v4 = vrot.slane %v5574_v28, 3 }
 0x37e   : > { %v4779_v11 = vadd.f32 %v4757_v42, %v4702_v61  ;;  %v5184_v15 = vsel %vm385_vm0, %v5182_v52, %v5183_v22  ;;  %v12068_v8 = vsel %vm1178_vm8, %v5259_v32, %v5260_v29  ;;  %v12077_v36 = vmul.f32 %v12073_v50, %v14801_v56  ;;  %v12085_v61 = vld [vmem:[%s13515_s4 + $0x48] ss:$0 sm:$0xff] }
 0x37f   : > { %6544 = vrcp.f32 %v6137_v27  ;;  %v12080_v5 = vsel %vm1256_vm9, %v5336_v3, %v5337_v2  ;;  %v12089_v32 = vmul.f32 %v12085_v61, %v14801_v56  ;;  %v12092_v22 = vsel %vm789_vm4, %v5455_v40, %v5456_v45  ;;  %v12105_v3 = vld [vmem:[%s13515_s4 + $0x4d] ss:$0 sm:$0xff] }
 0x380   : > { %v4800_v42 = vadd.f32 %v11955_v43, %v4779_v11  ;;  %v12096_v51 = vsel %vm867_vm5, %v5532_v14, %v5533_v38  ;;  %v12100_v27 = vmul.f32 %v12073_v50, %v14802_v60  ;;  %v12109_v44 = vmul.f32 %v12105_v3, %v14801_v56  ;;  %v14805_v52 = vld [vmem:[#allocation11_spill] sm:$0xff] }
 0x381   : > { %v12112_v41 = vsel %vm945_vm6, %v5609_v6, %v5610_v4  ;;  %v2320_v14 = vmul.f32 %v11484_v25, %v14657_v49  ;;  %v2321_v38 = vmul.f32 %v11484_v25, %v14658_v21  ;;  %v2397_v43 = vmul.f32 %v11493_v12, %v14657_v49 }
 0x382   : > { %v4821_v19 = vadd.f32 %v11987_v37, %v4800_v42  ;;  %v5686_v24 = vrot.slane %v12077_v36, 4  ;;  %v2302_v63 = vadd.f32 %v14805_v52, %v11833_v31  ;;  %v2398_v29 = vmul.f32 %v11493_v12, %v14658_v21 }
 0x383   : > { %v12128_v57 = vmul.f32 %v12105_v3, %v14802_v60  ;;  %v2357_v2 = vrot.slane %v2320_v14, 6  ;;  %v2358_v17 = vrot.slane %v2321_v38, 6  ;;  %v2434_v25 = vrot.slane %v2397_v43, 7 }
 0x384   : > { %v6543_v28 = vpop.eup %6542  ;;  %v4898_v49 = vadd.f32 %v11990_v20, %v4821_v19  ;;  %v5687_v37 = vrot.slane %v12100_v27, 4  ;;  %v12139_v12 = vmul.f32 %v12135_v23, %v14801_v56  ;;  %v2435_v31 = vrot.slane %v2398_v29, 7 }
 0x385   : > { %v6105_v40 = vadd.f32 1e-20, %v6543_v28  ;;  %v2359_v45 = vsel %vm1178_vm8, %v2357_v2, %v2358_v17  ;;  %v2516_v6 = vmul.f32 %v11519_v0, %v14717_v46  ;;  %v2517_v20 = vmul.f32 %v11519_v0, %v14719_v34 }
 0x386   : > { %v4975_v4 = vadd.f32 %v12003_v54, %v4898_v49  ;;  %v5763_v11 = vrot.slane %v12109_v44, 5  ;;  %v2379_v42 = vadd.f32 %v2359_v45, %v2302_v63  ;;  %v2593_v14 = vmul.f32 %v11537_v7, %v14717_v46 }
 0x387   : > { %6546 = vrcp.f32 %v6105_v40  ;;  %v2436_v38 = vsel %vm1256_vm9, %v2434_v25, %v2435_v31  ;;  %v2594_v43 = vmul.f32 %v11537_v7, %v14719_v34  ;;  %v2670_v19 = vmul.f32 %v11562_v35, %v14717_v46 }
 0x388   : > { %v5052_v52 = vadd.f32 %v5030_v16, %v4975_v4  ;;  %v2456_v29 = vadd.f32 %v2436_v38, %v2379_v42  ;;  %v2469_v0 = vmul.f32 %v11546_v62, %v14658_v21  ;;  %v2671_v54 = vmul.f32 %v11562_v35, %v14719_v34 }
 0x389   : > { %v6545_v44 = vpop.eup %6544  ;;  %v5764_v63 = vrot.slane %v12128_v57, 5  ;;  %v12162_v2 = vmul.f32 %v12135_v23, %v14802_v60  ;;  %v2553_v17 = vrot.slane %v2516_v6, 1  ;;  %v2554_v7 = vrot.slane %v2517_v20, 1 }
 0x38a   : > { %v5129_v25 = vadd.f32 %v5107_v18, %v5052_v52  ;;  %v2477_v28 = vadd.f32 %v2469_v0, %v2456_v29  ;;  %v2490_v16 = vmul.f32 %v11553_v53, %v14717_v46  ;;  %v2630_v49 = vrot.slane %v2593_v14, 2 }
 0x38b   : > { %v2631_v31 = vrot.slane %v2594_v43, 2  ;;  %v2707_v21 = vrot.slane %v2670_v19, 3  ;;  %v2747_v62 = vmul.f32 %v11573_v39, %v14717_v46  ;;  %v2748_v35 = vmul.f32 %v11573_v39, %v14719_v34  ;;  %v12182_v39 = vld [vmem:[%s13515_s4 + $0x4f] ss:$0 sm:$0xff] }
 0x38c   : > { %v5206_v57 = vadd.f32 %v5184_v15, %v5129_v25  ;;  %v2498_v40 = vadd.f32 %v2490_v16, %v2477_v28  ;;  %v2708_v45 = vrot.slane %v2671_v54, 3  ;;  %v2824_v6 = vmul.f32 %v11582_v26, %v14717_v46 }
 0x38d   : > { %v5840_v18 = vrot.slane %v12139_v12, 6  ;;  %v2555_v20 = vsel %vm789_vm4, %v2553_v17, %v2554_v7  ;;  %v2825_v53 = vmul.f32 %v11582_v26, %v14719_v34  ;;  %v2901_v4 = vmul.f32 %v11597_v1, %v14717_v46 }
 0x38e   : > { %v5283_v42 = vadd.f32 %v12068_v8, %v5206_v57  ;;  %v12186_v15 = vmul.f32 %v12182_v39, %v14801_v56  ;;  %v2575_v14 = vadd.f32 %v2555_v20, %v2498_v40  ;;  %v2902_v38 = vmul.f32 %v11597_v1, %v14719_v34 }
 0x38f   : > { %v12192_v26 = vmul.f32 %v12182_v39, %v14802_v60  ;;  %v2632_v43 = vsel %vm867_vm5, %v2630_v49, %v2631_v31  ;;  %v2784_v8 = vrot.slane %v2747_v62, 4  ;;  %v2785_v19 = vrot.slane %v2748_v35, 4  ;;  %v12211_v35 = vld [vmem:[%s13515_s4 + $0x50] ss:$0 sm:$0xff] }
 0x390   : > { %v5360_v52 = vadd.f32 %v12080_v5, %v5283_v42  ;;  %v2652_v29 = vadd.f32 %v2632_v43, %v2575_v14  ;;  %v2709_v0 = vsel %vm945_vm6, %v2707_v21, %v2708_v45  ;;  %v2861_v54 = vrot.slane %v2824_v6, 5 }
 0x391   : > { %v6547_v17 = vpop.eup %6546  ;;  %v2862_v7 = vrot.slane %v2825_v53, 5  ;;  %v2938_v25 = vrot.slane %v2901_v4, 6  ;;  %v2978_v1 = vmul.f32 %v11609_v9, %v14717_v46  ;;  %v2979_v28 = vmul.f32 %v11609_v9, %v14719_v34 }
 0x392   : > { %v6129_v16 = vsub.f32 1.0, %v6547_v17  ;;  %v5381_v49 = vadd.f32 %v12064_v58, %v5360_v52  ;;  %v2729_v31 = vadd.f32 %v2709_v0, %v2652_v29  ;;  %v2939_v62 = vrot.slane %v2902_v38, 6  ;;  %v14806_v38 = vld [vmem:[#allocation36_spill] sm:$0xff]  ;;  %v14808_v52 = vld [vmem:[#allocation49_spill] sm:$0xff] }
 0x393   : > { %v5688_v5 = vsel %vm1023_vm7, %v5686_v24, %v5687_v37  ;;  %v5841_v21 = vrot.slane %v12162_v2, 6  ;;  %v12215_v9 = vmul.f32 %v12211_v35, %v14802_v60  ;;  %v2786_v58 = vsel %vm1023_vm7, %v2784_v8, %v2785_v19  ;;  %v14807_v8 = vld [vmem:[#allocation59_spill] sm:$0xff] }
 0x394   : > { %v6149_v57 = vmul.f32 %v6545_v44, %v6129_v16  ;;  %v5402_v27 = vadd.f32 %v12089_v32, %v5381_v49  ;;  %v5765_v36 = vsel %vm385_vm0, %v5763_v11, %v5764_v63  ;;  %v2806_v40 = vadd.f32 %v2786_v58, %v2729_v31  ;;  %v14809_v16 = vld [vmem:[#allocation2_spill] sm:$0xff] }
 0x395   : > { %v5917_v24 = vrot.slane %v12186_v15, 7  ;;  %v2863_v37 = vsel %vm385_vm0, %v2861_v54, %v2862_v7  ;;  %v3015_v2 = vrot.slane %v2978_v1, 7  ;;  %v3016_v45 = vrot.slane %v2979_v28, 7  ;;  %v14810_v31 = vld [vmem:[#allocation42_spill] sm:$0xff] }
 0x396   : > { %v6161_v6 = vmul.f32 %v6149_v57, %v11775_v55  ;;  %v5479_v20 = vadd.f32 %v12092_v22, %v5402_v27  ;;  %v2883_v53 = vadd.f32 %v2863_v37, %v2806_v40  ;;  %v2940_v4 = vsel %vm1178_vm8, %v2938_v25, %v2939_v62 }
 0x397   : > { %v3097_v44 = vmul.f32 %v11635_v10, %v14730_v33  ;;  %v3098_v32 = vmul.f32 %v11635_v10, %v14732_v47  ;;  %v3174_v11 = vmul.f32 %v11660_v30, %v14730_v33  ;;  %v3175_v63 = vmul.f32 %v11660_v30, %v14732_v47 }
 0x398   : > { %6169 = vxpose.xlu0.b32.cont [4/8] (short) %v6161_v6, 128  ;;  %v5556_v55 = vadd.f32 %v12096_v51, %v5479_v20  ;;  %v2960_v42 = vadd.f32 %v2940_v4, %v2883_v53  ;;  %v3251_v22 = vmul.f32 %v11677_v59, %v14730_v33  ;;  %v3252_v15 = vmul.f32 %v11677_v59, %v14732_v47  ;;  %v14812_v6 = vld [vmem:[#allocation94_spill] sm:$0xff] }
 0x399   : > { %v5918_v14 = vrot.slane %v12192_v26, 7  ;;  %v3017_v10 = vsel %vm1256_vm9, %v3015_v2, %v3016_v45  ;;  %v3050_v43 = vmul.f32 %v14806_v38, %v14719_v34  ;;  %v3071_v30 = vmul.f32 %v14807_v8, %v14730_v33  ;;  %v14811_v45 = vld [vmem:[#allocation74_spill] sm:$0xff] }
 0x39a   : > { %v5633_v19 = vadd.f32 %v12112_v41, %v5556_v55  ;;  %v3037_v51 = vadd.f32 %v3017_v10, %v2960_v42  ;;  %v3328_v29 = vmul.f32 %v14808_v52, %v14730_v33  ;;  %v3329_v0 = vmul.f32 %v14808_v52, %v14732_v47  ;;  %v14816_v10 = vld [vmem:[#allocation51_spill] sm:$0xff] }
 0x39b   : > { %v3134_v59 = vrot.slane %v3097_v44, 1  ;;  %v3135_v54 = vrot.slane %v3098_v32, 1  ;;  %v3211_v26 = vrot.slane %v3174_v11, 2  ;;  %v3212_v17 = vrot.slane %v3175_v63, 2 }
 0x39c   : > { %v5710_v7 = vadd.f32 %v5688_v5, %v5633_v19  ;;  %v3058_v25 = vadd.f32 %v3050_v43, %v3037_v51  ;;  %v3288_v1 = vrot.slane %v3251_v22, 3  ;;  %v3289_v28 = vrot.slane %v3252_v15, 3  ;;  %v14817_v43 = vld [vmem:[#allocation114_spill] sm:$0xff] }
 0x39d   : > { %v3405_v49 = vmul.f32 %v14809_v16, %v14730_v33  ;;  %v3406_v41 = vmul.f32 %v14809_v16, %v14732_v47  ;;  %v3482_v62 = vmul.f32 %v14810_v31, %v14730_v33  ;;  %v3483_v58 = vmul.f32 %v14810_v31, %v14732_v47 }
 0x39e   : > { %v5787_v57 = vadd.f32 %v5765_v36, %v5710_v7  ;;  %v3079_v27 = vadd.f32 %v3071_v30, %v3058_v25  ;;  %v3365_v40 = vrot.slane %v3328_v29, 4  ;;  %v3366_v37 = vrot.slane %v3329_v0, 4  ;;  %v14818_v30 = vld [vmem:[#allocation54_spill] sm:$0xff]  ;;  %v14819_v0 = vld [vmem:[#allocation13_spill] sm:$0xff] }
 0x39f   : > { %v5842_v5 = vsel %vm1178_vm8, %v5840_v18, %v5841_v21  ;;  %v5919_v2 = vsel %vm1256_vm9, %v5917_v24, %v5918_v14  ;;  %v12263_v20 = vadd.f32 %v14812_v6, %v14811_v45  ;;  %v3136_v53 = vsel %vm789_vm4, %v3134_v59, %v3135_v54  ;;  %v14814_v24 = vld [vmem:[#allocation40_spill] sm:$0xff]  ;;  %v14815_v14 = vld [vmem:[#allocation9_spill] sm:$0xff] }
 0x3a0   : > { %v5864_v4 = vadd.f32 %v5842_v5, %v5787_v57  ;;  %v3156_v44 = vadd.f32 %v3136_v53, %v3079_v27  ;;  %v3213_v32 = vsel %vm867_vm5, %v3211_v26, %v3212_v17  ;;  %v3290_v36 = vsel %vm945_vm6, %v3288_v1, %v3289_v28  ;;  %v14820_v7 = vld [vmem:[#allocation73_spill] sm:$0xff] }
 0x3a1   : > { %14813 = vst [vmem:[#allocation58_spill] sm:$0xff] %v12263_v20  ;;  %v3442_v11 = vrot.slane %v3405_v49, 5  ;;  %v3443_v63 = vrot.slane %v3406_v41, 5  ;;  %v3519_v55 = vrot.slane %v3482_v62, 6  ;;  %v3520_v12 = vrot.slane %v3483_v58, 6  ;;  %v14851_v20 = vld [vmem:[#allocation84_spill] sm:$0xff] }
 0x3a2   : > { %v5941_v42 = vadd.f32 %v5919_v2, %v5864_v4  ;;  %v3233_v18 = vadd.f32 %v3213_v32, %v3156_v44  ;;  %v3367_v21 = vsel %vm1023_vm7, %v3365_v40, %v3366_v37  ;;  %v3559_v22 = vmul.f32 %v14814_v24, %v14730_v33  ;;  %v14821_v2 = vld [vmem:[#allocation43_spill] sm:$0xff]  ;;  %v14822_v32 = vld [vmem:[#allocation14_spill] sm:$0xff] }
 0x3a3   : > { %v3560_v15 = vmul.f32 %v14814_v24, %v14732_v47  ;;  %v3678_v38 = vmul.f32 %v14816_v10, %v14815_v14  ;;  %v3679_v8 = vmul.f32 %v14816_v10, %v14817_v43  ;;  %v3755_v19 = vmul.f32 %v14818_v30, %v14815_v14 }
 0x3a4   : > { %v12280_v51 = vadd.f32 %v12215_v9, %v5941_v42  ;;  %v3310_v52 = vadd.f32 %v3290_v36, %v3233_v18  ;;  %v3756_v29 = vmul.f32 %v14818_v30, %v14817_v43  ;;  %v3832_v59 = vmul.f32 %v14819_v0, %v14815_v14  ;;  %v14825_v42 = vld [vmem:[#allocation52_spill] sm:$0xff] }
 0x3a5   : > { %v3444_v54 = vsel %vm385_vm0, %v3442_v11, %v3443_v63  ;;  %v3521_v26 = vsel %vm1178_vm8, %v3519_v55, %v3520_v12  ;;  %v3833_v17 = vmul.f32 %v14819_v0, %v14817_v43  ;;  %v3909_v25 = vmul.f32 %v14820_v7, %v14815_v14  ;;  %v14823_v11 = vld [vmem:[#allocation57_spill] sm:$0xff]  ;;  %v14824_v63 = vld [vmem:[#allocation63_spill] sm:$0xff] }
 0x3a6   : > { %v5970_v9 = vmul.f32 %v12280_v51, %v12280_v51  ;;  %v3387_v1 = vadd.f32 %v3367_v21, %v3310_v52  ;;  %v3596_v28 = vrot.slane %v3559_v22, 7  ;;  %v3910_v16 = vmul.f32 %v14820_v7, %v14817_v43 }
 0x3a7   : > { %v3597_v49 = vrot.slane %v3560_v15, 7  ;;  %v3715_v41 = vrot.slane %v3678_v38, 1  ;;  %v3716_v31 = vrot.slane %v3679_v8, 1  ;;  %v3792_v62 = vrot.slane %v3755_v19, 2  ;;  %v14826_v15 = vld [vmem:[#allocation56_spill] sm:$0xff] }
 0x3a8   : > { %v5998_v58 = vrot.slane %v5970_v9, 4  ;;  %v3464_v57 = vadd.f32 %v3444_v54, %v3387_v1  ;;  %v3793_v27 = vrot.slane %v3756_v29, 2  ;;  %v3869_v40 = vrot.slane %v3832_v59, 3  ;;  %v14829_v1 = vld [vmem:[#allocation62_spill] sm:$0xff] }
 0x3a9   : > { %v3870_v37 = vrot.slane %v3833_v17, 3  ;;  %v3946_v5 = vrot.slane %v3909_v25, 4  ;;  %v3986_v45 = vmul.f32 %v14821_v2, %v14815_v14  ;;  %v3987_v6 = vmul.f32 %v14821_v2, %v14817_v43  ;;  %v14827_v17 = vld [vmem:[#allocation98_spill] sm:$0xff] }
 0x3aa   : > { %v5999_v53 = vadd.f32 %v5998_v58, %v5970_v9  ;;  %v3541_v4 = vadd.f32 %v3521_v26, %v3464_v57  ;;  %v3947_v44 = vrot.slane %v3910_v16, 4  ;;  %v4063_v36 = vmul.f32 %v14822_v32, %v14815_v14  ;;  %v14828_v9 = vld [vmem:[#allocation46_spill] sm:$0xff] }
 0x3ab   : > { %v12304_v55 = vadd.f32 %v14824_v63, %v14823_v11  ;;  %v3598_v12 = vsel %vm1256_vm9, %v3596_v28, %v3597_v49  ;;  %v3631_v18 = vmul.f32 %v14825_v42, %v14732_v47  ;;  %v4064_v21 = vmul.f32 %v14822_v32, %v14817_v43  ;;  %v14833_v32 = vld [vmem:[#allocation104_spill] sm:$0xff]  ;;  %v14834_v11 = vld [vmem:[#allocation22_spill] sm:$0xff] }
 0x3ac   : > { %v6000_v24 = vrot.slane %v5999_v53, 2  ;;  %v3618_v22 = vadd.f32 %v3598_v12, %v3541_v4  ;;  %v3652_v10 = vmul.f32 %v14826_v15, %v14815_v14  ;;  %v3717_v38 = vsel %vm789_vm4, %v3715_v41, %v3716_v31  ;;  %v14830_v31 = vld [vmem:[#allocation21_spill] sm:$0xff] }
 0x3ad   : > { %v3794_v8 = vsel %vm867_vm5, %v3792_v62, %v3793_v27  ;;  %v3871_v30 = vsel %vm945_vm6, %v3869_v40, %v3870_v37  ;;  %v4023_v19 = vrot.slane %v3986_v45, 5  ;;  %v4024_v52 = vrot.slane %v3987_v6, 5  ;;  %v14831_v27 = vld [vmem:[#allocation27_spill] sm:$0xff]  ;;  %v14832_v45 = vld [vmem:[#allocation61_spill] sm:$0xff] }
 0x3ae   : > { %v6001_v29 = vadd.f32 %v6000_v24, %v5999_v53  ;;  %v3639_v0 = vadd.f32 %v3631_v18, %v3618_v22  ;;  %v3948_v59 = vsel %vm1023_vm7, %v3946_v5, %v3947_v44  ;;  %v4100_v54 = vrot.slane %v4063_v36, 6 }
 0x3af   : > { %v4101_v26 = vrot.slane %v4064_v21, 6  ;;  %v4140_v7 = vmul.f32 %v14827_v17, %v14815_v14  ;;  %v4141_v25 = vmul.f32 %v14827_v17, %v14817_v43  ;;  %v4259_v28 = vmul.f32 %v14829_v1, %v14828_v9 }
 0x3b0   : > { %v6002_v16 = vrot.slane %v6001_v29, 1  ;;  %v3660_v49 = vadd.f32 %v3652_v10, %v3639_v0  ;;  %v4260_v41 = vmul.f32 %v14829_v1, %v14752_v48  ;;  %v4336_v62 = vmul.f32 %v14830_v31, %v14828_v9 }
 0x3b1   : > { %v4025_v58 = vsel %vm385_vm0, %v4023_v19, %v4024_v52  ;;  %v4337_v57 = vmul.f32 %v14830_v31, %v14752_v48  ;;  %v4413_v40 = vmul.f32 %v14831_v27, %v14828_v9  ;;  %v4414_v37 = vmul.f32 %v14831_v27, %v14752_v48  ;;  %v14835_v19 = vld [vmem:[#allocation18_spill] sm:$0xff] }
 0x3b2   : > { %v12334_v5 = vadd.f32 %v6002_v16, %v6001_v29  ;;  %v3737_v2 = vadd.f32 %v3717_v38, %v3660_v49  ;;  %v4490_v6 = vmul.f32 %v14832_v45, %v14828_v9  ;;  %v4491_v53 = vmul.f32 %v14832_v45, %v14752_v48  ;;  %v14837_v16 = vld [vmem:[#allocation77_spill] sm:$0xff] }
 0x3b3   : > { %v4177_v4 = vrot.slane %v4140_v7, 7  ;;  %v4178_v44 = vrot.slane %v4141_v25, 7  ;;  %v4212_v36 = vmul.f32 %v14833_v32, %v14817_v43  ;;  %v12344_v63 = vmul.f32 %v14834_v11, %v14828_v9  ;;  %v14836_v25 = vld [vmem:[#allocation78_spill] sm:$0xff] }
 0x3b4   : > { %6548 = vrsqrt.f32 %v12334_v5  ;;  %v4296_v12 = vrot.slane %v4259_v28, 1  ;;  %v4297_v42 = vrot.slane %v4260_v41, 1  ;;  %v4373_v18 = vrot.slane %v4336_v62, 2 }
 0x3b5   : > { %v3814_v21 = vadd.f32 %v3794_v8, %v3737_v2  ;;  %v4374_v24 = vrot.slane %v4337_v57, 2  ;;  %v4450_v22 = vrot.slane %v4413_v40, 3  ;;  %v4451_v15 = vrot.slane %v4414_v37, 3 }
 0x3b6   : > { %v4527_v10 = vrot.slane %v4490_v6, 4  ;;  %v4528_v38 = vrot.slane %v4491_v53, 4  ;;  %v4567_v52 = vmul.f32 %v14835_v19, %v14828_v9  ;;  %v4568_v29 = vmul.f32 %v14835_v19, %v14752_v48  ;;  %v14841_v19 = vld [vmem:[#allocation29_spill] sm:$0xff] }
 0x3b7   : > { %v3891_v0 = vadd.f32 %v3871_v30, %v3814_v21  ;;  %v4102_v17 = vsel %vm1178_vm8, %v4100_v54, %v4101_v26  ;;  %v4179_v7 = vsel %vm1256_vm9, %v4177_v4, %v4178_v44  ;;  %v4644_v1 = vmul.f32 %v14836_v25, %v14828_v9  ;;  %v14838_v54 = vld [vmem:[#allocation19_spill] sm:$0xff]  ;;  %v14839_v4 = vld [vmem:[#allocation30_spill] sm:$0xff] }
 0x3b8   : > { %v4298_v8 = vsel %vm789_vm4, %v4296_v12, %v4297_v42  ;;  %v4645_v28 = vmul.f32 %v14836_v25, %v14752_v48  ;;  %v4721_v49 = vmul.f32 %v14837_v16, %v14828_v9  ;;  %v4722_v41 = vmul.f32 %v14837_v16, %v14752_v48 }
 0x3b9   : > { %v3968_v31 = vadd.f32 %v3948_v59, %v3891_v0  ;;  %v4375_v30 = vsel %vm867_vm5, %v4373_v18, %v4374_v24  ;;  %v4840_v26 = vmul.f32 %v14838_v54, %v14801_v56  ;;  %v4841_v62 = vmul.f32 %v14838_v54, %v14802_v60 }
 0x3ba   : > { %v4452_v57 = vsel %vm945_vm6, %v4450_v22, %v4451_v15  ;;  %v12369_v27 = vsel %vm1023_vm7, %v4527_v10, %v4528_v38  ;;  %v4604_v40 = vrot.slane %v4567_v52, 5  ;;  %v4605_v37 = vrot.slane %v4568_v29, 5  ;;  %v14842_v29 = vld [vmem:[#allocation112_spill] sm:$0xff] }
 0x3bb   : > { %vm6052_vm3 = vcmp.eq.f32.partialorder %v12334_v5, inf  ;;  %vm6054_vm10 = vcmp.eq.f32.partialorder %v12334_v5, 0.0  ;;  %v4045_v59 = vadd.f32 %v4025_v58, %v3968_v31  ;;  %v4681_v2 = vrot.slane %v4644_v1, 6  ;;  %v14840_v58 = vld [vmem:[#allocation105_spill] sm:$0xff] }
 0x3bc   : > { %v4682_v45 = vrot.slane %v4645_v28, 6  ;;  %v4758_v6 = vrot.slane %v4721_v49, 7  ;;  %v4759_v53 = vrot.slane %v4722_v41, 7  ;;  %v4917_v44 = vmul.f32 %v14839_v4, %v14801_v56  ;;  %v14843_v28 = vld [vmem:[#allocation35_spill] sm:$0xff] }
 0x3bd   : > { %v4122_v32 = vadd.f32 %v4102_v17, %v4045_v59  ;;  %v4877_v11 = vrot.slane %v4840_v26, 1  ;;  %v4878_v12 = vrot.slane %v4841_v62, 1  ;;  %v4918_v42 = vmul.f32 %v14839_v4, %v14802_v60 }
 0x3be   : > { %v6549_v18 = vpop.eup %6548  ;;  %v6055_v21 = vand.u32 2147483648, %v12334_v5  ;;  %v4606_v24 = vsel %vm385_vm0, %v4604_v40, %v4605_v37  ;;  %v4994_v22 = vmul.f32 %v14840_v58, %v14801_v56  ;;  %v4995_v15 = vmul.f32 %v14840_v58, %v14802_v60 }
 0x3bf   : > { %v6051_v10 = vmul.f32 %v6549_v18, %v12334_v5  ;;  %v4199_v38 = vadd.f32 %v4179_v7, %v4122_v32  ;;  %v12386_v52 = vmul.f32 %v14841_v19, %v14752_v48  ;;  %v12390_v0 = vmul.f32 %v14842_v29, %v14801_v56  ;;  %v14848_v18 = vld [vmem:[#allocation60_spill] sm:$0xff] }
 0x3c0   : > { %v4683_v17 = vsel %vm1178_vm8, %v4681_v2, %v4682_v45  ;;  %v12394_v25 = vsel %vm1256_vm9, %v4758_v6, %v4759_v53  ;;  %v4954_v1 = vrot.slane %v4917_v44, 2  ;;  %v5071_v16 = vmul.f32 %v14843_v28, %v14801_v56  ;;  %v14844_v2 = vld [vmem:[#allocation20_spill] sm:$0xff]  ;;  %v14845_v53 = vld [vmem:[#allocation87_spill] sm:$0xff] }
 0x3c1   : > { %v6053_v7 = vsel %vm6052_vm3, %v12334_v5, %v6051_v10  ;;  %v4220_v49 = vadd.f32 %v4212_v36, %v4199_v38  ;;  %v12402_v41 = vsel %vm789_vm4, %v4877_v11, %v4878_v12  ;;  %v4955_v31 = vrot.slane %v4918_v42, 2  ;;  %v14846_v44 = vld [vmem:[#allocation107_spill] sm:$0xff]  ;;  %v14847_v42 = vld [vmem:[#allocation26_spill] sm:$0xff]  ;;  %v14850_v10 = vld [vmem:[#allocation5_spill] sm:$0xff] }
 0x3c2   : > { %v6056_v54 = vsel %vm6054_vm10, %v6055_v21, %v6053_v7  ;;  %v5031_v26 = vrot.slane %v4994_v22, 3  ;;  %v5032_v62 = vrot.slane %v4995_v15, 3  ;;  %v5072_v40 = vmul.f32 %v14843_v28, %v14802_v60  ;;  %v14849_v22 = vld [vmem:[#allocation53_spill] sm:$0xff] }
 0x3c3   : > { %v6082_v37 = vmin.f32 %v6056_v54, 80.0  ;;  %v4241_v59 = vadd.f32 %v12344_v63, %v4220_v49  ;;  %v5148_v45 = vmul.f32 %v14844_v2, %v14801_v56  ;;  %v5149_v36 = vmul.f32 %v14844_v2, %v14802_v60 }
 0x3c4   : > { %v5108_v6 = vrot.slane %v5071_v16, 4  ;;  %v5225_v4 = vmul.f32 %v14845_v53, %v14801_v56  ;;  %v5226_v5 = vmul.f32 %v14845_v53, %v14802_v60  ;;  %v5302_v32 = vmul.f32 %v14846_v44, %v14801_v56 }
 0x3c5   : > { %v6094_v11 = vmul.f32 1.442695, %v6082_v37  ;;  %v4318_v12 = vadd.f32 %v4298_v8, %v4241_v59  ;;  %v5303_v63 = vmul.f32 %v14846_v44, %v14802_v60  ;;  %v5421_v21 = vmul.f32 %v14848_v18, %v14847_v42 }
 0x3c6   : > { %v5109_v58 = vrot.slane %v5072_v40, 4  ;;  %v5422_v15 = vmul.f32 %v14848_v18, %v14849_v22  ;;  %v5498_v38 = vmul.f32 %v14850_v10, %v14847_v42  ;;  %v5499_v19 = vmul.f32 %v14850_v10, %v14849_v22 }
 0x3c7   : > { %6550 = vpow2.f32 %v6094_v11  ;;  %v4395_v29 = vadd.f32 %v4375_v30, %v4318_v12  ;;  %v5185_v28 = vrot.slane %v5148_v45, 5  ;;  %v5186_v8 = vrot.slane %v5149_v36, 5  ;;  %v12484_v11 = vld [vmem:[%s13515_s4 + $0x18] ss:$0 sm:$0xff] }
 0x3c8   : > { %v12430_v16 = vsel %vm867_vm5, %v4954_v1, %v4955_v31  ;;  %v5262_v7 = vrot.slane %v5225_v4, 6  ;;  %v5263_v49 = vrot.slane %v5226_v5, 6  ;;  %v5339_v37 = vrot.slane %v5302_v32, 7 }
 0x3c9   : > { %v6138_v40 = vadd.f32 1e-20, %v6056_v54  ;;  %v4472_v59 = vadd.f32 %v4452_v57, %v4395_v29  ;;  %v5340_v2 = vrot.slane %v5303_v63, 7  ;;  %v5458_v53 = vrot.slane %v5421_v21, 1  ;;  %v14853_v21 = vld [vmem:[#allocation12_spill] sm:$0xff] }
 0x3ca   : > { %v5459_v44 = vrot.slane %v5422_v15, 1  ;;  %v5535_v18 = vrot.slane %v5498_v38, 2  ;;  %v5536_v56 = vrot.slane %v5499_v19, 2  ;;  %v12434_v10 = vmul.f32 %v14851_v20, %v14847_v42 }
 0x3cb   : > { %v4549_v30 = vadd.f32 %v12369_v27, %v4472_v59  ;;  %v12438_v45 = vsel %vm945_vm6, %v5031_v26, %v5032_v62  ;;  %v12441_v1 = vsel %vm1023_vm7, %v5108_v6, %v5109_v58  ;;  %v12444_v31 = vsel %vm385_vm0, %v5185_v28, %v5186_v8  ;;  %v12512_v59 = vld [vmem:[%s13515_s4 + $0x1c] ss:$0 sm:$0xff] }
 0x3cc   : > { %v12447_v57 = vsel %vm1178_vm8, %v5262_v7, %v5263_v49  ;;  %v12451_v54 = vmul.f32 %v12060_v13, %v14802_v60  ;;  %v12455_v36 = vmul.f32 %v12085_v61, %v14847_v42  ;;  %v12459_v27 = vmul.f32 %v14851_v20, %v14849_v22  ;;  %v14852_v20 = vld [vmem:[#allocation95_spill] sm:$0xff] }
 0x3cd   : > { %6552 = vrcp.f32 %v6138_v40  ;;  %v4626_v26 = vadd.f32 %v4606_v24, %v4549_v30  ;;  %v12462_v62 = vsel %vm1256_vm9, %v5339_v37, %v5340_v2  ;;  %v12466_v6 = vmul.f32 %v12073_v50, %v14847_v42  ;;  %v12528_v30 = vld [vmem:[%s13515_s4 + $0x1d] ss:$0 sm:$0xff] }
 0x3ce   : > { %v12469_v13 = vsel %vm789_vm4, %v5458_v53, %v5459_v44  ;;  %v12472_v4 = vsel %vm867_vm5, %v5535_v18, %v5536_v56  ;;  %v5612_v61 = vrot.slane %v12434_v10, 3  ;;  %v2226_v5 = vadd.f32 %v14852_v20, %v12304_v55 }
 0x3cf   : > { %v4703_v32 = vadd.f32 %v4683_v17, %v4626_v26  ;;  %v12479_v24 = vmul.f32 %v12073_v50, %v14849_v22  ;;  %v2322_v12 = vmul.f32 %v12484_v11, %v14717_v46  ;;  %v2323_v56 = vmul.f32 %v12484_v11, %v14719_v34  ;;  %v12495_v50 = vld [vmem:[%s13515_s4 + $0x19] ss:$0 sm:$0xff] }
 0x3d0   : > { %v5613_v63 = vrot.slane %v12459_v27, 3  ;;  %v2303_v55 = vadd.f32 %v14853_v21, %v2226_v5  ;;  %v2399_v17 = vmul.f32 %v12495_v50, %v14717_v46  ;;  %v2400_v58 = vmul.f32 %v12495_v50, %v14719_v34  ;;  %v12544_v5 = vld [vmem:[%s13515_s4 + $0x1e] ss:$0 sm:$0xff] }
 0x3d1   : > { %v6551_v15 = vpop.eup %6550  ;;  %v4780_v38 = vadd.f32 %v12394_v25, %v4703_v32  ;;  %v5689_v19 = vrot.slane %v12466_v6, 4  ;;  %v2360_v29 = vrot.slane %v2322_v12, 6  ;;  %v2361_v28 = vrot.slane %v2323_v56, 6  ;;  %v12627_v6 = vld [vmem:[%s13515_s4 + $0x25] ss:$0 sm:$0xff] }
 0x3d2   : > { %v6106_v8 = vadd.f32 1e-20, %v6551_v15  ;;  %v12505_v7 = vmul.f32 %v12105_v3, %v14847_v42  ;;  %v2437_v49 = vrot.slane %v2399_v17, 7  ;;  %v2438_v37 = vrot.slane %v2400_v58, 7  ;;  %v12558_v58 = vld [vmem:[%s13515_s4 + $0x1b] ss:$0 sm:$0xff] }
 0x3d3   : > { %v4801_v40 = vadd.f32 %v12386_v52, %v4780_v38  ;;  %v2362_v46 = vsel %vm1178_vm8, %v2360_v29, %v2361_v28  ;;  %v2518_v25 = vmul.f32 %v12512_v59, %v14730_v33  ;;  %v2519_v2 = vmul.f32 %v12512_v59, %v14732_v47  ;;  %v12565_v38 = vld [vmem:[%s13515_s4 + $0x1f] ss:$0 sm:$0xff] }
 0x3d4   : > { %6554 = vrcp.f32 %v6106_v8  ;;  %v5690_v53 = vrot.slane %v12479_v24, 4  ;;  %v12521_v44 = vmul.f32 %v12105_v3, %v14849_v22  ;;  %v2380_v52 = vadd.f32 %v2362_v46, %v2303_v55  ;;  %v12537_v3 = vld [vmem:[%s13515_s4 + $0x1a] ss:$0 sm:$0xff] }
 0x3d5   : > { %v4822_v18 = vadd.f32 %v12390_v0, %v4801_v40  ;;  %v2439_v10 = vsel %vm1256_vm9, %v2437_v49, %v2438_v37  ;;  %v2595_v27 = vmul.f32 %v12528_v30, %v14730_v33  ;;  %v2596_v26 = vmul.f32 %v12528_v30, %v14732_v47 }
 0x3d6   : > { %v2457_v20 = vadd.f32 %v2439_v10, %v2380_v52  ;;  %v2470_v0 = vmul.f32 %v12537_v3, %v14719_v34  ;;  %v2672_v32 = vmul.f32 %v12544_v5, %v14730_v33  ;;  %v2673_v24 = vmul.f32 %v12544_v5, %v14732_v47 }
 0x3d7   : > { %v6553_v12 = vpop.eup %6552  ;;  %v4899_v56 = vadd.f32 %v12402_v41, %v4822_v18  ;;  %v12553_v21 = vmul.f32 %v12135_v23, %v14847_v42  ;;  %v2556_v55 = vrot.slane %v2518_v25, 1  ;;  %v2557_v34 = vrot.slane %v2519_v2, 1 }
 0x3d8   : > { %v2478_v17 = vadd.f32 %v2470_v0, %v2457_v20  ;;  %v2491_v15 = vmul.f32 %v12558_v58, %v14730_v33  ;;  %v2749_v41 = vmul.f32 %v12565_v38, %v14730_v33  ;;  %v2750_v29 = vmul.f32 %v12565_v38, %v14732_v47  ;;  %v12596_v0 = vld [vmem:[%s13515_s4 + $0x21] ss:$0 sm:$0xff] }
 0x3d9   : > { %v4976_v28 = vadd.f32 %v12430_v16, %v4899_v56  ;;  %v12574_v8 = vmul.f32 %v12135_v23, %v14849_v22  ;;  %v2633_v49 = vrot.slane %v2595_v27, 2  ;;  %v2634_v37 = vrot.slane %v2596_v26, 2  ;;  %v12584_v16 = vld [vmem:[%s13515_s4 + $0x20] ss:$0 sm:$0xff] }
 0x3da   : > { %v12577_v40 = vsel %vm945_vm6, %v5612_v61, %v5613_v63  ;;  %v2499_v46 = vadd.f32 %v2491_v15, %v2478_v17  ;;  %v2710_v25 = vrot.slane %v2672_v32, 3  ;;  %v2711_v2 = vrot.slane %v2673_v24, 3 }
 0x3db   : > { %v5053_v52 = vadd.f32 %v12438_v45, %v4976_v28  ;;  %v2558_v18 = vsel %vm789_vm4, %v2556_v55, %v2557_v34  ;;  %v2826_v23 = vmul.f32 %v12584_v16, %v14730_v33  ;;  %v2827_v10 = vmul.f32 %v12584_v16, %v14732_v47 }
 0x3dc   : > { %v5766_v61 = vrot.slane %v12505_v7, 5  ;;  %v2576_v63 = vadd.f32 %v2558_v18, %v2499_v46  ;;  %v2787_v27 = vrot.slane %v2749_v41, 4  ;;  %v2788_v26 = vrot.slane %v2750_v29, 4 }
 0x3dd   : > { %v5130_v45 = vadd.f32 %v12441_v1, %v5053_v52  ;;  %v2635_v20 = vsel %vm867_vm5, %v2633_v49, %v2634_v37  ;;  %v2903_v32 = vmul.f32 %v12596_v0, %v14730_v33  ;;  %v2904_v24 = vmul.f32 %v12596_v0, %v14732_v47  ;;  %v12606_v1 = vld [vmem:[%s13515_s4 + $0x22] ss:$0 sm:$0xff] }
 0x3de   : > { %v6555_v56 = vpop.eup %6554  ;;  %v2653_v55 = vadd.f32 %v2635_v20, %v2576_v63  ;;  %v2712_v34 = vsel %vm945_vm6, %v2710_v25, %v2711_v2  ;;  %v2980_v17 = vmul.f32 %v12606_v1, %v14730_v33  ;;  %v2981_v15 = vmul.f32 %v12606_v1, %v14732_v47 }
 0x3df   : > { %v6130_v41 = vsub.f32 1.0, %v6555_v56  ;;  %v5207_v29 = vadd.f32 %v12444_v31, %v5130_v45  ;;  %v2864_v28 = vrot.slane %v2826_v23, 5  ;;  %v2865_v49 = vrot.slane %v2827_v10, 5 }
 0x3e0   : > { %v12616_v37 = vsel %vm1023_vm7, %v5689_v19, %v5690_v53  ;;  %v12620_v46 = vmul.f32 %v12182_v39, %v14847_v42  ;;  %v2730_v25 = vadd.f32 %v2712_v34, %v2653_v55  ;;  %v2789_v2 = vsel %vm1023_vm7, %v2787_v27, %v2788_v26  ;;  %v12646_v55 = vld [vmem:[%s13515_s4 + $0x23] ss:$0 sm:$0xff] }
 0x3e1   : > { %v6151_v52 = vmul.f32 %v6553_v12, %v6130_v41  ;;  %v5284_v18 = vadd.f32 %v12447_v57, %v5207_v29  ;;  %v2941_v63 = vrot.slane %v2903_v32, 6  ;;  %v2942_v20 = vrot.slane %v2904_v24, 6  ;;  %v12664_v29 = vld [vmem:[%s13515_s4 + $0x27] ss:$0 sm:$0xff] }
 0x3e2   : > { %v2807_v31 = vadd.f32 %v2789_v2, %v2730_v25  ;;  %v3018_v23 = vrot.slane %v2980_v17, 7  ;;  %v3019_v10 = vrot.slane %v2981_v15, 7  ;;  %v3099_v19 = vmul.f32 %v12627_v6, %v14815_v14 }
 0x3e3   : > { %v6162_v53 = vmul.f32 %v6151_v52, %v12280_v51  ;;  %v5361_v27 = vadd.f32 %v12462_v62, %v5284_v18  ;;  %v2866_v12 = vsel %vm385_vm0, %v2864_v28, %v2865_v49  ;;  %v3100_v57 = vmul.f32 %v12627_v6, %v14817_v43 }
 0x3e4   : > { %v5767_v26 = vrot.slane %v12521_v44, 5  ;;  %v5843_v45 = vrot.slane %v12553_v21, 6  ;;  %v5844_v32 = vrot.slane %v12574_v8, 6  ;;  %v2884_v24 = vadd.f32 %v2866_v12, %v2807_v31 }
 0x3e5   : > { %6170 = vxpose.xlu0.b32.cont [5/8] (short) %v6162_v53, 128  ;;  %v5382_v56 = vadd.f32 %v12451_v54, %v5361_v27  ;;  %v5884_v51 = vmul.f32 %v12182_v39, %v14849_v22  ;;  %v2943_v62 = vsel %vm1178_vm8, %v2941_v63, %v2942_v20  ;;  %v3051_v44 = vmul.f32 %v12646_v55, %v14732_v47  ;;  %v12654_v54 = vld [vmem:[%s13515_s4 + $0x26] ss:$0 sm:$0xff]  ;;  %v12684_v20 = vld [vmem:[%s13515_s4 + $0x29] ss:$0 sm:$0xff]  ;;  %v12693_v53 = vld [vmem:[%s13515_s4 + $0x24] ss:$0 sm:$0xff] }
 0x3e6   : > { %v2961_v21 = vadd.f32 %v2943_v62, %v2884_v24  ;;  %v3020_v8 = vsel %vm1256_vm9, %v3018_v23, %v3019_v10  ;;  %v3137_v34 = vrot.slane %v3099_v19, 1  ;;  %v3176_v39 = vmul.f32 %v12654_v54, %v14815_v14  ;;  %14855 = vst [vmem:[#allocation100_spill] sm:$0xff] %v12684_v20 }
 0x3e7   : > { %v5403_v17 = vadd.f32 %v12455_v36, %v5382_v56  ;;  %v3138_v15 = vrot.slane %v3100_v57, 1  ;;  %v3177_v41 = vmul.f32 %v12654_v54, %v14817_v43  ;;  %v3253_v28 = vmul.f32 %v12664_v29, %v14815_v14  ;;  %v12673_v36 = vld [vmem:[%s13515_s4 + $0x28] ss:$0 sm:$0xff] }
 0x3e8   : > { %v3038_v49 = vadd.f32 %v3020_v8, %v2961_v21  ;;  %v3254_v25 = vmul.f32 %v12664_v29, %v14817_v43  ;;  %14854 = vst [vmem:[#allocation108_spill] sm:$0xff] %v12673_v36  ;;  %v3330_v2 = vmul.f32 %v12673_v36, %v14815_v14  ;;  %v3331_v52 = vmul.f32 %v12673_v36, %v14817_v43  ;;  %v12894_v36 = vld [vmem:[%s13515_s4 + $0x3c] ss:$0 sm:$0xff] }
 0x3e9   : > { %v5480_v18 = vadd.f32 %v12469_v13, %v5403_v17  ;;  %v5920_v63 = vrot.slane %v12620_v46, 7  ;;  %v3407_v31 = vmul.f32 %v12684_v20, %v14815_v14  ;;  %v3408_v23 = vmul.f32 %v12684_v20, %v14817_v43  ;;  %14878 = vst [vmem:[#allocation123_spill] sm:$0xff] %v12894_v36 }
 0x3ea   : > { %v5921_v10 = vrot.slane %v5884_v51, 7  ;;  %v3059_v19 = vadd.f32 %v3051_v44, %v3038_v49  ;;  %v3072_v13 = vmul.f32 %v12693_v53, %v14815_v14  ;;  %v3214_v46 = vrot.slane %v3176_v39, 2  ;;  %v12703_v49 = vld [vmem:[%s13515_s4 + $0x2a] ss:$0 sm:$0xff] }
 0x3eb   : > { %v5557_v27 = vadd.f32 %v12472_v4, %v5480_v18  ;;  %v3139_v12 = vsel %vm789_vm4, %v3137_v34, %v3138_v15  ;;  %v3215_v57 = vrot.slane %v3177_v41, 2  ;;  %v3291_v24 = vrot.slane %v3253_v28, 3  ;;  %14856 = vst [vmem:[#allocation118_spill] sm:$0xff] %v12703_v49 }
 0x3ec   : > { %v3080_v56 = vadd.f32 %v3072_v13, %v3059_v19  ;;  %v3292_v62 = vrot.slane %v3254_v25, 3  ;;  %v3368_v21 = vrot.slane %v3330_v2, 4  ;;  %v3369_v51 = vrot.slane %v3331_v52, 4 }
 0x3ed   : > { %v5634_v44 = vadd.f32 %v12577_v40, %v5557_v27  ;;  %v3445_v8 = vrot.slane %v3407_v31, 5  ;;  %v3446_v17 = vrot.slane %v3408_v23, 5  ;;  %v3484_v4 = vmul.f32 %v12703_v49, %v14815_v14  ;;  %v12714_v40 = vld [vmem:[%s13515_s4 + $0x2b] ss:$0 sm:$0xff] }
 0x3ee   : > { %v5955_v34 = vmul.f32 %v12211_v35, %v14849_v22  ;;  %v3157_v39 = vadd.f32 %v3139_v12, %v3080_v56  ;;  %v3485_v15 = vmul.f32 %v12703_v49, %v14817_v43  ;;  %14857 = vst [vmem:[#allocation81_spill] sm:$0xff] %v12714_v40  ;;  %v3561_v41 = vmul.f32 %v12714_v40, %v14815_v14  ;;  %v12749_v56 = vld [vmem:[%s13515_s4 + $0x2f] ss:$0 sm:$0xff] }
 0x3ef   : > { %v5711_v28 = vadd.f32 %v12616_v37, %v5634_v44  ;;  %v5768_v25 = vsel %vm385_vm0, %v5766_v61, %v5767_v26  ;;  %v3216_v35 = vsel %vm867_vm5, %v3214_v46, %v3215_v57  ;;  %v3562_v2 = vmul.f32 %v12714_v40, %v14817_v43  ;;  %v12733_v46 = vld [vmem:[%s13515_s4 + $0x2c] ss:$0 sm:$0xff]  ;;  %14860 = vst [vmem:[#allocation17_spill] sm:$0xff] %v12749_v56 }
 0x3f0   : > { %v5845_v52 = vsel %vm1178_vm8, %v5843_v45, %v5844_v32  ;;  %v5922_v18 = vsel %vm1256_vm9, %v5920_v63, %v5921_v10  ;;  %v3234_v31 = vadd.f32 %v3216_v35, %v3157_v39  ;;  %v3293_v23 = vsel %vm945_vm6, %v3291_v24, %v3292_v62  ;;  %14858 = vst [vmem:[#allocation25_spill] sm:$0xff] %v12733_v46  ;;  %v12740_v10 = vld [vmem:[%s13515_s4 + $0x2e] ss:$0 sm:$0xff] }
 0x3f1   : > { %v5788_v19 = vadd.f32 %v5768_v25, %v5711_v28  ;;  %v3370_v13 = vsel %vm1023_vm7, %v3368_v21, %v3369_v51  ;;  %v3447_v37 = vsel %vm385_vm0, %v3445_v8, %v3446_v17  ;;  %v3522_v7 = vrot.slane %v3484_v4, 6  ;;  %14859 = vst [vmem:[#allocation101_spill] sm:$0xff] %v12740_v10  ;;  %v12758_v51 = vld [vmem:[%s13515_s4 + $0x30] ss:$0 sm:$0xff]  ;;  %v12767_v4 = vld [vmem:[%s13515_s4 + $0x31] ss:$0 sm:$0xff] }
 0x3f2   : > { %v3311_v27 = vadd.f32 %v3293_v23, %v3234_v31  ;;  %v3523_v61 = vrot.slane %v3485_v15, 6  ;;  %v3599_v26 = vrot.slane %v3561_v41, 7  ;;  %v3632_v45 = vmul.f32 %v12733_v46, %v14817_v43  ;;  %14861 = vst [vmem:[#allocation97_spill] sm:$0xff] %v12758_v51  ;;  %14862 = vst [vmem:[#allocation76_spill] sm:$0xff] %v12767_v4  ;;  %v12777_v25 = vld [vmem:[%s13515_s4 + $0x32] ss:$0 sm:$0xff] }
 0x3f3   : > { %v5865_v32 = vadd.f32 %v5845_v52, %v5788_v19  ;;  %v3600_v63 = vrot.slane %v3562_v2, 7  ;;  %v3680_v12 = vmul.f32 %v12740_v10, %v14828_v9  ;;  %v3681_v57 = vmul.f32 %v12740_v10, %v14752_v48  ;;  %14863 = vst [vmem:[#allocation96_spill] sm:$0xff] %v12777_v25 }
 0x3f4   : > { %v3388_v24 = vadd.f32 %v3370_v13, %v3311_v27  ;;  %v3757_v62 = vmul.f32 %v12749_v56, %v14828_v9  ;;  %v3758_v21 = vmul.f32 %v12749_v56, %v14752_v48  ;;  %v3834_v44 = vmul.f32 %v12758_v51, %v14828_v9 }
 0x3f5   : > { %v5942_v8 = vadd.f32 %v5922_v18, %v5865_v32  ;;  %v3835_v17 = vmul.f32 %v12758_v51, %v14752_v48  ;;  %v3911_v39 = vmul.f32 %v12767_v4, %v14828_v9  ;;  %v3912_v15 = vmul.f32 %v12767_v4, %v14752_v48 }
 0x3f6   : > { %v3465_v41 = vadd.f32 %v3447_v37, %v3388_v24  ;;  %v3524_v28 = vsel %vm1178_vm8, %v3522_v7, %v3523_v61  ;;  %v3988_v35 = vmul.f32 %v12777_v25, %v14828_v9  ;;  %v3989_v2 = vmul.f32 %v12777_v25, %v14752_v48 }
 0x3f7   : > { %v12783_v52 = vadd.f32 %v5955_v34, %v5942_v8  ;;  %v3601_v18 = vsel %vm1256_vm9, %v3599_v26, %v3600_v63  ;;  %v3718_v31 = vrot.slane %v3680_v12, 1  ;;  %v3719_v23 = vrot.slane %v3681_v57, 1  ;;  %v12791_v34 = vld [vmem:[%s13515_s4 + $0x33] ss:$0 sm:$0xff]  ;;  %v14865_v63 = vld [vmem:[#allocation103_spill] sm:$0xff]  ;;  %v14867_v8 = vld [vmem:[#allocation117_spill] sm:$0xff] }
 0x3f8   : > { %v3542_v19 = vadd.f32 %v3524_v28, %v3465_v41  ;;  %v3795_v13 = vrot.slane %v3757_v62, 2  ;;  %v3796_v37 = vrot.slane %v3758_v21, 2  ;;  %v3872_v7 = vrot.slane %v3834_v44, 3  ;;  %14864 = vst [vmem:[#allocation86_spill] sm:$0xff] %v12791_v34  ;;  %v12807_v21 = vld [vmem:[%s13515_s4 + $0x34] ss:$0 sm:$0xff] }
 0x3f9   : > { %v5971_v27 = vmul.f32 %v12783_v52, %v12783_v52  ;;  %v3873_v61 = vrot.slane %v3835_v17, 3  ;;  %v3949_v32 = vrot.slane %v3911_v39, 4  ;;  %v3950_v24 = vrot.slane %v3912_v15, 4  ;;  %14866 = vst [vmem:[#allocation7_spill] sm:$0xff] %v12807_v21  ;;  %v14868_v39 = vld [vmem:[#allocation58_spill] sm:$0xff]  ;;  %v14869_v15 = vld [vmem:[#allocation75_spill] sm:$0xff] }
 0x3fa   : > { %v3619_v4 = vadd.f32 %v3601_v18, %v3542_v19  ;;  %v4026_v46 = vrot.slane %v3988_v35, 5  ;;  %v4027_v51 = vrot.slane %v3989_v2, 5  ;;  %v12795_v26 = vmul.f32 %v12791_v34, %v14828_v9  ;;  %v12823_v35 = vld [vmem:[%s13515_s4 + $0x2d] ss:$0 sm:$0xff] }
 0x3fb   : > { %v12798_v12 = vmax.f32 %v14865_v63, 0.0  ;;  %v6004_v57 = vrot.slane %v5971_v27, 4  ;;  %v12802_v62 = vmul.f32 %v12791_v34, %v14752_v48  ;;  %v12811_v44 = vmul.f32 %v12807_v21, %v14828_v9  ;;  %14870 = vst [vmem:[#allocation15_spill] sm:$0xff] %v12823_v35 }
 0x3fc   : > { %v12814_v17 = vmax.f32 %v14867_v8, 0.0  ;;  %v12818_v41 = vadd.f32 %v14869_v15, %v14868_v39  ;;  %v3640_v28 = vadd.f32 %v3632_v45, %v3619_v4  ;;  %v3653_v2 = vmul.f32 %v12823_v35, %v14828_v9 }
 0x3fd   : > { %v6005_v18 = vadd.f32 %v6004_v57, %v5971_v27  ;;  %v3720_v19 = vsel %vm789_vm4, %v3718_v31, %v3719_v23  ;;  %v3797_v63 = vsel %vm867_vm5, %v3795_v13, %v3796_v37  ;;  %v3874_v8 = vsel %vm945_vm6, %v3872_v7, %v3873_v61  ;;  %v12840_v23 = vld [vmem:[%s13515_s4 + $0x37] ss:$0 sm:$0xff] }
 0x3fe   : > { %v3661_v34 = vadd.f32 %v3653_v2, %v3640_v28  ;;  %v3951_v39 = vsel %vm1023_vm7, %v3949_v32, %v3950_v24  ;;  %v4028_v45 = vsel %vm385_vm0, %v4026_v46, %v4027_v51  ;;  %v4103_v4 = vrot.slane %v12795_v26, 6  ;;  %14871 = vst [vmem:[#allocation48_spill] sm:$0xff] %v12840_v23  ;;  %v14872_v13 = vld [vmem:[#allocation116_spill] sm:$0xff]  ;;  %v12849_v51 = vld [vmem:[%s13515_s4 + $0x38] ss:$0 sm:$0xff] }
 0x3ff   : > { %v6006_v15 = vrot.slane %v6005_v18, 2  ;;  %v4104_v25 = vrot.slane %v12802_v62, 6  ;;  %v4143_v35 = vmul.f32 %v12807_v21, %v14752_v48  ;;  %v4180_v27 = vrot.slane %v12811_v44, 7  ;;  %14873 = vst [vmem:[#allocation106_spill] sm:$0xff] %v12849_v51  ;;  %v12858_v24 = vld [vmem:[%s13515_s4 + $0x39] ss:$0 sm:$0xff] }
 0x400   : > { %v3738_v31 = vadd.f32 %v3720_v19, %v3661_v34  ;;  %v4261_v37 = vmul.f32 %v12840_v23, %v14872_v13  ;;  %v4262_v46 = vmul.f32 %v12840_v23, %v14802_v60  ;;  %v4338_v7 = vmul.f32 %v12849_v51, %v14872_v13  ;;  %14874 = vst [vmem:[#allocation6_spill] sm:$0xff] %v12858_v24  ;;  %v12867_v62 = vld [vmem:[%s13515_s4 + $0x35] ss:$0 sm:$0xff]  ;;  %v12874_v28 = vld [vmem:[%s13515_s4 + $0x3a] ss:$0 sm:$0xff] }
 0x401   : > { %v6007_v61 = vadd.f32 %v6006_v15, %v6005_v18  ;;  %v4339_v32 = vmul.f32 %v12849_v51, %v14802_v60  ;;  %v4415_v34 = vmul.f32 %v12858_v24, %v14872_v13  ;;  %v4416_v26 = vmul.f32 %v12858_v24, %v14802_v60  ;;  %14875 = vst [vmem:[#allocation102_spill] sm:$0xff] %v12867_v62  ;;  %v12883_v15 = vld [vmem:[%s13515_s4 + $0x3b] ss:$0 sm:$0xff] }
 0x402   : > { %v3815_v57 = vadd.f32 %v3797_v63, %v3738_v31  ;;  %v4213_v44 = vmul.f32 %v12867_v62, %v14752_v48  ;;  %14876 = vst [vmem:[#allocation122_spill] sm:$0xff] %v12874_v28  ;;  %v4492_v2 = vmul.f32 %v12874_v28, %v14872_v13  ;;  %v4493_v18 = vmul.f32 %v12874_v28, %v14802_v60 }
 0x403   : > { %v6008_v19 = vrot.slane %v6007_v61, 1  ;;  %v4181_v63 = vrot.slane %v4143_v35, 7  ;;  %14877 = vst [vmem:[#allocation82_spill] sm:$0xff] %v12883_v15  ;;  %v4569_v31 = vmul.f32 %v12883_v15, %v14872_v13  ;;  %v4570_v62 = vmul.f32 %v12883_v15, %v14802_v60 }
 0x404   : > { %v3892_v24 = vadd.f32 %v3874_v8, %v3815_v57  ;;  %v4299_v51 = vrot.slane %v4261_v37, 1  ;;  %v4300_v23 = vrot.slane %v4262_v46, 1  ;;  %v4376_v21 = vrot.slane %v4338_v7, 2 }
 0x405   : > { %v12889_v56 = vadd.f32 %v6008_v19, %v6007_v61  ;;  %v4377_v28 = vrot.slane %v4339_v32, 2  ;;  %v4453_v10 = vrot.slane %v4415_v34, 3  ;;  %v4454_v35 = vrot.slane %v4416_v26, 3  ;;  %v12911_v32 = vld [vmem:[%s13515_s4 + $0x3d] ss:$0 sm:$0xff] }
 0x406   : > { %v3969_v40 = vadd.f32 %v3951_v39, %v3892_v24  ;;  %v4530_v49 = vrot.slane %v4492_v2, 4  ;;  %v4531_v20 = vrot.slane %v4493_v18, 4  ;;  %v4646_v15 = vmul.f32 %v12894_v36, %v14872_v13  ;;  %v12904_v39 = vld [vmem:[%s13515_s4 + $0x36] ss:$0 sm:$0xff]  ;;  %14880 = vst [vmem:[#allocation28_spill] sm:$0xff] %v12911_v32 }
 0x407   : > { %6556 = vrsqrt.f32 %v12889_v56  ;;  %v4607_v8 = vrot.slane %v4569_v31, 5  ;;  %v4608_v37 = vrot.slane %v4570_v62, 5  ;;  %v4647_v46 = vmul.f32 %v12894_v36, %v14802_v60  ;;  %14879 = vst [vmem:[#allocation79_spill] sm:$0xff] %v12904_v39  ;;  %v12922_v26 = vld [vmem:[%s13515_s4 + $0x40] ss:$0 sm:$0xff] }
 0x408   : > { %v4046_v7 = vadd.f32 %v4028_v45, %v3969_v40  ;;  %v4234_v61 = vmul.f32 %v12904_v39, %v14872_v13  ;;  %v4723_v24 = vmul.f32 %v12911_v32, %v14872_v13  ;;  %v4724_v34 = vmul.f32 %v12911_v32, %v14802_v60  ;;  %14881 = vst [vmem:[#allocation16_spill] sm:$0xff] %v12922_v26 }
 0x409   : > { %v4105_v40 = vsel %vm1178_vm8, %v4103_v4, %v4104_v25  ;;  %v4182_v45 = vsel %vm1256_vm9, %v4180_v27, %v4181_v63  ;;  %v4842_v57 = vmul.f32 %v12922_v26, %v14847_v42  ;;  %v4843_v62 = vmul.f32 %v12922_v26, %v14849_v22 }
 0x40a   : > { %v4123_v2 = vadd.f32 %v4105_v40, %v4046_v7  ;;  %v4301_v18 = vsel %vm789_vm4, %v4299_v51, %v4300_v23  ;;  %v4378_v19 = vsel %vm867_vm5, %v4376_v21, %v4377_v28  ;;  %v4455_v25 = vsel %vm945_vm6, %v4453_v10, %v4454_v35  ;;  %v12940_v7 = vld [vmem:[%s13515_s4 + $0x41] ss:$0 sm:$0xff] }
 0x40b   : > { %v12932_v4 = vsel %vm1023_vm7, %v4530_v49, %v4531_v20  ;;  %v12935_v27 = vsel %vm385_vm0, %v4607_v8, %v4608_v37  ;;  %v4684_v63 = vrot.slane %v4646_v15, 6  ;;  %v4685_v31 = vrot.slane %v4647_v46, 6  ;;  %14882 = vst [vmem:[#allocation24_spill] sm:$0xff] %v12940_v7  ;;  %v12949_v49 = vld [vmem:[%s13515_s4 + $0x42] ss:$0 sm:$0xff] }
 0x40c   : > { %v4200_v39 = vadd.f32 %v4182_v45, %v4123_v2  ;;  %v4761_v32 = vrot.slane %v4723_v24, 7  ;;  %v4762_v36 = vrot.slane %v4724_v34, 7  ;;  %v4919_v21 = vmul.f32 %v12940_v7, %v14847_v42  ;;  %14883 = vst [vmem:[#allocation10_spill] sm:$0xff] %v12949_v49  ;;  %v12956_v15 = vld [vmem:[%s13515_s4 + $0x3e] ss:$0 sm:$0xff] }
 0x40d   : > { %v4880_v10 = vrot.slane %v4842_v57, 1  ;;  %v4881_v23 = vrot.slane %v4843_v62, 1  ;;  %v4920_v20 = vmul.f32 %v12940_v7, %v14849_v22  ;;  %v4996_v51 = vmul.f32 %v12949_v49, %v14847_v42  ;;  %14884 = vst [vmem:[#allocation44_spill] sm:$0xff] %v12956_v15  ;;  %v12965_v8 = vld [vmem:[%s13515_s4 + $0x3f] ss:$0 sm:$0xff] }
 0x40e   : > { %v4221_v28 = vadd.f32 %v4213_v44, %v4200_v39  ;;  %v12960_v35 = vmul.f32 %v12956_v15, %v14802_v60  ;;  %14885 = vst [vmem:[#allocation72_spill] sm:$0xff] %v12965_v8  ;;  %v12969_v37 = vmul.f32 %v12965_v8, %v14847_v42  ;;  %v4997_v44 = vmul.f32 %v12949_v49, %v14849_v22  ;;  %v12978_v39 = vld [vmem:[%s13515_s4 + $0x43] ss:$0 sm:$0xff]  ;;  %v13055_v60 = vld [vmem:[%s13515_s4 + $0x4b] ss:$0 sm:$0xff] }
 0x40f   : > { %vm6059_vm11 = vcmp.eq.f32.partialorder %v12889_v56, inf  ;;  %v4686_v46 = vsel %vm1178_vm8, %v4684_v63, %v4685_v31  ;;  %14886 = vst [vmem:[#allocation99_spill] sm:$0xff] %v12978_v39  ;;  %v5073_v24 = vmul.f32 %v12978_v39, %v14847_v42  ;;  %v5074_v34 = vmul.f32 %v12978_v39, %v14849_v22  ;;  %v12994_v39 = vld [vmem:[%s13515_s4 + $0x44] ss:$0 sm:$0xff] }
 0x410   : > { %vm6061_vm12 = vcmp.eq.f32.partialorder %v12889_v56, 0.0  ;;  %v6062_v40 = vand.u32 2147483648, %v12889_v56  ;;  %v4242_v45 = vadd.f32 %v4234_v61, %v4221_v28  ;;  %v4763_v57 = vsel %vm1256_vm9, %v4761_v32, %v4762_v36  ;;  %14887 = vst [vmem:[#allocation83_spill] sm:$0xff] %v12994_v39  ;;  %v13015_v28 = vld [vmem:[%s13515_s4 + $0x46] ss:$0 sm:$0xff] }
 0x411   : > { %v6557_v62 = vpop.eup %6556  ;;  %v12988_v2 = vsel %vm789_vm4, %v4880_v10, %v4881_v23  ;;  %v4957_v63 = vrot.slane %v4919_v21, 2  ;;  %v4958_v31 = vrot.slane %v4920_v20, 2  ;;  %v5034_v8 = vrot.slane %v4996_v51, 3  ;;  %v13003_v21 = vld [vmem:[%s13515_s4 + $0x45] ss:$0 sm:$0xff]  ;;  %14889 = vst [vmem:[#allocation47_spill] sm:$0xff] %v13015_v28 }
 0x412   : > { %v6058_v49 = vmul.f32 %v6557_v62, %v12889_v56  ;;  %v4319_v7 = vadd.f32 %v4301_v18, %v4242_v45  ;;  %v5035_v26 = vrot.slane %v4997_v44, 3  ;;  %v5150_v61 = vmul.f32 %v12994_v39, %v14847_v42  ;;  %14888 = vst [vmem:[#allocation33_spill] sm:$0xff] %v13003_v21 }
 0x413   : > { %v5111_v36 = vrot.slane %v5073_v24, 4  ;;  %v5112_v32 = vrot.slane %v5074_v34, 4  ;;  %v5151_v10 = vmul.f32 %v12994_v39, %v14849_v22  ;;  %v5227_v18 = vmul.f32 %v13003_v21, %v14847_v42 }
 0x414   : > { %v6060_v23 = vsel %vm6059_vm11, %v12889_v56, %v6058_v49  ;;  %v4396_v20 = vadd.f32 %v4378_v19, %v4319_v7  ;;  %v5228_v51 = vmul.f32 %v13003_v21, %v14849_v22  ;;  %v5304_v44 = vmul.f32 %v13015_v28, %v14847_v42  ;;  %v13026_v19 = vld [vmem:[%s13515_s4 + $0x49] ss:$0 sm:$0xff] }
 0x415   : > { %v6063_v24 = vsel %vm6061_vm12, %v6062_v40, %v6060_v23  ;;  %v5305_v34 = vmul.f32 %v13015_v28, %v14849_v22  ;;  %14890 = vst [vmem:[#allocation3_spill] sm:$0xff] %v13026_v19  ;;  %v5423_v7 = vmul.f32 %v13026_v19, %v12814_v17  ;;  %v5424_v49 = vmul.f32 %v13026_v19, %v12798_v12  ;;  %v13041_v28 = vld [vmem:[%s13515_s4 + $0x4a] ss:$0 sm:$0xff] }
 0x416   : > { %v6083_v45 = vmin.f32 %v6063_v24, 80.0  ;;  %v4473_v62 = vadd.f32 %v4455_v25, %v4396_v20  ;;  %v13033_v21 = vsel %vm867_vm5, %v4957_v63, %v4958_v31  ;;  %v13036_v56 = vsel %vm945_vm6, %v5034_v8, %v5035_v26 }
 0x417   : > { %v5188_v40 = vrot.slane %v5150_v61, 5  ;;  %v5189_v23 = vrot.slane %v5151_v10, 5  ;;  %v5500_v39 = vmul.f32 %v13041_v28, %v12814_v17  ;;  %v5501_v19 = vmul.f32 %v13041_v28, %v12798_v12 }
 0x418   : > { %v6096_v25 = vmul.f32 1.442695, %v6083_v45  ;;  %v4550_v63 = vadd.f32 %v12932_v4, %v4473_v62  ;;  %v5265_v31 = vrot.slane %v5227_v18, 6  ;;  %v5266_v20 = vrot.slane %v5228_v51, 6  ;;  %v13067_v51 = vld [vmem:[%s13515_s4 + $0x47] ss:$0 sm:$0xff] }
 0x419   : > { %v5342_v26 = vrot.slane %v5304_v44, 7  ;;  %v5343_v8 = vrot.slane %v5305_v34, 7  ;;  %v5461_v61 = vrot.slane %v5423_v7, 1  ;;  %v5462_v10 = vrot.slane %v5424_v49, 1  ;;  %v13079_v7 = vld [vmem:[%s13515_s4 + $0x48] ss:$0 sm:$0xff] }
 0x41a   : > { %6558 = vpow2.f32 %v6096_v25  ;;  %v4627_v15 = vadd.f32 %v12935_v27, %v4550_v63  ;;  %v13050_v42 = vsel %vm1023_vm7, %v5111_v36, %v5112_v32  ;;  %v13059_v4 = vmul.f32 %v13055_v60, %v12814_v17 }
 0x41b   : > { %v13062_v18 = vsel %vm385_vm0, %v5188_v40, %v5189_v23  ;;  %v13071_v27 = vmul.f32 %v13067_v51, %v14849_v22  ;;  %v5538_v36 = vrot.slane %v5500_v39, 2  ;;  %v5539_v32 = vrot.slane %v5501_v19, 2 }
 0x41c   : > { %v4704_v44 = vadd.f32 %v4686_v46, %v4627_v15  ;;  %v13074_v34 = vsel %vm1178_vm8, %v5265_v31, %v5266_v20  ;;  %v13083_v49 = vmul.f32 %v13079_v7, %v12814_v17  ;;  %v5578_v45 = vmul.f32 %v13055_v60, %v12798_v12  ;;  %v14891_v46 = vld [vmem:[#allocation115_spill] sm:$0xff]  ;;  %v14892_v31 = vld [vmem:[#allocation69_spill] sm:$0xff] }
 0x41d   : > { %v6139_v62 = vadd.f32 1e-20, %v6063_v24  ;;  %v13088_v39 = vsel %vm1256_vm9, %v5342_v26, %v5343_v8  ;;  %v13091_v15 = vsel %vm789_vm4, %v5461_v61, %v5462_v10  ;;  %v2150_v19 = vadd.f32 %v14891_v46, %v12818_v41 }
 0x41e   : > { %v4781_v40 = vadd.f32 %v4763_v57, %v4704_v44  ;;  %v5615_v23 = vrot.slane %v13059_v4, 3  ;;  %v2324_v25 = vmul.f32 %v12484_v11, %v14730_v33  ;;  %v2325_v63 = vmul.f32 %v12484_v11, %v14732_v47  ;;  %v13112_v11 = vld [vmem:[%s13515_s4 + $0x4c] ss:$0 sm:$0xff] }
 0x41f   : > { %v13101_v24 = vsel %vm867_vm5, %v5538_v36, %v5539_v32  ;;  %v2227_v20 = vadd.f32 %v14892_v31, %v2150_v19  ;;  %v2401_v26 = vmul.f32 %v12495_v50, %v14730_v33  ;;  %v2402_v41 = vmul.f32 %v12495_v50, %v14732_v47  ;;  %v14893_v36 = vld [vmem:[#allocation8_spill] sm:$0xff] }
 0x420   : > { %v4802_v57 = vadd.f32 %v12960_v35, %v4781_v40  ;;  %v5616_v8 = vrot.slane %v5578_v45, 3  ;;  %v2363_v61 = vrot.slane %v2324_v25, 6  ;;  %v2364_v10 = vrot.slane %v2325_v63, 6 }
 0x421   : > { %v13116_v4 = vmul.f32 %v13112_v11, %v12814_v17  ;;  %v2304_v32 = vadd.f32 %v14893_v36, %v2227_v20  ;;  %v2440_v33 = vrot.slane %v2401_v26, 7  ;;  %v2441_v44 = vrot.slane %v2402_v41, 7 }
 0x422   : > { %v4823_v50 = vadd.f32 %v12969_v37, %v4802_v57  ;;  %v13122_v35 = vmul.f32 %v13112_v11, %v12798_v12  ;;  %v2365_v45 = vsel %vm1178_vm8, %v2363_v61, %v2364_v10  ;;  %v2520_v46 = vmul.f32 %v12512_v59, %v14815_v14 }
 0x423   : > { %v2381_v19 = vadd.f32 %v2365_v45, %v2304_v32  ;;  %v2471_v40 = vmul.f32 %v12537_v3, %v14732_v47  ;;  %v2521_v25 = vmul.f32 %v12512_v59, %v14817_v43  ;;  %v2597_v63 = vmul.f32 %v12528_v30, %v14815_v14 }
 0x424   : > { %v6559_v37 = vpop.eup %6558  ;;  %v4900_v31 = vadd.f32 %v12988_v2, %v4823_v50  ;;  %v2442_v20 = vsel %vm1256_vm9, %v2440_v33, %v2441_v44  ;;  %v2559_v26 = vrot.slane %v2520_v46, 1  ;;  %v2598_v41 = vmul.f32 %v12528_v30, %v14817_v43  ;;  %v13153_v50 = vld [vmem:[%s13515_s4 + $0x4d] ss:$0 sm:$0xff] }
 0x425   : > { %v6107_v57 = vadd.f32 1e-20, %v6559_v37  ;;  %v2458_v61 = vadd.f32 %v2442_v20, %v2381_v19  ;;  %v2492_v47 = vmul.f32 %v12558_v58, %v14815_v14  ;;  %v2560_v3 = vrot.slane %v2521_v25, 1 }
 0x426   : > { %v4977_v59 = vadd.f32 %v13033_v21, %v4900_v31  ;;  %v2636_v10 = vrot.slane %v2597_v63, 2  ;;  %v2674_v36 = vmul.f32 %v12544_v5, %v14815_v14  ;;  %v2675_v2 = vmul.f32 %v12544_v5, %v14817_v43 }
 0x427   : > { %6560 = vrcp.f32 %v6107_v57  ;;  %v2479_v32 = vadd.f32 %v2471_v40, %v2458_v61  ;;  %v2637_v33 = vrot.slane %v2598_v41, 2  ;;  %v2751_v30 = vmul.f32 %v12565_v38, %v14815_v14 }
 0x428   : > { %6562 = vrcp.f32 %v6139_v62  ;;  %v5054_v44 = vadd.f32 %v13036_v56, %v4977_v59  ;;  %v2561_v58 = vsel %vm789_vm4, %v2559_v26, %v2560_v3  ;;  %v2752_v21 = vmul.f32 %v12565_v38, %v14817_v43 }
 0x429   : > { %v13157_v5 = vmul.f32 %v13153_v50, %v12814_v17  ;;  %v2500_v45 = vadd.f32 %v2492_v47, %v2479_v32  ;;  %v2828_v62 = vmul.f32 %v12584_v16, %v14815_v14  ;;  %v2829_v56 = vmul.f32 %v12584_v16, %v14817_v43 }
 0x42a   : > { %v5131_v46 = vadd.f32 %v13050_v42, %v5054_v44  ;;  %v13165_v38 = vsel %vm945_vm6, %v5615_v23, %v5616_v8  ;;  %v2713_v19 = vrot.slane %v2674_v36, 3  ;;  %v2714_v40 = vrot.slane %v2675_v2, 3 }
 0x42b   : > { %v2577_v25 = vadd.f32 %v2561_v58, %v2500_v45  ;;  %v2638_v63 = vsel %vm867_vm5, %v2636_v10, %v2637_v33  ;;  %v2790_v37 = vrot.slane %v2751_v30, 4  ;;  %v2791_v31 = vrot.slane %v2752_v21, 4 }
 0x42c   : > { %v5208_v20 = vadd.f32 %v13062_v18, %v5131_v46  ;;  %v2867_v26 = vrot.slane %v2828_v62, 5  ;;  %v2905_v41 = vmul.f32 %v12596_v0, %v14815_v14  ;;  %v2906_v16 = vmul.f32 %v12596_v0, %v14817_v43 }
 0x42d   : > { %v2654_v42 = vadd.f32 %v2638_v63, %v2577_v25  ;;  %v2868_v57 = vrot.slane %v2829_v56, 5  ;;  %v2982_v23 = vmul.f32 %v12606_v1, %v14815_v14  ;;  %v2983_v8 = vmul.f32 %v12606_v1, %v14817_v43  ;;  %v13187_v14 = vld [vmem:[%s13515_s4 + $0x4e] ss:$0 sm:$0xff] }
 0x42e   : > { %v5285_v61 = vadd.f32 %v13074_v34, %v5208_v20  ;;  %v5692_v47 = vrot.slane %v13116_v4, 4  ;;  %v5693_v18 = vrot.slane %v13122_v35, 4  ;;  %v2715_v3 = vsel %vm945_vm6, %v2713_v19, %v2714_v40 }
 0x42f   : > { %v5732_v59 = vmul.f32 %v13153_v50, %v12798_v12  ;;  %v5769_v0 = vrot.slane %v13157_v5, 5  ;;  %v13191_v1 = vmul.f32 %v13187_v14, %v12814_v17  ;;  %v2731_v34 = vadd.f32 %v2715_v3, %v2654_v42 }
 0x430   : > { %v5362_v4 = vadd.f32 %v13088_v39, %v5285_v61  ;;  %v2792_v35 = vsel %vm1023_vm7, %v2790_v37, %v2791_v31  ;;  %v2944_v10 = vrot.slane %v2905_v41, 6  ;;  %v2945_v36 = vrot.slane %v2906_v16, 6 }
 0x431   : > { %v6561_v2 = vpop.eup %6560  ;;  %v2808_v32 = vadd.f32 %v2792_v35, %v2731_v34  ;;  %v2869_v33 = vsel %vm385_vm0, %v2867_v26, %v2868_v57  ;;  %v3021_v30 = vrot.slane %v2982_v23, 7  ;;  %v3022_v44 = vrot.slane %v2983_v8, 7 }
 0x432   : > { %v6563_v58 = vpop.eup %6562  ;;  %v6131_v21 = vsub.f32 1.0, %v6561_v2  ;;  %v5383_v5 = vadd.f32 %v13071_v27, %v5362_v4  ;;  %v3101_v45 = vmul.f32 %v12627_v6, %v14828_v9  ;;  %v3102_v39 = vmul.f32 %v12627_v6, %v14752_v48  ;;  %v13208_v27 = vld [vmem:[%s13515_s4 + $0x4f] ss:$0 sm:$0xff] }
 0x433   : > { %v5694_v62 = vsel %vm1023_vm7, %v5692_v47, %v5693_v18  ;;  %v5770_v56 = vrot.slane %v5732_v59, 5  ;;  %v5809_v46 = vmul.f32 %v13187_v14, %v12798_v12  ;;  %v2885_v19 = vadd.f32 %v2869_v33, %v2808_v32 }
 0x434   : > { %v6153_v40 = vmul.f32 %v6563_v58, %v6131_v21  ;;  %v5404_v25 = vadd.f32 %v13083_v49, %v5383_v5  ;;  %v5885_v63 = vmul.f32 %v13208_v27, %v12814_v17  ;;  %v2946_v6 = vsel %vm1178_vm8, %v2944_v10, %v2945_v36  ;;  %v14895_v36 = vld [vmem:[#allocation100_spill] sm:$0xff] }
 0x435   : > { %v2962_v37 = vadd.f32 %v2946_v6, %v2885_v19  ;;  %v3023_v31 = vsel %vm1256_vm9, %v3021_v30, %v3022_v44  ;;  %v3178_v20 = vmul.f32 %v12654_v54, %v14828_v9  ;;  %v3179_v26 = vmul.f32 %v12654_v54, %v14752_v48  ;;  %v14897_v6 = vld [vmem:[#allocation81_spill] sm:$0xff] }
 0x436   : > { %v6163_v49 = vmul.f32 %v6153_v40, %v12783_v52  ;;  %v5481_v41 = vadd.f32 %v13091_v15, %v5404_v25  ;;  %v3140_v16 = vrot.slane %v3101_v45, 1  ;;  %v3141_v42 = vrot.slane %v3102_v39, 1  ;;  %v14896_v39 = vld [vmem:[#allocation118_spill] sm:$0xff] }
 0x437   : > { %v3039_v57 = vadd.f32 %v3023_v31, %v2962_v37  ;;  %v3052_v23 = vmul.f32 %v12646_v55, %v14817_v43  ;;  %v3255_v8 = vmul.f32 %v12664_v29, %v14828_v9  ;;  %v3256_v61 = vmul.f32 %v12664_v29, %v14752_v48  ;;  %v14894_v55 = vld [vmem:[#allocation108_spill] sm:$0xff] }
 0x438   : > { %6171 = vxpose.xlu0.b32.cont [6/8] (short) %v6163_v49, 128  ;;  %v5558_v47 = vadd.f32 %v13101_v24, %v5481_v41  ;;  %v5846_v54 = vrot.slane %v13191_v1, 6  ;;  %v5886_v52 = vmul.f32 %v13208_v27, %v12798_v12  ;;  %v3073_v15 = vmul.f32 %v12693_v53, %v14828_v9 }
 0x439   : > { %v3060_v18 = vadd.f32 %v3052_v23, %v3039_v57  ;;  %v3217_v3 = vrot.slane %v3178_v20, 2  ;;  %v3218_v43 = vrot.slane %v3179_v26, 2  ;;  %v3332_v59 = vmul.f32 %v14894_v55, %v14828_v9  ;;  %v13258_v26 = vld [vmem:[%s13515_s4 + $0x50] ss:$0 sm:$0xff] }
 0x43a   : > { %v5635_v34 = vadd.f32 %v13165_v38, %v5558_v47  ;;  %v5847_v29 = vrot.slane %v5809_v46, 6  ;;  %v3142_v4 = vsel %vm789_vm4, %v3140_v16, %v3141_v42  ;;  %v3333_v24 = vmul.f32 %v14894_v55, %v14752_v48  ;;  %v14899_v47 = vld [vmem:[#allocation88_spill] sm:$0xff]  ;;  %v14900_v55 = vld [vmem:[#allocation17_spill] sm:$0xff] }
 0x43b   : > { %v3081_v1 = vadd.f32 %v3073_v15, %v3060_v18  ;;  %v3294_v35 = vrot.slane %v3255_v8, 3  ;;  %v3295_v10 = vrot.slane %v3256_v61, 3  ;;  %v3409_v53 = vmul.f32 %v14895_v36, %v14828_v9  ;;  %v14898_v8 = vld [vmem:[#allocation101_spill] sm:$0xff] }
 0x43c   : > { %v5712_v2 = vadd.f32 %v5694_v62, %v5635_v34  ;;  %v5771_v32 = vsel %vm385_vm0, %v5769_v0, %v5770_v56  ;;  %v5923_v33 = vrot.slane %v5885_v63, 7  ;;  %v3410_v30 = vmul.f32 %v14895_v36, %v14752_v48 }
 0x43d   : > { %v5924_v38 = vrot.slane %v5886_v52, 7  ;;  %v3158_v44 = vadd.f32 %v3142_v4, %v3081_v1  ;;  %v3219_v58 = vsel %vm867_vm5, %v3217_v3, %v3218_v43  ;;  %v3371_v21 = vrot.slane %v3332_v59, 4 }
 0x43e   : > { %v5789_v5 = vadd.f32 %v5771_v32, %v5712_v2  ;;  %v3372_v45 = vrot.slane %v3333_v24, 4  ;;  %v3486_v46 = vmul.f32 %v14896_v39, %v14828_v9  ;;  %v3487_v19 = vmul.f32 %v14896_v39, %v14752_v48  ;;  %v14902_v2 = vld [vmem:[#allocation64_spill] sm:$0xff] }
 0x43f   : > { %v5848_v62 = vsel %vm1178_vm8, %v5846_v54, %v5847_v29  ;;  %v3235_v0 = vadd.f32 %v3219_v58, %v3158_v44  ;;  %v3296_v56 = vsel %vm945_vm6, %v3294_v35, %v3295_v10  ;;  %v3448_v40 = vrot.slane %v3409_v53, 5  ;;  %v14901_v10 = vld [vmem:[#allocation97_spill] sm:$0xff]  ;;  %v6801_v53 = vld [vmem:[%s13513_s2] ss:$0 sm:$0xff] }
 0x440   : > { %v5866_v25 = vadd.f32 %v5848_v62, %v5789_v5  ;;  %v3449_v63 = vrot.slane %v3410_v30, 5  ;;  %v3563_v37 = vmul.f32 %v14897_v6, %v14828_v9  ;;  %v3564_v31 = vmul.f32 %v14897_v6, %v14752_v48 }
 0x441   : > { %v5925_v20 = vsel %vm1256_vm9, %v5923_v33, %v5924_v38  ;;  %v5956_v49 = vmul.f32 %v13258_v26, %v12798_v12  ;;  %v3312_v41 = vadd.f32 %v3296_v56, %v3235_v0  ;;  %v3373_v42 = vsel %vm1023_vm7, %v3371_v21, %v3372_v45  ;;  %v14903_v33 = vld [vmem:[#allocation65_spill] sm:$0xff]  ;;  %v14905_v45 = vld [vmem:[#allocation15_spill] sm:$0xff]  ;;  %v14906_v0 = vld [vmem:[#allocation76_spill] sm:$0xff] }
 0x442   : > { %v5943_v16 = vadd.f32 %v5925_v20, %v5866_v25  ;;  %v3525_v57 = vrot.slane %v3486_v46, 6  ;;  %v3526_v23 = vrot.slane %v3487_v19, 6  ;;  %v3682_v61 = vmul.f32 %v14898_v8, %v14872_v13  ;;  %v14904_v21 = vld [vmem:[#allocation25_spill] sm:$0xff] }
 0x443   : > { %v3389_v9 = vadd.f32 %v3373_v42, %v3312_v41  ;;  %v3683_v54 = vmul.f32 %v14898_v8, %v14899_v47  ;;  %v3450_v15 = vsel %vm385_vm0, %v3448_v40, %v3449_v63  ;;  %v3602_v18 = vrot.slane %v3563_v37, 7  ;;  %v14908_v41 = vld [vmem:[#allocation86_spill] sm:$0xff] }
 0x444   : > { %v13267_v52 = vadd.f32 %v5956_v49, %v5943_v16  ;;  %v3603_v3 = vrot.slane %v3564_v31, 7  ;;  %v3759_v59 = vmul.f32 %v14900_v55, %v14872_v13  ;;  %v3527_v29 = vsel %vm1178_vm8, %v3525_v57, %v3526_v23  ;;  %v14907_v31 = vld [vmem:[#allocation96_spill] sm:$0xff]  ;;  %v14909_v23 = vld [vmem:[#allocation7_spill] sm:$0xff] }
 0x445   : > { %v3466_v43 = vadd.f32 %v3450_v15, %v3389_v9  ;;  %v3760_v4 = vmul.f32 %v14900_v55, %v14899_v47  ;;  %v3721_v1 = vrot.slane %v3682_v61, 1  ;;  %v3722_v35 = vrot.slane %v3683_v54, 1 }
 0x446   : > { %v5972_v34 = vmul.f32 %v13267_v52, %v13267_v52  ;;  %v3836_v36 = vmul.f32 %v14901_v10, %v14872_v13  ;;  %v652_v32 = vmul.f32 %v6801_v53, %v14902_v2  ;;  %v651_v30 = vmul.f32 %v6801_v53, %v14903_v33 }
 0x447   : > { %v3543_v24 = vadd.f32 %v3527_v29, %v3466_v43  ;;  %v3604_v44 = vsel %vm1256_vm9, %v3602_v18, %v3603_v3  ;;  %v3633_v5 = vmul.f32 %v14904_v21, %v14752_v48  ;;  %v3654_v39 = vmul.f32 %v14905_v45, %v14872_v13  ;;  %v6802_v3 = vld [vmem:[%s13514_s3] ss:$0 sm:$0xff] }
 0x448   : > { %v6010_v38 = vrot.slane %v5972_v34, 4  ;;  %v3798_v46 = vrot.slane %v3759_v59, 2  ;;  %v3837_v62 = vmul.f32 %v14901_v10, %v14899_v47  ;;  %v3913_v56 = vmul.f32 %v14906_v0, %v14872_v13 }
 0x449   : > { %v3620_v58 = vadd.f32 %v3604_v44, %v3543_v24  ;;  %v3914_v40 = vmul.f32 %v14906_v0, %v14899_v47  ;;  %v3723_v63 = vsel %vm789_vm4, %v3721_v1, %v3722_v35  ;;  %v3799_v6 = vrot.slane %v3760_v4, 2  ;;  %v14911_v44 = vld [vmem:[#allocation48_spill] sm:$0xff] }
 0x44a   : > { %v6011_v19 = vadd.f32 %v6010_v38, %v5972_v34  ;;  %v3875_v37 = vrot.slane %v3836_v36, 3  ;;  %v3990_v20 = vmul.f32 %v14907_v31, %v14872_v13  ;;  %v3991_v49 = vmul.f32 %v14907_v31, %v14899_v47 }
 0x44b   : > { %v3641_v25 = vadd.f32 %v3633_v5, %v3620_v58  ;;  %v4067_v16 = vmul.f32 %v14908_v41, %v14872_v13  ;;  %v4068_v57 = vmul.f32 %v14908_v41, %v14899_v47  ;;  %v4144_v9 = vmul.f32 %v14909_v23, %v14872_v13  ;;  %v14912_v5 = vld [vmem:[#allocation106_spill] sm:$0xff] }
 0x44c   : > { %v6012_v48 = vrot.slane %v6011_v19, 2  ;;  %v4145_v8 = vmul.f32 %v14909_v23, %v14899_v47  ;;  %v3876_v54 = vrot.slane %v3837_v62, 3  ;;  %v3952_v15 = vrot.slane %v3913_v56, 4  ;;  %v14916_v23 = vld [vmem:[#allocation123_spill] sm:$0xff] }
 0x44d   : > { %v3662_v42 = vadd.f32 %v3654_v39, %v3641_v25  ;;  %v3953_v18 = vrot.slane %v3914_v40, 4  ;;  %v691_v43 = vadd.f32 %v6802_v3, %v652_v32  ;;  %v3800_v59 = vsel %vm867_vm5, %v3798_v46, %v3799_v6  ;;  %v14910_v32 = vld [vmem:[#allocation26_spill] sm:$0xff] }
 0x44e   : > { %v6013_v61 = vadd.f32 %v6012_v48, %v6011_v19  ;;  %v4029_v29 = vrot.slane %v3990_v20, 5  ;;  %v4030_v4 = vrot.slane %v3991_v49, 5  ;;  %v4106_v24 = vrot.slane %v4067_v16, 6  ;;  %v14913_v46 = vld [vmem:[#allocation6_spill] sm:$0xff] }
 0x44f   : > { %v3739_v55 = vadd.f32 %v3723_v63, %v3662_v42  ;;  %v4107_v1 = vrot.slane %v4068_v57, 6  ;;  %v4183_v35 = vrot.slane %v4144_v9, 7  ;;  %v4184_v10 = vrot.slane %v4145_v8, 7  ;;  %v14914_v25 = vld [vmem:[#allocation122_spill] sm:$0xff] }
 0x450   : > { %v6014_v34 = vrot.slane %v6013_v61, 1  ;;  %v690_v36 = vadd.f32 %v6802_v3, %v651_v30  ;;  %v3877_v2 = vsel %vm945_vm6, %v3875_v37, %v3876_v54  ;;  %v3954_v33 = vsel %vm1023_vm7, %v3952_v15, %v3953_v18  ;;  %v14915_v37 = vld [vmem:[#allocation82_spill] sm:$0xff]  ;;  %v14917_v15 = vld [vmem:[#allocation28_spill] sm:$0xff] }
 0x451   : > { %v3816_v13 = vadd.f32 %v3800_v59, %v3739_v55  ;;  %v4263_v58 = vmul.f32 %v14911_v44, %v14910_v32  ;;  %v4264_v21 = vmul.f32 %v14911_v44, %v14849_v22  ;;  %v4340_v45 = vmul.f32 %v14912_v5, %v14910_v32 }
 0x452   : > { %v13312_v53 = vadd.f32 %v6014_v34, %v6013_v61  ;;  %v4031_v30 = vsel %vm385_vm0, %v4029_v29, %v4030_v4  ;;  %v4341_v39 = vmul.f32 %v14912_v5, %v14849_v22  ;;  %v4417_v19 = vmul.f32 %v14913_v46, %v14910_v32 }
 0x453   : > { %v3893_v38 = vadd.f32 %v3877_v2, %v3816_v13  ;;  %v4108_v0 = vsel %vm1178_vm8, %v4106_v24, %v4107_v1  ;;  %v4185_v56 = vsel %vm1256_vm9, %v4183_v35, %v4184_v10  ;;  %v4418_v40 = vmul.f32 %v14913_v46, %v14849_v22  ;;  %v14918_v1 = vld [vmem:[#allocation102_spill] sm:$0xff]  ;;  %v14919_v10 = vld [vmem:[#allocation79_spill] sm:$0xff] }
 0x454   : > { %6564 = vrsqrt.f32 %v13312_v53  ;;  %v4494_v63 = vmul.f32 %v14914_v25, %v14910_v32  ;;  %v4495_v6 = vmul.f32 %v14914_v25, %v14849_v22  ;;  %v4571_v48 = vmul.f32 %v14915_v37, %v14910_v32 }
 0x455   : > { %v3970_v62 = vadd.f32 %v3954_v33, %v3893_v38  ;;  %v4572_v31 = vmul.f32 %v14915_v37, %v14849_v22  ;;  %v4302_v49 = vrot.slane %v4263_v58, 1  ;;  %v4303_v41 = vrot.slane %v4264_v21, 1 }
 0x456   : > { %v4379_v16 = vrot.slane %v4340_v45, 2  ;;  %v4380_v42 = vrot.slane %v4341_v39, 2  ;;  %v4456_v57 = vrot.slane %v4417_v19, 3  ;;  %v4648_v9 = vmul.f32 %v14916_v23, %v14910_v32 }
 0x457   : > { %v4047_v20 = vadd.f32 %v4031_v30, %v3970_v62  ;;  %v4649_v8 = vmul.f32 %v14916_v23, %v14849_v22  ;;  %v4457_v54 = vrot.slane %v4418_v40, 3  ;;  %v4725_v18 = vmul.f32 %v14917_v15, %v14910_v32  ;;  %v14920_v62 = vld [vmem:[#allocation44_spill] sm:$0xff] }
 0x458   : > { %v4726_v3 = vmul.f32 %v14917_v15, %v14849_v22  ;;  %v4533_v55 = vrot.slane %v4494_v63, 4  ;;  %v4534_v59 = vrot.slane %v4495_v6, 4  ;;  %v4610_v34 = vrot.slane %v4571_v48, 5  ;;  %v14922_v48 = vld [vmem:[#allocation3_spill] sm:$0xff] }
 0x459   : > { %v4124_v61 = vadd.f32 %v4108_v0, %v4047_v20  ;;  %v4611_v29 = vrot.slane %v4572_v31, 5  ;;  %v13348_v4 = vmax.f32 %v691_v43, 0.0  ;;  %v13350_v24 = vmax.f32 %v690_v36, 0.0 }
 0x45a   : > { %v4214_v35 = vmul.f32 %v14918_v1, %v14899_v47  ;;  %v4235_v2 = vmul.f32 %v14919_v10, %v14910_v32  ;;  %v4304_v33 = vsel %vm789_vm4, %v4302_v49, %v4303_v41  ;;  %v4687_v38 = vrot.slane %v4648_v9, 6  ;;  %v14923_v49 = vld [vmem:[#allocation24_spill] sm:$0xff] }
 0x45b   : > { %v4201_v13 = vadd.f32 %v4185_v56, %v4124_v61  ;;  %v4688_v44 = vrot.slane %v4649_v8, 6  ;;  %v4381_v21 = vsel %vm867_vm5, %v4379_v16, %v4380_v42  ;;  %v4764_v5 = vrot.slane %v4725_v18, 7  ;;  %v14921_v56 = vld [vmem:[#allocation16_spill] sm:$0xff] }
 0x45c   : > { %v4765_v45 = vrot.slane %v4726_v3, 7  ;;  %vm6066_vm13 = vcmp.eq.f32.partialorder %v13312_v53, inf  ;;  %v4458_v36 = vsel %vm945_vm6, %v4456_v57, %v4457_v54  ;;  %v4535_v30 = vsel %vm1023_vm7, %v4533_v55, %v4534_v59 }
 0x45d   : > { %v4222_v58 = vadd.f32 %v4214_v35, %v4201_v13  ;;  %v4612_v47 = vsel %vm385_vm0, %v4610_v34, %v4611_v29  ;;  %vm6068_vm14 = vcmp.eq.f32.partialorder %v13312_v53, 0.0  ;;  %v6069_v39 = vand.u32 2147483648, %v13312_v53 }
 0x45e   : > { %v6565_v43 = vpop.eup %6564  ;;  %v4689_v19 = vsel %vm1178_vm8, %v4687_v38, %v4688_v44  ;;  %v4795_v0 = vmul.f32 %v14920_v62, %v14849_v22  ;;  %v13370_v40 = vmul.f32 %v14921_v56, %v12814_v17  ;;  %v4845_v25 = vmul.f32 %v14921_v56, %v12798_v12 }
 0x45f   : > { %v6065_v32 = vmul.f32 %v6565_v43, %v13312_v53  ;;  %v4243_v46 = vadd.f32 %v4235_v2, %v4222_v58  ;;  %v4766_v37 = vsel %vm1256_vm9, %v4764_v5, %v4765_v45  ;;  %v5425_v31 = vmul.f32 %v14922_v48, %v13350_v24 }
 0x460   : > { %v13380_v41 = vmul.f32 %v14923_v49, %v12814_v17  ;;  %v5426_v22 = vmul.f32 %v14922_v48, %v13348_v4  ;;  %v5502_v16 = vmul.f32 %v13041_v28, %v13350_v24  ;;  %v5503_v8 = vmul.f32 %v13041_v28, %v13348_v4 }
 0x461   : > { %v6067_v63 = vsel %vm6066_vm13, %v13312_v53, %v6065_v32  ;;  %v4320_v6 = vadd.f32 %v4304_v33, %v4243_v46  ;;  %v4922_v53 = vmul.f32 %v14923_v49, %v12798_v12  ;;  %v5464_v23 = vrot.slane %v5425_v31, 1 }
 0x462   : > { %v6070_v20 = vsel %vm6068_vm14, %v6069_v39, %v6067_v63  ;;  %v5465_v9 = vrot.slane %v5426_v22, 1  ;;  %v5541_v61 = vrot.slane %v5502_v16, 2  ;;  %v5579_v54 = vmul.f32 %v13055_v60, %v13350_v24  ;;  %v14926_v22 = vld [vmem:[#allocation99_spill] sm:$0xff] }
 0x463   : > { %v6084_v42 = vmin.f32 %v6070_v20, 80.0  ;;  %v4397_v57 = vadd.f32 %v4381_v21, %v4320_v6  ;;  %v4883_v3 = vrot.slane %v13370_v40, 1  ;;  %v5580_v55 = vmul.f32 %v13055_v60, %v13348_v4  ;;  %v14925_v6 = vld [vmem:[#allocation72_spill] sm:$0xff] }
 0x464   : > { %v13396_v59 = vsel %vm789_vm4, %v5464_v23, %v5465_v9  ;;  %v5542_v34 = vrot.slane %v5503_v8, 2  ;;  %v5618_v29 = vrot.slane %v5579_v54, 3  ;;  %v5656_v13 = vmul.f32 %v13112_v11, %v13350_v24 }
 0x465   : > { %v6098_v15 = vmul.f32 1.442695, %v6084_v42  ;;  %v4474_v18 = vadd.f32 %v4458_v36, %v4397_v57  ;;  %v5619_v1 = vrot.slane %v5580_v55, 3  ;;  %v5657_v35 = vmul.f32 %v13112_v11, %v13348_v4 }
 0x466   : > { %v13403_v10 = vsel %vm867_vm5, %v5541_v61, %v5542_v34  ;;  %v5695_v2 = vrot.slane %v5656_v13, 4  ;;  %v5733_v60 = vmul.f32 %v13153_v50, %v13350_v24  ;;  %v5734_v33 = vmul.f32 %v13153_v50, %v13348_v4 }
 0x467   : > { %6566 = vpow2.f32 %v6098_v15  ;;  %v4551_v28 = vadd.f32 %v4535_v30, %v4474_v18  ;;  %v13410_v44 = vsel %vm945_vm6, %v5618_v29, %v5619_v1  ;;  %v5696_v58 = vrot.slane %v5657_v35, 4  ;;  %v14928_v29 = vld [vmem:[#allocation33_spill] sm:$0xff] }
 0x468   : > { %v5810_v21 = vmul.f32 %v13187_v14, %v13350_v24  ;;  %v5772_v5 = vrot.slane %v5733_v60, 5  ;;  %v5773_v11 = vrot.slane %v5734_v33, 5  ;;  %v5811_v45 = vmul.f32 %v13187_v14, %v13348_v4  ;;  %v14924_v14 = vld [vmem:[#allocation10_spill] sm:$0xff]  ;;  %v14929_v60 = vld [vmem:[#allocation47_spill] sm:$0xff] }
 0x469   : > { %v4628_v38 = vadd.f32 %v4612_v47, %v4551_v28  ;;  %v5887_v43 = vmul.f32 %v13208_v27, %v13350_v24  ;;  %v13419_v30 = vsel %vm1023_vm7, %v5695_v2, %v5696_v58  ;;  %v5888_v47 = vmul.f32 %v13208_v27, %v13348_v4 }
 0x46a   : > { %v5849_v50 = vrot.slane %v5810_v21, 6  ;;  %v4884_v32 = vrot.slane %v4845_v25, 1  ;;  %v13424_v39 = vsel %vm385_vm0, %v5772_v5, %v5773_v11  ;;  %v5850_v46 = vrot.slane %v5811_v45, 6 }
 0x46b   : > { %v4705_v36 = vadd.f32 %v4689_v19, %v4628_v38  ;;  %v5926_v62 = vrot.slane %v5887_v43, 7  ;;  %v4998_v40 = vmul.f32 %v14924_v14, %v12814_v17  ;;  %v4999_v19 = vmul.f32 %v14924_v14, %v12798_v12 }
 0x46c   : > { %v5927_v63 = vrot.slane %v5888_v47, 7  ;;  %v4816_v48 = vmul.f32 %v14925_v6, %v12814_v17  ;;  %v4960_v31 = vrot.slane %v13380_v41, 2  ;;  %v5851_v27 = vsel %vm1178_vm8, %v5849_v50, %v5850_v46  ;;  %v14927_v41 = vld [vmem:[#allocation83_spill] sm:$0xff] }
 0x46d   : > { %v4782_v56 = vadd.f32 %v4766_v37, %v4705_v36  ;;  %v4961_v49 = vrot.slane %v4922_v53, 2  ;;  %v5075_v16 = vmul.f32 %v14926_v22, %v12814_v17  ;;  %v4885_v42 = vsel %vm789_vm4, %v4883_v3, %v4884_v32 }
 0x46e   : > { %v5928_v37 = vsel %vm1256_vm9, %v5926_v62, %v5927_v63  ;;  %v5076_v57 = vmul.f32 %v14926_v22, %v12798_v12  ;;  %v5037_v8 = vrot.slane %v4998_v40, 3  ;;  %v5038_v61 = vrot.slane %v4999_v19, 3 }
 0x46f   : > { %v4803_v25 = vadd.f32 %v4795_v0, %v4782_v56  ;;  %v5152_v54 = vmul.f32 %v14927_v41, %v12814_v17  ;;  %v6140_v0 = vadd.f32 1e-20, %v6070_v20  ;;  %v5153_v53 = vmul.f32 %v14927_v41, %v12798_v12 }
 0x470   : > { %v4962_v55 = vsel %vm867_vm5, %v4960_v31, %v4961_v49  ;;  %v5114_v34 = vrot.slane %v5075_v16, 4  ;;  %v5115_v3 = vrot.slane %v5076_v57, 4  ;;  %v5229_v13 = vmul.f32 %v14928_v29, %v12814_v17 }
 0x471   : > { %v6567_v23 = vpop.eup %6566  ;;  %v4824_v9 = vadd.f32 %v4816_v48, %v4803_v25  ;;  %v5230_v28 = vmul.f32 %v14928_v29, %v12798_v12  ;;  %v5039_v35 = vsel %vm945_vm6, %v5037_v8, %v5038_v61  ;;  %v5191_v2 = vrot.slane %v5152_v54, 5 }
 0x472   : > { %v6108_v15 = vadd.f32 1e-20, %v6567_v23  ;;  %v5192_v20 = vrot.slane %v5153_v53, 5  ;;  %v5306_v33 = vmul.f32 %v14929_v60, %v12814_v17  ;;  %v5307_v38 = vmul.f32 %v14929_v60, %v12798_v12 }
 0x473   : > { %v4901_v18 = vadd.f32 %v4885_v42, %v4824_v9  ;;  %v5116_v21 = vsel %vm1023_vm7, %v5114_v34, %v5115_v3  ;;  %v5268_v5 = vrot.slane %v5229_v13, 6  ;;  %v5269_v11 = vrot.slane %v5230_v28, 6 }
 0x474   : > { %6568 = vrcp.f32 %v6108_v15  ;;  %v5193_v43 = vsel %vm385_vm0, %v5191_v2, %v5192_v20  ;;  %v5345_v36 = vrot.slane %v5306_v33, 7  ;;  %v5346_v50 = vrot.slane %v5307_v38, 7 }
 0x475   : > { %v4978_v1 = vadd.f32 %v4962_v55, %v4901_v18  ;;  %6570 = vrcp.f32 %v6140_v0  ;;  %v5270_v32 = vsel %vm1178_vm8, %v5268_v5, %v5269_v11  ;;  %v5376_v40 = vmul.f32 %v13067_v51, %v12798_v12 }
 0x476   : > { %v5347_v17 = vsel %vm1256_vm9, %v5345_v36, %v5346_v50  ;;  %v5397_v48 = vmul.f32 %v13079_v7, %v13350_v24  ;;  %v5957_v23 = vmul.f32 %v13258_v26, %v13348_v4  ;;  %vm6198_vm5 = vcmask 523264  }
 0x477   : > { %v5055_v58 = vadd.f32 %v5039_v35, %v4978_v1 }
 0x479   : > { %v5132_v45 = vadd.f32 %v5116_v21, %v5055_v58 }
 0x47b   : > { %v5209_v47 = vadd.f32 %v5193_v43, %v5132_v45 }
 0x47d   : > { %v5286_v46 = vadd.f32 %v5270_v32, %v5209_v47 }
 0x47e   : > { %v6569_v62 = vpop.eup %6568 }
 0x47f   : > { %v6132_v56 = vsub.f32 1.0, %v6569_v62  ;;  %v5363_v14 = vadd.f32 %v5347_v17, %v5286_v46  ;;  %v6571_v19 = vpop.eup %6570 }
 0x481   : > { %v6155_v63 = vmul.f32 %v6571_v19, %v6132_v56  ;;  %v5384_v6 = vadd.f32 %v5376_v40, %v5363_v14 }
 0x483   : > { %v6164_v31 = vmul.f32 %v6155_v63, %v13267_v52  ;;  %v5405_v25 = vadd.f32 %v5397_v48, %v5384_v6 }
 0x485   : > { %6172 = vxpose.xlu0.b32.cont [7/8] (short) %v6164_v31, 128  ;;  %v5482_v49 = vadd.f32 %v13396_v59, %v5405_v25 }
 0x487   : > { %v5559_v22 = vadd.f32 %v13403_v10, %v5482_v49 }
 0x489   : > { %v5636_v16 = vadd.f32 %v13410_v44, %v5559_v22 }
 0x48b   : > { %v5713_v42 = vadd.f32 %v13419_v30, %v5636_v16 }
 0x48d   : > { %v5790_v12 = vadd.f32 %v13424_v39, %v5713_v42 }
 0x48f   : > { %v5867_v51 = vadd.f32 %v5851_v27, %v5790_v12 }
 0x491   : > { %v5944_v57 = vadd.f32 %v5928_v37, %v5867_v51 }
 0x493   : > { %v5965_v7 = vadd.f32 %v5957_v23, %v5944_v57 }
 0x495   : > { %v5973_v24 = vmul.f32 %v5965_v7, %v5965_v7 }
 0x497   : > { %v6016_v52 = vrot.slane %v5973_v24, 4 }
 0x499   : > { %v6017_v9 = vadd.f32 %v6016_v52, %v5973_v24 }
 0x49b   : > { %v6018_v8 = vrot.slane %v6017_v9, 2 }
 0x49d   : > { %v6019_v61 = vadd.f32 %v6018_v8, %v6017_v9 }
 0x49f   : > { %v6020_v59 = vrot.slane %v6019_v61, 1 }
 0x4a1   : > { %v6021_v41 = vadd.f32 %v6020_v59, %v6019_v61 }
 0x4a3   : > { %6572 = vrsqrt.f32 %v6021_v41  ;;  %vm6073_vm0 = vcmp.eq.f32.partialorder %v6021_v41, inf  ;;  %v6076_v30 = vand.u32 2147483648, %v6021_v41  ;;  %vm6075_vm4 = vcmp.eq.f32.partialorder %v6021_v41, 0.0 }
 0x4ad   : > { %v6573_v10 = vpop.eup %6572 }
 0x4ae   : > { %v6072_v44 = vmul.f32 %v6573_v10, %v6021_v41 }
 0x4b0   : > { %v6074_v54 = vsel %vm6073_vm0, %v6021_v41, %v6072_v44 }
 0x4b1   : > { %v6077_v39 = vsel %vm6075_vm4, %v6076_v30, %v6074_v54 }
 0x4b2   : > { %v6085_v27 = vmin.f32 %v6077_v39, 80.0  ;;  %v6141_v15 = vadd.f32 1e-20, %v6077_v39 }
 0x4b4   : > { %v6100_v37 = vmul.f32 1.442695, %v6085_v27 }
 0x4b6   : > { %6574 = vpow2.f32 %v6100_v37 }
 0x4c0   : > { %v6575_v26 = vpop.eup %6574 }
 0x4c1   : > { %v6109_v4 = vadd.f32 1e-20, %v6575_v26 }
 0x4c3   : > { %6576 = vrcp.f32 %v6109_v4 }
 0x4c4   : > { %6578 = vrcp.f32 %v6141_v15 }
 0x4cd   : > { %v6577_v0 = vpop.eup %6576 }
 0x4ce   : > { %v6133_v53 = vsub.f32 1.0, %v6577_v0  ;;  %v6579_v18 = vpop.eup %6578 }
 0x4d0   : > { %v6157_v55 = vmul.f32 %v6579_v18, %v6133_v53 }
 0x4d2   : > { %v6165_v34 = vmul.f32 %v6157_v55, %v5965_v7 }
 0x4d4   : > { %6173 = vxpose.xlu0.b32.end [8/8] (short) %v6165_v34, 128 }
 0x538   : > { %v6182_v3 = vpop.trf.xlu0 }
 0x539   : > { %6199 = vst.msk [vmem:[%s13474_s12] sm:$0xff] %vm6198_vm5, %v6182_v3 }
 0x53c   : > { %v6183_v29 = vpop.trf.xlu0 }
 0x53d   : > { %6200 = vst.msk [vmem:[%s13474_s12 + $0x8] sm:$0xff] %vm6198_vm5, %v6183_v29 }
 0x540   : > { %v6184_v13 = vpop.trf.xlu0 }
 0x541   : > { %6201 = vst.msk [vmem:[%s13474_s12 + $0x10] sm:$0xff] %vm6198_vm5, %v6184_v13 }
 0x544   : > { %v6185_v28 = vpop.trf.xlu0 }
 0x545   : > { %6202 = vst.msk [vmem:[%s13474_s12 + $0x18] sm:$0xff] %vm6198_vm5, %v6185_v28 }
 0x548   : > { %v6186_v1 = vpop.trf.xlu0 }
 0x549   : > { %6203 = vst.msk [vmem:[%s13474_s12 + $0x20] sm:$0xff] %vm6198_vm5, %v6186_v1 }
 0x54c   : > { %v6187_v35 = vpop.trf.xlu0 }
 0x54d   : > { %6204 = vst.msk [vmem:[%s13474_s12 + $0x28] sm:$0xff] %vm6198_vm5, %v6187_v35 }
 0x550   : > { %v6188_v2 = vpop.trf.xlu0 }
 0x551   : > { %6205 = vst.msk [vmem:[%s13474_s12 + $0x30] sm:$0xff] %vm6198_vm5, %v6188_v2 }
 0x554   : > { %v6189_v20 = vpop.trf.xlu0 }
 0x555   : > { %6206 = vst.msk [vmem:[%s13474_s12 + $0x38] sm:$0xff] %vm6198_vm5, %v6189_v20 }
 0x558   : > { %v6190_v60 = vpop.trf.xlu0 }
 0x559   : > { %6207 = vst.msk [vmem:[%s13474_s12 + $0x40] sm:$0xff] %vm6198_vm5, %v6190_v60 }
 0x55c   : > { %v6191_v33 = vpop.trf.xlu0 }
 0x55d   : > { %6208 = vst.msk [vmem:[%s13474_s12 + $0x48] sm:$0xff] %vm6198_vm5, %v6191_v33 }
 0x560   : > { %v6192_v38 = vpop.trf.xlu0 }
 0x561   : > { %6209 = vst.msk [vmem:[%s13474_s12 + $0x50] sm:$0xff] %vm6198_vm5, %v6192_v38 }
 0x564   : > { %v6193_v58 = vpop.trf.xlu0 }
 0x565   : > { %6210 = vst.msk [vmem:[%s13474_s12 + $0x58] sm:$0xff] %vm6198_vm5, %v6193_v58 }
 0x568   : > { %v6194_v21 = vpop.trf.xlu0 }
 0x569   : > { %6211 = vst.msk [vmem:[%s13474_s12 + $0x60] sm:$0xff] %vm6198_vm5, %v6194_v21 }
 0x56c   : > { %v6195_v5 = vpop.trf.xlu0 }
 0x56d   : > { %6212 = vst.msk [vmem:[%s13474_s12 + $0x68] sm:$0xff] %vm6198_vm5, %v6195_v5 }
 0x570   : > { %v6196_v11 = vpop.trf.xlu0 }
 0x571   : > { %6213 = vst.msk [vmem:[%s13474_s12 + $0x70] sm:$0xff] %vm6198_vm5, %v6196_v11 }
 0x574   : > { %v6197_v45 = vpop.trf.xlu0 }
 0x575   : > { %6214 = vst.msk [vmem:[%s13474_s12 + $0x78] sm:$0xff] %vm6198_vm5, %v6197_v45 }
 0x576 PF: > { %s16_s21 = sadd.s32 1, %s6809_s21  }
 0x577   : > { %p13_p4 = scmp.ge.s32.totalorder %s16_s21, 4  }
 0x579   :  { %15 = sbr.rel (!%p13_p4) target bundleno = 1 (0x1), region = 74 }

</bundles_post_ra>
